<compile_context>
chip_gen: v5e
topology: v5e:2x2
jax: 0.10.0
libtpu: 0.0.40
codegen_flags: <defaults>
</compile_context>

<pallas_src>
import functools

import jax
import jax.numpy as jnp
from jax.experimental import pallas as pl
from jax.experimental.pallas import tpu as pltpu


def _round_up(n, m):
    return ((n + m - 1) // m) * m


# ---------------------------------------------------------------------------
# Fused LeNet5 kernel (one grid step == one block of B images)
# ---------------------------------------------------------------------------

def _lenet5_kernel(x_ref, m1_ref, b1_ref, pw1_ref, m2_ref, b2_ref, pw2_ref,
                   w3_ref, b3_ref, wf1_ref, bf1_ref, wf2_ref, bf2_ref,
                   logits_ref, probs_ref):
    f32 = jnp.float32
    B = x_ref.shape[0]
    x = x_ref[...]                                                  # (B, 32, 32)

    # ---- conv1: 1 -> 6, 5x5 valid, + bias + tanh  (ONE MXU matmul) ----------
    # Patch rows are (b, h); the kj shift structure lives inside m1 (160, 168).
    p1 = jnp.concatenate(
        [x[:, ki:ki + 28, :].reshape(B * 28, 32) for ki in range(5)],
        axis=1)                                                     # (B*28, 160)
    a1 = jnp.tanh(jnp.dot(p1, m1_ref[...], preferred_element_type=f32)
                  + b1_ref[...])                                    # (B*28, 168) lanes=(oc,w)

    # ---- avgpool 2x2: H pair-add + block-diagonal 0.25 matmul along lanes ---
    a1h = a1.reshape(B * 14, 2, 168)
    a1p = jnp.dot(a1h[:, 0, :] + a1h[:, 1, :], pw1_ref[...],
                  preferred_element_type=f32)                       # (B*14, 84)
    a1p = a1p.reshape(B, 14, 84)

    # ---- conv2: 6 -> 16, 5x5 valid, + bias + tanh  (ONE MXU matmul) ---------
    p2 = jnp.concatenate(
        [a1p[:, ki:ki + 10, :].reshape(B * 10, 84) for ki in range(5)],
        axis=1)                                                     # (B*10, 420)
    a2 = jnp.tanh(jnp.dot(p2, m2_ref[...], preferred_element_type=f32)
                  + b2_ref[...])                                    # (B*10, 160) lanes=(oc,w)

    # ---- avgpool 2x2 ---------------------------------------------------------
    a2h = a2.reshape(B * 5, 2, 160)
    a2p = jnp.dot(a2h[:, 0, :] + a2h[:, 1, :], pw2_ref[...],
                  preferred_element_type=f32)                       # (B*5, 80) lanes=(ic,wi)
    a2p = a2p.reshape(B, 5, 80)

    # ---- conv3: 16 -> 120, 5x5 on the 5x5 map (1x1 out) == FC over 400 feats -
    feat = jnp.concatenate([a2p[:, hi, :] for hi in range(5)], axis=1)   # (B, 400)
    h3 = jnp.tanh(jnp.dot(feat, w3_ref[...], preferred_element_type=f32)
                  + b3_ref[...])                                    # (B, 120) == flatten(x,1)

    # ---- classifier: fc1 + tanh, fc2, softmax --------------------------------
    h4 = jnp.tanh(jnp.dot(h3, wf1_ref[...], preferred_element_type=f32)
                  + bf1_ref[...])                                   # (B, 84)
    # Final layer emitted transposed: (n_classes, B) -> batch on lanes, lane-dense output.
    logits_t = jax.lax.dot_general(
        wf2_ref[...], h4, (((1,), (1,)), ((), ())),
        preferred_element_type=f32) + bf2_ref[...]                  # (nc, B)

    logits_ref[0] = logits_t
    m = jnp.max(logits_t, axis=0, keepdims=True)
    e = jnp.exp(logits_t - m)
    probs_ref[0] = e / jnp.sum(e, axis=0, keepdims=True)


# ---------------------------------------------------------------------------
# Parameters (PyTorch layout) + one-time packing into kernel layout
# ---------------------------------------------------------------------------

def init_lenet5_params(key, n_classes):
    """PyTorch-layout parameters with nn.Conv2d / nn.Linear default uniform init."""
    ks = jax.random.split(key, 10)

    def u(k, shape, fan_in):
        bound = 1.0 / jnp.sqrt(jnp.float32(fan_in))
        return jax.random.uniform(k, shape, jnp.float32, -bound, bound)

    return dict(
        conv1_w=u(ks[0], (6, 1, 5, 5), 1 * 25),      conv1_b=u(ks[1], (6,), 1 * 25),
        conv2_w=u(ks[2], (16, 6, 5, 5), 6 * 25),     conv2_b=u(ks[3], (16,), 6 * 25),
        conv3_w=u(ks[4], (120, 16, 5, 5), 16 * 25),  conv3_b=u(ks[5], (120,), 16 * 25),
        fc1_w=u(ks[6], (84, 120), 120),              fc1_b=u(ks[7], (84,), 120),
        fc2_w=u(ks[8], (n_classes, 84), 84),         fc2_b=u(ks[9], (n_classes,), 84),
    )


def pack_params(p):
    """One-time layout plumbing (outside the traced forward).

    Convolutions become banded (Toeplitz-along-W) matrices so each conv is a single
    (B*Ho, K) @ (K, OC*Wo) matmul inside the kernel; pooling becomes a block-diagonal
    0.25-valued matrix along the (C*W) lane axis; biases become lane row-vectors.
    """
    f32 = jnp.float32
    w1 = p['conv1_w'].astype(f32)       # (6, 1, 5, 5)
    w2 = p['conv2_w'].astype(f32)       # (16, 6, 5, 5)
    w3 = p['conv3_w'].astype(f32)       # (120, 16, 5, 5)

    # conv1 Toeplitz: m1[ki*32 + wp, oc*28 + w] = w1[oc, 0, ki, wp - w]  (0 <= wp-w <= 4)
    wp_i = jnp.arange(32)[:, None]
    w_i = jnp.arange(28)[None, :]
    m1 = jnp.zeros((5, 32, 6, 28), f32)
    for kj in range(5):
        band = (wp_i - w_i == kj).astype(f32)                       # (32, 28)
        wk = jnp.transpose(w1[:, 0, :, kj], (1, 0))                 # (5, 6)  [ki, oc]
        m1 = m1 + band[None, :, None, :] * wk[:, None, :, None]
    m1 = m1.reshape(160, 168)

    # conv2 Toeplitz: m2[ki*84 + ic*14 + wp, oc*10 + w] = w2[oc, ic, ki, wp - w]
    wp_i2 = jnp.arange(14)[:, None]
    w_i2 = jnp.arange(10)[None, :]
    m2 = jnp.zeros((5, 6, 14, 16, 10), f32)
    for kj in range(5):
        band = (wp_i2 - w_i2 == kj).astype(f32)                     # (14, 10)
        wk = jnp.transpose(w2[:, :, :, kj], (2, 1, 0))              # (5, 6, 16) [ki, ic, oc]
        m2 = m2 + band[None, None, :, None, :] * wk[:, :, None, :, None]
    m2 = m2.reshape(420, 160)

    # Block-diagonal pooling matrices (0.25 absorbs the H pair-add done in the kernel).
    def pool_block(width):
        wi = jnp.arange(width)[:, None]
        qi = jnp.arange(width // 2)[None, :]
        return jnp.where(wi // 2 == qi, 0.25, 0.0).astype(f32)

    pw1 = jnp.kron(jnp.eye(6, dtype=f32), pool_block(28))           # (168, 84)
    pw2 = jnp.kron(jnp.eye(16, dtype=f32), pool_block(10))          # (160, 80)

    # conv3 as a (400, 120) FC with feature order (hi, ic, wi), matching the kernel concat.
    w3r = jnp.transpose(w3, (2, 1, 3, 0)).reshape(400, 120)

    return dict(
        m1=m1, b1=jnp.repeat(p['conv1_b'].astype(f32), 28).reshape(1, 168),
        m2=m2, b2=jnp.repeat(p['conv2_b'].astype(f32), 10).reshape(1, 160),
        pw1=pw1, pw2=pw2,
        w3=w3r, b3=p['conv3_b'].astype(f32).reshape(1, 120),
        wf1=jnp.transpose(p['fc1_w']).astype(f32),                  # (120, 84)
        bf1=p['fc1_b'].astype(f32).reshape(1, 84),
        wf2=p['fc2_w'].astype(f32),                                 # (n_classes, 84)
        bf2=p['fc2_b'].astype(f32).reshape(-1, 1),                  # (n_classes, 1)
    )


# ---------------------------------------------------------------------------
# Forward pass (single batch-blocked pallas_call)
# ---------------------------------------------------------------------------

def lenet5_forward(packed, x, block_b=128):
    """x: (N, 1, 32, 32) float32 -> (logits, probs), each (N, n_classes)."""
    N, C, H, W = x.shape
    assert C == 1 and H == 32 and W == 32, "LeNet5 expects (N, 1, 32, 32) inputs"
    nc = packed['wf2'].shape[0]

    # Batch block size: multiple of 8 (sublane tile); pad the batch to a whole
    # number of blocks (zero images are harmless and sliced off afterwards).
    B = _round_up(min(block_b, _round_up(N, 8)), 8)
    nb = -(-N // B)
    Npad = nb * B

    x3 = x.reshape(N, 32, 32).astype(jnp.float32)
    if Npad != N:
        x3 = jnp.pad(x3, ((0, Npad - N), (0, 0), (0, 0)))

    weights = (packed['m1'], packed['b1'], packed['pw1'],
               packed['m2'], packed['b2'], packed['pw2'],
               packed['w3'], packed['b3'],
               packed['wf1'], packed['bf1'],
               packed['wf2'], packed['bf2'])

    def const_spec(a):
        zeros = (0,) * a.ndim            # full-array block, resident across the grid
        return pl.BlockSpec(a.shape, lambda i, z=zeros: z)

    logits_t, probs_t = pl.pallas_call(
        _lenet5_kernel,
        grid=(nb,),
        out_shape=(jax.ShapeDtypeStruct((nb, nc, B), jnp.float32),
                   jax.ShapeDtypeStruct((nb, nc, B), jnp.float32)),
        in_specs=[pl.BlockSpec((B, 32, 32), lambda i: (i, 0, 0))]
                 + [const_spec(w) for w in weights],
        out_specs=(pl.BlockSpec((1, nc, B), lambda i: (i, 0, 0)),
                   pl.BlockSpec((1, nc, B), lambda i: (i, 0, 0))),
        compiler_params=pltpu.CompilerParams(
            dimension_semantics=("parallel",)),   # v7x: batch blocks split over both TCs
    )(x3, *weights)

    # (nb, n_classes, B) lane-dense tiles -> (N, n_classes)
    logits = jnp.transpose(logits_t, (0, 2, 1)).reshape(Npad, nc)[:N]
    probs = jnp.transpose(probs_t, (0, 2, 1)).reshape(Npad, nc)[:N]
    return logits, probs


# ---------------------------------------------------------------------------
# Pure-JAX reference (mirrors the PyTorch module) for a correctness check
# ---------------------------------------------------------------------------

def reference_forward(params, x):
    hi = jax.lax.Precision.HIGHEST

    def conv_tanh(h, w, b):
        y = jax.lax.conv_general_dilated(
            h, w, window_strides=(1, 1), padding='VALID',
            dimension_numbers=('NCHW', 'OIHW', 'NCHW'), precision=hi)
        return jnp.tanh(y + b.reshape(1, -1, 1, 1))

    def avgpool2(h):
        s = jax.lax.reduce_window(h, jnp.float32(0.0), jax.lax.add,
                                  (1, 1, 2, 2), (1, 1, 2, 2), 'VALID')
        return s * 0.25

    h = conv_tanh(x, params['conv1_w'], params['conv1_b'])
    h = avgpool2(h)
    h = conv_tanh(h, params['conv2_w'], params['conv2_b'])
    h = avgpool2(h)
    h = conv_tanh(h, params['conv3_w'], params['conv3_b'])
    h = h.reshape(h.shape[0], -1)
    h = jnp.tanh(jnp.dot(h, params['fc1_w'].T, precision=hi) + params['fc1_b'])
    logits = jnp.dot(h, params['fc2_w'].T, precision=hi) + params['fc2_b']
    return logits, jax.nn.softmax(logits, axis=1)


if __name__ == "__main__":
    n_classes = 10
    key = jax.random.PRNGKey(0)
    k_param, k_input = jax.random.split(key)

    params = init_lenet5_params(k_param, n_classes)
    packed = pack_params(params)        # one-time layout plumbing, outside the hot path

    # LeNet5 expects 1x32x32 inputs. N=20 with block_b=8 exercises a multi-step
    # batch-blocked grid (grid=(3,)) plus zero-padded tail handling.
    N = 20
    x = jax.random.normal(k_input, (N, 1, 32, 32), dtype=jnp.float32)

    fwd = jax.jit(functools.partial(lenet5_forward, block_b=8))
    logits, probs = fwd(packed, x)
    jax.block_until_ready((logits, probs))

    assert logits.shape == (N, n_classes) and probs.shape == (N, n_classes)
    assert bool(jnp.all(jnp.isfinite(logits))) and bool(jnp.all(jnp.isfinite(probs)))
    assert bool(jnp.allclose(jnp.sum(probs, axis=1), 1.0, atol=1e-5))

    ref_logits, ref_probs = reference_forward(params, x)
    assert bool(jnp.allclose(logits, ref_logits, atol=1e-2, rtol=1e-2)), \
        "logits mismatch vs. pure-JAX reference"
    assert bool(jnp.allclose(probs, ref_probs, atol=1e-2, rtol=1e-2)), \
        "probs mismatch vs. pure-JAX reference"

    print("KERNEL_OK")
</pallas_src>

<mosaic_0001>
module attributes {stable_mosaic.version = 11 : i64} {
  func.func @_lenet5_kernel(%arg0: i32, %arg1: memref<8x32x32xf32, #tpu.memory_space<vmem>>, %arg2: memref<160x168xf32, #tpu.memory_space<vmem>>, %arg3: memref<1x168xf32, #tpu.memory_space<vmem>>, %arg4: memref<168x84xf32, #tpu.memory_space<vmem>>, %arg5: memref<420x160xf32, #tpu.memory_space<vmem>>, %arg6: memref<1x160xf32, #tpu.memory_space<vmem>>, %arg7: memref<160x80xf32, #tpu.memory_space<vmem>>, %arg8: memref<400x120xf32, #tpu.memory_space<vmem>>, %arg9: memref<1x120xf32, #tpu.memory_space<vmem>>, %arg10: memref<120x84xf32, #tpu.memory_space<vmem>>, %arg11: memref<1x84xf32, #tpu.memory_space<vmem>>, %arg12: memref<10x84xf32, #tpu.memory_space<vmem>>, %arg13: memref<10x1xf32, #tpu.memory_space<vmem>>, %arg14: memref<1x10x8xf32, #tpu.memory_space<vmem>>, %arg15: memref<1x10x8xf32, #tpu.memory_space<vmem>>) attributes {dimension_semantics = [#tpu.dimension_semantics<parallel>], iteration_bounds = array<i64: 3>, scalar_prefetch = 0 : i64, scratch_operands = 0 : i64, tpu.core_type = #tpu.core_type<tc>, window_params = [{transform_indices = @transform_0, window_bounds = array<i64: 8, 32, 32>}, {pipeline_mode = #tpu.pipeline_mode<synchronous>, transform_indices = @transform_1, window_bounds = array<i64: 160, 168>}, {pipeline_mode = #tpu.pipeline_mode<synchronous>, transform_indices = @transform_2, window_bounds = array<i64: 1, 168>}, {pipeline_mode = #tpu.pipeline_mode<synchronous>, transform_indices = @transform_3, window_bounds = array<i64: 168, 84>}, {pipeline_mode = #tpu.pipeline_mode<synchronous>, transform_indices = @transform_4, window_bounds = array<i64: 420, 160>}, {pipeline_mode = #tpu.pipeline_mode<synchronous>, transform_indices = @transform_5, window_bounds = array<i64: 1, 160>}, {pipeline_mode = #tpu.pipeline_mode<synchronous>, transform_indices = @transform_6, window_bounds = array<i64: 160, 80>}, {pipeline_mode = #tpu.pipeline_mode<synchronous>, transform_indices = @transform_7, window_bounds = array<i64: 400, 120>}, {pipeline_mode = #tpu.pipeline_mode<synchronous>, transform_indices = @transform_8, window_bounds = array<i64: 1, 120>}, {pipeline_mode = #tpu.pipeline_mode<synchronous>, transform_indices = @transform_9, window_bounds = array<i64: 120, 84>}, {pipeline_mode = #tpu.pipeline_mode<synchronous>, transform_indices = @transform_10, window_bounds = array<i64: 1, 84>}, {pipeline_mode = #tpu.pipeline_mode<synchronous>, transform_indices = @transform_11, window_bounds = array<i64: 10, 84>}, {pipeline_mode = #tpu.pipeline_mode<synchronous>, transform_indices = @transform_12, window_bounds = array<i64: 10, 1>}, {transform_indices = @transform_13, window_bounds = array<i64: 1, 10, 8>}, {transform_indices = @transform_14, window_bounds = array<i64: 1, 10, 8>}]} {
    %c0 = arith.constant 0 : index
    %c0_0 = arith.constant 0 : index
    %c0_1 = arith.constant 0 : index
    %0 = vector.load %arg1[%c0, %c0_0, %c0_1] : memref<8x32x32xf32, #tpu.memory_space<vmem>>, vector<8x32x32xf32>
    %1 = vector.extract_strided_slice %0 {offsets = [0, 0, 0], sizes = [8, 28, 32], strides = [1, 1, 1]} : vector<8x32x32xf32> to vector<8x28x32xf32>
    %2 = vector.shape_cast %1 : vector<8x28x32xf32> to vector<224x32xf32>
    %3 = vector.extract_strided_slice %0 {offsets = [0, 1, 0], sizes = [8, 28, 32], strides = [1, 1, 1]} : vector<8x32x32xf32> to vector<8x28x32xf32>
    %4 = vector.shape_cast %3 : vector<8x28x32xf32> to vector<224x32xf32>
    %5 = vector.extract_strided_slice %0 {offsets = [0, 2, 0], sizes = [8, 28, 32], strides = [1, 1, 1]} : vector<8x32x32xf32> to vector<8x28x32xf32>
    %6 = vector.shape_cast %5 : vector<8x28x32xf32> to vector<224x32xf32>
    %7 = vector.extract_strided_slice %0 {offsets = [0, 3, 0], sizes = [8, 28, 32], strides = [1, 1, 1]} : vector<8x32x32xf32> to vector<8x28x32xf32>
    %8 = vector.shape_cast %7 : vector<8x28x32xf32> to vector<224x32xf32>
    %9 = vector.extract_strided_slice %0 {offsets = [0, 4, 0], sizes = [8, 28, 32], strides = [1, 1, 1]} : vector<8x32x32xf32> to vector<8x28x32xf32>
    %10 = vector.shape_cast %9 : vector<8x28x32xf32> to vector<224x32xf32>
    %11 = tpu.concatenate %2, %4, %6, %8, %10 in 1 : vector<224x32xf32>, vector<224x32xf32>, vector<224x32xf32>, vector<224x32xf32>, vector<224x32xf32> -> vector<224x160xf32>
    %c0_2 = arith.constant 0 : index
    %c0_3 = arith.constant 0 : index
    %12 = vector.load %arg2[%c0_2, %c0_3] : memref<160x168xf32, #tpu.memory_space<vmem>>, vector<160x168xf32>
    %cst = arith.constant dense<0.000000e+00> : vector<224x168xf32>
    %13 = tpu.matmul %11, %12, %cst {dimension_numbers = #tpu.dot_dimension_numbers<[1], [0], [0], [1], [0, 0, 1, 1], [], []>} : vector<224x160xf32>, vector<160x168xf32>, vector<224x168xf32> -> vector<224x168xf32>
    %c0_4 = arith.constant 0 : index
    %c0_5 = arith.constant 0 : index
    %14 = vector.load %arg3[%c0_4, %c0_5] : memref<1x168xf32, #tpu.memory_space<vmem>>, vector<1x168xf32>
    %15 = vector.broadcast %14 : vector<1x168xf32> to vector<224x168xf32>
    %16 = arith.addf %13, %15 : vector<224x168xf32>
    %17 = math.tanh %16 : vector<224x168xf32>
    %18 = vector.shape_cast %17 : vector<224x168xf32> to vector<112x2x168xf32>
    %19 = vector.extract_strided_slice %18 {offsets = [0, 0, 0], sizes = [112, 1, 168], strides = [1, 1, 1]} : vector<112x2x168xf32> to vector<112x1x168xf32>
    %20 = vector.shape_cast %19 : vector<112x1x168xf32> to vector<112x168xf32>
    %21 = vector.extract_strided_slice %18 {offsets = [0, 1, 0], sizes = [112, 1, 168], strides = [1, 1, 1]} : vector<112x2x168xf32> to vector<112x1x168xf32>
    %22 = vector.shape_cast %21 : vector<112x1x168xf32> to vector<112x168xf32>
    %23 = arith.addf %20, %22 : vector<112x168xf32>
    %c0_6 = arith.constant 0 : index
    %c0_7 = arith.constant 0 : index
    %24 = vector.load %arg4[%c0_6, %c0_7] : memref<168x84xf32, #tpu.memory_space<vmem>>, vector<168x84xf32>
    %cst_8 = arith.constant dense<0.000000e+00> : vector<112x84xf32>
    %25 = tpu.matmul %23, %24, %cst_8 {dimension_numbers = #tpu.dot_dimension_numbers<[1], [0], [0], [1], [0, 0, 1, 1], [], []>} : vector<112x168xf32>, vector<168x84xf32>, vector<112x84xf32> -> vector<112x84xf32>
    %26 = vector.shape_cast %25 : vector<112x84xf32> to vector<8x14x84xf32>
    %27 = vector.extract_strided_slice %26 {offsets = [0, 0, 0], sizes = [8, 10, 84], strides = [1, 1, 1]} : vector<8x14x84xf32> to vector<8x10x84xf32>
    %28 = vector.shape_cast %27 : vector<8x10x84xf32> to vector<80x84xf32>
    %29 = vector.extract_strided_slice %26 {offsets = [0, 1, 0], sizes = [8, 10, 84], strides = [1, 1, 1]} : vector<8x14x84xf32> to vector<8x10x84xf32>
    %30 = vector.shape_cast %29 : vector<8x10x84xf32> to vector<80x84xf32>
    %31 = vector.extract_strided_slice %26 {offsets = [0, 2, 0], sizes = [8, 10, 84], strides = [1, 1, 1]} : vector<8x14x84xf32> to vector<8x10x84xf32>
    %32 = vector.shape_cast %31 : vector<8x10x84xf32> to vector<80x84xf32>
    %33 = vector.extract_strided_slice %26 {offsets = [0, 3, 0], sizes = [8, 10, 84], strides = [1, 1, 1]} : vector<8x14x84xf32> to vector<8x10x84xf32>
    %34 = vector.shape_cast %33 : vector<8x10x84xf32> to vector<80x84xf32>
    %35 = vector.extract_strided_slice %26 {offsets = [0, 4, 0], sizes = [8, 10, 84], strides = [1, 1, 1]} : vector<8x14x84xf32> to vector<8x10x84xf32>
    %36 = vector.shape_cast %35 : vector<8x10x84xf32> to vector<80x84xf32>
    %37 = tpu.concatenate %28, %30, %32, %34, %36 in 1 : vector<80x84xf32>, vector<80x84xf32>, vector<80x84xf32>, vector<80x84xf32>, vector<80x84xf32> -> vector<80x420xf32>
    %c0_9 = arith.constant 0 : index
    %c0_10 = arith.constant 0 : index
    %38 = vector.load %arg5[%c0_9, %c0_10] : memref<420x160xf32, #tpu.memory_space<vmem>>, vector<420x160xf32>
    %cst_11 = arith.constant dense<0.000000e+00> : vector<80x160xf32>
    %39 = tpu.matmul %37, %38, %cst_11 {dimension_numbers = #tpu.dot_dimension_numbers<[1], [0], [0], [1], [0, 0, 1, 1], [], []>} : vector<80x420xf32>, vector<420x160xf32>, vector<80x160xf32> -> vector<80x160xf32>
    %c0_12 = arith.constant 0 : index
    %c0_13 = arith.constant 0 : index
    %40 = vector.load %arg6[%c0_12, %c0_13] : memref<1x160xf32, #tpu.memory_space<vmem>>, vector<1x160xf32>
    %41 = vector.broadcast %40 : vector<1x160xf32> to vector<80x160xf32>
    %42 = arith.addf %39, %41 : vector<80x160xf32>
    %43 = math.tanh %42 : vector<80x160xf32>
    %44 = vector.shape_cast %43 : vector<80x160xf32> to vector<40x2x160xf32>
    %45 = vector.extract_strided_slice %44 {offsets = [0, 0, 0], sizes = [40, 1, 160], strides = [1, 1, 1]} : vector<40x2x160xf32> to vector<40x1x160xf32>
    %46 = vector.shape_cast %45 : vector<40x1x160xf32> to vector<40x160xf32>
    %47 = vector.extract_strided_slice %44 {offsets = [0, 1, 0], sizes = [40, 1, 160], strides = [1, 1, 1]} : vector<40x2x160xf32> to vector<40x1x160xf32>
    %48 = vector.shape_cast %47 : vector<40x1x160xf32> to vector<40x160xf32>
    %49 = arith.addf %46, %48 : vector<40x160xf32>
    %c0_14 = arith.constant 0 : index
    %c0_15 = arith.constant 0 : index
    %50 = vector.load %arg7[%c0_14, %c0_15] : memref<160x80xf32, #tpu.memory_space<vmem>>, vector<160x80xf32>
    %cst_16 = arith.constant dense<0.000000e+00> : vector<40x80xf32>
    %51 = tpu.matmul %49, %50, %cst_16 {dimension_numbers = #tpu.dot_dimension_numbers<[1], [0], [0], [1], [0, 0, 1, 1], [], []>} : vector<40x160xf32>, vector<160x80xf32>, vector<40x80xf32> -> vector<40x80xf32>
    %52 = vector.shape_cast %51 : vector<40x80xf32> to vector<8x5x80xf32>
    %53 = vector.extract_strided_slice %52 {offsets = [0, 0, 0], sizes = [8, 1, 80], strides = [1, 1, 1]} : vector<8x5x80xf32> to vector<8x1x80xf32>
    %54 = vector.shape_cast %53 : vector<8x1x80xf32> to vector<8x80xf32>
    %55 = vector.extract_strided_slice %52 {offsets = [0, 1, 0], sizes = [8, 1, 80], strides = [1, 1, 1]} : vector<8x5x80xf32> to vector<8x1x80xf32>
    %56 = vector.shape_cast %55 : vector<8x1x80xf32> to vector<8x80xf32>
    %57 = vector.extract_strided_slice %52 {offsets = [0, 2, 0], sizes = [8, 1, 80], strides = [1, 1, 1]} : vector<8x5x80xf32> to vector<8x1x80xf32>
    %58 = vector.shape_cast %57 : vector<8x1x80xf32> to vector<8x80xf32>
    %59 = vector.extract_strided_slice %52 {offsets = [0, 3, 0], sizes = [8, 1, 80], strides = [1, 1, 1]} : vector<8x5x80xf32> to vector<8x1x80xf32>
    %60 = vector.shape_cast %59 : vector<8x1x80xf32> to vector<8x80xf32>
    %61 = vector.extract_strided_slice %52 {offsets = [0, 4, 0], sizes = [8, 1, 80], strides = [1, 1, 1]} : vector<8x5x80xf32> to vector<8x1x80xf32>
    %62 = vector.shape_cast %61 : vector<8x1x80xf32> to vector<8x80xf32>
    %63 = tpu.concatenate %54, %56, %58, %60, %62 in 1 : vector<8x80xf32>, vector<8x80xf32>, vector<8x80xf32>, vector<8x80xf32>, vector<8x80xf32> -> vector<8x400xf32>
    %c0_17 = arith.constant 0 : index
    %c0_18 = arith.constant 0 : index
    %64 = vector.load %arg8[%c0_17, %c0_18] : memref<400x120xf32, #tpu.memory_space<vmem>>, vector<400x120xf32>
    %cst_19 = arith.constant dense<0.000000e+00> : vector<8x120xf32>
    %65 = tpu.matmul %63, %64, %cst_19 {dimension_numbers = #tpu.dot_dimension_numbers<[1], [0], [0], [1], [0, 0, 1, 1], [], []>} : vector<8x400xf32>, vector<400x120xf32>, vector<8x120xf32> -> vector<8x120xf32>
    %c0_20 = arith.constant 0 : index
    %c0_21 = arith.constant 0 : index
    %66 = vector.load %arg9[%c0_20, %c0_21] : memref<1x120xf32, #tpu.memory_space<vmem>>, vector<1x120xf32>
    %67 = vector.broadcast %66 : vector<1x120xf32> to vector<8x120xf32>
    %68 = arith.addf %65, %67 : vector<8x120xf32>
    %69 = math.tanh %68 : vector<8x120xf32>
    %c0_22 = arith.constant 0 : index
    %c0_23 = arith.constant 0 : index
    %70 = vector.load %arg10[%c0_22, %c0_23] : memref<120x84xf32, #tpu.memory_space<vmem>>, vector<120x84xf32>
    %cst_24 = arith.constant dense<0.000000e+00> : vector<8x84xf32>
    %71 = tpu.matmul %69, %70, %cst_24 {dimension_numbers = #tpu.dot_dimension_numbers<[1], [0], [0], [1], [0, 0, 1, 1], [], []>} : vector<8x120xf32>, vector<120x84xf32>, vector<8x84xf32> -> vector<8x84xf32>
    %c0_25 = arith.constant 0 : index
    %c0_26 = arith.constant 0 : index
    %72 = vector.load %arg11[%c0_25, %c0_26] : memref<1x84xf32, #tpu.memory_space<vmem>>, vector<1x84xf32>
    %73 = vector.broadcast %72 : vector<1x84xf32> to vector<8x84xf32>
    %74 = arith.addf %71, %73 : vector<8x84xf32>
    %75 = math.tanh %74 : vector<8x84xf32>
    %c0_27 = arith.constant 0 : index
    %c0_28 = arith.constant 0 : index
    %76 = vector.load %arg12[%c0_27, %c0_28] : memref<10x84xf32, #tpu.memory_space<vmem>>, vector<10x84xf32>
    %cst_29 = arith.constant dense<0.000000e+00> : vector<10x8xf32>
    %77 = tpu.matmul %76, %75, %cst_29 {dimension_numbers = #tpu.dot_dimension_numbers<[1], [1], [0], [0], [0, 0, 1, 0], [], []>} : vector<10x84xf32>, vector<8x84xf32>, vector<10x8xf32> -> vector<10x8xf32>
    %c0_30 = arith.constant 0 : index
    %c0_31 = arith.constant 0 : index
    %78 = vector.load %arg13[%c0_30, %c0_31] : memref<10x1xf32, #tpu.memory_space<vmem>>, vector<10x1xf32>
    %79 = vector.broadcast %78 : vector<10x1xf32> to vector<10x8xf32>
    %80 = arith.addf %77, %79 : vector<10x8xf32>
    %c0_32 = arith.constant 0 : index
    %c0_33 = arith.constant 0 : index
    %c0_34 = arith.constant 0 : index
    %81 = vector.load %arg14[%c0_32, %c0_33, %c0_34] : memref<1x10x8xf32, #tpu.memory_space<vmem>>, vector<1x10x8xf32>
    %82 = vector.shape_cast %81 : vector<1x10x8xf32> to vector<10x8xf32>
    %83 = vector.shape_cast %80 : vector<10x8xf32> to vector<1x10x8xf32>
    tpu.vector_store %arg14[%c0_32, %c0_33, %c0_34], %83 {strides = array<i32>} : memref<1x10x8xf32, #tpu.memory_space<vmem>>, vector<1x10x8xf32>,
    %cst_35 = arith.constant dense<0xFF800000> : vector<8xf32>
    %84 = vector.multi_reduction <maximumf>, %80, %cst_35 [0] : vector<10x8xf32> to vector<8xf32>
    %85 = vector.shape_cast %84 : vector<8xf32> to vector<1x8xf32>
    %86 = vector.broadcast %85 : vector<1x8xf32> to vector<10x8xf32>
    %87 = arith.subf %80, %86 : vector<10x8xf32>
    %88 = math.exp %87 : vector<10x8xf32>
    %cst_36 = arith.constant dense<0.000000e+00> : vector<8xf32>
    %89 = vector.multi_reduction <add>, %88, %cst_36 [0] : vector<10x8xf32> to vector<8xf32>
    %90 = vector.shape_cast %89 : vector<8xf32> to vector<1x8xf32>
    %91 = vector.broadcast %90 : vector<1x8xf32> to vector<10x8xf32>
    %92 = arith.divf %88, %91 : vector<10x8xf32>
    %c0_37 = arith.constant 0 : index
    %c0_38 = arith.constant 0 : index
    %c0_39 = arith.constant 0 : index
    %93 = vector.load %arg15[%c0_37, %c0_38, %c0_39] : memref<1x10x8xf32, #tpu.memory_space<vmem>>, vector<1x10x8xf32>
    %94 = vector.shape_cast %93 : vector<1x10x8xf32> to vector<10x8xf32>
    %95 = vector.shape_cast %92 : vector<10x8xf32> to vector<1x10x8xf32>
    tpu.vector_store %arg15[%c0_37, %c0_38, %c0_39], %95 {strides = array<i32>} : memref<1x10x8xf32, #tpu.memory_space<vmem>>, vector<1x10x8xf32>,
    return
  }
  func.func @transform_0(%arg0: i32) -> (i32, i32, i32) {
    %c0_i32 = arith.constant 0 : i32
    %c0_i32_0 = arith.constant 0 : i32
    %c0_i32_1 = arith.constant 0 : i32
    return %arg0, %c0_i32, %c0_i32_0 : i32, i32, i32
  }
  func.func @transform_1(%arg0: i32) -> (i32, i32) {
    %c0_i32 = arith.constant 0 : i32
    %c0_i32_0 = arith.constant 0 : i32
    %c0_i32_1 = arith.constant 0 : i32
    return %c0_i32, %c0_i32_0 : i32, i32
  }
  func.func @transform_2(%arg0: i32) -> (i32, i32) {
    %c0_i32 = arith.constant 0 : i32
    %c0_i32_0 = arith.constant 0 : i32
    %c0_i32_1 = arith.constant 0 : i32
    return %c0_i32, %c0_i32_0 : i32, i32
  }
  func.func @transform_3(%arg0: i32) -> (i32, i32) {
    %c0_i32 = arith.constant 0 : i32
    %c0_i32_0 = arith.constant 0 : i32
    %c0_i32_1 = arith.constant 0 : i32
    return %c0_i32, %c0_i32_0 : i32, i32
  }
  func.func @transform_4(%arg0: i32) -> (i32, i32) {
    %c0_i32 = arith.constant 0 : i32
    %c0_i32_0 = arith.constant 0 : i32
    %c0_i32_1 = arith.constant 0 : i32
    return %c0_i32, %c0_i32_0 : i32, i32
  }
  func.func @transform_5(%arg0: i32) -> (i32, i32) {
    %c0_i32 = arith.constant 0 : i32
    %c0_i32_0 = arith.constant 0 : i32
    %c0_i32_1 = arith.constant 0 : i32
    return %c0_i32, %c0_i32_0 : i32, i32
  }
  func.func @transform_6(%arg0: i32) -> (i32, i32) {
    %c0_i32 = arith.constant 0 : i32
    %c0_i32_0 = arith.constant 0 : i32
    %c0_i32_1 = arith.constant 0 : i32
    return %c0_i32, %c0_i32_0 : i32, i32
  }
  func.func @transform_7(%arg0: i32) -> (i32, i32) {
    %c0_i32 = arith.constant 0 : i32
    %c0_i32_0 = arith.constant 0 : i32
    %c0_i32_1 = arith.constant 0 : i32
    return %c0_i32, %c0_i32_0 : i32, i32
  }
  func.func @transform_8(%arg0: i32) -> (i32, i32) {
    %c0_i32 = arith.constant 0 : i32
    %c0_i32_0 = arith.constant 0 : i32
    %c0_i32_1 = arith.constant 0 : i32
    return %c0_i32, %c0_i32_0 : i32, i32
  }
  func.func @transform_9(%arg0: i32) -> (i32, i32) {
    %c0_i32 = arith.constant 0 : i32
    %c0_i32_0 = arith.constant 0 : i32
    %c0_i32_1 = arith.constant 0 : i32
    return %c0_i32, %c0_i32_0 : i32, i32
  }
  func.func @transform_10(%arg0: i32) -> (i32, i32) {
    %c0_i32 = arith.constant 0 : i32
    %c0_i32_0 = arith.constant 0 : i32
    %c0_i32_1 = arith.constant 0 : i32
    return %c0_i32, %c0_i32_0 : i32, i32
  }
  func.func @transform_11(%arg0: i32) -> (i32, i32) {
    %c0_i32 = arith.constant 0 : i32
    %c0_i32_0 = arith.constant 0 : i32
    %c0_i32_1 = arith.constant 0 : i32
    return %c0_i32, %c0_i32_0 : i32, i32
  }
  func.func @transform_12(%arg0: i32) -> (i32, i32) {
    %c0_i32 = arith.constant 0 : i32
    %c0_i32_0 = arith.constant 0 : i32
    %c0_i32_1 = arith.constant 0 : i32
    return %c0_i32, %c0_i32_0 : i32, i32
  }
  func.func @transform_13(%arg0: i32) -> (i32, i32, i32) {
    %c0_i32 = arith.constant 0 : i32
    %c0_i32_0 = arith.constant 0 : i32
    %c0_i32_1 = arith.constant 0 : i32
    return %arg0, %c0_i32, %c0_i32_0 : i32, i32, i32
  }
  func.func @transform_14(%arg0: i32) -> (i32, i32, i32) {
    %c0_i32 = arith.constant 0 : i32
    %c0_i32_0 = arith.constant 0 : i32
    %c0_i32_1 = arith.constant 0 : i32
    return %arg0, %c0_i32, %c0_i32_0 : i32, i32, i32
  }
}

</mosaic_0001>

<bundles_post_ra>
// kernel: lenet5_forward.1
= control target key start
LH: loop header
LB: loop body
LE: loop exit
PB: predicated region body
PF: predicated region fallthrough
CT: control target
= control target key end

     0   :  { %s7257_s29 = smov 0   ;;  %s12319_s0 = inlined_call_operand.vmem [shape: f32[24,32,32], index: 0, kind: input, shape index: {}]   ;;  %s12320_s1 = inlined_call_operand.vmem [shape: f32[160,168], index: 1, kind: input, shape index: {}]   ;;  %s12321_s2 = inlined_call_operand.vmem [shape: f32[1,168], index: 2, kind: input, shape index: {}]   ;;  %s12322_s3 = inlined_call_operand.vmem [shape: f32[168,84], index: 3, kind: input, shape index: {}]   ;;  %s12323_s4 = inlined_call_operand.vmem [shape: f32[420,160], index: 4, kind: input, shape index: {}]   ;;  %s12324_s5 = inlined_call_operand.vmem [shape: f32[1,160], index: 5, kind: input, shape index: {}]   ;;  %s12325_s6 = inlined_call_operand.vmem [shape: f32[160,80], index: 6, kind: input, shape index: {}]   ;;  %s12326_s7 = inlined_call_operand.vmem [shape: f32[400,120], index: 7, kind: input, shape index: {}]   ;;  %s12327_s8 = inlined_call_operand.vmem [shape: f32[1,120], index: 8, kind: input, shape index: {}]   ;;  %s12328_s9 = inlined_call_operand.vmem [shape: f32[120,84], index: 9, kind: input, shape index: {}]   ;;  %s12329_s10 = inlined_call_operand.vmem [shape: f32[1,84], index: 10, kind: input, shape index: {}]   ;;  %s12330_s11 = inlined_call_operand.vmem [shape: f32[10,84], index: 11, kind: input, shape index: {}]   ;;  %s12331_s12 = inlined_call_operand.vmem [shape: f32[10,1], index: 12, kind: input, shape index: {}]   ;;  %s12332_s13 = inlined_call_operand.vmem [shape: f32[3,10,8], index: 13, kind: output, shape index: {0}]   ;;  %s12333_s14 = inlined_call_operand.vmem [shape: f32[3,10,8], index: 14, kind: output, shape index: {1}]  }
   0x1 LB: > { %s7263_s30 = sadd.s32 4294967295, %s7171_s29   ;;  %p6458_p0 = scmp.ge.s32.totalorder %s7171_s29, 1  ;;  %s7171_s29 = sphi %s7257_s29, %s25_s29  }
   0x2   : > { %p417_p1 = scmp.lt.s32.totalorder %s7171_s29, 4 }
   0x4   : > { %p418_p2 = pnand %p6458_p0, %p417_p1 }
   0x6   : > { %421 = sbr.rel (%p418_p2) target bundleno = 2488 (0x9b8), region = 72 }
   0xb   : > { %s6459_s15 = sshll.u32 %s7263_s30, 3  ;;  %vm582_vm0 = vcmask 1042432   ;;  %vm583_vm1 = vcmask 1046532   ;;  %s7173_s20 = smov 32   ;;  %vm761_vm3 = vcmask 1041408   ;;  %vm762_vm4 = vcmask 1045508  }
   0xc   : > { %p470_p3 = scmp.lt.s32.totalorder %s6459_s15, 23  ;;  %vm7653_vm2 = vmor %vm582_vm0, %vm583_vm1  ;;  %s7174_s21 = smov 64   ;;  %vm940_vm6 = vcmask 1040384   ;;  %vm941_vm7 = vcmask 1044484   ;;  %vm12445_vm9 = vcmask 261120   ;;  %vm12409_vm10 = vcmask 523264  }
   0xd   : > { %vm7917_vm5 = vmor %vm761_vm3, %vm762_vm4  ;;  %s7175_s22 = smov 96   ;;  %vm2007_vm11 = vcmask 785408   ;;  %vm2683_vm12 = vcmask 1043458   ;;  %vm2688_vm13 = vcmask 1045504   ;;  %vm3797_vm14 = vcmask 1041409   ;;  %s7177_s26 = smov 40  }
   0xe   : > { %s12944_s15 = smov (!%p470_p3, %s6459_s15), 23  ;;  %vm8202_vm8 = vmor %vm940_vm6, %vm941_vm7  ;;  %vm3799_vm15 = vcmask 1042434   ;;  %vm3801_vm0 = vcmask 1043459   ;;  %vm3804_vm1 = vcmask 1045509   ;;  %s7178_s28 = smov 124  }
   0xf   : > { %s6754_s16 = sshll.u32 %s12944_s15, 5  ;;  %p476_p4 = scmp.lt.s32.totalorder %s7263_s30, 2 }
  0x10   : > { %s7271_s19 = scalar_lea.vmem %s12319_s0, %s6754_s16  ;;  %s7176_s16 = smov 84  }
  0x11   : > { %v7274_v0 = vld [vmem:[%s7271_s19] sm:$0xff]  ;;  %v7277_v1 = vld [vmem:[%s7271_s19 + $0x8] sm:$0xff]  ;;  %v7280_v2 = vld [vmem:[%s7271_s19 + $0x10] sm:$0xff]  ;;  %s12946_s30 = smov (!%p476_p4, %s7263_s30), 2 }
  0x12   : > { %1119 = vst.sshfl [vmem:[#allocation1] sm:$0xff pattern:$0x75316420] %v7274_v0  ;;  %v7286_v3 = vld [vmem:[%s7271_s19 + $0x20] sm:$0xff]  ;;  %v7289_v4 = vld [vmem:[%s7271_s19 + $0x28] sm:$0xff]  ;;  %v7312_v13 = vld [vmem:[%s7271_s19 + $0x30] sm:$0xff] }
  0x13   : > { %1120 = vst.sshfl [vmem:[#allocation1 + $0x10] sm:$0xff pattern:$0x75316420] %v7277_v1  ;;  %v7300_v8 = vld [vmem:[%s7271_s19 + $0x40] sm:$0xff]  ;;  %v7303_v9 = vld [vmem:[%s7271_s19 + $0x48] sm:$0xff]  ;;  %v7317_v14 = vld [vmem:[%s7271_s19 + $0x18] sm:$0xff] }
  0x14   : > { %1121 = vst.sshfl [vmem:[#allocation1 + $0x20] sm:$0xff pattern:$0x75316420] %v7280_v2  ;;  %v7326_v17 = vld [vmem:[%s7271_s19 + $0x60] sm:$0xff]  ;;  %v7329_v18 = vld [vmem:[%s7271_s19 + $0x68] sm:$0xff]  ;;  %v7339_v22 = vld [vmem:[%s7271_s19 + $0x38] sm:$0xff] }
  0x15   : > { %12446 = vst [vmem:[#allocation2_spill] sm:$0xff] %v7289_v4  ;;  %v7344_v24 = vld [vmem:[%s7271_s19 + $0x50] sm:$0xff]  ;;  %v7356_v28 = vld [vmem:[%s7271_s19 + $0x80] sm:$0xff]  ;;  %v7359_v29 = vld [vmem:[%s7271_s19 + $0x88] sm:$0xff]  ;;  %s6755_s24 = sshll.u32 %s12946_s30, 4 }
  0x16   : > { %12450 = vst [vmem:[#allocation6_spill] sm:$0xff] %v7300_v8  ;;  %v7368_v33 = vld [vmem:[%s7271_s19 + $0x58] sm:$0xff]  ;;  %v7374_v35 = vld [vmem:[%s7271_s19 + $0x70] sm:$0xff]  ;;  %v7386_v39 = vld [vmem:[%s7271_s19 + $0xa0] sm:$0xff]  ;;  %s480_s27 = scalar_lea.vmem %s12332_s13, %s6755_s24  ;;  %s485_s18 = scalar_lea.vmem %s12333_s14, %s6755_s24 }
  0x17   : > { %12454 = vst [vmem:[#allocation10_spill] sm:$0xff] %v7312_v13  ;;  %v7389_v40 = vld [vmem:[%s7271_s19 + $0xa8] sm:$0xff]  ;;  %v7394_v42 = vld [vmem:[%s7271_s19 + $0x78] sm:$0xff]  ;;  %v7404_v46 = vld [vmem:[%s7271_s19 + $0x90] sm:$0xff] }
  0x18   : > { %12455 = vst [vmem:[#allocation11_spill] sm:$0xff] %v7317_v14  ;;  %v7416_v50 = vld [vmem:[%s7271_s19 + $0xc0] sm:$0xff]  ;;  %v7419_v51 = vld [vmem:[%s7271_s19 + $0xc8] sm:$0xff]  ;;  %v7424_v53 = vld [vmem:[%s7271_s19 + $0x98] sm:$0xff] }
  0x19   : > { %v7291_v5 = vld [vmem:[#allocation1 + $0x1] ss:$2 sm:$0xff]  ;;  %1122 = vst.sshfl [vmem:[#allocation1 + $0x30] sm:$0xff pattern:$0x75316420] %v7317_v14  ;;  %v7434_v57 = vld [vmem:[%s7271_s19 + $0xb0] sm:$0xff] }
  0x1a   : > { %12447 = vst [vmem:[#allocation3_spill] sm:$0xff] %v7291_v5  ;;  %v7293_v6 = vld [vmem:[#allocation1 + $0x10] ss:$2 sm:$0xff]  ;;  %v7295_v7 = vld [vmem:[#allocation1 + $0x11] ss:$2 sm:$0xff]  ;;  %v7446_v61 = vld [vmem:[%s7271_s19 + $0xe0] sm:$0xff] }
  0x1b   : > { %12448 = vst [vmem:[#allocation4_spill] sm:$0xff] %v7293_v6  ;;  %v7319_v15 = vld [vmem:[#allocation1 + $0x20] ss:$2 sm:$0xff]  ;;  %v7322_v16 = vld [vmem:[#allocation1 + $0x21] ss:$2 sm:$0xff]  ;;  %v618_v5 = vrot.slane %v7312_v13, 5 }
  0x1c   : > { %12449 = vst [vmem:[#allocation5_spill] sm:$0xff] %v7295_v7  ;;  %v7449_v62 = vld [vmem:[%s7271_s19 + $0xe8] sm:$0xff] }
  0x1d   : > { %1137 = vst.sshfl [vmem:[#allocation1] sm:$0xff pattern:$0x75316420] %v7286_v3 }
  0x1e   : > { %1138 = vst.sshfl [vmem:[#allocation1 + $0x10] sm:$0xff pattern:$0x75316420] %v7289_v4 }
  0x1f   : > { %12456 = vst [vmem:[#allocation12_spill] sm:$0xff] %v7319_v15 }
  0x20   : > { %12457 = vst [vmem:[#allocation13_spill] sm:$0xff] %v7322_v16  ;;  %v7341_v23 = vld [vmem:[#allocation1 + $0x30] ss:$2 sm:$0xff]  ;;  %v7347_v25 = vld [vmem:[#allocation1 + $0x31] ss:$2 sm:$0xff] }
  0x21   : > { %1139 = vst.sshfl [vmem:[#allocation1 + $0x20] sm:$0xff pattern:$0x75316420] %v7312_v13 }
  0x22   : > { %12458 = vst [vmem:[#allocation14_spill] sm:$0xff] %v7329_v18 }
  0x23   : > { %12462 = vst [vmem:[#allocation18_spill] sm:$0xff] %v7341_v23 }
  0x24   : > { %v7305_v10 = vld [vmem:[#allocation1 + $0x1] ss:$2 sm:$0xff]  ;;  %12463 = vst [vmem:[#allocation19_spill] sm:$0xff] %v7344_v24 }
  0x25   : > { %12451 = vst [vmem:[#allocation7_spill] sm:$0xff] %v7305_v10  ;;  %v7307_v11 = vld [vmem:[#allocation1 + $0x10] ss:$2 sm:$0xff]  ;;  %v7309_v12 = vld [vmem:[#allocation1 + $0x11] ss:$2 sm:$0xff]  ;;  %v7607_v10 = vrot.slane %v7434_v57, 4 }
  0x26   : > { %12452 = vst [vmem:[#allocation8_spill] sm:$0xff] %v7307_v11 }
  0x27   : > { %12453 = vst [vmem:[#allocation9_spill] sm:$0xff] %v7309_v12  ;;  %v12340_v12 = vrot.slane %v7280_v2, 5 }
  0x28   : > { %1148 = vst.sshfl [vmem:[#allocation1] sm:$0xff pattern:$0x75316420] %v7300_v8  ;;  %v7350_v26 = vld [vmem:[#allocation1 + $0x20] ss:$2 sm:$0xff] }
  0x29   : > { %1149 = vst.sshfl [vmem:[#allocation1 + $0x10] sm:$0xff pattern:$0x75316420] %v7303_v9  ;;  %v7352_v27 = vld [vmem:[#allocation1 + $0x21] ss:$2 sm:$0xff] }
  0x2a   : > { %12464 = vst [vmem:[#allocation20_spill] sm:$0xff] %v7347_v25 }
  0x2b   : > { %1140 = vst.sshfl [vmem:[#allocation1 + $0x30] sm:$0xff pattern:$0x75316420] %v7339_v22 }
  0x2c   : > { %12465 = vst [vmem:[#allocation21_spill] sm:$0xff] %v7350_v26 }
  0x2d   : > { %12466 = vst [vmem:[#allocation22_spill] sm:$0xff] %v7352_v27  ;;  %v7651_v27 = vrot.slane %v7386_v39, 4 }
  0x2e   : > { %1150 = vst.sshfl [vmem:[#allocation1 + $0x20] sm:$0xff pattern:$0x75316420] %v7344_v24 }
  0x2f   : > { %v7331_v19 = vld [vmem:[#allocation1 + $0x1] ss:$2 sm:$0xff]  ;;  %12467 = vst [vmem:[#allocation23_spill] sm:$0xff] %v7356_v28 }
  0x30   : > { %12459 = vst [vmem:[#allocation15_spill] sm:$0xff] %v7331_v19  ;;  %v7333_v20 = vld [vmem:[#allocation1 + $0x10] ss:$2 sm:$0xff]  ;;  %v7335_v21 = vld [vmem:[#allocation1 + $0x11] ss:$2 sm:$0xff] }
  0x31   : > { %12460 = vst [vmem:[#allocation16_spill] sm:$0xff] %v7333_v20  ;;  %v7563_v20 = vrot.slane %v7329_v18, 4 }
  0x32   : > { %12461 = vst [vmem:[#allocation17_spill] sm:$0xff] %v7335_v21  ;;  %v7371_v34 = vld [vmem:[#allocation1 + $0x30] ss:$2 sm:$0xff]  ;;  %v7377_v36 = vld [vmem:[#allocation1 + $0x31] ss:$2 sm:$0xff]  ;;  %v6466_v21 = vrot.slane %v7274_v0, 9 }
  0x33   : > { %1159 = vst.sshfl [vmem:[#allocation1] sm:$0xff pattern:$0x75316420] %v7326_v17 }
  0x34   : > { %1160 = vst.sshfl [vmem:[#allocation1 + $0x10] sm:$0xff pattern:$0x75316420] %v7329_v18 }
  0x35   : > { %12468 = vst [vmem:[#allocation24_spill] sm:$0xff] %v7359_v29  ;;  %v7380_v37 = vld [vmem:[#allocation1 + $0x20] ss:$2 sm:$0xff]  ;;  %v7382_v38 = vld [vmem:[#allocation1 + $0x21] ss:$2 sm:$0xff] }
  0x36   : > { %12472 = vst [vmem:[#allocation28_spill] sm:$0xff] %v7371_v34 }
  0x37   : > { %12473 = vst [vmem:[#allocation29_spill] sm:$0xff] %v7374_v35 }
  0x38   : > { %12474 = vst [vmem:[#allocation30_spill] sm:$0xff] %v7377_v36  ;;  %v7589_v36 = vrot.slane %v7404_v46, 4 }
  0x39   : > { %1151 = vst.sshfl [vmem:[#allocation1 + $0x30] sm:$0xff pattern:$0x75316420] %v7368_v33 }
  0x3a   : > { %v7361_v30 = vld [vmem:[#allocation1 + $0x1] ss:$2 sm:$0xff]  ;;  %12475 = vst [vmem:[#allocation31_spill] sm:$0xff] %v7380_v37 }
  0x3b   : > { %12469 = vst [vmem:[#allocation25_spill] sm:$0xff] %v7361_v30  ;;  %v7363_v31 = vld [vmem:[#allocation1 + $0x10] ss:$2 sm:$0xff]  ;;  %v7365_v32 = vld [vmem:[#allocation1 + $0x11] ss:$2 sm:$0xff]  ;;  %v7542_v30 = vrot.slane %v7344_v24, 4 }
  0x3c   : > { %12470 = vst [vmem:[#allocation26_spill] sm:$0xff] %v7363_v31 }
  0x3d   : > { %12471 = vst [vmem:[#allocation27_spill] sm:$0xff] %v7365_v32  ;;  %v7511_v32 = vrot.slane %v7289_v4, 4 }
  0x3e   : > { %1170 = vst.sshfl [vmem:[#allocation1] sm:$0xff pattern:$0x75316420] %v7356_v28 }
  0x3f   : > { %1171 = vst.sshfl [vmem:[#allocation1 + $0x10] sm:$0xff pattern:$0x75316420] %v7359_v29 }
  0x40   : > { %12476 = vst [vmem:[#allocation32_spill] sm:$0xff] %v7382_v38  ;;  %v7401_v45 = vld [vmem:[#allocation1 + $0x30] ss:$2 sm:$0xff]  ;;  %v7407_v47 = vld [vmem:[#allocation1 + $0x31] ss:$2 sm:$0xff]  ;;  %v590_v38 = vrot.slane %v7277_v1, 5 }
  0x41   : > { %1161 = vst.sshfl [vmem:[#allocation1 + $0x20] sm:$0xff pattern:$0x75316420] %v7374_v35 }
  0x42   : > { %12477 = vst [vmem:[#allocation33_spill] sm:$0xff] %v7386_v39  ;;  %v592_v15 = vrot.slane %v590_v38, 4 }
  0x43   : > { %12478 = vst [vmem:[#allocation34_spill] sm:$0xff] %v7389_v40 }
  0x44   : > { %12480 = vst [vmem:[#allocation36_spill] sm:$0xff] %v7394_v42 }
  0x45   : > { %v7391_v41 = vld [vmem:[#allocation1 + $0x1] ss:$2 sm:$0xff]  ;;  %12483 = vst [vmem:[#allocation39_spill] sm:$0xff] %v7401_v45 }
  0x46   : > { %12479 = vst [vmem:[#allocation35_spill] sm:$0xff] %v7391_v41  ;;  %v7396_v43 = vld [vmem:[#allocation1 + $0x10] ss:$2 sm:$0xff]  ;;  %v7398_v44 = vld [vmem:[#allocation1 + $0x11] ss:$2 sm:$0xff] }
  0x47   : > { %12481 = vst [vmem:[#allocation37_spill] sm:$0xff] %v7396_v43  ;;  %v7483_v43 = vld [vmem:[%s7271_s19 + $0xd8] sm:$0xff] }
  0x48   : > { %12482 = vst [vmem:[#allocation38_spill] sm:$0xff] %v7398_v44  ;;  %v7410_v48 = vld [vmem:[#allocation1 + $0x20] ss:$2 sm:$0xff]  ;;  %v7412_v49 = vld [vmem:[#allocation1 + $0x21] ss:$2 sm:$0xff] }
  0x49   : > { %1181 = vst.sshfl [vmem:[#allocation1] sm:$0xff pattern:$0x75316420] %v7386_v39 }
  0x4a   : > { %1182 = vst.sshfl [vmem:[#allocation1 + $0x10] sm:$0xff pattern:$0x75316420] %v7389_v40 }
  0x4b   : > { %12484 = vst [vmem:[#allocation40_spill] sm:$0xff] %v7407_v47 }
  0x4c   : > { %1162 = vst.sshfl [vmem:[#allocation1 + $0x30] sm:$0xff pattern:$0x75316420] %v7394_v42 }
  0x4d   : > { %12485 = vst [vmem:[#allocation41_spill] sm:$0xff] %v7410_v48 }
  0x4e   : > { %12486 = vst [vmem:[#allocation42_spill] sm:$0xff] %v7412_v49 }
  0x4f   : > { %1172 = vst.sshfl [vmem:[#allocation1 + $0x20] sm:$0xff pattern:$0x75316420] %v7404_v46 }
  0x50   : > { %12487 = vst [vmem:[#allocation43_spill] sm:$0xff] %v7416_v50  ;;  %v7421_v52 = vld [vmem:[#allocation1 + $0x1] ss:$2 sm:$0xff] }
  0x51   : > { %12488 = vst [vmem:[#allocation44_spill] sm:$0xff] %v7421_v52  ;;  %v7426_v54 = vld [vmem:[#allocation1 + $0x10] ss:$2 sm:$0xff]  ;;  %v7428_v55 = vld [vmem:[#allocation1 + $0x11] ss:$2 sm:$0xff] }
  0x52   : > { %12489 = vst [vmem:[#allocation45_spill] sm:$0xff] %v7426_v54  ;;  %v7458_v52 = vld [vmem:[%s7271_s19 + $0xb8] sm:$0xff] }
  0x53   : > { %12490 = vst [vmem:[#allocation46_spill] sm:$0xff] %v7428_v55  ;;  %v7431_v56 = vld [vmem:[#allocation1 + $0x30] ss:$2 sm:$0xff]  ;;  %v7437_v58 = vld [vmem:[#allocation1 + $0x31] ss:$2 sm:$0xff] }
  0x54   : > { %1192 = vst.sshfl [vmem:[#allocation1] sm:$0xff pattern:$0x75316420] %v7416_v50 }
  0x55   : > { %12491 = vst [vmem:[#allocation47_spill] sm:$0xff] %v7431_v56 }
  0x56   : > { %12492 = vst [vmem:[#allocation48_spill] sm:$0xff] %v7434_v57  ;;  %v7440_v59 = vld [vmem:[#allocation1 + $0x20] ss:$2 sm:$0xff]  ;;  %v7442_v60 = vld [vmem:[#allocation1 + $0x21] ss:$2 sm:$0xff] }
  0x57   : > { %1193 = vst.sshfl [vmem:[#allocation1 + $0x10] sm:$0xff pattern:$0x75316420] %v7419_v51 }
  0x58   : > { %12493 = vst [vmem:[#allocation49_spill] sm:$0xff] %v7437_v58 }
  0x59   : > { %1173 = vst.sshfl [vmem:[#allocation1 + $0x30] sm:$0xff pattern:$0x75316420] %v7424_v53 }
  0x5a   : > { %12494 = vst [vmem:[#allocation50_spill] sm:$0xff] %v7440_v59 }
  0x5b   : > { %12495 = vst [vmem:[#allocation51_spill] sm:$0xff] %v7442_v60  ;;  %v7451_v63 = vld [vmem:[#allocation1 + $0x1] ss:$2 sm:$0xff]  ;;  %v7465_v60 = vld [vmem:[%s7271_s19 + $0xd0] sm:$0xff] }
  0x5c   : > { %1183 = vst.sshfl [vmem:[#allocation1 + $0x20] sm:$0xff pattern:$0x75316420] %v7434_v57 }
  0x5d   : > { %12496 = vst [vmem:[#allocation52_spill] sm:$0xff] %v7446_v61 }
  0x5e   : > { %12497 = vst [vmem:[#allocation53_spill] sm:$0xff] %v7449_v62  ;;  %v7453_v55 = vld [vmem:[#allocation1 + $0x10] ss:$2 sm:$0xff]  ;;  %v7455_v54 = vld [vmem:[#allocation1 + $0x11] ss:$2 sm:$0xff] }
  0x5f   : > { %12498 = vst [vmem:[#allocation54_spill] sm:$0xff] %v7451_v63 }
  0x60   : > { %12499 = vst [vmem:[#allocation55_spill] sm:$0xff] %v7453_v55  ;;  %v7461_v59 = vld [vmem:[#allocation1 + $0x30] ss:$2 sm:$0xff]  ;;  %v7467_v44 = vld [vmem:[#allocation1 + $0x31] ss:$2 sm:$0xff] }
  0x61   : > { %12500 = vst [vmem:[#allocation56_spill] sm:$0xff] %v7455_v54  ;;  %v7476_v54 = vrot.slane %v7274_v0, 4 }
  0x62   : > { %1203 = vst.sshfl [vmem:[#allocation1] sm:$0xff pattern:$0x75316420] %v7446_v61 }
  0x63   : > { %12501 = vst [vmem:[#allocation57_spill] sm:$0xff] %v7461_v59  ;;  %v7470_v63 = vld [vmem:[#allocation1 + $0x20] ss:$2 sm:$0xff]  ;;  %v7472_v55 = vld [vmem:[#allocation1 + $0x21] ss:$2 sm:$0xff]  ;;  %v7480_v59 = vrot.slane %v7277_v1, 4 }
  0x64   : > { %1204 = vst.sshfl [vmem:[#allocation1 + $0x10] sm:$0xff pattern:$0x75316420] %v7449_v62 }
  0x65   : > { %12502 = vst [vmem:[#allocation58_spill] sm:$0xff] %v7465_v60 }
  0x66   : > { %12503 = vst [vmem:[#allocation59_spill] sm:$0xff] %v7467_v44 }
  0x67   : > { %1214 = vst [vmem:[#allocation1] ss:$2 sm:$0xff] %v7274_v0 }
  0x68   : > { %12504 = vst [vmem:[#allocation60_spill] sm:$0xff] %v7470_v63 }
  0x69   : > { %12505 = vst [vmem:[#allocation61_spill] sm:$0xff] %v7472_v55  ;;  %v7485_v41 = vld [vmem:[#allocation1 + $0x1] ss:$2 sm:$0xff]  ;;  %v7494_v55 = vld [vmem:[%s7271_s19 + $0xf0] sm:$0xff] }
  0x6a   : > { %1184 = vst.sshfl [vmem:[#allocation1 + $0x30] sm:$0xff pattern:$0x75316420] %v7458_v52 }
  0x6b   : > { %1194 = vst.sshfl [vmem:[#allocation1 + $0x20] sm:$0xff pattern:$0x75316420] %v7465_v60  ;;  %v7487_v44 = vld [vmem:[#allocation1 + $0x10] ss:$2 sm:$0xff] }
  0x6c   : > { %12506 = vst [vmem:[#allocation62_spill] sm:$0xff] %v7485_v41  ;;  %v7489_v58 = vld [vmem:[#allocation1 + $0x11] ss:$2 sm:$0xff] }
  0x6d   : > { %12507 = vst [vmem:[#allocation63_spill] sm:$0xff] %v7487_v44  ;;  %v7505_v44 = vrot.slane %v7286_v3, 4 }
  0x6e   : > { %12508 = vst [vmem:[#allocation64_spill] sm:$0xff] %v7489_v58 }
  0x6f   : > { %1216 = vst [vmem:[#allocation1 + $0x1] ss:$2 sm:$0xff] %v7476_v54 }
  0x70   : > { %1218 = vst [vmem:[#allocation1 + $0x10] ss:$2 sm:$0xff] %v7277_v1 }
  0x71   : > { %12509 = vst [vmem:[#allocation65_spill] sm:$0xff] %v7494_v55  ;;  %v7497_v63 = vld [vmem:[#allocation1 + $0x30] ss:$2 sm:$0xff]  ;;  %v7499_v56 = vld [vmem:[#allocation1 + $0x31] ss:$2 sm:$0xff] }
  0x72   : > { %1220 = vst [vmem:[#allocation1 + $0x11] ss:$2 sm:$0xff] %v7480_v59  ;;  %v7502_v41 = vld [vmem:[#allocation1 + $0x20] ss:$2 sm:$0xff]  ;;  %v7507_v58 = vld [vmem:[#allocation1 + $0x21] ss:$2 sm:$0xff] }
  0x73   : > { %12510 = vst [vmem:[#allocation66_spill] sm:$0xff] %v7497_v63 }
  0x74   : > { %12511 = vst [vmem:[#allocation67_spill] sm:$0xff] %v7499_v56  ;;  %v7517_v56 = vrot.slane %v7280_v2, 4 }
  0x75   : > { %1195 = vst.sshfl [vmem:[#allocation1 + $0x30] sm:$0xff pattern:$0x75316420] %v7483_v43 }
  0x76   : > { %12512 = vst [vmem:[#allocation68_spill] sm:$0xff] %v7502_v41  ;;  %v7513_v31 = vld.sshfl [vmem:[#allocation1] sm:$0xff pattern:$0x75316420]  ;;  %v7523_v41 = vld [vmem:[%s7271_s19 + $0xf8] sm:$0xff] }
  0x77   : > { %12513 = vst [vmem:[#allocation69_spill] sm:$0xff] %v7507_v58 }
  0x78   : > { %1205 = vst.sshfl [vmem:[#allocation1 + $0x20] sm:$0xff pattern:$0x75316420] %v7494_v55 }
  0x79   : > { %12514 = vst [vmem:[#allocation70_spill] sm:$0xff] %v7511_v32  ;;  %v7519_v63 = vld.sshfl [vmem:[#allocation1 + $0x10] sm:$0xff pattern:$0x75316420] }
  0x7a   : > { %12515 = vst [vmem:[#allocation71_spill] sm:$0xff] %v7513_v31 }
  0x7b   : > { %1233 = vst [vmem:[#allocation1] ss:$2 sm:$0xff] %v7505_v44 }
  0x7c   : > { %12516 = vst [vmem:[#allocation72_spill] sm:$0xff] %v7517_v56  ;;  %v7526_v58 = vld [vmem:[#allocation1 + $0x30] ss:$2 sm:$0xff]  ;;  %v7528_v49 = vld [vmem:[#allocation1 + $0x31] ss:$2 sm:$0xff] }
  0x7d   : > { %12517 = vst [vmem:[#allocation73_spill] sm:$0xff] %v7519_v63  ;;  %v7538_v63 = vrot.slane %v7303_v9, 4 }
  0x7e   : > { %1234 = vst [vmem:[#allocation1 + $0x1] ss:$2 sm:$0xff] %v7289_v4 }
  0x7f   : > { %12518 = vst [vmem:[#allocation74_spill] sm:$0xff] %v7523_v41  ;;  %v7532_v31 = vld [vmem:[#allocation1 + $0x20] ss:$2 sm:$0xff]  ;;  %v7534_v48 = vld [vmem:[#allocation1 + $0x21] ss:$2 sm:$0xff] }
  0x80   : > { %1235 = vst [vmem:[#allocation1 + $0x10] ss:$2 sm:$0xff] %v7511_v32 }
  0x81   : > { %12519 = vst [vmem:[#allocation75_spill] sm:$0xff] %v7526_v58 }
  0x82   : > { %12520 = vst [vmem:[#allocation76_spill] sm:$0xff] %v7528_v49 }
  0x83   : > { %1236 = vst [vmem:[#allocation1 + $0x11] ss:$2 sm:$0xff] %v7312_v13 }
  0x84   : > { %1206 = vst.sshfl [vmem:[#allocation1 + $0x30] sm:$0xff pattern:$0x75316420] %v7523_v41 }
  0x85   : > { %12521 = vst [vmem:[#allocation77_spill] sm:$0xff] %v7532_v31  ;;  %v7544_v58 = vld.sshfl [vmem:[#allocation1] sm:$0xff pattern:$0x75316420] }
  0x86   : > { %12522 = vst [vmem:[#allocation78_spill] sm:$0xff] %v7534_v48  ;;  %v7552_v48 = vrot.slane %v7312_v13, 4 }
  0x87   : > { %1222 = vst [vmem:[#allocation1 + $0x20] ss:$2 sm:$0xff] %v7280_v2 }
  0x88   : > { %12523 = vst [vmem:[#allocation79_spill] sm:$0xff] %v7538_v63 }
  0x89   : > { %1224 = vst [vmem:[#allocation1 + $0x21] ss:$2 sm:$0xff] %v7517_v56 }
  0x8a   : > { %12524 = vst [vmem:[#allocation80_spill] sm:$0xff] %v7542_v30  ;;  %v7547_v49 = vld.sshfl [vmem:[#allocation1 + $0x10] sm:$0xff pattern:$0x75316420] }
  0x8b   : > { %12525 = vst [vmem:[#allocation81_spill] sm:$0xff] %v7544_v58  ;;  %v7554_v31 = vld [vmem:[#allocation1 + $0x30] ss:$2 sm:$0xff]  ;;  %v7557_v47 = vld [vmem:[#allocation1 + $0x31] ss:$2 sm:$0xff] }
  0x8c   : > { %1245 = vst [vmem:[#allocation1] ss:$2 sm:$0xff] %v7303_v9 }
  0x8d   : > { %12526 = vst [vmem:[#allocation82_spill] sm:$0xff] %v7547_v49  ;;  %v7568_v49 = vrot.slane %v7374_v35, 4 }
  0x8e   : > { %1246 = vst [vmem:[#allocation1 + $0x1] ss:$2 sm:$0xff] %v7538_v63 }
  0x8f   : > { %1247 = vst [vmem:[#allocation1 + $0x10] ss:$2 sm:$0xff] %v7344_v24 }
  0x90   : > { %12527 = vst [vmem:[#allocation83_spill] sm:$0xff] %v7554_v31  ;;  %v7560_v58 = vld.sshfl [vmem:[#allocation1 + $0x20] sm:$0xff pattern:$0x75316420] }
  0x91   : > { %1248 = vst [vmem:[#allocation1 + $0x11] ss:$2 sm:$0xff] %v7542_v30 }
  0x92   : > { %12528 = vst [vmem:[#allocation84_spill] sm:$0xff] %v7557_v47 }
  0x93   : > { %1226 = vst [vmem:[#allocation1 + $0x30] ss:$2 sm:$0xff] %v7317_v14 }
  0x94   : > { %12529 = vst [vmem:[#allocation85_spill] sm:$0xff] %v7560_v58  ;;  %v7578_v58 = vrot.slane %v7300_v8, 4 }
  0x95   : > { %1228 = vst [vmem:[#allocation1 + $0x31] ss:$2 sm:$0xff] %v7286_v3  ;;  %v7571_v31 = vld.sshfl [vmem:[#allocation1] sm:$0xff pattern:$0x75316420] }
  0x96   : > { %1237 = vst [vmem:[#allocation1 + $0x20] ss:$2 sm:$0xff] %v7552_v48 }
  0x97   : > { %12530 = vst [vmem:[#allocation86_spill] sm:$0xff] %v7568_v49 }
  0x98   : > { %1238 = vst [vmem:[#allocation1 + $0x21] ss:$2 sm:$0xff] %v7339_v22  ;;  %v7574_v47 = vld.sshfl [vmem:[#allocation1 + $0x10] sm:$0xff pattern:$0x75316420] }
  0x99   : > { %12531 = vst [vmem:[#allocation87_spill] sm:$0xff] %v7571_v31 }
  0x9a   : > { %1257 = vst [vmem:[#allocation1] ss:$2 sm:$0xff] %v7563_v20 }
  0x9b   : > { %12532 = vst [vmem:[#allocation88_spill] sm:$0xff] %v7574_v47 }
  0x9c   : > { %1258 = vst [vmem:[#allocation1 + $0x1] ss:$2 sm:$0xff] %v7374_v35  ;;  %v7582_v19 = vld.sshfl [vmem:[#allocation1 + $0x30] sm:$0xff pattern:$0x75316420] }
  0x9d   : > { %1259 = vst [vmem:[#allocation1 + $0x10] ss:$2 sm:$0xff] %v7568_v49 }
  0x9e   : > { %1260 = vst [vmem:[#allocation1 + $0x11] ss:$2 sm:$0xff] %v7394_v42 }
  0x9f   : > { %12533 = vst [vmem:[#allocation89_spill] sm:$0xff] %v7582_v19  ;;  %v7586_v31 = vld.sshfl [vmem:[#allocation1 + $0x20] sm:$0xff pattern:$0x75316420]  ;;  %v7600_v19 = vrot.slane %v7326_v17, 4 }
  0xa0   : > { %1239 = vst [vmem:[#allocation1 + $0x30] ss:$2 sm:$0xff] %v7300_v8 }
  0xa1   : > { %1240 = vst [vmem:[#allocation1 + $0x31] ss:$2 sm:$0xff] %v7578_v58 }
  0xa2   : > { %12534 = vst [vmem:[#allocation90_spill] sm:$0xff] %v7586_v31 }
  0xa3   : > { %12535 = vst [vmem:[#allocation91_spill] sm:$0xff] %v7589_v36  ;;  %v7593_v47 = vld.sshfl [vmem:[#allocation1] sm:$0xff pattern:$0x75316420] }
  0xa4   : > { %1249 = vst [vmem:[#allocation1 + $0x20] ss:$2 sm:$0xff] %v7368_v33 }
  0xa5   : > { %1250 = vst [vmem:[#allocation1 + $0x21] ss:$2 sm:$0xff] %v7326_v17  ;;  %v7596_v34 = vld.sshfl [vmem:[#allocation1 + $0x10] sm:$0xff pattern:$0x75316420] }
  0xa6   : > { %12536 = vst [vmem:[#allocation92_spill] sm:$0xff] %v7593_v47 }
  0xa7   : > { %1269 = vst [vmem:[#allocation1] ss:$2 sm:$0xff] %v7404_v46 }
  0xa8   : > { %12537 = vst [vmem:[#allocation93_spill] sm:$0xff] %v7596_v34  ;;  %v7604_v31 = vld.sshfl [vmem:[#allocation1 + $0x30] sm:$0xff pattern:$0x75316420]  ;;  %v7615_v34 = vrot.slane %v7416_v50, 4 }
  0xa9   : > { %1270 = vst [vmem:[#allocation1 + $0x1] ss:$2 sm:$0xff] %v7589_v36 }
  0xaa   : > { %12538 = vst [vmem:[#allocation94_spill] sm:$0xff] %v7600_v19 }
  0xab   : > { %1271 = vst [vmem:[#allocation1 + $0x10] ss:$2 sm:$0xff] %v7424_v53 }
  0xac   : > { %1272 = vst [vmem:[#allocation1 + $0x11] ss:$2 sm:$0xff] %v7386_v39  ;;  %v7610_v47 = vld.sshfl [vmem:[#allocation1 + $0x20] sm:$0xff pattern:$0x75316420] }
  0xad   : > { %12539 = vst [vmem:[#allocation95_spill] sm:$0xff] %v7604_v31  ;;  %v7624_v31 = vrot.slane %v7356_v28, 4 }
  0xae   : > { %1251 = vst [vmem:[#allocation1 + $0x30] ss:$2 sm:$0xff] %v7600_v19 }
  0xaf   : > { %12540 = vst [vmem:[#allocation96_spill] sm:$0xff] %v7610_v47  ;;  %v7629_v47 = vrot.slane %v7359_v29, 4 }
  0xb0   : > { %1252 = vst [vmem:[#allocation1 + $0x31] ss:$2 sm:$0xff] %v7329_v18  ;;  %v7617_v25 = vld.sshfl [vmem:[#allocation1] sm:$0xff pattern:$0x75316420] }
  0xb1   : > { %1261 = vst [vmem:[#allocation1 + $0x20] ss:$2 sm:$0xff] %v7356_v28 }
  0xb2   : > { %12541 = vst [vmem:[#allocation97_spill] sm:$0xff] %v7615_v34 }
  0xb3   : > { %12542 = vst [vmem:[#allocation98_spill] sm:$0xff] %v7617_v25  ;;  %v7620_v23 = vld.sshfl [vmem:[#allocation1 + $0x10] sm:$0xff pattern:$0x75316420]  ;;  %v587_v25 = vrot.slane %v7476_v54, 5 }
  0xb4   : > { %1281 = vst [vmem:[#allocation1] ss:$2 sm:$0xff] %v7607_v10 }
  0xb5   : > { %12543 = vst [vmem:[#allocation99_spill] sm:$0xff] %v7620_v23  ;;  %v7636_v23 = vrot.slane %v7446_v61, 4  ;;  %v589_v26 = vrot.slane %v587_v25, 4  ;;  %v588_v11 = vsel %vm7653_vm2, %v6466_v21, %v587_v25  ;;  %v615_v25 = vrot.slane %v7511_v32, 5 }
  0xb6   : > { %1282 = vst [vmem:[#allocation1 + $0x1] ss:$2 sm:$0xff] %v7458_v52 }
  0xb7   : > { %1283 = vst [vmem:[#allocation1 + $0x10] ss:$2 sm:$0xff] %v7416_v50  ;;  %v7631_v16 = vld.sshfl [vmem:[#allocation1 + $0x30] sm:$0xff pattern:$0x75316420]  ;;  %v591_v6 = vsel %vm7653_vm2, %v589_v26, %v590_v38 }
  0xb8   : > { %1284 = vst [vmem:[#allocation1 + $0x11] ss:$2 sm:$0xff] %v7615_v34 }
  0xb9   : > { %12544 = vst [vmem:[#allocation100_spill] sm:$0xff] %v7629_v47 }
  0xba   : > { %12545 = vst [vmem:[#allocation101_spill] sm:$0xff] %v7631_v16  ;;  %v593_v16 = vrot.slane %v7480_v59, 5 }
  0xbb   : > { %1262 = vst [vmem:[#allocation1 + $0x21] ss:$2 sm:$0xff] %v7624_v31 }
  0xbc   : > { %1263 = vst [vmem:[#allocation1 + $0x30] ss:$2 sm:$0xff] %v7359_v29  ;;  %v594_v29 = vsel %vm7653_vm2, %v592_v15, %v593_v16  ;;  %v12555_v15 = vrot.slane %v7505_v44, 5 }
  0xbd   : > { %12546 = vst [vmem:[#allocation102_spill] sm:$0xff] %v7636_v23  ;;  %v7640_v45 = vld.sshfl [vmem:[#allocation1] sm:$0xff pattern:$0x75316420] }
  0xbe   : > { %1264 = vst [vmem:[#allocation1 + $0x31] ss:$2 sm:$0xff] %v7629_v47 }
  0xbf   : > { %12547 = vst [vmem:[#allocation103_spill] sm:$0xff] %v7640_v45  ;;  %v7645_v37 = vld.sshfl [vmem:[#allocation1 + $0x10] sm:$0xff pattern:$0x75316420] }
  0xc0   : > { %1293 = vst [vmem:[#allocation1] ss:$2 sm:$0xff] %v7483_v43 }
  0xc1   : > { %12548 = vst [vmem:[#allocation104_spill] sm:$0xff] %v7645_v37  ;;  %v595_v37 = vrot.slane %v593_v16, 4  ;;  %v611_v16 = vrot.slane %v12555_v15, 4 }
  0xc2   : > { %1294 = vst [vmem:[#allocation1 + $0x1] ss:$2 sm:$0xff] %v7446_v61  ;;  %v7658_v7 = vld.sshfl [vmem:[#allocation1 + $0x20] sm:$0xff pattern:$0x75316420] }
  0xc3   : > { %1295 = vst [vmem:[#allocation1 + $0x10] ss:$2 sm:$0xff] %v7636_v23  ;;  %v597_v21 = vsel %vm7653_vm2, %v595_v37, %v12340_v12  ;;  %v617_v37 = vrot.slane %v615_v25, 4  ;;  %v12347_v12 = vrot.slane %v7552_v48, 5 }
  0xc4   : > { %1296 = vst [vmem:[#allocation1 + $0x11] ss:$2 sm:$0xff] %v7449_v62 }
  0xc5   : > { %12551 = vst [vmem:[#allocation105_spill] sm:$0xff] %v7658_v7  ;;  %v612_v7 = vrot.slane %v7289_v4, 5  ;;  %v7678_v26 = vld.sshfl [vmem:[#allocation1 + $0x30] sm:$0xff pattern:$0x75316420]  ;;  %v7686_v4 = vrot.slane %v7389_v40, 4 }
  0xc6   : > { %1273 = vst [vmem:[#allocation1 + $0x20] ss:$2 sm:$0xff] %v7651_v27 }
  0xc7   : > { %1274 = vst [vmem:[#allocation1 + $0x21] ss:$2 sm:$0xff] %v7389_v40 }
  0xc8   : > { %12553 = vst [vmem:[#allocation107_spill] sm:$0xff] %v7678_v26  ;;  %v619_v26 = vsel %vm7653_vm2, %v617_v37, %v618_v5  ;;  %v12559_v37 = vrot.slane %v7303_v9, 5 }
  0xc9   : > { %v7670_v47 = vld.sshfl [vmem:[#allocation1] sm:$0xff pattern:$0x75316420]  ;;  %12556 = vst [vmem:[#allocation109_spill] sm:$0xff] %v7686_v4 }
  0xca   : > { %12552 = vst [vmem:[#allocation106_spill] sm:$0xff] %v7670_v47  ;;  %v614_v47 = vrot.slane %v612_v7, 4 }
  0xcb   : > { %1333 = vst [vmem:[#allocation1] ss:$2 sm:$0xff] %v588_v11  ;;  %v7680_v38 = vld.sshfl [vmem:[#allocation1 + $0x10] sm:$0xff pattern:$0x75316420]  ;;  %v620_v11 = vrot.slane %v618_v5, 4 }
  0xcc   : > { %12554 = vst [vmem:[#allocation108_spill] sm:$0xff] %v7680_v38 }
  0xcd   : > { %1335 = vst [vmem:[#allocation1 + $0x1] ss:$2 sm:$0xff] %v591_v6  ;;  %v613_v6 = vsel %vm7653_vm2, %v611_v16, %v612_v7  ;;  %v622_v7 = vsel %vm7653_vm2, %v620_v11, %v12347_v12  ;;  %v640_v16 = vrot.slane %v7344_v24, 5  ;;  %v7734_v12 = vrot.slane %v7449_v62, 4 }
  0xce   : > { %1337 = vst [vmem:[#allocation1 + $0x10] ss:$2 sm:$0xff] %v594_v29  ;;  %v616_v29 = vsel %vm7653_vm2, %v614_v47, %v615_v25  ;;  %v7696_v15 = vld.sshfl [vmem:[#allocation1 + $0x20] sm:$0xff pattern:$0x75316420]  ;;  %v643_v47 = vrot.slane %v7542_v30, 5 }
  0xcf   : > { %1339 = vst [vmem:[#allocation1 + $0x11] ss:$2 sm:$0xff] %v597_v21  ;;  %v7709_v21 = vrot.slane %v7419_v51, 4  ;;  %v642_v11 = vrot.slane %v640_v16, 4 }
  0xd0   : > { %1276 = vst [vmem:[#allocation1 + $0x31] ss:$2 sm:$0xff] %v7434_v57  ;;  %v637_v57 = vrot.slane %v7538_v63, 5 }
  0xd1   : > { %1275 = vst [vmem:[#allocation1 + $0x30] ss:$2 sm:$0xff] %v7686_v4  ;;  %v7714_v4 = vrot.slane %v7465_v60, 4 }
  0xd2   : > { %12557 = vst [vmem:[#allocation110_spill] sm:$0xff] %v7696_v15  ;;  %v636_v15 = vrot.slane %v12559_v37, 4  ;;  %v639_v63 = vrot.slane %v637_v57, 4 }
  0xd3   : > { %1285 = vst [vmem:[#allocation1 + $0x20] ss:$2 sm:$0xff] %v7419_v51 }
  0xd4   : > { %v1348_v38 = vld.sshfl [vmem:[#allocation1] sm:$0xff pattern:$0x75316420]  ;;  %12558 = vst [vmem:[#allocation111_spill] sm:$0xff] %v7709_v21 }
  0xd5   : > { %1352 = vst [vmem:[#allocation1] ss:$2 sm:$0xff] %v613_v6 }
  0xd6   : > { %v1349_v25 = vld.sshfl [vmem:[#allocation1 + $0x10] sm:$0xff pattern:$0x75316420]  ;;  %1353 = vst [vmem:[#allocation1 + $0x1] ss:$2 sm:$0xff] %v616_v29  ;;  %v645_v29 = vrot.slane %v643_v47, 4 }
  0xd7   : > { %v6774_v5 = vpack.i.bf16 %v1349_v25, %v1348_v38  ;;  %1354 = vst [vmem:[#allocation1 + $0x10] ss:$2 sm:$0xff] %v619_v26  ;;  %v638_v38 = vsel %vm7653_vm2, %v636_v15, %v637_v57  ;;  %v641_v26 = vsel %vm7653_vm2, %v639_v63, %v640_v16  ;;  %v662_v25 = vrot.slane %v7374_v35, 5 }
  0xd8   : > { %1355 = vst [vmem:[#allocation1 + $0x11] ss:$2 sm:$0xff] %v622_v7  ;;  %v7717_v6 = vld.sshfl [vmem:[#allocation1 + $0x30] sm:$0xff pattern:$0x75316420]  ;;  %v12563_v57 = vrot.slane %v7368_v33, 5 }
  0xd9   : > { %12560 = vst [vmem:[#allocation112_spill] sm:$0xff] %v7714_v4  ;;  %6775 = vrot.lane.b32.xlu0 %v6774_v5, %s7173_s20  ;;  %v644_v5 = vsel %vm7653_vm2, %v642_v11, %v643_v47  ;;  %v665_v63 = vrot.slane %v7568_v49, 5  ;;  %v668_v16 = vrot.slane %v7394_v42, 5  ;;  %v7743_v7 = vrot.slane %v7394_v42, 4 }
  0xda   : > { %12561 = vst [vmem:[#allocation113_spill] sm:$0xff] %v7717_v6  ;;  %v647_v15 = vsel %vm7653_vm2, %v645_v29, %v12563_v57  ;;  %v12566_v47 = vrot.slane %v7563_v20, 5  ;;  %v7750_v35 = vrot.slane %v7494_v55, 4  ;;  %v599_v29 = vrot.slane %v7517_v56, 5 }
  0xdb   : > { %1286 = vst [vmem:[#allocation1 + $0x21] ss:$2 sm:$0xff] %v7709_v21  ;;  %v670_v49 = vrot.slane %v668_v16, 4  ;;  %v7756_v42 = vrot.slane %v7317_v14, 4  ;;  %v602_v56 = vrot.slane %v7317_v14, 5 }
  0xdc   : > { %1287 = vst [vmem:[#allocation1 + $0x30] ss:$2 sm:$0xff] %v7465_v60  ;;  %v661_v11 = vrot.slane %v12566_v47, 4  ;;  %v601_v60 = vrot.slane %v599_v29, 4 }
  0xdd   : > { %1288 = vst [vmem:[#allocation1 + $0x31] ss:$2 sm:$0xff] %v7714_v4  ;;  %v7731_v37 = vld.sshfl [vmem:[#allocation1] sm:$0xff pattern:$0x75316420]  ;;  %v605_v14 = vrot.slane %v7756_v42, 5 }
  0xde   : > { %12562 = vst [vmem:[#allocation114_spill] sm:$0xff] %v7731_v37  ;;  %v664_v37 = vrot.slane %v662_v25, 4 }
  0xdf   : > { %1364 = vst [vmem:[#allocation1] ss:$2 sm:$0xff] %v638_v38  ;;  %v7745_v6 = vld.sshfl [vmem:[#allocation1 + $0x10] sm:$0xff pattern:$0x75316420]  ;;  %v667_v38 = vrot.slane %v665_v63, 4 }
  0xe0   : > { %12564 = vst [vmem:[#allocation115_spill] sm:$0xff] %v7743_v7 }
  0xe1   : > { %12565 = vst [vmem:[#allocation116_spill] sm:$0xff] %v7745_v6 }
  0xe2   : > { %1365 = vst [vmem:[#allocation1 + $0x1] ss:$2 sm:$0xff] %v641_v26  ;;  %v7753_v57 = vld.sshfl [vmem:[#allocation1 + $0x20] sm:$0xff pattern:$0x75316420]  ;;  %v671_v26 = vrot.slane %v7743_v7, 5  ;;  %v666_v7 = vsel %vm7653_vm2, %v664_v37, %v665_v63 }
  0xe3   : > { %1366 = vst [vmem:[#allocation1 + $0x10] ss:$2 sm:$0xff] %v644_v5  ;;  %v7764_v5 = vrot.slane %v7424_v53, 4  ;;  %v690_v37 = vrot.slane %v7424_v53, 5  ;;  %v6467_v63 = vrot.slane %v7286_v3, 9 }
  0xe4   : > { %12567 = vst [vmem:[#allocation117_spill] sm:$0xff] %v7750_v35  ;;  %v7760_v47 = vld.sshfl [vmem:[#allocation1 + $0x30] sm:$0xff pattern:$0x75316420] }
  0xe5   : > { %1367 = vst [vmem:[#allocation1 + $0x11] ss:$2 sm:$0xff] %v647_v15  ;;  %v663_v15 = vsel %vm7653_vm2, %v661_v11, %v662_v25  ;;  %v669_v25 = vsel %vm7653_vm2, %v667_v38, %v668_v16  ;;  %v12574_v16 = vrot.slane %v7404_v46, 5 }
  0xe6   : > { %12568 = vst [vmem:[#allocation118_spill] sm:$0xff] %v7753_v57  ;;  %v12571_v57 = vrot.slane %v7280_v2, 5 }
  0xe7   : > { %12569 = vst [vmem:[#allocation119_spill] sm:$0xff] %v7756_v42  ;;  %v686_v38 = vrot.slane %v12574_v16, 4  ;;  %v693_v42 = vrot.slane %v7764_v5, 5  ;;  %v12577_v16 = vrot.slane %v7505_v44, 5 }
  0xe8   : > { %1297 = vst [vmem:[#allocation1 + $0x20] ss:$2 sm:$0xff] %v7734_v12  ;;  %v598_v6 = vrot.slane %v12571_v57, 4  ;;  %v604_v57 = vrot.slane %v602_v56, 4 }
  0xe9   : > { %12570 = vst [vmem:[#allocation120_spill] sm:$0xff] %v7760_v47  ;;  %v7779_v11 = vld.sshfl [vmem:[#allocation1] sm:$0xff pattern:$0x75316420] }
  0xea   : > { %1298 = vst [vmem:[#allocation1 + $0x21] ss:$2 sm:$0xff] %v7494_v55  ;;  %v687_v55 = vrot.slane %v7589_v36, 5  ;;  %v600_v36 = vsel %vm7653_vm2, %v598_v6, %v599_v29  ;;  %v7802_v29 = vrot.slane %v7339_v22, 4  ;;  %v7817_v6 = vrot.slane %v7458_v52, 4 }
  0xeb   : > { %1299 = vst [vmem:[#allocation1 + $0x30] ss:$2 sm:$0xff] %v7750_v35  ;;  %v672_v35 = vsel %vm7653_vm2, %v670_v49, %v671_v26  ;;  %v603_v49 = vsel %vm7653_vm2, %v601_v60, %v602_v56  ;;  %v6471_v26 = vrot.slane %v7386_v39, 9  ;;  %v624_v56 = vrot.slane %v7339_v22, 5 }
  0xec   : > { %1300 = vst [vmem:[#allocation1 + $0x31] ss:$2 sm:$0xff] %v7523_v41  ;;  %v7786_v47 = vld.sshfl [vmem:[#allocation1 + $0x10] sm:$0xff pattern:$0x75316420] }
  0xed   : > { %12572 = vst [vmem:[#allocation121_spill] sm:$0xff] %v7779_v11  ;;  %v689_v11 = vrot.slane %v687_v55, 4 }
  0xee   : > { %1376 = vst [vmem:[#allocation1] ss:$2 sm:$0xff] %v663_v15  ;;  %v606_v15 = vsel %vm7653_vm2, %v604_v57, %v605_v14  ;;  %v688_v14 = vsel %vm7653_vm2, %v686_v38, %v687_v55  ;;  %v12581_v38 = vrot.slane %v7651_v27, 5 }
  0xef   : > { %12573 = vst [vmem:[#allocation122_spill] sm:$0xff] %v7786_v47  ;;  %v692_v47 = vrot.slane %v690_v37, 4  ;;  %v691_v60 = vsel %vm7653_vm2, %v689_v11, %v690_v37  ;;  %v626_v37 = vrot.slane %v624_v56, 4 }
  0xf0   : > { %1377 = vst [vmem:[#allocation1 + $0x1] ss:$2 sm:$0xff] %v666_v7  ;;  %v698_v11 = vsel %vm7653_vm2, %v6471_v26, %v12581_v38  ;;  %v6472_v38 = vrot.slane %v7416_v50, 9 }
  0xf1   : > { %1378 = vst [vmem:[#allocation1 + $0x10] ss:$2 sm:$0xff] %v669_v25  ;;  %v7798_v7 = vld.sshfl [vmem:[#allocation1 + $0x20] sm:$0xff pattern:$0x75316420]  ;;  %v610_v25 = vsel %vm7653_vm2, %v6467_v63, %v12577_v16  ;;  %v712_v63 = vrot.slane %v7458_v52, 5 }
  0xf2   : > { %1379 = vst [vmem:[#allocation1 + $0x11] ss:$2 sm:$0xff] %v672_v35 }
  0xf3   : > { %12575 = vst [vmem:[#allocation123_spill] sm:$0xff] %v7798_v7  ;;  %v7809_v35 = vld.sshfl [vmem:[#allocation1 + $0x30] sm:$0xff pattern:$0x75316420] }
  0xf4   : > { %12576 = vst [vmem:[#allocation124_spill] sm:$0xff] %v7802_v29 }
  0xf5   : > { %1341 = vst [vmem:[#allocation1 + $0x20] ss:$2 sm:$0xff] %v600_v36  ;;  %v694_v36 = vsel %vm7653_vm2, %v692_v47, %v693_v42  ;;  %v12583_v42 = vrot.slane %v7607_v10, 5 }
  0xf6   : > { %12578 = vst [vmem:[#allocation125_spill] sm:$0xff] %v7809_v35  ;;  %v714_v35 = vrot.slane %v712_v63, 4 }
  0xf7   : > { %1343 = vst [vmem:[#allocation1 + $0x21] ss:$2 sm:$0xff] %v603_v49  ;;  %v7822_v16 = vld.sshfl [vmem:[#allocation1] sm:$0xff pattern:$0x75316420]  ;;  %v12580_v49 = vrot.slane %v7552_v48, 5 }
  0xf8   : > { %1345 = vst [vmem:[#allocation1 + $0x30] ss:$2 sm:$0xff] %v606_v15  ;;  %v627_v15 = vrot.slane %v7802_v29, 5  ;;  %v711_v47 = vrot.slane %v12583_v42, 4 }
  0xf9   : > { %1347 = vst [vmem:[#allocation1 + $0x31] ss:$2 sm:$0xff] %v610_v25  ;;  %v623_v55 = vrot.slane %v12580_v49, 4  ;;  %v719_v25 = vrot.slane %v7615_v34, 5  ;;  %v715_v49 = vrot.slane %v7817_v6, 5 }
  0xfa   : > { %12579 = vst [vmem:[#allocation126_spill] sm:$0xff] %v7822_v16  ;;  %v7832_v57 = vld.sshfl [vmem:[#allocation1 + $0x10] sm:$0xff pattern:$0x75316420]  ;;  %v628_v7 = vsel %vm7653_vm2, %v626_v37, %v627_v15  ;;  %v12374_v15 = vrot.slane %v7483_v43, 5 }
  0xfb   : > { %1388 = vst [vmem:[#allocation1] ss:$2 sm:$0xff] %v688_v14  ;;  %v625_v26 = vsel %vm7653_vm2, %v623_v55, %v624_v56  ;;  %v631_v14 = vrot.slane %v7578_v58, 5  ;;  %v6468_v56 = vrot.slane %v7300_v8, 9  ;;  %v7853_v55 = vrot.slane %v7483_v43, 4 }
  0xfc   : > { %12582 = vst [vmem:[#allocation127_spill] sm:$0xff] %v7832_v57  ;;  %v716_v37 = vsel %vm7653_vm2, %v714_v35, %v715_v49  ;;  %v720_v42 = vsel %vm7653_vm2, %v6472_v38, %v719_v25 }
  0xfd   : > { %1389 = vst [vmem:[#allocation1 + $0x1] ss:$2 sm:$0xff] %v691_v60  ;;  %v721_v60 = vrot.slane %v719_v25, 4  ;;  %v633_v16 = vrot.slane %v631_v14, 4  ;;  %v632_v38 = vsel %vm7653_vm2, %v6468_v56, %v631_v14  ;;  %v656_v14 = vrot.slane %v7329_v18, 5 }
  0xfe   : > { %1390 = vst [vmem:[#allocation1 + $0x10] ss:$2 sm:$0xff] %v694_v36  ;;  %v7843_v57 = vld.sshfl [vmem:[#allocation1 + $0x20] sm:$0xff pattern:$0x75316420]  ;;  %v7847_v36 = vrot.slane %v7368_v33, 4 }
  0xff   : > { %1391 = vst [vmem:[#allocation1 + $0x11] ss:$2 sm:$0xff] %v698_v11  ;;  %v713_v11 = vsel %vm7653_vm2, %v711_v47, %v712_v63  ;;  %v12587_v63 = vrot.slane %v7368_v33, 5 }
 0x100   : > { %12584 = vst [vmem:[#allocation128_spill] sm:$0xff] %v7843_v57  ;;  %v741_v57 = vrot.slane %v7636_v23, 5  ;;  %v649_v35 = vrot.slane %v7847_v36, 5  ;;  %v7870_v49 = vld.sshfl [vmem:[#allocation1 + $0x30] sm:$0xff pattern:$0x75316420] }
 0x101   : > { %12585 = vst [vmem:[#allocation129_spill] sm:$0xff] %v7847_v36  ;;  %v648_v47 = vrot.slane %v12587_v63, 4  ;;  %v736_v63 = vrot.slane %v12374_v15, 4 }
 0x102   : > { %1356 = vst [vmem:[#allocation1 + $0x20] ss:$2 sm:$0xff] %v625_v26  ;;  %v12588_v26 = vrot.slane %v7419_v51, 5 }
 0x103   : > { %1357 = vst [vmem:[#allocation1 + $0x21] ss:$2 sm:$0xff] %v628_v7  ;;  %v744_v7 = vrot.slane %v7449_v62, 5 }
 0x104   : > { %v7861_v29 = vld.sshfl [vmem:[#allocation1] sm:$0xff pattern:$0x75316420]  ;;  %v723_v8 = vsel %vm7653_vm2, %v721_v60, %v12588_v26  ;;  %12589 = vst [vmem:[#allocation131_spill] sm:$0xff] %v7870_v49  ;;  %v12591_v60 = vrot.slane %v7303_v9, 5  ;;  %v6473_v26 = vrot.slane %v7446_v61, 9 }
 0x105   : > { %12586 = vst [vmem:[#allocation130_spill] sm:$0xff] %v7861_v29  ;;  %v737_v29 = vrot.slane %v7853_v55, 5  ;;  %v743_v49 = vrot.slane %v741_v57, 4  ;;  %v746_v56 = vrot.slane %v744_v7, 4 }
 0x106   : > { %1400 = vst [vmem:[#allocation1] ss:$2 sm:$0xff] %v713_v11  ;;  %v7873_v25 = vld.sshfl [vmem:[#allocation1 + $0x10] sm:$0xff pattern:$0x75316420]  ;;  %v635_v11 = vsel %vm7653_vm2, %v633_v16, %v12591_v60  ;;  %v6469_v16 = vrot.slane %v7326_v17, 9 }
 0x107   : > { %12590 = vst [vmem:[#allocation132_spill] sm:$0xff] %v7873_v25  ;;  %v738_v25 = vsel %vm7653_vm2, %v736_v63, %v737_v29  ;;  %v769_v63 = vrot.slane %v7277_v1, 6 }
 0x108   : > { %1401 = vst [vmem:[#allocation1 + $0x1] ss:$2 sm:$0xff] %v716_v37  ;;  %v650_v37 = vsel %vm7653_vm2, %v648_v47, %v649_v35  ;;  %v745_v35 = vsel %vm7653_vm2, %v743_v49, %v744_v7  ;;  %v6474_v7 = vrot.slane %v7274_v0, 10 }
 0x109   : > { %1402 = vst [vmem:[#allocation1 + $0x10] ss:$2 sm:$0xff] %v720_v42  ;;  %v653_v42 = vrot.slane %v7600_v19, 5  ;;  %v12594_v19 = vrot.slane %v7734_v12, 5 }
 0x10a   : > { %1403 = vst [vmem:[#allocation1 + $0x11] ss:$2 sm:$0xff] %v723_v8  ;;  %v7893_v60 = vld.sshfl [vmem:[#allocation1 + $0x20] sm:$0xff pattern:$0x75316420]  ;;  %v742_v8 = vsel %vm7653_vm2, %v6473_v26, %v741_v57  ;;  %v772_v57 = vrot.slane %v7480_v59, 6 }
 0x10b   : > { %1358 = vst [vmem:[#allocation1 + $0x30] ss:$2 sm:$0xff] %v632_v38  ;;  %v655_v47 = vrot.slane %v653_v42, 4  ;;  %v766_v38 = vrot.slane %v7476_v54, 6  ;;  %v748_v29 = vsel %vm7653_vm2, %v746_v56, %v12594_v19  ;;  %v654_v49 = vsel %vm7653_vm2, %v6469_v16, %v653_v42 }
 0x10c   : > { %1359 = vst [vmem:[#allocation1 + $0x31] ss:$2 sm:$0xff] %v635_v11  ;;  %v658_v11 = vrot.slane %v656_v14, 4  ;;  %v12598_v56 = vrot.slane %v7563_v20, 5  ;;  %v771_v42 = vrot.slane %v769_v63, 4 }
 0x10d   : > { %12592 = vst [vmem:[#allocation133_spill] sm:$0xff] %v7893_v60  ;;  %v794_v60 = vrot.slane %v7511_v32, 6 }
 0x10e   : > { %1368 = vst [vmem:[#allocation1 + $0x20] ss:$2 sm:$0xff] %v650_v37  ;;  %v657_v37 = vsel %vm7653_vm2, %v655_v47, %v656_v14  ;;  %v12379_v14 = vrot.slane %v7280_v2, 6  ;;  %v675_v47 = vrot.slane %v7624_v31, 5 }
 0x10f   : > { %v7900_v15 = vld.sshfl [vmem:[#allocation1] sm:$0xff pattern:$0x75316420]  ;;  %1369 = vst [vmem:[#allocation1 + $0x21] ss:$2 sm:$0xff] %v654_v49  ;;  %v6470_v49 = vrot.slane %v7356_v28, 9 }
 0x110   : > { %12593 = vst [vmem:[#allocation134_spill] sm:$0xff] %v7900_v15  ;;  %v12601_v15 = vld [vmem:[#allocation100_spill] sm:$0xff]  ;;  %v796_v32 = vrot.slane %v794_v60, 4 }
 0x111   : > { %1412 = vst [vmem:[#allocation1] ss:$2 sm:$0xff] %v738_v25  ;;  %v7908_v26 = vld.sshfl [vmem:[#allocation1 + $0x10] sm:$0xff pattern:$0x75316420]  ;;  %v768_v25 = vrot.slane %v766_v38, 4  ;;  %v676_v28 = vsel %vm7653_vm2, %v6470_v49, %v675_v47 }
 0x112   : > { %12595 = vst [vmem:[#allocation135_spill] sm:$0xff] %v7908_v26  ;;  %v767_v26 = vsel %vm7917_vm5, %v6474_v7, %v766_v38  ;;  %v677_v38 = vrot.slane %v675_v47, 4  ;;  %v12602_v7 = vld [vmem:[#allocation24_spill] sm:$0xff]  ;;  %v12607_v47 = vrot.slane %v7404_v46, 5 }
 0x113   : > { %1413 = vst [vmem:[#allocation1 + $0x1] ss:$2 sm:$0xff] %v742_v8  ;;  %v660_v8 = vsel %vm7653_vm2, %v658_v11, %v12598_v56  ;;  %v7925_v16 = vld.sshfl [vmem:[#allocation1 + $0x30] sm:$0xff pattern:$0x75316420]  ;;  %v773_v11 = vsel %vm7917_vm5, %v771_v42, %v772_v57 }
 0x114   : > { %1414 = vst [vmem:[#allocation1 + $0x10] ss:$2 sm:$0xff] %v745_v35  ;;  %v774_v35 = vrot.slane %v772_v57, 4  ;;  %v12604_v57 = vld [vmem:[#allocation2_spill] sm:$0xff] }
 0x115   : > { %1415 = vst [vmem:[#allocation1 + $0x11] ss:$2 sm:$0xff] %v748_v29  ;;  %v770_v29 = vsel %vm7917_vm5, %v768_v25, %v769_v63  ;;  %v12381_v63 = vrot.slane %v7505_v44, 6  ;;  %v791_v42 = vrot.slane %v12604_v57, 6 }
 0x116   : > { %12599 = vst [vmem:[#allocation136_spill] sm:$0xff] %v7925_v16  ;;  %v681_v16 = vrot.slane %v12601_v15, 5 }
 0x117   : > { %1370 = vst [vmem:[#allocation1 + $0x30] ss:$2 sm:$0xff] %v657_v37  ;;  %v776_v37 = vsel %vm7917_vm5, %v774_v35, %v12379_v14  ;;  %v793_v57 = vrot.slane %v791_v42, 4 }
 0x118   : > { %1371 = vst [vmem:[#allocation1 + $0x31] ss:$2 sm:$0xff] %v660_v8  ;;  %v678_v8 = vrot.slane %v12602_v7, 5  ;;  %v683_v35 = vrot.slane %v681_v16, 4 }
 0x119   : > { %v795_v7 = vsel %vm7917_vm5, %v793_v57, %v794_v60  ;;  %v12612_v60 = vld [vmem:[#allocation79_spill] sm:$0xff] }
 0x11a   : > { %v7935_v56 = vld.sshfl [vmem:[#allocation1] sm:$0xff pattern:$0x75316420]  ;;  %v679_v14 = vsel %vm7653_vm2, %v677_v38, %v678_v8  ;;  %v685_v49 = vsel %vm7653_vm2, %v683_v35, %v12607_v47  ;;  %v700_v38 = vrot.slane %v7389_v40, 5  ;;  %v816_v57 = vrot.slane %v12612_v60, 6 }
 0x11b   : > { %12600 = vst [vmem:[#allocation137_spill] sm:$0xff] %v7935_v56  ;;  %v680_v56 = vrot.slane %v678_v8, 4  ;;  %v12610_v47 = vld [vmem:[#allocation109_spill] sm:$0xff] }
 0x11c   : > { %1508 = vst [vmem:[#allocation1] ss:$2 sm:$0xff] %v767_v26  ;;  %v7945_v25 = vld.sshfl [vmem:[#allocation1 + $0x10] sm:$0xff pattern:$0x75316420]  ;;  %v797_v26 = vrot.slane %v7312_v13, 6 }
 0x11d   : > { %12603 = vst [vmem:[#allocation138_spill] sm:$0xff] %v7945_v25  ;;  %v790_v25 = vrot.slane %v12381_v63, 4  ;;  %v703_v40 = vrot.slane %v12610_v47, 5  ;;  %v702_v15 = vrot.slane %v700_v38, 4 }
 0x11e   : > { %1510 = vst [vmem:[#allocation1 + $0x1] ss:$2 sm:$0xff] %v770_v29  ;;  %v7956_v29 = vld.sshfl [vmem:[#allocation1 + $0x20] sm:$0xff pattern:$0x75316420]  ;;  %v799_v8 = vrot.slane %v797_v26, 4  ;;  %v798_v63 = vsel %vm7917_vm5, %v796_v32, %v797_v26 }
 0x11f   : > { %1512 = vst [vmem:[#allocation1 + $0x10] ss:$2 sm:$0xff] %v773_v11  ;;  %v682_v11 = vsel %vm7653_vm2, %v680_v56, %v681_v16  ;;  %v792_v13 = vsel %vm7917_vm5, %v790_v25, %v791_v42  ;;  %v12608_v16 = vrot.slane %v7651_v27, 5  ;;  %v12611_v25 = vrot.slane %v7552_v48, 6 }
 0x120   : > { %1514 = vst [vmem:[#allocation1 + $0x11] ss:$2 sm:$0xff] %v776_v37  ;;  %v7960_v37 = vld.sshfl [vmem:[#allocation1 + $0x30] sm:$0xff pattern:$0x75316420] }
 0x121   : > { %12605 = vst [vmem:[#allocation139_spill] sm:$0xff] %v7956_v29  ;;  %v699_v56 = vrot.slane %v12608_v16, 4  ;;  %v801_v42 = vsel %vm7917_vm5, %v799_v8, %v12611_v25  ;;  %v12385_v16 = vrot.slane %v7303_v9, 6 }
 0x122   : > { %12606 = vst [vmem:[#allocation140_spill] sm:$0xff] %v7960_v37  ;;  %v12609_v37 = vld [vmem:[#allocation48_spill] sm:$0xff] }
 0x123   : > { %1380 = vst [vmem:[#allocation1 + $0x20] ss:$2 sm:$0xff] %v676_v28  ;;  %v706_v28 = vrot.slane %v12609_v37, 5  ;;  %v705_v37 = vrot.slane %v703_v40, 4  ;;  %v701_v32 = vsel %vm7653_vm2, %v699_v56, %v700_v38  ;;  %v725_v38 = vrot.slane %v7709_v21, 5 }
 0x124   : > { %1381 = vst [vmem:[#allocation1 + $0x21] ss:$2 sm:$0xff] %v679_v14  ;;  %v818_v56 = vrot.slane %v816_v57, 4 }
 0x125   : > { %v1523_v29 = vld.sshfl [vmem:[#allocation1] sm:$0xff pattern:$0x75316420]  ;;  %1382 = vst [vmem:[#allocation1 + $0x30] ss:$2 sm:$0xff] %v682_v11  ;;  %v708_v26 = vrot.slane %v706_v28, 4  ;;  %v707_v8 = vsel %vm7653_vm2, %v705_v37, %v706_v28 }
 0x126   : > { %1383 = vst [vmem:[#allocation1 + $0x31] ss:$2 sm:$0xff] %v685_v49  ;;  %v822_v11 = vrot.slane %v7542_v30, 6  ;;  %v815_v49 = vrot.slane %v12385_v16, 4  ;;  %v12616_v37 = vrot.slane %v7419_v51, 5  ;;  %v12617_v16 = vld [vmem:[#allocation58_spill] sm:$0xff] }
 0x127   : > { %v1524_v35 = vld.sshfl [vmem:[#allocation1 + $0x10] sm:$0xff pattern:$0x75316420]  ;;  %1527 = vst [vmem:[#allocation1] ss:$2 sm:$0xff] %v792_v13  ;;  %v704_v13 = vsel %vm7653_vm2, %v702_v15, %v703_v40  ;;  %v727_v30 = vrot.slane %v725_v38, 4 }
 0x128   : > { %v6779_v14 = vpack.i.bf16 %v1524_v35, %v1523_v29  ;;  %1528 = vst [vmem:[#allocation1 + $0x1] ss:$2 sm:$0xff] %v795_v7  ;;  %v819_v29 = vrot.slane %v7344_v24, 6  ;;  %v824_v25 = vrot.slane %v822_v11, 4  ;;  %v724_v28 = vrot.slane %v12616_v37, 4 }
 0x129   : > { %1529 = vst [vmem:[#allocation1 + $0x10] ss:$2 sm:$0xff] %v798_v63  ;;  %v12614_v63 = vrot.slane %v7607_v10, 5 }
 0x12a   : > { %6780 = vrot.lane.b32.xlu0 %v6779_v14, %s7174_s21  ;;  %1530 = vst [vmem:[#allocation1 + $0x11] ss:$2 sm:$0xff] %v801_v42  ;;  %v731_v14 = vrot.slane %v7714_v4, 5  ;;  %v821_v40 = vrot.slane %v819_v29, 4  ;;  %v12618_v42 = vld [vmem:[#allocation29_spill] sm:$0xff] }
 0x12b   : > { %v7993_v7 = vld.sshfl [vmem:[#allocation1 + $0x20] sm:$0xff pattern:$0x75316420]  ;;  %v710_v35 = vsel %vm7653_vm2, %v708_v26, %v12614_v63  ;;  %v820_v26 = vsel %vm7917_vm5, %v818_v56, %v819_v29  ;;  %v841_v37 = vrot.slane %v12618_v42, 6  ;;  %v726_v56 = vsel %vm7653_vm2, %v724_v28, %v725_v38 }
 0x12c   : > { %12613 = vst [vmem:[#allocation79_spill] sm:$0xff] %v7993_v7  ;;  %v728_v7 = vrot.slane %v12617_v16, 5  ;;  %v733_v4 = vrot.slane %v731_v14, 4  ;;  %v12620_v16 = vrot.slane %v7368_v33, 6  ;;  %v12627_v28 = vrot.slane %v7483_v43, 5 }
 0x12d   : > { %1392 = vst [vmem:[#allocation1 + $0x20] ss:$2 sm:$0xff] %v701_v32  ;;  %v8003_v15 = vld.sshfl [vmem:[#allocation1 + $0x30] sm:$0xff pattern:$0x75316420]  ;;  %v817_v32 = vsel %vm7917_vm5, %v815_v49, %v816_v57  ;;  %v12621_v49 = vld [vmem:[#allocation86_spill] sm:$0xff] }
 0x12e   : > { %12615 = vst [vmem:[#allocation141_spill] sm:$0xff] %v8003_v15  ;;  %v730_v15 = vrot.slane %v728_v7, 4  ;;  %v826_v57 = vsel %vm7917_vm5, %v824_v25, %v12620_v16  ;;  %v12625_v16 = vrot.slane %v7563_v20, 6 }
 0x12f   : > { %1393 = vst [vmem:[#allocation1 + $0x21] ss:$2 sm:$0xff] %v704_v13  ;;  %v823_v13 = vsel %vm7917_vm5, %v821_v40, %v822_v11  ;;  %v8017_v24 = vld.sshfl [vmem:[#allocation1] sm:$0xff pattern:$0x75316420]  ;;  %v8030_v11 = vrot.slane %v7523_v41, 4  ;;  %v729_v40 = vsel %vm7653_vm2, %v727_v30, %v728_v7 }
 0x130   : > { %1394 = vst [vmem:[#allocation1 + $0x30] ss:$2 sm:$0xff] %v707_v8  ;;  %v844_v8 = vrot.slane %v12621_v49, 6  ;;  %v840_v25 = vrot.slane %v12625_v16, 4  ;;  %v756_v30 = vrot.slane %v7523_v41, 5 }
 0x131   : > { %1395 = vst [vmem:[#allocation1 + $0x31] ss:$2 sm:$0xff] %v710_v35  ;;  %v8024_v29 = vld.sshfl [vmem:[#allocation1 + $0x10] sm:$0xff pattern:$0x75316420]  ;;  %v12623_v35 = vld [vmem:[#allocation36_spill] sm:$0xff] }
 0x132   : > { %12619 = vst [vmem:[#allocation142_spill] sm:$0xff] %v8017_v24  ;;  %v847_v63 = vrot.slane %v12623_v35, 6  ;;  %v12624_v24 = vld [vmem:[#allocation65_spill] sm:$0xff]  ;;  %v846_v7 = vrot.slane %v844_v8, 4  ;;  %v12628_v35 = vld [vmem:[#allocation115_spill] sm:$0xff]  ;;  %v759_v21 = vrot.slane %v8030_v11, 5 }
 0x133   : > { %12622 = vst [vmem:[#allocation143_spill] sm:$0xff] %v8024_v29  ;;  %v750_v42 = vrot.slane %v12624_v24, 5  ;;  %v843_v29 = vrot.slane %v841_v37, 4  ;;  %v850_v49 = vrot.slane %v12628_v35, 6  ;;  %v842_v24 = vsel %vm7917_vm5, %v840_v25, %v841_v37 }
 0x134   : > { %1539 = vst [vmem:[#allocation1] ss:$2 sm:$0xff] %v817_v32  ;;  %v732_v32 = vsel %vm7653_vm2, %v730_v15, %v731_v14  ;;  %v849_v16 = vrot.slane %v847_v63, 4  ;;  %v12630_v14 = vrot.slane %v7734_v12, 5  ;;  %v12394_v35 = vrot.slane %v7404_v46, 6 }
 0x135   : > { %1540 = vst [vmem:[#allocation1 + $0x1] ss:$2 sm:$0xff] %v820_v26  ;;  %v735_v26 = vsel %vm7653_vm2, %v733_v4, %v12627_v28  ;;  %v752_v4 = vrot.slane %v750_v42, 4  ;;  %v845_v28 = vsel %vm7917_vm5, %v843_v29, %v844_v8  ;;  %v869_v25 = vrot.slane %v7424_v53, 6 }
 0x136   : > { %1541 = vst [vmem:[#allocation1 + $0x10] ss:$2 sm:$0xff] %v823_v13  ;;  %v8039_v38 = vld.sshfl [vmem:[#allocation1 + $0x20] sm:$0xff pattern:$0x75316420]  ;;  %v749_v15 = vrot.slane %v12630_v14, 4  ;;  %v851_v37 = vsel %vm7917_vm5, %v849_v16, %v850_v49 }
 0x137   : > { %12626 = vst [vmem:[#allocation144_spill] sm:$0xff] %v8039_v38  ;;  %v12631_v38 = vld [vmem:[#allocation117_spill] sm:$0xff] }
 0x138   : > { %1542 = vst [vmem:[#allocation1 + $0x11] ss:$2 sm:$0xff] %v826_v57  ;;  %v8047_v13 = vld.sshfl [vmem:[#allocation1 + $0x30] sm:$0xff pattern:$0x75316420]  ;;  %v753_v57 = vrot.slane %v12631_v38, 5  ;;  %v751_v8 = vsel %vm7653_vm2, %v749_v15, %v750_v42 }
 0x139   : > { %1404 = vst [vmem:[#allocation1 + $0x20] ss:$2 sm:$0xff] %v726_v56  ;;  %v758_v38 = vrot.slane %v756_v30, 4  ;;  %v871_v15 = vrot.slane %v869_v25, 4 }
 0x13a   : > { %12629 = vst [vmem:[#allocation145_spill] sm:$0xff] %v8047_v13  ;;  %v755_v56 = vrot.slane %v753_v57, 4  ;;  %v12632_v13 = vld [vmem:[#allocation91_spill] sm:$0xff] }
 0x13b   : > { %1405 = vst [vmem:[#allocation1 + $0x21] ss:$2 sm:$0xff] %v729_v40  ;;  %v848_v40 = vsel %vm7917_vm5, %v846_v7, %v847_v63  ;;  %v866_v41 = vrot.slane %v12632_v13, 6  ;;  %v754_v63 = vsel %vm7653_vm2, %v752_v4, %v753_v57  ;;  %v865_v7 = vrot.slane %v12394_v35, 4  ;;  %v12639_v4 = vld [vmem:[#allocation119_spill] sm:$0xff] }
 0x13c   : > { %1406 = vst [vmem:[#allocation1 + $0x30] ss:$2 sm:$0xff] %v732_v32  ;;  %v8060_v14 = vld.sshfl [vmem:[#allocation1] sm:$0xff pattern:$0x75316420]  ;;  %v12634_v32 = vld [vmem:[#allocation72_spill] sm:$0xff]  ;;  %v757_v49 = vsel %vm7653_vm2, %v755_v56, %v756_v30  ;;  %v760_v42 = vsel %vm7653_vm2, %v758_v38, %v759_v21 }
 0x13d   : > { %1407 = vst [vmem:[#allocation1 + $0x31] ss:$2 sm:$0xff] %v735_v26  ;;  %v778_v26 = vrot.slane %v12634_v32, 6  ;;  %v868_v16 = vrot.slane %v866_v41, 4  ;;  %v6479_v57 = vrot.slane %v7386_v39, 10  ;;  %v12637_v30 = vrot.slane %v7280_v2, 6 }
 0x13e   : > { %1551 = vst [vmem:[#allocation1] ss:$2 sm:$0xff] %v842_v24  ;;  %v867_v45 = vsel %vm7917_vm5, %v865_v7, %v866_v41  ;;  %v6475_v41 = vrot.slane %v7286_v3, 10  ;;  %v12641_v7 = vrot.slane %v7651_v27, 6  ;;  %vm3806_vm2 = vcmask 1046534  }
 0x13f   : > { %v8068_v29 = vld.sshfl [vmem:[#allocation1 + $0x10] sm:$0xff pattern:$0x75316420]  ;;  %1552 = vst [vmem:[#allocation1 + $0x1] ss:$2 sm:$0xff] %v845_v28  ;;  %v872_v28 = vrot.slane %v7764_v5, 6  ;;  %v870_v38 = vsel %vm7917_vm5, %v868_v16, %v869_v25 }
 0x140   : > { %12633 = vst [vmem:[#allocation91_spill] sm:$0xff] %v8068_v29  ;;  %v777_v56 = vrot.slane %v12637_v30, 4  ;;  %v780_v21 = vrot.slane %v778_v26, 4  ;;  %v891_v30 = vrot.slane %v7458_v52, 6  ;;  %v877_v25 = vsel %vm7917_vm5, %v6479_v57, %v12641_v7 }
 0x141   : > { %1553 = vst [vmem:[#allocation1 + $0x10] ss:$2 sm:$0xff] %v848_v40  ;;  %v12638_v40 = vld [vmem:[#allocation11_spill] sm:$0xff]  ;;  %v898_v16 = vrot.slane %v7615_v34, 6  ;;  %v894_v29 = vrot.slane %v7817_v6, 6  ;;  %v12398_v7 = vrot.slane %v7483_v43, 6 }
 0x142   : > { %v8077_v24 = vld.sshfl [vmem:[#allocation1 + $0x20] sm:$0xff pattern:$0x75316420]  ;;  %1554 = vst [vmem:[#allocation1 + $0x11] ss:$2 sm:$0xff] %v851_v37  ;;  %v12396_v37 = vrot.slane %v7607_v10, 6 }
 0x143   : > { %12635 = vst [vmem:[#allocation72_spill] sm:$0xff] %v8077_v24  ;;  %v781_v24 = vrot.slane %v12638_v40, 6 }
 0x144   : > { %1416 = vst [vmem:[#allocation1 + $0x20] ss:$2 sm:$0xff] %v751_v8  ;;  %v8084_v35 = vld.sshfl [vmem:[#allocation1 + $0x30] sm:$0xff pattern:$0x75316420] }
 0x145   : > { %12636 = vst [vmem:[#allocation146_spill] sm:$0xff] %v8084_v35  ;;  %v783_v8 = vrot.slane %v781_v24, 4  ;;  %v784_v35 = vrot.slane %v12639_v4, 6 }
 0x146   : > { %1417 = vst [vmem:[#allocation1 + $0x21] ss:$2 sm:$0xff] %v754_v63  ;;  %v873_v63 = vsel %vm7917_vm5, %v871_v15, %v872_v28  ;;  %v8098_v39 = vld.sshfl [vmem:[#allocation1] sm:$0xff pattern:$0x75316420]  ;;  %v782_v15 = vsel %vm7917_vm5, %v780_v21, %v781_v24  ;;  %v803_v28 = vrot.slane %v7339_v22, 6 }
 0x147   : > { %1418 = vst [vmem:[#allocation1 + $0x30] ss:$2 sm:$0xff] %v757_v49  ;;  %v779_v49 = vsel %vm7917_vm5, %v777_v56, %v778_v26  ;;  %v785_v57 = vsel %vm7917_vm5, %v783_v8, %v784_v35  ;;  %v893_v26 = vrot.slane %v891_v30, 4  ;;  %v810_v21 = vrot.slane %v7578_v58, 6 }
 0x148   : > { %1419 = vst [vmem:[#allocation1 + $0x31] ss:$2 sm:$0xff] %v760_v42  ;;  %v12646_v35 = vrot.slane %v7552_v48, 6 }
 0x149   : > { %12640 = vst [vmem:[#allocation11_spill] sm:$0xff] %v8098_v39  ;;  %v8108_v42 = vld.sshfl [vmem:[#allocation1 + $0x10] sm:$0xff pattern:$0x75316420]  ;;  %v890_v39 = vrot.slane %v12396_v37, 4 }
 0x14a   : > { %1563 = vst [vmem:[#allocation1] ss:$2 sm:$0xff] %v867_v45  ;;  %v12644_v45 = vrot.slane %v7505_v44, 6  ;;  %v802_v8 = vrot.slane %v12646_v35, 4  ;;  %v812_v35 = vrot.slane %v810_v21, 4 }
 0x14b   : > { %12642 = vst [vmem:[#allocation119_spill] sm:$0xff] %v8108_v42  ;;  %v895_v42 = vsel %vm7917_vm5, %v893_v26, %v894_v29  ;;  %v923_v26 = vrot.slane %v7449_v62, 6 }
 0x14c   : > { %1564 = vst [vmem:[#allocation1 + $0x1] ss:$2 sm:$0xff] %v870_v38  ;;  %v789_v24 = vsel %vm7917_vm5, %v6475_v41, %v12644_v45  ;;  %v6480_v38 = vrot.slane %v7416_v50, 10  ;;  %v12647_v41 = vld [vmem:[#allocation124_spill] sm:$0xff]  ;;  %v804_v29 = vsel %vm7917_vm5, %v802_v8, %v803_v28  ;;  %v12652_v8 = vrot.slane %v7303_v9, 6 }
 0x14d   : > { %1565 = vst [vmem:[#allocation1 + $0x10] ss:$2 sm:$0xff] %v873_v63  ;;  %v8118_v56 = vld.sshfl [vmem:[#allocation1 + $0x20] sm:$0xff pattern:$0x75316420]  ;;  %v900_v63 = vrot.slane %v898_v16, 4 }
 0x14e   : > { %12643 = vst [vmem:[#allocation147_spill] sm:$0xff] %v8118_v56  ;;  %v805_v56 = vrot.slane %v803_v28, 4  ;;  %v806_v45 = vrot.slane %v12647_v41, 6 }
 0x14f   : > { %1566 = vst [vmem:[#allocation1 + $0x11] ss:$2 sm:$0xff] %v877_v25  ;;  %v8127_v37 = vld.sshfl [vmem:[#allocation1 + $0x30] sm:$0xff pattern:$0x75316420]  ;;  %v892_v25 = vsel %vm7917_vm5, %v890_v39, %v891_v30  ;;  %v12650_v39 = vrot.slane %v7419_v51, 6 }
 0x150   : > { %1516 = vst [vmem:[#allocation1 + $0x20] ss:$2 sm:$0xff] %v779_v49  ;;  %v12648_v49 = vld [vmem:[#allocation6_spill] sm:$0xff] }
 0x151   : > { %12645 = vst [vmem:[#allocation148_spill] sm:$0xff] %v8127_v37  ;;  %v6476_v50 = vrot.slane %v12648_v49, 10  ;;  %v902_v30 = vsel %vm7917_vm5, %v900_v63, %v12650_v39  ;;  %v12655_v39 = vld [vmem:[#allocation114_spill] sm:$0xff] }
 0x152   : > { %1518 = vst [vmem:[#allocation1 + $0x21] ss:$2 sm:$0xff] %v782_v15  ;;  %v899_v15 = vsel %vm7917_vm5, %v6480_v38, %v898_v16  ;;  %v807_v16 = vsel %vm7917_vm5, %v805_v56, %v806_v45  ;;  %v915_v38 = vrot.slane %v12398_v7, 4  ;;  %v835_v56 = vrot.slane %v7329_v18, 6 }
 0x153   : > { %1520 = vst [vmem:[#allocation1 + $0x30] ss:$2 sm:$0xff] %v785_v57  ;;  %v8140_v37 = vld.sshfl [vmem:[#allocation1] sm:$0xff pattern:$0x75316420]  ;;  %v920_v57 = vrot.slane %v7636_v23, 6  ;;  %v811_v63 = vsel %vm7917_vm5, %v6476_v50, %v810_v21 }
 0x154   : > { %1522 = vst [vmem:[#allocation1 + $0x31] ss:$2 sm:$0xff] %v789_v24  ;;  %v925_v7 = vrot.slane %v923_v26, 4  ;;  %v12653_v50 = vrot.slane %v7368_v33, 6 }
 0x155   : > { %12649 = vst [vmem:[#allocation124_spill] sm:$0xff] %v8140_v37  ;;  %v916_v37 = vrot.slane %v7853_v55, 6  ;;  %v922_v45 = vrot.slane %v920_v57, 4 }
 0x156   : > { %1575 = vst [vmem:[#allocation1] ss:$2 sm:$0xff] %v892_v25  ;;  %v8150_v24 = vld.sshfl [vmem:[#allocation1 + $0x10] sm:$0xff pattern:$0x75316420]  ;;  %v6481_v25 = vrot.slane %v7446_v61, 10 }
 0x157   : > { %12651 = vst [vmem:[#allocation6_spill] sm:$0xff] %v8150_v24  ;;  %v827_v21 = vrot.slane %v12653_v50, 4  ;;  %v828_v24 = vrot.slane %v7847_v36, 6  ;;  %v917_v23 = vsel %vm7917_vm5, %v915_v38, %v916_v37  ;;  %v837_v50 = vrot.slane %v835_v56, 4 }
 0x158   : > { %1576 = vst [vmem:[#allocation1 + $0x1] ss:$2 sm:$0xff] %v895_v42  ;;  %v814_v42 = vsel %vm7917_vm5, %v812_v35, %v12652_v8  ;;  %v6477_v35 = vrot.slane %v7326_v17, 10  ;;  %v921_v8 = vsel %vm7917_vm5, %v6481_v25, %v920_v57  ;;  %v924_v36 = vsel %vm7917_vm5, %v922_v45, %v923_v26 }
 0x159   : > { %1577 = vst [vmem:[#allocation1 + $0x10] ss:$2 sm:$0xff] %v899_v15  ;;  %v1525_v28 = vld.sshfl [vmem:[#allocation1 + $0x20] sm:$0xff pattern:$0x75316420]  ;;  %v12658_v37 = vrot.slane %v7734_v12, 6  ;;  %v829_v26 = vsel %vm7917_vm5, %v827_v21, %v828_v24 }
 0x15a   : > { %1578 = vst [vmem:[#allocation1 + $0x11] ss:$2 sm:$0xff] %v902_v30  ;;  %v12654_v30 = vld [vmem:[#allocation94_spill] sm:$0xff]  ;;  %v948_v57 = vrot.slane %v7277_v1, 7  ;;  %v854_v25 = vrot.slane %v7624_v31, 6  ;;  %v6482_v1 = vrot.slane %v7274_v0, 11 }
 0x15b   : > { %1531 = vst [vmem:[#allocation1 + $0x20] ss:$2 sm:$0xff] %v804_v29  ;;  %v1526_v15 = vld.sshfl [vmem:[#allocation1 + $0x30] sm:$0xff pattern:$0x75316420]  ;;  %v832_v62 = vrot.slane %v12654_v30, 6  ;;  %v927_v38 = vsel %vm7917_vm5, %v925_v7, %v12658_v37 }
 0x15c   : > { %1532 = vst [vmem:[#allocation1 + $0x21] ss:$2 sm:$0xff] %v807_v16  ;;  %v6794_v29 = vpack.i.bf16 %v1526_v15, %v1525_v28  ;;  %v12656_v16 = vld [vmem:[#allocation116_spill] sm:$0xff]  ;;  %v945_v30 = vrot.slane %v7476_v54, 7  ;;  %v951_v54 = vrot.slane %v7480_v59, 7  ;;  %v12666_v37 = vld [vmem:[#allocation2_spill] sm:$0xff] }
 0x15d   : > { %1533 = vst [vmem:[#allocation1 + $0x30] ss:$2 sm:$0xff] %v811_v63  ;;  %v6804_v18 = vpack.i.bf16 %v12656_v16, %v12655_v39  ;;  %v834_v61 = vrot.slane %v832_v62, 4  ;;  %v833_v7 = vsel %vm7917_vm5, %v6477_v35, %v832_v62  ;;  %v12662_v62 = vrot.slane %v7563_v20, 6  ;;  %v12663_v0 = vld [vmem:[#allocation100_spill] sm:$0xff]  ;;  %v12664_v39 = vld [vmem:[#allocation23_spill] sm:$0xff] }
 0x15e   : > { %1534 = vst [vmem:[#allocation1 + $0x31] ss:$2 sm:$0xff] %v814_v42  ;;  %6795 = vrot.lane.b32.xlu2 %v6794_v29, %s7174_s21  ;;  %v947_v59 = vrot.slane %v945_v30, 4  ;;  %v950_v42 = vrot.slane %v948_v57, 4  ;;  %v6478_v15 = vrot.slane %v12664_v39, 10  ;;  %v12665_v21 = vld [vmem:[#allocation24_spill] sm:$0xff] }
 0x15f   : > { %v8180_v34 = vld.sshfl [vmem:[#allocation1] sm:$0xff pattern:$0x75316420]  ;;  %6805 = vrot.lane.b32.xlu0 %v6804_v18, %s7173_s20  ;;  %v839_v28 = vsel %vm7917_vm5, %v837_v50, %v12662_v62  ;;  %v857_v35 = vrot.slane %v12665_v21, 6  ;;  %v856_v29 = vrot.slane %v854_v25, 4  ;;  %v12405_v50 = vrot.slane %v7505_v44, 7 }
 0x160   : > { %12657 = vst [vmem:[#allocation114_spill] sm:$0xff] %v8180_v34  ;;  %v949_v16 = vsel %vm8202_vm8, %v947_v59, %v948_v57  ;;  %v855_v57 = vsel %vm7917_vm5, %v6478_v15, %v854_v25 }
 0x161   : > { %1587 = vst [vmem:[#allocation1] ss:$2 sm:$0xff] %v917_v23  ;;  %v8192_v63 = vld.sshfl [vmem:[#allocation1 + $0x10] sm:$0xff pattern:$0x75316420]  ;;  %v836_v23 = vsel %vm7917_vm5, %v834_v61, %v835_v56  ;;  %v953_v56 = vrot.slane %v951_v54, 4 }
 0x162   : > { %12659 = vst [vmem:[#allocation116_spill] sm:$0xff] %v8192_v63  ;;  %v12668_v63 = vrot.slane %v7280_v2, 7 }
 0x163   : > { %1588 = vst [vmem:[#allocation1 + $0x1] ss:$2 sm:$0xff] %v921_v8  ;;  %v8206_v24 = vld.sshfl [vmem:[#allocation1 + $0x20] sm:$0xff pattern:$0x75316420]  ;;  %v946_v8 = vsel %vm8202_vm8, %v6482_v1, %v945_v30  ;;  %v12669_v1 = vld [vmem:[#allocation34_spill] sm:$0xff] }
 0x164   : > { %1589 = vst [vmem:[#allocation1 + $0x10] ss:$2 sm:$0xff] %v924_v36  ;;  %v860_v36 = vrot.slane %v12663_v0, 6  ;;  %v955_v30 = vsel %vm8202_vm8, %v953_v56, %v12668_v63  ;;  %v12671_v56 = vrot.slane %v7404_v46, 6 }
 0x165   : > { %1590 = vst [vmem:[#allocation1 + $0x11] ss:$2 sm:$0xff] %v927_v38  ;;  %v8214_v45 = vld.sshfl [vmem:[#allocation1 + $0x30] sm:$0xff pattern:$0x75316420]  ;;  %v970_v38 = vrot.slane %v12666_v37, 7 }
 0x166   : > { %1543 = vst [vmem:[#allocation1 + $0x20] ss:$2 sm:$0xff] %v829_v26  ;;  %v859_v26 = vrot.slane %v857_v35, 4  ;;  %v862_v62 = vrot.slane %v860_v36, 4  ;;  %v882_v37 = vrot.slane %v12610_v47, 6  ;;  %v6824_v19 = vpack.i.bf16 %v8214_v45, %v8206_v24 }
 0x167   : > { %1544 = vst [vmem:[#allocation1 + $0x21] ss:$2 sm:$0xff] %v833_v7  ;;  %v952_v7 = vsel %vm8202_vm8, %v950_v42, %v951_v54  ;;  %v969_v54 = vrot.slane %v12405_v50, 4  ;;  %v972_v42 = vrot.slane %v970_v38, 4  ;;  %v1070_v24 = vrot.slane %v7458_v52, 7 }
 0x168   : > { %1545 = vst [vmem:[#allocation1 + $0x30] ss:$2 sm:$0xff] %v836_v23  ;;  %v879_v23 = vrot.slane %v12669_v1, 6  ;;  %v861_v63 = vsel %vm7917_vm5, %v859_v26, %v860_v36  ;;  %v864_v25 = vsel %vm7917_vm5, %v862_v62, %v12671_v56  ;;  %v884_v34 = vrot.slane %v882_v37, 4 }
 0x169   : > { %1546 = vst [vmem:[#allocation1 + $0x31] ss:$2 sm:$0xff] %v839_v28  ;;  %v858_v28 = vsel %vm7917_vm5, %v856_v29, %v857_v35  ;;  %v12674_v35 = vrot.slane %v7651_v27, 6  ;;  %v971_v62 = vsel %vm8202_vm8, %v969_v54, %v970_v38 }
 0x16a   : > { %v8226_v61 = vld.sshfl [vmem:[#allocation1] sm:$0xff pattern:$0x75316420]  ;;  %v881_v26 = vrot.slane %v879_v23, 4 }
 0x16b   : > { %12667 = vst [vmem:[#allocation100_spill] sm:$0xff] %v8226_v61  ;;  %v878_v29 = vrot.slane %v12674_v35, 4  ;;  %v12676_v61 = vld [vmem:[#allocation10_spill] sm:$0xff] }
 0x16c   : > { %1683 = vst [vmem:[#allocation1] ss:$2 sm:$0xff] %v946_v8  ;;  %v8235_v59 = vld.sshfl [vmem:[#allocation1 + $0x10] sm:$0xff pattern:$0x75316420]  ;;  %v12673_v8 = vld [vmem:[#allocation70_spill] sm:$0xff] }
 0x16d   : > { %12670 = vst [vmem:[#allocation23_spill] sm:$0xff] %v8235_v59  ;;  %v976_v36 = vrot.slane %v12676_v61, 7  ;;  %v880_v54 = vsel %vm7917_vm5, %v878_v29, %v879_v23  ;;  %v12682_v29 = vrot.slane %v7607_v10, 6 }
 0x16e   : > { %1685 = vst [vmem:[#allocation1 + $0x1] ss:$2 sm:$0xff] %v949_v16  ;;  %v8247_v15 = vld.sshfl [vmem:[#allocation1 + $0x20] sm:$0xff pattern:$0x75316420]  ;;  %v973_v16 = vrot.slane %v12673_v8, 7 }
 0x16f   : > { %1687 = vst [vmem:[#allocation1 + $0x10] ss:$2 sm:$0xff] %v952_v7  ;;  %v12675_v7 = vld [vmem:[#allocation48_spill] sm:$0xff]  ;;  %v978_v56 = vrot.slane %v976_v36, 4  ;;  %v12406_v8 = vrot.slane %v7552_v48, 7 }
 0x170   : > { %1689 = vst [vmem:[#allocation1 + $0x11] ss:$2 sm:$0xff] %v955_v30  ;;  %v885_v50 = vrot.slane %v12675_v7, 6  ;;  %v8255_v59 = vld.sshfl [vmem:[#allocation1 + $0x30] sm:$0xff pattern:$0x75316420]  ;;  %v974_v35 = vsel %vm8202_vm8, %v972_v42, %v973_v16 }
 0x171   : > { %12672 = vst [vmem:[#allocation24_spill] sm:$0xff] %v8247_v15  ;;  %v975_v30 = vrot.slane %v973_v16, 4  ;;  %v980_v38 = vsel %vm8202_vm8, %v978_v56, %v12406_v8  ;;  %v12678_v16 = vld [vmem:[#allocation111_spill] sm:$0xff] }
 0x172   : > { %1555 = vst [vmem:[#allocation1 + $0x20] ss:$2 sm:$0xff] %v855_v57  ;;  %v995_v57 = vrot.slane %v12612_v60, 7  ;;  %v883_v60 = vsel %vm7917_vm5, %v881_v26, %v882_v37  ;;  %v886_v7 = vsel %vm7917_vm5, %v884_v34, %v885_v50  ;;  %v12683_v26 = vld [vmem:[#allocation112_spill] sm:$0xff] }
 0x173   : > { %12677 = vst [vmem:[#allocation2_spill] sm:$0xff] %v8255_v59  ;;  %v977_v59 = vsel %vm8202_vm8, %v975_v30, %v976_v36  ;;  %v904_v36 = vrot.slane %v12678_v16, 6 }
 0x174   : > { %1556 = vst [vmem:[#allocation1 + $0x21] ss:$2 sm:$0xff] %v858_v28  ;;  %v997_v30 = vrot.slane %v995_v57, 4  ;;  %v12679_v28 = vld [vmem:[#allocation19_spill] sm:$0xff] }
 0x175   : > { %1557 = vst [vmem:[#allocation1 + $0x30] ss:$2 sm:$0xff] %v861_v63  ;;  %v1698_v61 = vld.sshfl [vmem:[#allocation1] sm:$0xff pattern:$0x75316420]  ;;  %v887_v63 = vrot.slane %v885_v50, 4 }
 0x176   : > { %1558 = vst [vmem:[#allocation1 + $0x31] ss:$2 sm:$0xff] %v864_v25  ;;  %v998_v15 = vrot.slane %v12679_v28, 7  ;;  %v12686_v28 = vrot.slane %v7419_v51, 6  ;;  %v906_v8 = vrot.slane %v904_v36, 4 }
 0x177   : > { %1702 = vst [vmem:[#allocation1] ss:$2 sm:$0xff] %v971_v62  ;;  %v1699_v42 = vld.sshfl [vmem:[#allocation1 + $0x10] sm:$0xff pattern:$0x75316420]  ;;  %v12681_v62 = vrot.slane %v7303_v9, 7  ;;  %v889_v37 = vsel %vm7917_vm5, %v887_v63, %v12682_v29 }
 0x178   : > { %1703 = vst [vmem:[#allocation1 + $0x1] ss:$2 sm:$0xff] %v974_v35  ;;  %v6784_v25 = vpack.i.bf16 %v1699_v42, %v1698_v61  ;;  %v910_v35 = vrot.slane %v12683_v26, 6  ;;  %v1000_v50 = vrot.slane %v998_v15, 4  ;;  %v12687_v42 = vld [vmem:[#allocation58_spill] sm:$0xff]  ;;  %v999_v63 = vsel %vm8202_vm8, %v997_v30, %v998_v15  ;;  %v12688_v29 = vld [vmem:[#allocation29_spill] sm:$0xff] }
 0x179   : > { %1704 = vst [vmem:[#allocation1 + $0x10] ss:$2 sm:$0xff] %v977_v59  ;;  %v994_v23 = vrot.slane %v12681_v62, 4  ;;  %v12684_v59 = vld [vmem:[#allocation80_spill] sm:$0xff]  ;;  %v907_v62 = vrot.slane %v12687_v42, 6 }
 0x17a   : > { %1705 = vst [vmem:[#allocation1 + $0x11] ss:$2 sm:$0xff] %v980_v38  ;;  %6785 = vrot.lane.b32.xlu1 %v6784_v25, %s7175_s22  ;;  %v1001_v61 = vrot.slane %v12684_v59, 7  ;;  %v903_v38 = vrot.slane %v12686_v28, 4  ;;  %v12407_v25 = vrot.slane %v7563_v20, 7  ;;  %v1020_v59 = vrot.slane %v12688_v29, 7 }
 0x17b   : > { %v8278_v56 = vld.sshfl [vmem:[#allocation1 + $0x20] sm:$0xff pattern:$0x75316420] }
 0x17c   : > { %12680 = vst [vmem:[#allocation70_spill] sm:$0xff] %v8278_v56  ;;  %v12690_v56 = vld [vmem:[#allocation131_spill] sm:$0xff]  ;;  %v1002_v28 = vsel %vm8202_vm8, %v1000_v50, %v1001_v61  ;;  %v1003_v16 = vrot.slane %v1001_v61, 4  ;;  %v905_v15 = vsel %vm7917_vm5, %v903_v38, %v904_v36  ;;  %v1019_v61 = vrot.slane %v12407_v25, 4  ;;  %v12694_v38 = vld [vmem:[#allocation133_spill] sm:$0xff]  ;;  %v12696_v25 = vld [vmem:[#allocation86_spill] sm:$0xff] }
 0x17d   : > { %1567 = vst [vmem:[#allocation1 + $0x20] ss:$2 sm:$0xff] %v880_v54  ;;  %v8289_v34 = vld.sshfl [vmem:[#allocation1 + $0x30] sm:$0xff pattern:$0x75316420]  ;;  %v996_v54 = vsel %vm8202_vm8, %v994_v23, %v995_v57  ;;  %v908_v57 = vsel %vm7917_vm5, %v906_v8, %v907_v62  ;;  %v1023_v30 = vrot.slane %v12696_v25, 7 }
 0x17e   : > { %12685 = vst [vmem:[#allocation10_spill] sm:$0xff] %v8289_v34  ;;  %v12689_v34 = vld [vmem:[#allocation128_spill] sm:$0xff]  ;;  %v2070_v25 = vld [vmem:[%s12320_s1 + $0x110] sm:$0xff] }
 0x17f   : > { %1568 = vst [vmem:[#allocation1 + $0x21] ss:$2 sm:$0xff] %v883_v60  ;;  %v909_v60 = vrot.slane %v907_v62, 4  ;;  %v6789_v26 = vpack.i.bf16 %v12690_v56, %v12689_v34  ;;  %v8304_v42 = vld.sshfl [vmem:[#allocation1] sm:$0xff pattern:$0x75316420] }
 0x180   : > { %1569 = vst [vmem:[#allocation1 + $0x30] ss:$2 sm:$0xff] %v886_v7  ;;  %v912_v7 = vrot.slane %v910_v35, 4  ;;  %v12691_v56 = vld [vmem:[#allocation65_spill] sm:$0xff]  ;;  %v12695_v62 = vld [vmem:[#allocation136_spill] sm:$0xff] }
 0x181   : > { %1570 = vst [vmem:[#allocation1 + $0x31] ss:$2 sm:$0xff] %v889_v37  ;;  %v8311_v23 = vld.sshfl [vmem:[#allocation1 + $0x10] sm:$0xff pattern:$0x75316420]  ;;  %v929_v37 = vrot.slane %v12691_v56, 6  ;;  %v911_v36 = vsel %vm7917_vm5, %v909_v60, %v910_v35  ;;  %v6819_v29 = vpack.i.bf16 %v12695_v62, %v12694_v38 }
 0x182   : > { %1715 = vst [vmem:[#allocation1 + $0x1] ss:$2 sm:$0xff] %v999_v63  ;;  %v12692_v34 = vld [vmem:[#allocation117_spill] sm:$0xff]  ;;  %v1022_v63 = vrot.slane %v1020_v59, 4  ;;  %6790 = vrot.lane.b32.xlu1 %v6789_v26, %s7173_s20  ;;  %v12698_v35 = vld [vmem:[#allocation74_spill] sm:$0xff] }
 0x183   : > { %1714 = vst [vmem:[#allocation1] ss:$2 sm:$0xff] %v996_v54  ;;  %v932_v50 = vrot.slane %v12692_v34, 6  ;;  %v2074_v54 = vld [vmem:[%s12320_s1 + $0x130] sm:$0xff]  ;;  %v12697_v34 = vrot.slane %v7483_v43, 6  ;;  %v935_v60 = vrot.slane %v12698_v35, 6  ;;  %6820 = vrot.lane.b32.xlu0 %v6819_v29, %s7173_s20 }
 0x184   : > { %1716 = vst [vmem:[#allocation1 + $0x10] ss:$2 sm:$0xff] %v1002_v28  ;;  %v2075_v28 = vld [vmem:[%s12320_s1 + $0x138] sm:$0xff]  ;;  %2251 = vmatpush.msra.mxu1 %v2074_v54  ;;  %v2072_v38 = vld [vmem:[%s12320_s1 + $0x120] sm:$0xff]  ;;  %v2073_v62 = vld [vmem:[%s12320_s1 + $0x128] sm:$0xff]  ;;  %v12701_v54 = vrot.slane %v7734_v12, 6  ;;  %v1024_v1 = vsel %vm8202_vm8, %v1022_v63, %v1023_v30 }
 0x185   : > { %v914_v26 = vsel %vm7917_vm5, %v912_v7, %v12697_v34  ;;  %2453 = vmatpush.msra.mxu3 %v2075_v28  ;;  %v2071_v7 = vld [vmem:[%s12320_s1 + $0x118] sm:$0xff]  ;;  %v12703_v29 = vld [vmem:[#allocation143_spill] sm:$0xff]  ;;  %v931_v56 = vrot.slane %v929_v37, 4  ;;  %v934_v47 = vrot.slane %v932_v50, 4 }
 0x186   : > { %v8320_v8 = vld.sshfl [vmem:[#allocation1 + $0x20] sm:$0xff pattern:$0x75316420]  ;;  %v928_v28 = vrot.slane %v12701_v54, 4  ;;  %2252 = vmatpush.msra.mxu1 %v2072_v38  ;;  %v937_v38 = vrot.slane %v935_v60, 4  ;;  %v960_v54 = vrot.slane %v12638_v40, 7 }
 0x187   : > { %12693 = vst [vmem:[#allocation19_spill] sm:$0xff] %v8320_v8  ;;  %2454 = vmatpush.msra.mxu3 %v2073_v62  ;;  %v938_v62 = vrot.slane %v8030_v11, 6  ;;  %v933_v63 = vsel %vm7917_vm5, %v931_v56, %v932_v50  ;;  %v6483_v40 = vrot.slane %v7286_v3, 11 }
 0x188   : > { %1579 = vst [vmem:[#allocation1 + $0x20] ss:$2 sm:$0xff] %v905_v15  ;;  %v8345_v8 = vld.sshfl [vmem:[#allocation1 + $0x30] sm:$0xff pattern:$0x75316420]  ;;  %v12700_v15 = vrot.slane %v7368_v33, 7  ;;  %2253 = vmatpush.msra.mxu1 %v2070_v25 }
 0x189   : > { %12699 = vst [vmem:[#allocation80_spill] sm:$0xff] %v8345_v8  ;;  %v12702_v8 = vld [vmem:[#allocation142_spill] sm:$0xff]  ;;  %2455 = vmatpush.msra.mxu3 %v2071_v7  ;;  %v939_v50 = vsel %vm7917_vm5, %v937_v38, %v938_v62  ;;  %v1067_v62 = vrot.slane %v7607_v10, 7  ;;  %v12740_v10 = vld [vmem:[#allocation65_spill] sm:$0xff] }
 0x18a   : > { %1580 = vst [vmem:[#allocation1 + $0x21] ss:$2 sm:$0xff] %v908_v57  ;;  %v1005_v34 = vsel %vm8202_vm8, %v1003_v16, %v12700_v15  ;;  %v1021_v57 = vsel %vm8202_vm8, %v1019_v61, %v1020_v59  ;;  %v6809_v35 = vpack.i.bf16 %v12703_v29, %v12702_v8  ;;  %v1042_v16 = vrot.slane %v7404_v46, 7  ;;  %v2069_v25 = vld [vmem:[%s12320_s1 + $0x108] sm:$0xff] }
 0x18b   : > { %1581 = vst [vmem:[#allocation1 + $0x30] ss:$2 sm:$0xff] %v911_v36  ;;  %v8364_v36 = vld.sshfl [vmem:[#allocation1] sm:$0xff pattern:$0x75316420]  ;;  %v1045_v59 = vrot.slane %v12632_v13, 7  ;;  %v930_v61 = vsel %vm7917_vm5, %v928_v28, %v929_v37  ;;  %v936_v13 = vsel %vm7917_vm5, %v934_v47, %v935_v60  ;;  %2456 = vmatpush.msra.mxu3 %v2069_v25 }
 0x18c   : > { %1582 = vst [vmem:[#allocation1 + $0x31] ss:$2 sm:$0xff] %v914_v26  ;;  %v1025_v8 = vrot.slane %v1023_v30, 4  ;;  %6810 = vrot.lane.b32.xlu1 %v6809_v35, %s7174_s21  ;;  %v2068_v26 = vld [vmem:[%s12320_s1 + $0x100] sm:$0xff]  ;;  %v957_v37 = vrot.slane %v12634_v32, 7  ;;  %v1044_v56 = vrot.slane %v1042_v16, 4 }
 0x18d   : > { %1717 = vst [vmem:[#allocation1 + $0x11] ss:$2 sm:$0xff] %v1005_v34  ;;  %2254 = vmatpush.msra.mxu1 %v2068_v26  ;;  %v1047_v7 = vrot.slane %v1045_v59, 4  ;;  %v1048_v15 = vrot.slane %v7424_v53, 7  ;;  %v12705_v47 = vrot.slane %v7280_v2, 7  ;;  %v962_v53 = vrot.slane %v960_v54, 4 }
 0x18e   : > { %1726 = vst [vmem:[#allocation1] ss:$2 sm:$0xff] %v1021_v57  ;;  %v959_v57 = vrot.slane %v957_v37, 4  ;;  %v1046_v2 = vsel %vm8202_vm8, %v1044_v56, %v1045_v59  ;;  %v963_v29 = vrot.slane %v12639_v4, 7  ;;  %v1069_v52 = vrot.slane %v1067_v62, 4 }
 0x18f   : > { %1727 = vst [vmem:[#allocation1 + $0x1] ss:$2 sm:$0xff] %v1024_v1  ;;  %v12704_v1 = vld [vmem:[#allocation36_spill] sm:$0xff]  ;;  %v956_v60 = vrot.slane %v12705_v47, 4  ;;  %v1049_v38 = vsel %vm8202_vm8, %v1047_v7, %v1048_v15  ;;  %v982_v25 = vrot.slane %v7339_v22, 7  ;;  %v12708_v7 = vrot.slane %v7552_v48, 7 }
 0x190   : > { %v1026_v35 = vrot.slane %v12704_v1, 7  ;;  %v964_v3 = vsel %vm8202_vm8, %v962_v53, %v963_v29  ;;  %v1072_v1 = vrot.slane %v1070_v24, 4  ;;  %v1071_v22 = vsel %vm8202_vm8, %v1069_v52, %v1070_v24  ;;  %v12709_v53 = vld [vmem:[#allocation121_spill] sm:$0xff]  ;;  %v12710_v29 = vld [vmem:[#allocation122_spill] sm:$0xff] }
 0x191   : > { %v8382_v30 = vld.sshfl [vmem:[#allocation1 + $0x20] sm:$0xff pattern:$0x75316420]  ;;  %v981_v47 = vrot.slane %v12708_v7, 4  ;;  %v1051_v48 = vrot.slane %v7764_v5, 7  ;;  %vm3808_vm5 = vcmask 1047559  }
 0x192   : > { %1591 = vst [vmem:[#allocation1 + $0x20] ss:$2 sm:$0xff] %v930_v61  ;;  %v1027_v34 = vsel %vm8202_vm8, %v1025_v8, %v1026_v35  ;;  %v958_v61 = vsel %vm8202_vm8, %v956_v60, %v957_v37  ;;  %v1028_v59 = vrot.slane %v1026_v35, 4  ;;  %v12706_v8 = vld [vmem:[#allocation115_spill] sm:$0xff]  ;;  %v1073_v35 = vrot.slane %v7817_v6, 7 }
 0x193   : > { %v8392_v32 = vld.sshfl [vmem:[#allocation1 + $0x30] sm:$0xff pattern:$0x75316420]  ;;  %1592 = vst [vmem:[#allocation1 + $0x21] ss:$2 sm:$0xff] %v933_v63  ;;  %v1029_v4 = vrot.slane %v12706_v8, 7  ;;  %v961_v63 = vsel %vm8202_vm8, %v959_v57, %v960_v54 }
 0x194   : > { %1593 = vst [vmem:[#allocation1 + $0x30] ss:$2 sm:$0xff] %v936_v13  ;;  %v8399_v28 = vld.sshfl [vmem:[#allocation1 + $0x10] sm:$0xff pattern:$0x75316420]  ;;  %6825 = vrot.lane.b32.xlu1 %v6824_v19, %s7174_s21  ;;  %v12707_v13 = vrot.slane %v7505_v44, 7  ;;  %v1074_v6 = vsel %vm8202_vm8, %v1072_v1, %v1073_v35 }
 0x195   : > { %1594 = vst [vmem:[#allocation1 + $0x31] ss:$2 sm:$0xff] %v939_v50  ;;  %v1030_v50 = vsel %vm8202_vm8, %v1028_v59, %v1029_v4  ;;  %v984_v44 = vrot.slane %v982_v25, 4  ;;  %v985_v60 = vrot.slane %v12647_v41, 7  ;;  %v1092_v54 = vrot.slane %v7483_v43, 7  ;;  %v12711_v41 = vld [vmem:[#allocation91_spill] sm:$0xff] }
 0x196   : > { %1728 = vst [vmem:[#allocation1 + $0x10] ss:$2 sm:$0xff] %v1027_v34  ;;  %v8409_v45 = vld.sshfl [vmem:[#allocation1] sm:$0xff pattern:$0x75316420]  ;;  %v968_v37 = vsel %vm8202_vm8, %v6483_v40, %v12707_v13  ;;  %v989_v34 = vrot.slane %v7578_v58, 7  ;;  %v6839_v40 = vpack.i.bf16 %v12711_v41, %v8060_v14  ;;  %v983_v59 = vsel %vm8202_vm8, %v981_v47, %v982_v25 }
 0x197   : > { %1738 = vst [vmem:[#allocation1] ss:$2 sm:$0xff] %v1046_v2  ;;  %v6484_v19 = vrot.slane %v12648_v49, 11  ;;  %v1050_v57 = vrot.slane %v1048_v15, 4  ;;  %v12712_v58 = vld [vmem:[#allocation33_spill] sm:$0xff]  ;;  %v986_v5 = vsel %vm8202_vm8, %v984_v44, %v985_v60  ;;  %v1094_v14 = vrot.slane %v1092_v54, 4 }
 0x198   : > { %1739 = vst [vmem:[#allocation1 + $0x1] ss:$2 sm:$0xff] %v1049_v38  ;;  %v6834_v38 = vpack.i.bf16 %v12710_v29, %v12709_v53  ;;  %v6487_v24 = vrot.slane %v12712_v58, 11  ;;  %v991_v49 = vrot.slane %v989_v34, 4  ;;  %v1095_v8 = vrot.slane %v7853_v55, 7  ;;  %v12714_v25 = vld [vmem:[#allocation52_spill] sm:$0xff] }
 0x199   : > { %1729 = vst [vmem:[#allocation1 + $0x11] ss:$2 sm:$0xff] %v1030_v50  ;;  %v990_v4 = vsel %vm8202_vm8, %v6484_v19, %v989_v34  ;;  %v6489_v13 = vrot.slane %v12714_v25, 11  ;;  %v12716_v55 = vrot.slane %v7368_v33, 7  ;;  %v12717_v44 = vrot.slane %v7303_v9, 7  ;;  %v12718_v34 = vld [vmem:[#allocation129_spill] sm:$0xff] }
 0x19a   : > { %v8419_v26 = vld.sshfl [vmem:[#allocation1 + $0x20] sm:$0xff pattern:$0x75316420]  ;;  %6835 = vrot.lane.b32.xlu0 %v6834_v38, %s7173_s20  ;;  %v6485_v19 = vrot.slane %v7326_v17, 11  ;;  %v1096_v33 = vsel %vm8202_vm8, %v1094_v14, %v1095_v8  ;;  %v12720_v9 = vld [vmem:[#allocation43_spill] sm:$0xff]  ;;  %v12721_v41 = vld [vmem:[#allocation14_spill] sm:$0xff] }
 0x19b   : > { %1691 = vst [vmem:[#allocation1 + $0x20] ss:$2 sm:$0xff] %v958_v61  ;;  %v1055_v61 = vrot.slane %v7651_v27, 7  ;;  %v1006_v7 = vrot.slane %v12716_v55, 4  ;;  %v993_v60 = vsel %vm8202_vm8, %v991_v49, %v12717_v44  ;;  %v6488_v29 = vrot.slane %v12720_v9, 11  ;;  %v12746_v43 = vld [vmem:[#allocation31_spill] sm:$0xff] }
 0x19c   : > { %v8429_v56 = vld.sshfl [vmem:[#allocation1 + $0x30] sm:$0xff pattern:$0x75316420]  ;;  %1693 = vst [vmem:[#allocation1 + $0x21] ss:$2 sm:$0xff] %v961_v63  ;;  %6840 = vrot.lane.b32.xlu1 %v6839_v40, %s7174_s21  ;;  %v1052_v63 = vsel %vm8202_vm8, %v1050_v57, %v1051_v48  ;;  %v12719_v57 = vld [vmem:[#allocation94_spill] sm:$0xff]  ;;  %v6814_v49 = vpack.i.bf16 %v8311_v23, %v8304_v42 }
 0x19d   : > { %1695 = vst [vmem:[#allocation1 + $0x30] ss:$2 sm:$0xff] %v964_v3  ;;  %v12713_v3 = vld [vmem:[#allocation97_spill] sm:$0xff]  ;;  %v1056_v50 = vsel %vm8202_vm8, %v6487_v24, %v1055_v61  ;;  %v1011_v48 = vrot.slane %v12719_v57, 7  ;;  %v1014_v40 = vrot.slane %v12721_v41, 7  ;;  %v1080_v58 = vrot.slane %v7419_v51, 7 }
 0x19e   : > { %1697 = vst [vmem:[#allocation1 + $0x31] ss:$2 sm:$0xff] %v968_v37  ;;  %v1077_v52 = vrot.slane %v12713_v3, 7  ;;  %v12715_v37 = vld [vmem:[#allocation102_spill] sm:$0xff]  ;;  %v6486_v25 = vrot.slane %v12664_v39, 11  ;;  %v1036_v42 = vrot.slane %v12665_v21, 7 }
 0x19f   : > { %v8444_v2 = vld.sshfl [vmem:[#allocation1] sm:$0xff pattern:$0x75316420]  ;;  %v1099_v1 = vrot.slane %v12715_v37, 7  ;;  %v1105_v44 = vrot.slane %v7734_v12, 7  ;;  %v12737_v51 = vld [vmem:[#allocation24_spill] sm:$0xff] }
 0x1a0   : > { %1750 = vst [vmem:[#allocation1] ss:$2 sm:$0xff] %v1071_v22  ;;  %v8474_v22 = vld.sshfl [vmem:[#allocation1 + $0x10] sm:$0xff pattern:$0x75316420]  ;;  %v1079_v17 = vrot.slane %v1077_v52, 4  ;;  %v1078_v8 = vsel %vm8202_vm8, %v6488_v29, %v1077_v52 }
 0x1a1   : > { %1751 = vst [vmem:[#allocation1 + $0x1] ss:$2 sm:$0xff] %v1074_v6  ;;  %v1007_v6 = vrot.slane %v12718_v34, 7  ;;  %v1100_v53 = vsel %vm8202_vm8, %v6489_v13, %v1099_v1  ;;  %v1101_v39 = vrot.slane %v1099_v1, 4  ;;  %v12725_v34 = vld [vmem:[#allocation4_spill] sm:$0xff]  ;;  %v12726_v1 = vld [vmem:[#allocation34_spill] sm:$0xff] }
 0x1a2   : > { %1740 = vst [vmem:[#allocation1 + $0x10] ss:$2 sm:$0xff] %v1052_v63  ;;  %v1081_v63 = vsel %vm8202_vm8, %v1079_v17, %v1080_v58  ;;  %v1058_v57 = vrot.slane %v12726_v1, 7  ;;  %v1057_v29 = vrot.slane %v1055_v61, 4  ;;  %v2064_v12 = vld [vmem:[%s12320_s1 + $0xe0] sm:$0xff] }
 0x1a3   : > { %v1700_v15 = vld.sshfl [vmem:[#allocation1 + $0x20] sm:$0xff pattern:$0x75316420]  ;;  %1741 = vst [vmem:[#allocation1 + $0x11] ss:$2 sm:$0xff] %v1056_v50  ;;  %v1008_v24 = vsel %vm8202_vm8, %v1006_v7, %v1007_v6  ;;  %v12724_v7 = vld [vmem:[#allocation3_spill] sm:$0xff] }
 0x1a4   : > { %1706 = vst [vmem:[#allocation1 + $0x20] ss:$2 sm:$0xff] %v983_v59  ;;  %v1012_v59 = vsel %vm8202_vm8, %v6485_v19, %v1011_v48  ;;  %v1060_v41 = vrot.slane %v1058_v57, 4  ;;  %v1059_v61 = vsel %vm8202_vm8, %v1057_v29, %v1058_v57 }
 0x1a5   : > { %v1701_v35 = vld.sshfl [vmem:[#allocation1 + $0x30] sm:$0xff pattern:$0x75316420]  ;;  %1707 = vst [vmem:[#allocation1 + $0x21] ss:$2 sm:$0xff] %v986_v5  ;;  %v1013_v5 = vrot.slane %v1011_v48, 4 }
 0x1a6   : > { %v6799_v47 = vpack.i.bf16 %v1701_v35, %v1700_v15  ;;  %1708 = vst [vmem:[#allocation1 + $0x30] ss:$2 sm:$0xff] %v990_v4  ;;  %v1033_v15 = vrot.slane %v7624_v31, 7  ;;  %v1016_v4 = vrot.slane %v1014_v40, 4  ;;  %v12722_v31 = vld [vmem:[#allocation53_spill] sm:$0xff]  ;;  %v12723_v35 = vrot.slane %v7563_v20, 7 }
 0x1a7   : > { %1709 = vst [vmem:[#allocation1 + $0x31] ss:$2 sm:$0xff] %v993_v60  ;;  %v1015_v3 = vsel %vm8202_vm8, %v1013_v5, %v1014_v40  ;;  %v1102_v23 = vrot.slane %v12722_v31, 7  ;;  %v1039_v20 = vrot.slane %v12663_v0, 7  ;;  %v12727_v40 = vld [vmem:[#allocation109_spill] sm:$0xff]  ;;  %v1082_v31 = vrot.slane %v1080_v58, 4 }
 0x1a8   : > { %6800 = vrot.lane.b32.xlu2 %v6799_v47, %s7175_s22  ;;  %v8489_v38 = vld.sshfl [vmem:[#allocation1] sm:$0xff pattern:$0x75316420]  ;;  %v1035_v52 = vrot.slane %v1033_v15, 4  ;;  %v1018_v50 = vsel %vm8202_vm8, %v1016_v4, %v12723_v35  ;;  %v1034_v21 = vsel %vm8202_vm8, %v6486_v25, %v1033_v15  ;;  %v1061_v17 = vrot.slane %v12727_v40, 7  ;;  %v12729_v15 = vld [vmem:[#allocation48_spill] sm:$0xff] }
 0x1a9   : > { %1762 = vst [vmem:[#allocation1] ss:$2 sm:$0xff] %v1096_v33  ;;  %v1104_v47 = vrot.slane %v1102_v23, 4  ;;  %v1103_v48 = vsel %vm8202_vm8, %v1101_v39, %v1102_v23  ;;  %v1038_v33 = vrot.slane %v1036_v42, 4  ;;  %v1041_v0 = vrot.slane %v1039_v20, 4  ;;  %v12731_v4 = vld [vmem:[#allocation111_spill] sm:$0xff] }
 0x1aa   : > { %1763 = vst [vmem:[#allocation1 + $0x1] ss:$2 sm:$0xff] %v1100_v53  ;;  %v8511_v13 = vld.sshfl [vmem:[#allocation1 + $0x10] sm:$0xff pattern:$0x75316420]  ;;  %v1037_v60 = vsel %vm8202_vm8, %v1035_v52, %v1036_v42  ;;  %v1062_v46 = vsel %vm8202_vm8, %v1060_v41, %v1061_v17  ;;  %v12732_v23 = vld [vmem:[#allocation5_spill] sm:$0xff] }
 0x1ab   : > { %1752 = vst [vmem:[#allocation1 + $0x10] ss:$2 sm:$0xff] %v1078_v8  ;;  %v1106_v53 = vsel %vm8202_vm8, %v1104_v47, %v1105_v44  ;;  %v1043_v5 = vsel %vm8202_vm8, %v1041_v0, %v1042_v16  ;;  %v12730_v8 = vld [vmem:[#allocation9_spill] sm:$0xff]  ;;  %v12736_v47 = vld [vmem:[#allocation140_spill] sm:$0xff]  ;;  %v12738_v58 = vld [vmem:[#allocation2_spill] sm:$0xff]  ;;  %v1107_v40 = vrot.slane %v1105_v44, 4 }
 0x1ac   : > { %v1712_v14 = vld.sshfl [vmem:[#allocation1 + $0x20] sm:$0xff pattern:$0x75316420]  ;;  %1753 = vst [vmem:[#allocation1 + $0x11] ss:$2 sm:$0xff] %v1081_v63  ;;  %v1083_v63 = vrot.slane %v12731_v4, 7 }
 0x1ad   : > { %1718 = vst [vmem:[#allocation1 + $0x20] ss:$2 sm:$0xff] %v1008_v24  ;;  %v1040_v24 = vsel %vm8202_vm8, %v1038_v33, %v1039_v20  ;;  %v6854_v20 = vpack.i.bf16 %v12738_v58, %v12737_v51  ;;  %v1108_v33 = vrot.slane %v12740_v10, 7  ;;  %v12741_v41 = vld [vmem:[#allocation21_spill] sm:$0xff]  ;;  %v12750_v51 = vld [vmem:[#allocation119_spill] sm:$0xff]  ;;  %v2057_v10 = vld [vmem:[%s12320_s1 + $0xa8] sm:$0xff] }
 0x1ae   : > { %1719 = vst [vmem:[#allocation1 + $0x21] ss:$2 sm:$0xff] %v1012_v59  ;;  %v1713_v37 = vld.sshfl [vmem:[#allocation1 + $0x30] sm:$0xff pattern:$0x75316420]  ;;  %v1085_v52 = vrot.slane %v1083_v63, 4 }
 0x1af   : > { %1720 = vst [vmem:[#allocation1 + $0x30] ss:$2 sm:$0xff] %v1015_v3  ;;  %v6829_v6 = vpack.i.bf16 %v1713_v37, %v1712_v14  ;;  %v1064_v14 = vrot.slane %v12729_v15, 7  ;;  %v1063_v3 = vrot.slane %v1061_v17, 4  ;;  %v12733_v37 = vld [vmem:[#allocation58_spill] sm:$0xff]  ;;  %6855 = vrot.lane.b32.xlu1 %v6854_v20, %s7174_s21  ;;  %v1110_v17 = vrot.slane %v1108_v33, 4 }
 0x1b0   : > { %6815 = vrot.lane.b32.xlu2 %v6814_v49, %s7175_s22  ;;  %1721 = vst [vmem:[#allocation1 + $0x31] ss:$2 sm:$0xff] %v1018_v50  ;;  %v12728_v49 = vld [vmem:[#allocation8_spill] sm:$0xff]  ;;  %v1086_v35 = vrot.slane %v12733_v37, 7  ;;  %v6844_v15 = vpack.i.bf16 %v8399_v28, %v8364_v36  ;;  %v2062_v28 = vld [vmem:[%s12320_s1 + $0xd0] sm:$0xff]  ;;  %v1109_v4 = vsel %vm8202_vm8, %v1107_v40, %v1108_v33  ;;  %v1117_v37 = vrot.slane %v8030_v11, 7 }
 0x1b1   : > { %v8518_v55 = vld.sshfl [vmem:[#allocation1] sm:$0xff pattern:$0x75316420]  ;;  %v1066_v25 = vrot.slane %v1064_v14, 4  ;;  %v12734_v50 = vld [vmem:[#allocation12_spill] sm:$0xff]  ;;  %v1065_v39 = vsel %vm8202_vm8, %v1063_v3, %v1064_v14  ;;  %v2065_v14 = vld [vmem:[%s12320_s1 + $0xe8] sm:$0xff] }
 0x1b2   : > { %1858 = vst [vmem:[#allocation1] ss:$2 sm:$0xff] %v12724_v7  ;;  %v12735_v7 = vld [vmem:[#allocation139_spill] sm:$0xff]  ;;  %v2059_v20 = vld [vmem:[%s12320_s1 + $0xb8] sm:$0xff] }
 0x1b3   : > { %1860 = vst [vmem:[#allocation1 + $0x1] ss:$2 sm:$0xff] %v12725_v34  ;;  %v8537_v9 = vld.sshfl [vmem:[#allocation1 + $0x10] sm:$0xff pattern:$0x75316420]  ;;  %v1084_v34 = vsel %vm8202_vm8, %v1082_v31, %v1083_v63  ;;  %v12745_v63 = vld [vmem:[#allocation74_spill] sm:$0xff] }
 0x1b4   : > { %1764 = vst [vmem:[#allocation1 + $0x10] ss:$2 sm:$0xff] %v1103_v48  ;;  %v1087_v48 = vsel %vm8202_vm8, %v1085_v52, %v1086_v35  ;;  %v1114_v3 = vrot.slane %v12745_v63, 7  ;;  %v2058_v11 = vld [vmem:[%s12320_s1 + $0xb0] sm:$0xff]  ;;  %v12751_v33 = vld [vmem:[#allocation32_spill] sm:$0xff]  ;;  %v2044_v63 = vld [vmem:[%s12320_s1 + $0x40] sm:$0xff] }
 0x1b5   : > { %v8528_v19 = vld.sshfl [vmem:[#allocation1 + $0x20] sm:$0xff pattern:$0x75316420]  ;;  %1765 = vst [vmem:[#allocation1 + $0x11] ss:$2 sm:$0xff] %v1106_v53  ;;  %v1088_v53 = vrot.slane %v1086_v35, 4 }
 0x1b6   : > { %1730 = vst [vmem:[#allocation1 + $0x20] ss:$2 sm:$0xff] %v1034_v21  ;;  %v1068_v21 = vsel %vm8202_vm8, %v1066_v25, %v1067_v62  ;;  %v1116_v52 = vrot.slane %v1114_v3, 4  ;;  %v2063_v35 = vld [vmem:[%s12320_s1 + $0xd8] sm:$0xff] }
 0x1b7   : > { %1731 = vst [vmem:[#allocation1 + $0x21] ss:$2 sm:$0xff] %v1037_v60  ;;  %v8552_v27 = vld.sshfl [vmem:[#allocation1 + $0x30] sm:$0xff pattern:$0x75316420]  ;;  %v6849_v60 = vpack.i.bf16 %v12736_v47, %v12735_v7  ;;  %v2055_v40 = vld [vmem:[%s12320_s1 + $0x98] sm:$0xff] }
 0x1b8   : > { %6830 = vrot.lane.b32.xlu2 %v6829_v6, %s7175_s22  ;;  %1732 = vst [vmem:[#allocation1 + $0x30] ss:$2 sm:$0xff] %v1040_v24  ;;  %v12739_v6 = vld [vmem:[#allocation112_spill] sm:$0xff]  ;;  %v12742_v24 = vld [vmem:[#allocation22_spill] sm:$0xff]  ;;  %v12748_v7 = vld [vmem:[#allocation127_spill] sm:$0xff] }
 0x1b9   : > { %1733 = vst [vmem:[#allocation1 + $0x31] ss:$2 sm:$0xff] %v1043_v5  ;;  %v1089_v1 = vrot.slane %v12739_v6, 7  ;;  %6850 = vrot.lane.b32.xlu0 %v6849_v60, %s7173_s20  ;;  %v12749_v60 = vld [vmem:[#allocation11_spill] sm:$0xff]  ;;  %v2056_v6 = vld [vmem:[%s12320_s1 + $0xa0] sm:$0xff] }
 0x1ba   : > { %v1873_v59 = vld.sshfl [vmem:[#allocation1] sm:$0xff pattern:$0x75316420]  ;;  %v6869_v58 = vpack.i.bf16 %v12750_v51, %v12749_v60  ;;  %v12763_v51 = vld [vmem:[#allocation15_spill] sm:$0xff] }
 0x1bb   : > { %6490 = vmatmul.msk.f32.vlgmr.msra.gmra.mxu1 %vm12445_vm9, %v1873_v59  ;;  %1877 = vst [vmem:[#allocation1] ss:$2 sm:$0xff] %v12728_v49  ;;  %6518 = vmatmul.msk.f32.vlgmr.msra.gmra.mxu3 %vm12445_vm9, %v1873_v59  ;;  %v1091_v0 = vrot.slane %v1089_v1, 4  ;;  %v12743_v59 = vld [vmem:[#allocation117_spill] sm:$0xff]  ;;  %v2066_v49 = vld [vmem:[%s12320_s1 + $0xf0] sm:$0xff]  ;;  %v1090_v44 = vsel %vm8202_vm8, %v1088_v53, %v1089_v1 }
 0x1bc   : > { %1878 = vst [vmem:[#allocation1 + $0x1] ss:$2 sm:$0xff] %v12730_v8  ;;  %v8563_v42 = vld.sshfl [vmem:[#allocation1 + $0x10] sm:$0xff pattern:$0x75316420]  ;;  %v1111_v5 = vrot.slane %v12743_v59, 7  ;;  %2138 = vmatpush.msra.mxu0 %v2066_v49  ;;  %6870 = vrot.lane.b32.xlu1 %v6869_v58, %s7174_s21  ;;  %v6859_v49 = vpack.i.bf16 %v8552_v27, %v8528_v19 }
 0x1bd   : > { %1862 = vst [vmem:[#allocation1 + $0x10] ss:$2 sm:$0xff] %v12732_v23  ;;  %v1093_v36 = vsel %vm8202_vm8, %v1091_v0, %v1092_v54  ;;  %v2054_v0 = vld [vmem:[%s12320_s1 + $0x90] sm:$0xff]  ;;  %v2053_v59 = vld [vmem:[%s12320_s1 + $0x88] sm:$0xff]  ;;  %v2039_v58 = vld [vmem:[%s12320_s1 + $0x18] sm:$0xff] }
 0x1be   : > { %v8560_v16 = vld.sshfl [vmem:[#allocation1 + $0x20] sm:$0xff pattern:$0x75316420]  ;;  %1864 = vst [vmem:[#allocation1 + $0x11] ss:$2 sm:$0xff] %v12734_v50  ;;  %2139 = vmatpush.msra.mxu0 %v2064_v12  ;;  %v1112_v54 = vsel %vm8202_vm8, %v1110_v17, %v1111_v5  ;;  %v1113_v23 = vrot.slane %v1111_v5, 4 }
 0x1bf   : > { %1742 = vst [vmem:[#allocation1 + $0x20] ss:$2 sm:$0xff] %v1059_v61  ;;  %v2067_v61 = vld [vmem:[%s12320_s1 + $0xf8] sm:$0xff]  ;;  %v2060_v50 = vld [vmem:[%s12320_s1 + $0xc0] sm:$0xff]  ;;  %v12754_v17 = vld [vmem:[#allocation18_spill] sm:$0xff] }
 0x1c0   : > { %1743 = vst [vmem:[#allocation1 + $0x21] ss:$2 sm:$0xff] %v1062_v46  ;;  %v8583_v57 = vld.sshfl [vmem:[#allocation1 + $0x30] sm:$0xff pattern:$0x75316420]  ;;  %2340 = vmatpush.msra.mxu2 %v2067_v61  ;;  %6845 = vrot.lane.b32.xlu2 %v6844_v15, %s7175_s22  ;;  %v12744_v46 = vld [vmem:[#allocation17_spill] sm:$0xff] }
 0x1c1   : > { %1744 = vst [vmem:[#allocation1 + $0x30] ss:$2 sm:$0xff] %v1065_v39  ;;  %2140 = vmatpush.msra.mxu0 %v2062_v28  ;;  %v2061_v39 = vld [vmem:[%s12320_s1 + $0xc8] sm:$0xff]  ;;  %v2050_v5 = vld [vmem:[%s12320_s1 + $0x70] sm:$0xff]  ;;  %v2051_v61 = vld [vmem:[%s12320_s1 + $0x78] sm:$0xff]  ;;  %v8712_v28 = vpop.permute.xlu0 %6775 }
 0x1c2   : > { %1745 = vst [vmem:[#allocation1 + $0x31] ss:$2 sm:$0xff] %v1068_v21  ;;  %2341 = vmatpush.msra.mxu2 %v2065_v14  ;;  %v12747_v21 = vld [vmem:[#allocation126_spill] sm:$0xff]  ;;  %v2048_v15 = vld [vmem:[%s12320_s1 + $0x60] sm:$0xff]  ;;  %v2046_v19 = vld [vmem:[%s12320_s1 + $0x50] sm:$0xff] }
 0x1c3   : > { %v8615_v8 = vld.sshfl [vmem:[#allocation1] sm:$0xff pattern:$0x75316420]  ;;  %v6864_v47 = vpack.i.bf16 %v12748_v7, %v12747_v21  ;;  %2141 = vmatpush.msra.mxu0 %v2060_v50  ;;  %v2049_v12 = vld [vmem:[%s12320_s1 + $0x68] sm:$0xff]  ;;  %v2043_v21 = vld [vmem:[%s12320_s1 + $0x38] sm:$0xff] }
 0x1c4   : > { %1889 = vst [vmem:[#allocation1] ss:$2 sm:$0xff] %v12744_v46  ;;  %2342 = vmatpush.msra.mxu2 %v2063_v35  ;;  %v2047_v46 = vld [vmem:[%s12320_s1 + $0x58] sm:$0xff]  ;;  %v12761_v35 = vld [vmem:[#allocation10_spill] sm:$0xff]  ;;  %v2040_v7 = vld [vmem:[%s12320_s1 + $0x20] sm:$0xff] }
 0x1c5   : > { %v1874_v29 = vld.sshfl [vmem:[#allocation1 + $0x10] sm:$0xff pattern:$0x75316420]  ;;  %1890 = vst [vmem:[#allocation1 + $0x1] ss:$2 sm:$0xff] %v12746_v43  ;;  %6865 = vrot.lane.b32.xlu0 %v6864_v47, %s7173_s20  ;;  %2142 = vmatpush.msra.mxu0 %v2058_v11  ;;  %v2041_v47 = vld [vmem:[%s12320_s1 + $0x28] sm:$0xff] }
 0x1c6   : > { %6491 = vmatmul.msk.f32.gmra.mxu1 %vm12445_vm9, %v1874_v29  ;;  %1879 = vst [vmem:[#allocation1 + $0x10] ss:$2 sm:$0xff] %v12741_v41  ;;  %6519 = vmatmul.msk.f32.gmra.mxu3 %vm12445_vm9, %v1874_v29  ;;  %v12752_v29 = vld [vmem:[#allocation39_spill] sm:$0xff]  ;;  %v12753_v41 = vld [vmem:[#allocation13_spill] sm:$0xff] }
 0x1c7   : > { %v8590_v62 = vld.sshfl [vmem:[#allocation1 + $0x20] sm:$0xff pattern:$0x75316420]  ;;  %1880 = vst [vmem:[#allocation1 + $0x11] ss:$2 sm:$0xff] %v12742_v24  ;;  %2343 = vmatpush.msra.mxu2 %v2061_v39  ;;  %2143 = vmatpush.msra.mxu0 %v2056_v6  ;;  %v12758_v43 = vld [vmem:[#allocation79_spill] sm:$0xff] }
 0x1c8   : > { %1754 = vst [vmem:[#allocation1 + $0x20] ss:$2 sm:$0xff] %v1084_v34  ;;  %v1115_v34 = vsel %vm8202_vm8, %v1113_v23, %v1114_v3  ;;  %v2052_v24 = vld [vmem:[%s12320_s1 + $0x80] sm:$0xff]  ;;  %6860 = vrot.lane.b32.xlu2 %v6859_v49, %s7175_s22  ;;  %v2045_v3 = vld [vmem:[%s12320_s1 + $0x48] sm:$0xff]  ;;  %v2038_v11 = vld [vmem:[%s12320_s1 + $0x10] sm:$0xff] }
 0x1c9   : > { %1755 = vst [vmem:[#allocation1 + $0x21] ss:$2 sm:$0xff] %v1087_v48  ;;  %v8629_v25 = vld.sshfl [vmem:[#allocation1 + $0x30] sm:$0xff pattern:$0x75316420]  ;;  %v1118_v48 = vsel %vm8202_vm8, %v1116_v52, %v1117_v37  ;;  %2344 = vmatpush.msra.mxu2 %v2059_v20  ;;  %2144 = vmatpush.msra.mxu0 %v2054_v0  ;;  %v12760_v37 = vld [vmem:[#allocation70_spill] sm:$0xff] }
 0x1ca   : > { %1756 = vst [vmem:[#allocation1 + $0x30] ss:$2 sm:$0xff] %v1090_v44  ;;  %v12755_v44 = vld [vmem:[#allocation20_spill] sm:$0xff]  ;;  %v2042_v52 = vld [vmem:[%s12320_s1 + $0x30] sm:$0xff]  ;;  %v6884_v50 = vpack.i.bf16 %v12761_v35, %v12760_v37  ;;  %v12762_v39 = vld [vmem:[#allocation30_spill] sm:$0xff]  ;;  %v6796_v37 = vpop.permute.xlu2 %6795  ;;  %vm4013_vm8 = vcmask 326656  }
 0x1cb   : > { %1757 = vst [vmem:[#allocation1 + $0x31] ss:$2 sm:$0xff] %v1093_v36  ;;  %2345 = vmatpush.msra.mxu2 %v2057_v10  ;;  %2145 = vmatpush.msra.mxu0 %v2052_v24  ;;  %v12756_v36 = vld [vmem:[#allocation7_spill] sm:$0xff]  ;;  %v12764_v20 = vld [vmem:[#allocation16_spill] sm:$0xff]  ;;  %v2036_v6 = vld [vmem:[%s12320_s1] sm:$0xff]  ;;  %v6777_v10 = vunpack.i.l.bf16 %v8712_v28 }
 0x1cc   : > { %6885 = vrot.lane.b32.xlu1 %v6884_v50, %s7174_s21  ;;  %v12765_v0 = vld [vmem:[#allocation40_spill] sm:$0xff]  ;;  %v12769_v24 = vld [vmem:[#allocation71_spill] sm:$0xff] }
 0x1cd   : > { %2346 = vmatpush.msra.mxu2 %v2055_v40  ;;  %2146 = vmatpush.msra.mxu0 %v2050_v5  ;;  %v8767_v40 = vld.sshfl [vmem:[#allocation1] sm:$0xff pattern:$0x75316420] }
 0x1ce   : > { %v8662_v1 = vld.sshfl [vmem:[#allocation1 + $0x10] sm:$0xff pattern:$0x75316420] }
 0x1cf   : > { %1891 = vst [vmem:[#allocation1 + $0x10] ss:$2 sm:$0xff] %v12751_v33  ;;  %2347 = vmatpush.msra.mxu2 %v2053_v59  ;;  %2147 = vmatpush.msra.mxu0 %v2048_v15  ;;  %v6781_v33 = vpop.permute.xlu0 %6780  ;;  %v1950_v59 = vsel %vm12445_vm9, %v12769_v24, %v6777_v10  ;;  %v12770_v15 = vld [vmem:[#allocation26_spill] sm:$0xff] }
 0x1d0   : > { %v8634_v31 = vld.sshfl [vmem:[#allocation1 + $0x20] sm:$0xff pattern:$0x75316420]  ;;  %1892 = vst [vmem:[#allocation1 + $0x11] ss:$2 sm:$0xff] %v12752_v29  ;;  %v2037_v29 = vld [vmem:[%s12320_s1 + $0x8] sm:$0xff] }
 0x1d1   : > { %1766 = vst [vmem:[#allocation1 + $0x20] ss:$2 sm:$0xff] %v1109_v4  ;;  %2348 = vmatpush.msra.mxu2 %v2051_v61  ;;  %2148 = vmatpush.msra.mxu0 %v2046_v19  ;;  %v12757_v4 = vld [vmem:[#allocation28_spill] sm:$0xff]  ;;  %v12771_v19 = vld [vmem:[#allocation130_spill] sm:$0xff] }
 0x1d2   : > { %1767 = vst [vmem:[#allocation1 + $0x21] ss:$2 sm:$0xff] %v1112_v54  ;;  %v8671_v53 = vld.sshfl [vmem:[#allocation1 + $0x30] sm:$0xff pattern:$0x75316420]  ;;  %v12759_v54 = vld [vmem:[#allocation141_spill] sm:$0xff] }
 0x1d3   : > { %1768 = vst [vmem:[#allocation1 + $0x30] ss:$2 sm:$0xff] %v1115_v34  ;;  %2349 = vmatpush.msra.mxu2 %v2049_v12  ;;  %v6879_v23 = vpack.i.bf16 %v12759_v54, %v12758_v43  ;;  %2149 = vmatpush.msra.mxu0 %v2044_v63  ;;  %v6778_v63 = vunpack.i.h.bf16 %v8712_v28  ;;  %v12778_v28 = vld [vmem:[#allocation73_spill] sm:$0xff] }
 0x1d4   : > { %1769 = vst [vmem:[#allocation1 + $0x31] ss:$2 sm:$0xff] %v1118_v48  ;;  %v6874_v48 = vpack.i.bf16 %v8474_v22, %v8409_v45  ;;  %v6782_v45 = vunpack.i.l.bf16 %v6781_v33  ;;  %v12768_v22 = vld [vmem:[#allocation42_spill] sm:$0xff] }
 0x1d5   : > { %2350 = vmatpush.msra.mxu2 %v2047_v46  ;;  %6880 = vrot.lane.b32.xlu0 %v6879_v23, %s7173_s20  ;;  %1902 = vst [vmem:[#allocation1 + $0x1] ss:$2 sm:$0xff] %v12768_v22  ;;  %v12774_v46 = vld [vmem:[#allocation6_spill] sm:$0xff]  ;;  %v12777_v23 = vld [vmem:[#allocation49_spill] sm:$0xff]  ;;  %v1951_v50 = vsel %vm12445_vm9, %v12778_v28, %v6778_v63  ;;  %v6904_v63 = vpack.i.bf16 %v8511_v13, %v8444_v2 }
 0x1d6   : > { %2150 = vmatpush.msra.mxu0 %v2042_v52  ;;  %6875 = vrot.lane.b32.xlu2 %v6874_v48, %s7175_s22  ;;  %v1979_v12 = vsel %vm12409_vm10, %v1950_v59, %v6782_v45  ;;  %v6783_v52 = vunpack.i.h.bf16 %v6781_v33  ;;  %v12782_v33 = vld [vmem:[#allocation144_spill] sm:$0xff]  ;;  %v12786_v59 = vld [vmem:[#allocation38_spill] sm:$0xff] }
 0x1d7   : > { %2351 = vmatpush.msra.mxu2 %v2045_v3  ;;  %v12775_v3 = vld [vmem:[#allocation27_spill] sm:$0xff]  ;;  %v12792_v13 = vld [vmem:[#allocation134_spill] sm:$0xff] }
 0x1d8   : > { %2151 = vmatpush.msra.mxu0 %v2040_v7  ;;  %v8786_v54 = vld.sshfl [vmem:[#allocation1 + $0x10] sm:$0xff pattern:$0x75316420]  ;;  %v1980_v7 = vsel %vm12409_vm10, %v1951_v50, %v6783_v52 }
 0x1d9   : > { %v8677_v18 = vld.sshfl [vmem:[#allocation1 + $0x20] sm:$0xff pattern:$0x75316420]  ;;  %2352 = vmatpush.msra.mxu2 %v2043_v21  ;;  %1904 = vst [vmem:[#allocation1 + $0x11] ss:$2 sm:$0xff] %v12777_v23  ;;  %v12790_v52 = vld [vmem:[#allocation51_spill] sm:$0xff] }
 0x1da   : > { %1866 = vst [vmem:[#allocation1 + $0x20] ss:$2 sm:$0xff] %v12753_v41  ;;  %2152 = vmatpush.msra.mxu0 %v2038_v11  ;;  %v12766_v41 = vld [vmem:[#allocation25_spill] sm:$0xff]  ;;  %v12793_v50 = vld [vmem:[#allocation135_spill] sm:$0xff] }
 0x1db   : > { %1868 = vst [vmem:[#allocation1 + $0x21] ss:$2 sm:$0xff] %v12754_v17  ;;  %v8708_v27 = vld.sshfl [vmem:[#allocation1 + $0x30] sm:$0xff pattern:$0x75316420]  ;;  %2353 = vmatpush.msra.mxu2 %v2041_v47  ;;  %v12767_v17 = vld [vmem:[#allocation41_spill] sm:$0xff]  ;;  %v6889_v47 = vpack.i.bf16 %v8583_v57, %v8560_v16 }
 0x1dc   : > { %1870 = vst [vmem:[#allocation1 + $0x30] ss:$2 sm:$0xff] %v12755_v44  ;;  %2153 = vmatpush.msra.mxu0 %v2036_v6  ;;  %v12772_v44 = vld [vmem:[#allocation132_spill] sm:$0xff]  ;;  %v12781_v6 = vld [vmem:[#allocation85_spill] sm:$0xff] }
 0x1dd   : > { %1872 = vst [vmem:[#allocation1 + $0x31] ss:$2 sm:$0xff] %v12756_v36  ;;  %2354 = vmatpush.msra.mxu2 %v2039_v58  ;;  %v12773_v36 = vld [vmem:[#allocation124_spill] sm:$0xff]  ;;  %v6797_v58 = vunpack.i.l.bf16 %v6796_v37 }
 0x1de   : > { %1901 = vst [vmem:[#allocation1] ss:$2 sm:$0xff] %v12767_v17  ;;  %6890 = vrot.lane.b32.xlu2 %v6889_v47, %s7175_s22  ;;  %v12785_v17 = vld [vmem:[#allocation80_spill] sm:$0xff] }
 0x1df   : > { %2355 = vmatpush.msra.mxu2 %v2037_v29 }
 0x1e2   : > { %v1875_v14 = vld.sshfl [vmem:[#allocation1 + $0x20] sm:$0xff pattern:$0x75316420] }
 0x1e3   : > { %6492 = vmatmul.msk.f32.gmra.mxu1 %vm12445_vm9, %v1875_v14  ;;  %1881 = vst [vmem:[#allocation1 + $0x20] ss:$2 sm:$0xff] %v12757_v4  ;;  %6520 = vmatmul.msk.f32.gmra.mxu3 %vm12445_vm9, %v1875_v14  ;;  %v6894_v14 = vpack.i.bf16 %v12772_v44, %v12771_v19  ;;  %v6899_v4 = vpack.i.bf16 %v12774_v46, %v12773_v36 }
 0x1e4   : > { %1882 = vst [vmem:[#allocation1 + $0x21] ss:$2 sm:$0xff] %v12762_v39  ;;  %v1876_v60 = vld.sshfl [vmem:[#allocation1 + $0x30] sm:$0xff pattern:$0x75316420] }
 0x1e5   : > { %1883 = vst [vmem:[#allocation1 + $0x30] ss:$2 sm:$0xff] %v12763_v51  ;;  %6895 = vrot.lane.b32.xlu0 %v6894_v14, %s7173_s20  ;;  %6900 = vrot.lane.b32.xlu1 %v6899_v4, %s7174_s21  ;;  %v12779_v51 = vld [vmem:[#allocation35_spill] sm:$0xff] }
 0x1e6   : > { %1884 = vst [vmem:[#allocation1 + $0x31] ss:$2 sm:$0xff] %v12764_v20  ;;  %v12780_v20 = vld [vmem:[#allocation37_spill] sm:$0xff]  ;;  %6905 = vrot.lane.b32.xlu2 %v6904_v63, %s7175_s22 }
 0x1eb   : > { %6493 = vmatmul.msk.f32.gmra.mxu1 %vm12445_vm9, %v1876_v60  ;;  %6521 = vmatmul.msk.f32.gmra.mxu3 %vm12445_vm9, %v1876_v60  ;;  %v1887_v34 = vld.sshfl [vmem:[#allocation1 + $0x20] sm:$0xff pattern:$0x75316420] }
 0x1ec   : > { %1893 = vst [vmem:[#allocation1 + $0x20] ss:$2 sm:$0xff] %v12765_v0  ;;  %v6786_v5 = vpop.permute.xlu1 %6785  ;;  %v12783_v0 = vld [vmem:[#allocation145_spill] sm:$0xff] }
 0x1ed   : > { %1894 = vst [vmem:[#allocation1 + $0x21] ss:$2 sm:$0xff] %v12766_v41  ;;  %v6787_v49 = vunpack.i.l.bf16 %v6786_v5  ;;  %v1888_v61 = vld.sshfl [vmem:[#allocation1 + $0x30] sm:$0xff pattern:$0x75316420]  ;;  %v6788_v35 = vunpack.i.h.bf16 %v6786_v5  ;;  %v6909_v29 = vpack.i.bf16 %v12783_v0, %v12782_v33  ;;  %v6798_v5 = vunpack.i.h.bf16 %v6796_v37  ;;  %v12791_v37 = vld [vmem:[#allocation57_spill] sm:$0xff] }
 0x1ee   : > { %1895 = vst [vmem:[#allocation1 + $0x30] ss:$2 sm:$0xff] %v12770_v15  ;;  %v12784_v41 = vld [vmem:[#allocation19_spill] sm:$0xff]  ;;  %v12787_v15 = vld [vmem:[#allocation50_spill] sm:$0xff] }
 0x1ef   : > { %1896 = vst [vmem:[#allocation1 + $0x31] ss:$2 sm:$0xff] %v12775_v3  ;;  %v2008_v43 = vsel %vm2007_vm11, %v1979_v12, %v6787_v49  ;;  %v2009_v60 = vsel %vm2007_vm11, %v1980_v7, %v6788_v35  ;;  %v6914_v45 = vpack.i.bf16 %v12785_v17, %v12784_v41  ;;  %v6806_v49 = vpop.permute.xlu0 %6805  ;;  %6910 = vrot.lane.b32.xlu0 %v6909_v29, %s7173_s20  ;;  %v8830_v3 = vld.sshfl [vmem:[#allocation1] sm:$0xff pattern:$0x75316420]  ;;  %v12795_v7 = vld [vmem:[#allocation116_spill] sm:$0xff] }
 0x1f0   : > { %2154 = vmatmul.f32.vlgmr.msra.gmra.mxu0 %v2008_v43  ;;  %2356 = vmatmul.f32.vlgmr.msra.gmra.mxu2 %v2008_v43  ;;  %v6807_v44 = vunpack.i.l.bf16 %v6806_v49  ;;  %1913 = vst [vmem:[#allocation1] ss:$2 sm:$0xff] %v12790_v52  ;;  %v6808_v28 = vunpack.i.h.bf16 %v6806_v49  ;;  %v3460_v29 = vld [vmem:[%s12322_s3 + $0xa0] sm:$0xff]  ;;  %v6919_v41 = vpack.i.bf16 %v8629_v25, %v8590_v62  ;;  %v12799_v17 = vld [vmem:[#allocation72_spill] sm:$0xff]  ;;  %v12801_v49 = vld [vmem:[#allocation90_spill] sm:$0xff] }
 0x1f1   : > { %6915 = vrot.lane.b32.xlu1 %v6914_v45, %s7174_s21  ;;  %1914 = vst [vmem:[#allocation1 + $0x1] ss:$2 sm:$0xff] %v12791_v37  ;;  %v12800_v45 = vld [vmem:[#allocation146_spill] sm:$0xff]  ;;  %4112 = vmatpush.msrb.mxu3 %v3460_v29 }
 0x1f2   : > { %6920 = vrot.lane.b32.xlu2 %v6919_v41, %s7175_s22 }
 0x1f3   : > { %6494 = vmatmul.msk.f32.gmra.mxu1 %vm12445_vm9, %v8615_v8  ;;  %6522 = vmatmul.msk.f32.gmra.mxu3 %vm12445_vm9, %v8615_v8  ;;  %v12776_v8 = vld [vmem:[#allocation47_spill] sm:$0xff] }
 0x1f4   : > { %1903 = vst [vmem:[#allocation1 + $0x10] ss:$2 sm:$0xff] %v12776_v8  ;;  %v6791_v39 = vpop.permute.xlu1 %6790  ;;  %v8801_v11 = vld.sshfl [vmem:[#allocation1 + $0x20] sm:$0xff pattern:$0x75316420] }
 0x1f5   : > { %v6792_v21 = vunpack.i.l.bf16 %v6791_v39  ;;  %1905 = vst [vmem:[#allocation1 + $0x20] ss:$2 sm:$0xff] %v12779_v51  ;;  %v6793_v16 = vunpack.i.h.bf16 %v6791_v39  ;;  %v12789_v8 = vld [vmem:[#allocation81_spill] sm:$0xff]  ;;  %v6924_v39 = vpack.i.bf16 %v12793_v50, %v12792_v13  ;;  %v12796_v51 = vld [vmem:[#allocation59_spill] sm:$0xff] }
 0x1f6   : > { %1906 = vst [vmem:[#allocation1 + $0x21] ss:$2 sm:$0xff] %v12780_v20  ;;  %v8816_v22 = vld.sshfl [vmem:[#allocation1 + $0x30] sm:$0xff pattern:$0x75316420]  ;;  %v1954_v23 = vsel %vm12445_vm9, %v12789_v8, %v6807_v44  ;;  %v3455_v44 = vld [vmem:[%s12322_s3 + $0x78] sm:$0xff] }
 0x1f7   : > { %v1952_v48 = vsel %vm12445_vm9, %v12781_v6, %v6792_v21  ;;  %1907 = vst [vmem:[#allocation1 + $0x30] ss:$2 sm:$0xff] %v12786_v59  ;;  %v12794_v21 = vld [vmem:[#allocation114_spill] sm:$0xff]  ;;  %v6821_v20 = vpop.permute.xlu0 %6820  ;;  %v12797_v6 = vld [vmem:[#allocation44_spill] sm:$0xff]  ;;  %6925 = vrot.lane.b32.xlu0 %v6924_v39, %s7173_s20  ;;  %4042 = vmatpush.msrb.mxu1 %v3455_v44  ;;  %v12806_v8 = vld [vmem:[#allocation95_spill] sm:$0xff] }
 0x1f8   : > { %2157 = vmatmul.f32.gmra.mxu0 %v2009_v60  ;;  %2359 = vmatmul.f32.gmra.mxu2 %v2009_v60  ;;  %v1981_v10 = vsel %vm12409_vm10, %v1952_v48, %v6797_v58  ;;  %1908 = vst [vmem:[#allocation1 + $0x31] ss:$2 sm:$0xff] %v12787_v15  ;;  %v6929_v47 = vpack.i.bf16 %v12795_v7, %v12794_v21  ;;  %v12798_v48 = vld [vmem:[#allocation82_spill] sm:$0xff]  ;;  %v6823_v25 = vunpack.i.h.bf16 %v6821_v20  ;;  %v12809_v39 = vld [vmem:[#allocation87_spill] sm:$0xff]  ;;  %v12822_v44 = vld [vmem:[#allocation101_spill] sm:$0xff] }
 0x1f9   : > { %v12810_v7 = vld [vmem:[#allocation66_spill] sm:$0xff] }
 0x1fa   : > { %6930 = vrot.lane.b32.xlu1 %v6929_v47, %s7174_s21 }
 0x1fb   : > { %6495 = vmatmul.msk.f32.gmra.mxu1 %vm12445_vm9, %v8662_v1  ;;  %6523 = vmatmul.msk.f32.gmra.mxu3 %vm12445_vm9, %v8662_v1  ;;  %v8848_v60 = vld.sshfl [vmem:[#allocation1 + $0x10] sm:$0xff pattern:$0x75316420] }
 0x1fc   : > { %1915 = vst [vmem:[#allocation1 + $0x10] ss:$2 sm:$0xff] %v12796_v51 }
 0x1fd   : > { %1916 = vst [vmem:[#allocation1 + $0x11] ss:$2 sm:$0xff] %v12797_v6  ;;  %v8868_v59 = vld.sshfl [vmem:[#allocation1 + $0x20] sm:$0xff pattern:$0x75316420]  ;;  %v12812_v6 = vld [vmem:[#allocation54_spill] sm:$0xff] }
 0x1fe   : > { %v6811_v14 = vpop.permute.xlu1 %6810 }
 0x1ff   : > { %v6812_v46 = vunpack.i.l.bf16 %v6811_v14  ;;  %v6813_v58 = vunpack.i.h.bf16 %v6811_v14  ;;  %v6944_v14 = vpack.i.bf16 %v8392_v32, %v8382_v30 }
 0x202   : > { %v6801_v1 = vpop.permute.xlu2 %6800  ;;  %6945 = vrot.lane.b32.xlu1 %v6944_v14, %s7174_s21 }
 0x203   : > { %v6802_v57 = vunpack.i.l.bf16 %v6801_v1  ;;  %6496 = vmatmul.msk.f32.gmra.mxu1 %vm12445_vm9, %v1887_v34  ;;  %6524 = vmatmul.msk.f32.gmra.mxu3 %vm12445_vm9, %v1887_v34  ;;  %v12788_v34 = vld [vmem:[#allocation89_spill] sm:$0xff]  ;;  %v6803_v19 = vunpack.i.h.bf16 %v6801_v1 }
 0x204   : > { %v1953_v12 = vsel %vm12445_vm9, %v12788_v34, %v6793_v16  ;;  %v12803_v34 = vld [vmem:[#allocation46_spill] sm:$0xff] }
 0x205   : > { %v2010_v24 = vsel %vm2007_vm11, %v1981_v10, %v6802_v57  ;;  %v1982_v36 = vsel %vm12409_vm10, %v1953_v12, %v6798_v5  ;;  %v6822_v10 = vunpack.i.l.bf16 %v6821_v20  ;;  %1918 = vst [vmem:[#allocation1 + $0x21] ss:$2 sm:$0xff] %v12803_v34  ;;  %v8926_v20 = vld.sshfl [vmem:[#allocation1 + $0x10] sm:$0xff pattern:$0x75316420] }
 0x206   : > { %2160 = vmatmul.f32.gmra.mxu0 %v2010_v24  ;;  %2362 = vmatmul.f32.gmra.mxu2 %v2010_v24  ;;  %v2011_v43 = vsel %vm2007_vm11, %v1982_v36, %v6803_v19  ;;  %v6826_v16 = vpop.permute.xlu1 %6825  ;;  %v6939_v24 = vpack.i.bf16 %v12800_v45, %v12799_v17  ;;  %v8888_v36 = vld.sshfl [vmem:[#allocation1 + $0x30] sm:$0xff pattern:$0x75316420]  ;;  %1927 = vst [vmem:[#allocation1 + $0x10] ss:$2 sm:$0xff] %v12812_v6 }
 0x207   : > { %v6827_v33 = vunpack.i.l.bf16 %v6826_v16  ;;  %v1956_v15 = vsel %vm12445_vm9, %v12801_v49, %v6822_v10  ;;  %v12815_v10 = vld [vmem:[#allocation23_spill] sm:$0xff]  ;;  %v12818_v49 = vld [vmem:[#allocation100_spill] sm:$0xff] }
 0x208   : > { %6940 = vrot.lane.b32.xlu0 %v6939_v24, %s7173_s20 }
 0x209   : > { %v1985_v62 = vsel %vm12409_vm10, %v1956_v15, %v6827_v33 }
 0x20a   : > { %v6816_v4 = vpop.permute.xlu2 %6815 }
 0x20b   : > { %6497 = vmatmul.msk.f32.gmra.mxu1 %vm12445_vm9, %v1888_v61  ;;  %6525 = vmatmul.msk.f32.gmra.mxu3 %vm12445_vm9, %v1888_v61  ;;  %v6817_v35 = vunpack.i.l.bf16 %v6816_v4  ;;  %v1983_v61 = vsel %vm12409_vm10, %v1954_v23, %v6812_v46  ;;  %v6818_v1 = vunpack.i.h.bf16 %v6816_v4  ;;  %v12804_v46 = vld [vmem:[#allocation60_spill] sm:$0xff]  ;;  %v6828_v4 = vunpack.i.h.bf16 %v6826_v16 }
 0x20c   : > { %1919 = vst [vmem:[#allocation1 + $0x30] ss:$2 sm:$0xff] %v12804_v46  ;;  %v6836_v63 = vpop.permute.xlu0 %6835 }
 0x20d   : > { %v2012_v2 = vsel %vm2007_vm11, %v1983_v61, %v6817_v35  ;;  %v6837_v32 = vunpack.i.l.bf16 %v6836_v63  ;;  %v6934_v61 = vpack.i.bf16 %v8537_v9, %v8489_v38  ;;  %v6838_v9 = vunpack.i.h.bf16 %v6836_v63 }
 0x20e   : > { %2163 = vmatmul.f32.gmra.mxu0 %v2011_v43  ;;  %2365 = vmatmul.f32.gmra.mxu2 %v2011_v43  ;;  %v12805_v43 = vld [vmem:[#allocation61_spill] sm:$0xff]  ;;  %v6841_v23 = vpop.permute.xlu1 %6840 }
 0x20f   : > { %1920 = vst [vmem:[#allocation1 + $0x31] ss:$2 sm:$0xff] %v12805_v43  ;;  %v6842_v37 = vunpack.i.l.bf16 %v6841_v23  ;;  %v1958_v21 = vsel %vm12445_vm9, %v12809_v39, %v6837_v32  ;;  %6935 = vrot.lane.b32.xlu2 %v6934_v61, %s7175_s22  ;;  %v3459_v32 = vld [vmem:[%s12322_s3 + $0x98] sm:$0xff] }
 0x210   : > { %1820 = vrot.lane.b32.xlu0 %v8671_v53, %s7175_s22  ;;  %v8906_v53 = vld.sshfl [vmem:[#allocation1] sm:$0xff pattern:$0x75316420]  ;;  %4113 = vmatpush.msrb.mxu3 %v3459_v32 }
 0x211   : > { %1925 = vst [vmem:[#allocation1] ss:$2 sm:$0xff] %v12810_v7  ;;  %v1987_v38 = vsel %vm12409_vm10, %v1958_v21, %v6842_v37  ;;  %v12825_v37 = vld [vmem:[#allocation92_spill] sm:$0xff]  ;;  %v12827_v7 = vld [vmem:[#allocation62_spill] sm:$0xff]  ;;  %v2076_v32 = vld [vmem:[%s12321_s2] sm:$0x3] }
 0x212   : > { %v6831_v0 = vpop.permute.xlu2 %6830 }
 0x213   : > { %6498 = vmatmul.msk.f32.gmra.mxu1 %vm12445_vm9, %v8767_v40  ;;  %6526 = vmatmul.msk.f32.gmra.mxu3 %vm12445_vm9, %v8767_v40  ;;  %v1955_v40 = vsel %vm12445_vm9, %v12798_v48, %v6808_v28  ;;  %v6832_v12 = vunpack.i.l.bf16 %v6831_v0  ;;  %v6833_v30 = vunpack.i.h.bf16 %v6831_v0  ;;  %v12807_v28 = vld [vmem:[#allocation137_spill] sm:$0xff]  ;;  %v6843_v48 = vunpack.i.h.bf16 %v6841_v23 }
 0x214   : > { %v1984_v57 = vsel %vm12409_vm10, %v1955_v40, %v6813_v58  ;;  %v3454_v58 = vld [vmem:[%s12322_s3 + $0x70] sm:$0xff]  ;;  %v12814_v40 = vld [vmem:[#allocation88_spill] sm:$0xff] }
 0x215   : > { %v2013_v5 = vsel %vm2007_vm11, %v1984_v57, %v6818_v1  ;;  %v2014_v19 = vsel %vm2007_vm11, %v1985_v62, %v6832_v12  ;;  %4043 = vmatpush.msrb.mxu1 %v3454_v58  ;;  %v1959_v1 = vsel %vm12445_vm9, %v12814_v40, %v6838_v9  ;;  %v12820_v12 = vld [vmem:[#allocation56_spill] sm:$0xff] }
 0x216   : > { %2166 = vmatmul.f32.gmra.mxu0 %v2012_v2  ;;  %2368 = vmatmul.f32.gmra.mxu2 %v2012_v2  ;;  %v12808_v2 = vld [vmem:[#allocation138_spill] sm:$0xff]  ;;  %v1988_v33 = vsel %vm12409_vm10, %v1959_v1, %v6843_v48  ;;  %v12830_v40 = vld [vmem:[#allocation64_spill] sm:$0xff] }
 0x217   : > { %v6949_v13 = vpack.i.bf16 %v12808_v2, %v12807_v28  ;;  %1818 = vrot.lane.b32.xlu2 %v8634_v31, %s7175_s22  ;;  %v12817_v31 = vld [vmem:[#allocation96_spill] sm:$0xff] }
 0x218   : > { %1822 = vrot.lane.b32.xlu0 %v8518_v55, %s7175_s22  ;;  %v12813_v55 = vld [vmem:[#allocation55_spill] sm:$0xff] }
 0x219   : > { %6950 = vrot.lane.b32.xlu1 %v6949_v13, %s7173_s20  ;;  %1928 = vst [vmem:[#allocation1 + $0x11] ss:$2 sm:$0xff] %v12813_v55  ;;  %v12826_v13 = vld [vmem:[#allocation76_spill] sm:$0xff] }
 0x21a   : > { %v6846_v35 = vpop.permute.xlu2 %6845 }
 0x21b   : > { %6499 = vmatmul.msk.f32.gmra.mxu1 %vm12445_vm9, %v8786_v54  ;;  %6527 = vmatmul.msk.f32.gmra.mxu3 %vm12445_vm9, %v8786_v54  ;;  %v12802_v54 = vld [vmem:[#allocation45_spill] sm:$0xff]  ;;  %v6847_v47 = vunpack.i.l.bf16 %v6846_v35  ;;  %v6848_v16 = vunpack.i.h.bf16 %v6846_v35 }
 0x21c   : > { %1917 = vst [vmem:[#allocation1 + $0x20] ss:$2 sm:$0xff] %v12802_v54  ;;  %v3453_v54 = vld [vmem:[%s12322_s3 + $0x68] sm:$0xff] }
 0x21d   : > { %v2016_v51 = vsel %vm2007_vm11, %v1987_v38, %v6847_v47  ;;  %v2017_v45 = vsel %vm2007_vm11, %v1988_v33, %v6848_v16  ;;  %4044 = vmatpush.msrb.mxu1 %v3453_v54  ;;  %v12828_v47 = vld [vmem:[#allocation93_spill] sm:$0xff] }
 0x21e   : > { %2169 = vmatmul.f32.gmra.mxu0 %v2013_v5  ;;  %2371 = vmatmul.f32.gmra.mxu2 %v2013_v5  ;;  %v12831_v16 = vld [vmem:[#allocation105_spill] sm:$0xff] }
 0x21f   : > { %1647 = vrot.lane.b32.xlu2 %v12818_v49, %s7174_s21 }
 0x220   : > { %v9011_v48 = vld.sshfl [vmem:[#allocation1 + $0x10] sm:$0xff pattern:$0x75316420] }
 0x221   : > { %1649 = vrot.lane.b32.xlu1 %v12815_v10, %s7174_s21  ;;  %v6856_v29 = vpop.permute.xlu1 %6855  ;;  %1940 = vst [vmem:[#allocation1 + $0x11] ss:$2 sm:$0xff] %v12830_v40 }
 0x222   : > { %v6857_v41 = vunpack.i.l.bf16 %v6856_v29  ;;  %v6861_v17 = vpop.permute.xlu2 %6860 }
 0x223   : > { %6500 = vmatmul.msk.f32.gmra.mxu1 %vm12445_vm9, %v8801_v11  ;;  %6528 = vmatmul.msk.f32.gmra.mxu3 %vm12445_vm9, %v8801_v11  ;;  %v1957_v11 = vsel %vm12445_vm9, %v12806_v8, %v6823_v25  ;;  %v6862_v5 = vunpack.i.l.bf16 %v6861_v17  ;;  %v8956_v34 = vld.sshfl [vmem:[#allocation1 + $0x20] sm:$0xff pattern:$0x75316420]  ;;  %v12821_v25 = vld [vmem:[#allocation68_spill] sm:$0xff] }
 0x224   : > { %v1986_v52 = vsel %vm12409_vm10, %v1957_v11, %v6828_v4  ;;  %1929 = vst [vmem:[#allocation1 + $0x20] ss:$2 sm:$0xff] %v12820_v12  ;;  %v6863_v4 = vunpack.i.h.bf16 %v6861_v17  ;;  %v8971_v8 = vld.sshfl [vmem:[#allocation1 + $0x30] sm:$0xff pattern:$0x75316420]  ;;  %v12823_v11 = vld [vmem:[#allocation69_spill] sm:$0xff] }
 0x225   : > { %v2015_v50 = vsel %vm2007_vm11, %v1986_v52, %v6833_v30  ;;  %1930 = vst [vmem:[#allocation1 + $0x21] ss:$2 sm:$0xff] %v12821_v25  ;;  %v12824_v30 = vld [vmem:[#allocation75_spill] sm:$0xff]  ;;  %v12832_v17 = vld [vmem:[#allocation77_spill] sm:$0xff] }
 0x226   : > { %2172 = vmatmul.f32.gmra.mxu0 %v2014_v19  ;;  %2374 = vmatmul.f32.gmra.mxu2 %v2014_v19  ;;  %v6858_v19 = vunpack.i.h.bf16 %v6856_v29  ;;  %1931 = vst [vmem:[#allocation1 + $0x30] ss:$2 sm:$0xff] %v12823_v11 }
 0x227   : > { %1824 = vrot.lane.b32.xlu2 %v8563_v42, %s7175_s22  ;;  %1932 = vst [vmem:[#allocation1 + $0x31] ss:$2 sm:$0xff] %v12824_v30 }
 0x229   : > { %1651 = vrot.lane.b32.xlu1 %v8419_v26, %s7174_s21 }
 0x22b   : > { %6501 = vmatmul.msk.f32.gmra.mxu1 %vm12445_vm9, %v8816_v22  ;;  %6529 = vmatmul.msk.f32.gmra.mxu3 %vm12445_vm9, %v8816_v22  ;;  %v12811_v22 = vld [vmem:[#allocation67_spill] sm:$0xff]  ;;  %v6851_v57 = vpop.permute.xlu0 %6850 }
 0x22c   : > { %1926 = vst [vmem:[#allocation1 + $0x1] ss:$2 sm:$0xff] %v12811_v22  ;;  %v6852_v0 = vunpack.i.l.bf16 %v6851_v57  ;;  %v6853_v62 = vunpack.i.h.bf16 %v6851_v57 }
 0x22e   : > { %2175 = vmatmul.f32.gmra.mxu0 %v2015_v50  ;;  %2377 = vmatmul.f32.gmra.mxu2 %v2015_v50  ;;  %v1960_v24 = vsel %vm12445_vm9, %v12817_v31, %v6852_v0  ;;  %v1961_v14 = vsel %vm12445_vm9, %v12822_v44, %v6853_v62  ;;  %v6871_v43 = vpop.permute.xlu1 %6870  ;;  %v3451_v0 = vld [vmem:[%s12322_s3 + $0x58] sm:$0xff] }
 0x22f   : > { %v1989_v15 = vsel %vm12409_vm10, %v1960_v24, %v6857_v41  ;;  %1826 = vrot.lane.b32.xlu2 %v8677_v18, %s7175_s22  ;;  %v6873_v18 = vunpack.i.h.bf16 %v6871_v43  ;;  %v9031_v41 = vld.sshfl [vmem:[#allocation1 + $0x20] sm:$0xff pattern:$0x75316420]  ;;  %v12833_v24 = vld [vmem:[#allocation78_spill] sm:$0xff] }
 0x230   : > { %v2018_v26 = vsel %vm2007_vm11, %v1989_v15, %v6862_v5  ;;  %v6876_v42 = vpop.permute.xlu2 %6875  ;;  %1941 = vst [vmem:[#allocation1 + $0x20] ss:$2 sm:$0xff] %v12832_v17  ;;  %v12834_v15 = vld [vmem:[#allocation107_spill] sm:$0xff] }
 0x231   : > { %1653 = vrot.lane.b32.xlu1 %v8429_v56, %s7174_s21  ;;  %v6872_v56 = vunpack.i.l.bf16 %v6871_v43  ;;  %v6877_v61 = vunpack.i.l.bf16 %v6876_v42  ;;  %1942 = vst [vmem:[#allocation1 + $0x21] ss:$2 sm:$0xff] %v12833_v24 }
 0x233   : > { %6502 = vmatmul.msk.f32.gmra.mxu1 %vm12445_vm9, %v8830_v3  ;;  %6530 = vmatmul.msk.f32.gmra.mxu3 %vm12445_vm9, %v8830_v3  ;;  %v12816_v3 = vld [vmem:[#allocation147_spill] sm:$0xff]  ;;  %v8994_v2 = vld.sshfl [vmem:[#allocation1] sm:$0xff pattern:$0x75316420] }
 0x234   : > { %1476 = vrot.lane.b32.xlu0 %v12816_v3, %s7173_s20  ;;  %1937 = vst [vmem:[#allocation1] ss:$2 sm:$0xff] %v12826_v13 }
 0x235   : > { %1938 = vst [vmem:[#allocation1 + $0x1] ss:$2 sm:$0xff] %v12827_v7 }
 0x236   : > { %2178 = vmatmul.f32.gmra.mxu0 %v2016_v51  ;;  %2380 = vmatmul.f32.gmra.mxu2 %v2016_v51  ;;  %v6878_v51 = vunpack.i.h.bf16 %v6876_v42 }
 0x237   : > { %v6866_v46 = vpop.permute.xlu0 %6865  ;;  %1828 = vrot.lane.b32.xlu2 %v8708_v27, %s7175_s22 }
 0x238   : > { %v6867_v63 = vunpack.i.l.bf16 %v6866_v46  ;;  %v8983_v23 = vpop.f32.mrf.mxu1  ;;  %v6868_v39 = vunpack.i.h.bf16 %v6866_v46  ;;  %v6891_v27 = vpop.permute.xlu2 %6890 }
 0x239   : > { %v6892_v33 = vunpack.i.l.bf16 %v6891_v27  ;;  %v6893_v12 = vunpack.i.h.bf16 %v6891_v27 }
 0x23a   : > { %v1962_v35 = vsel %vm12445_vm9, %v12825_v37, %v6867_v63  ;;  %v1963_v38 = vsel %vm12445_vm9, %v12828_v47, %v6868_v39  ;;  %v3450_v63 = vld [vmem:[%s12322_s3 + $0x50] sm:$0xff] }
 0x23b   : > { %6503 = vmatmul.msk.f32.gmra.mxu1 %vm12445_vm9, %v8848_v60  ;;  %6531 = vmatmul.msk.f32.gmra.mxu3 %vm12445_vm9, %v8848_v60  ;;  %v12819_v60 = vld [vmem:[#allocation148_spill] sm:$0xff]  ;;  %v1991_v28 = vsel %vm12409_vm10, %v1962_v35, %v6872_v56  ;;  %v1992_v55 = vsel %vm12409_vm10, %v1963_v38, %v6873_v18  ;;  %v12838_v39 = vld [vmem:[#allocation99_spill] sm:$0xff] }
 0x23c   : > { %1478 = vrot.lane.b32.xlu0 %v12819_v60, %s7173_s20  ;;  %v2020_v21 = vsel %vm2007_vm11, %v1991_v28, %v6877_v61  ;;  %v2021_v3 = vsel %vm2007_vm11, %v1992_v55, %v6878_v51  ;;  %v9074_v61 = vperm.slane %v2076_v32, 0  ;;  %v9076_v28 = vperm.slane %v2076_v32, 1 }
 0x23e   : > { %2181 = vmatmul.f32.gmra.mxu0 %v2017_v45  ;;  %2383 = vmatmul.f32.gmra.mxu2 %v2017_v45  ;;  %v8997_v50 = vpop.f32.mrf.mxu3  ;;  %v6886_v6 = vpop.permute.xlu1 %6885 }
 0x23f   : > { %v6887_v1 = vunpack.i.l.bf16 %v6886_v6  ;;  %v6888_v5 = vunpack.i.h.bf16 %v6886_v6 }
 0x243   : > { %6504 = vmatmul.msk.f32.gmra.mxu1 %vm12445_vm9, %v8868_v59  ;;  %6532 = vmatmul.msk.f32.gmra.mxu3 %vm12445_vm9, %v8868_v59  ;;  %v1990_v59 = vsel %vm12409_vm10, %v1961_v14, %v6858_v19  ;;  %v9005_v22 = vpop.f32.mrf.mxu1  ;;  %v12835_v14 = vld [vmem:[#allocation83_spill] sm:$0xff] }
 0x244   : > { %v2019_v52 = vsel %vm2007_vm11, %v1990_v59, %v6863_v4  ;;  %v6906_v4 = vpop.permute.xlu2 %6905  ;;  %v12837_v59 = vld [vmem:[#allocation98_spill] sm:$0xff] }
 0x245   : > { %v6907_v56 = vunpack.i.l.bf16 %v6906_v4  ;;  %v6908_v47 = vunpack.i.h.bf16 %v6906_v4 }
 0x246   : > { %2184 = vmatmul.f32.gmra.mxu0 %v2018_v26  ;;  %2386 = vmatmul.f32.gmra.mxu2 %v2018_v26  ;;  %v9046_v26 = vld.sshfl [vmem:[#allocation1 + $0x30] sm:$0xff pattern:$0x75316420] }
 0x247   : > { %v6881_v9 = vpop.permute.xlu0 %6880  ;;  %1943 = vst [vmem:[#allocation1 + $0x30] ss:$2 sm:$0xff] %v12835_v14 }
 0x248   : > { %v6882_v58 = vunpack.i.l.bf16 %v6881_v9  ;;  %v6883_v45 = vunpack.i.h.bf16 %v6881_v9  ;;  %v3458_v9 = vld [vmem:[%s12322_s3 + $0x90] sm:$0xff] }
 0x249   : > { %v9020_v10 = vpop.f32.mrf.mxu3  ;;  %4114 = vmatpush.msrb.mxu3 %v3458_v9 }
 0x24a   : > { %v1964_v57 = vsel %vm12445_vm9, %v12831_v16, %v6882_v58  ;;  %v1965_v60 = vsel %vm12445_vm9, %v12834_v15, %v6883_v45 }
 0x24b   : > { %6505 = vmatmul.msk.f32.gmra.mxu1 %vm12445_vm9, %v8888_v36  ;;  %6533 = vmatmul.msk.f32.gmra.mxu3 %vm12445_vm9, %v8888_v36  ;;  %v3452_v36 = vld [vmem:[%s12322_s3 + $0x60] sm:$0xff]  ;;  %v1993_v29 = vsel %vm12409_vm10, %v1964_v57, %v6887_v1  ;;  %v1994_v25 = vsel %vm12409_vm10, %v1965_v60, %v6888_v5 }
 0x24c   : > { %4045 = vmatpush.msrb.mxu1 %v3452_v36  ;;  %v2022_v31 = vsel %vm2007_vm11, %v1993_v29, %v6892_v33  ;;  %v2023_v43 = vsel %vm2007_vm11, %v1994_v25, %v6893_v12  ;;  %v9102_v16 = vpop.permute.xlu2 %6920  ;;  %v12839_v33 = vld [vmem:[#allocation110_spill] sm:$0xff] }
 0x24d   : > { %v6923_v32 = vunpack.i.h.bf16 %v9102_v16 }
 0x24e   : > { %2187 = vmatmul.f32.gmra.mxu0 %v2019_v52  ;;  %2389 = vmatmul.f32.gmra.mxu2 %v2019_v52 }
 0x24f   : > { %4046 = vmatpush.msrb.mxu1 %v3451_v0 }
 0x251   : > { %4047 = vmatpush.msrb.mxu1 %v3450_v63  ;;  %v12840_v63 = vld [vmem:[#allocation113_spill] sm:$0xff] }
 0x253   : > { %6506 = vmatmul.msk.f32.gmra.mxu1 %vm12445_vm9, %v8906_v53  ;;  %6534 = vmatmul.msk.f32.gmra.mxu3 %vm12445_vm9, %v8906_v53  ;;  %v12829_v53 = vld [vmem:[#allocation63_spill] sm:$0xff] }
 0x254   : > { %1939 = vst [vmem:[#allocation1 + $0x10] ss:$2 sm:$0xff] %v12829_v53 }
 0x256   : > { %2190 = vmatmul.f32.gmra.mxu0 %v2020_v21  ;;  %2392 = vmatmul.f32.gmra.mxu2 %v2020_v21 }
 0x257   : > { %v6896_v62 = vpop.permute.xlu0 %6895  ;;  %v6901_v44 = vpop.permute.xlu1 %6900 }
 0x258   : > { %v6897_v19 = vunpack.i.l.bf16 %v6896_v62  ;;  %v6902_v46 = vunpack.i.l.bf16 %v6901_v44  ;;  %v6898_v52 = vunpack.i.h.bf16 %v6896_v62  ;;  %v6903_v36 = vunpack.i.h.bf16 %v6901_v44 }
 0x25a   : > { %v1966_v11 = vsel %vm12445_vm9, %v12837_v59, %v6897_v19  ;;  %v1967_v21 = vsel %vm12445_vm9, %v12838_v39, %v6898_v52  ;;  %v3447_v19 = vld [vmem:[%s12322_s3 + $0x38] sm:$0xff]  ;;  %v3445_v59 = vld [vmem:[%s12322_s3 + $0x28] sm:$0xff] }
 0x25b   : > { %6507 = vmatmul.msk.f32.gmra.mxu1 %vm12445_vm9, %v8926_v20  ;;  %6535 = vmatmul.msk.f32.gmra.mxu3 %vm12445_vm9, %v8926_v20  ;;  %v1995_v42 = vsel %vm12409_vm10, %v1966_v11, %v6902_v46  ;;  %v1996_v58 = vsel %vm12409_vm10, %v1967_v21, %v6903_v36 }
 0x25c   : > { %v2024_v35 = vsel %vm2007_vm11, %v1995_v42, %v6907_v56  ;;  %v2025_v57 = vsel %vm2007_vm11, %v1996_v58, %v6908_v47  ;;  %v3443_v58 = vld [vmem:[%s12322_s3 + $0x18] sm:$0xff] }
 0x25e   : > { %2193 = vmatmul.f32.gmra.mxu0 %v2021_v3  ;;  %2395 = vmatmul.f32.gmra.mxu2 %v2021_v3 }
 0x260   : > { %v9029_v20 = vpop.f32.mrf.mxu1 }
 0x261   : > { %v6911_v6 = vpop.permute.xlu0 %6910 }
 0x262   : > { %v6912_v40 = vunpack.i.l.bf16 %v6911_v6  ;;  %v6913_v5 = vunpack.i.h.bf16 %v6911_v6 }
 0x263   : > { %6508 = vmatmul.msk.f32.gmra.mxu1 %vm12445_vm9, %v8956_v34  ;;  %6536 = vmatmul.msk.f32.gmra.mxu3 %vm12445_vm9, %v8956_v34  ;;  %v12836_v34 = vld [vmem:[#allocation84_spill] sm:$0xff]  ;;  %v9093_v55 = vpop.permute.xlu1 %6915 }
 0x264   : > { %1944 = vst [vmem:[#allocation1 + $0x31] ss:$2 sm:$0xff] %v12836_v34  ;;  %v6917_v3 = vunpack.i.l.bf16 %v9093_v55  ;;  %v1968_v0 = vsel %vm12445_vm9, %v12839_v33, %v6912_v40  ;;  %v6918_v34 = vunpack.i.h.bf16 %v9093_v55 }
 0x266   : > { %2196 = vmatmul.f32.gmra.mxu0 %v2022_v31  ;;  %2398 = vmatmul.f32.gmra.mxu2 %v2022_v31  ;;  %v9040_v49 = vpop.f32.mrf.mxu3  ;;  %v3448_v31 = vld [vmem:[%s12322_s3 + $0x40] sm:$0xff] }
 0x268   : > { %v9044_v54 = vpop.f32.mrf.mxu1 }
 0x269   : > { %v9153_v39 = vpop.permute.xlu0 %6925 }
 0x26b   : > { %6509 = vmatmul.msk.f32.gmra.mxu1 %vm12445_vm9, %v8971_v8  ;;  %6537 = vmatmul.msk.f32.gmra.mxu3 %vm12445_vm9, %v8971_v8 }
 0x26d   : > { %v2155_v37 = vpop.f32.mrf.mxu0 }
 0x26e   : > { %2199 = vmatmul.f32.gmra.mxu0 %v2023_v43  ;;  %2401 = vmatmul.f32.gmra.mxu2 %v2023_v43  ;;  %v9061_v30 = vpop.f32.mrf.mxu3  ;;  %v2156_v7 = vadd.f32 %v2155_v37, %v9074_v61  ;;  %v1969_v43 = vsel %vm12445_vm9, %v12840_v63, %v6913_v5  ;;  %v3444_v37 = vld [vmem:[%s12322_s3 + $0x20] sm:$0xff] }
 0x26f   : > { %v1998_v36 = vsel %vm12409_vm10, %v1969_v43, %v6918_v34 }
 0x270   : > { %v9064_v8 = vpop.f32.mrf.mxu1  ;;  %v2257_v1 = vadd.f32 %v8983_v23, %v2156_v7  ;;  %v2027_v55 = vsel %vm2007_vm11, %v1998_v36, %v6923_v32 }
 0x273   : > { %6510 = vmatmul.msk.f32.gmra.mxu1 %vm12445_vm9, %v8994_v2  ;;  %6538 = vmatmul.msk.f32.gmra.mxu3 %vm12445_vm9, %v8994_v2  ;;  %v2357_v38 = vpop.f32.mrf.mxu2  ;;  %v3449_v2 = vld [vmem:[%s12322_s3 + $0x48] sm:$0xff] }
 0x274   : > { %v2358_v51 = vadd.f32 %v2357_v38, %v9076_v28  ;;  %4048 = vmatpush.msrb.mxu1 %v3449_v2 }
 0x275   : > { %v2158_v53 = vpop.f32.mrf.mxu0 }
 0x276   : > { %2202 = vmatmul.f32.gmra.mxu0 %v2024_v35  ;;  %2404 = vmatmul.f32.gmra.mxu2 %v2024_v35  ;;  %v9078_v13 = vpop.f32.mrf.mxu3  ;;  %v2459_v27 = vadd.f32 %v8997_v50, %v2358_v51  ;;  %v2159_v23 = vadd.f32 %v2158_v53, %v9074_v61  ;;  %v1997_v50 = vsel %vm12409_vm10, %v1968_v0, %v6917_v3  ;;  %v6927_v53 = vunpack.i.l.bf16 %v9153_v39  ;;  %v9175_v3 = vpop.permute.xlu2 %6935 }
 0x277   : > { %4049 = vmatpush.msrb.mxu1 %v3448_v31  ;;  %v1945_v31 = vld.sshfl [vmem:[#allocation1] sm:$0xff pattern:$0x75316420] }
 0x278   : > { %v9083_v18 = vpop.f32.mrf.mxu1  ;;  %7003 = vtanh.f32 %v2459_v27  ;;  %v2260_v62 = vadd.f32 %v9005_v22, %v2159_v23  ;;  %v3441_v23 = vld [vmem:[%s12322_s3 + $0x8] sm:$0xff] }
 0x279   : > { %7005 = vtanh.f32 %v2257_v1  ;;  %4050 = vmatpush.msrb.mxu1 %v3447_v19  ;;  %v3456_v19 = vld [vmem:[%s12322_s3 + $0x80] sm:$0xff] }
 0x27b   : > { %6511 = vmatmul.msk.f32.gmra.mxu1 %vm12445_vm9, %v9011_v48  ;;  %6539 = vmatmul.msk.f32.gmra.mxu3 %vm12445_vm9, %v9011_v48  ;;  %v6922_v48 = vunpack.i.l.bf16 %v9102_v16  ;;  %v2360_v45 = vpop.f32.mrf.mxu2  ;;  %v3442_v16 = vld [vmem:[%s12322_s3 + $0x10] sm:$0xff] }
 0x27c   : > { %v2361_v24 = vadd.f32 %v2360_v45, %v9076_v28 }
 0x27d   : > { %v2026_v60 = vsel %vm2007_vm11, %v1997_v50, %v6922_v48  ;;  %v3457_v50 = vld [vmem:[%s12322_s3 + $0x88] sm:$0xff] }
 0x27e   : > { %2205 = vmatmul.f32.gmra.mxu0 %v2025_v57  ;;  %2407 = vmatmul.f32.gmra.mxu2 %v2025_v57  ;;  %v9107_v29 = vpop.f32.mrf.mxu3  ;;  %v7004_v12 = vpop.eup %7003  ;;  %v2462_v25 = vadd.f32 %v9020_v10, %v2361_v24 }
 0x27f   : > { %v2654_v44 = vrot.slane %v7004_v12, 6  ;;  %v7006_v14 = vpop.eup %7005  ;;  %v12841_v12 = vld [vmem:[#allocation103_spill] sm:$0xff]  ;;  %4115 = vmatpush.msrb.mxu3 %v3457_v50 }
 0x280   : > { %v9112_v17 = vpop.f32.mrf.mxu1  ;;  %7007 = vtanh.f32 %v2462_v25  ;;  %v3440_v25 = vld [vmem:[%s12322_s3] sm:$0xff] }
 0x281   : > { %v2684_v22 = vsel %vm2683_vm12, %v7006_v14, %v2654_v44  ;;  %v9136_v10 = vsel %vm762_vm4, %v7006_v14, %v2654_v44  ;;  %7009 = vtanh.f32 %v2260_v62  ;;  %v2682_v42 = vsel %vm761_vm3, %v7006_v14, %v2654_v44  ;;  %4116 = vmatpush.msrb.mxu3 %v3456_v19 }
 0x282   : > { %v2685_v11 = vrot.slane %v2684_v22, 2  ;;  %v2687_v35 = vrot.slane %v9136_v10, 4  ;;  %v9156_v21 = vsel %vm2688_vm13, %v2654_v44, %v7006_v14  ;;  %v6546_v51 = vrot.slane %v2682_v42, 9 }
 0x283   : > { %v2161_v15 = vpop.f32.mrf.mxu0  ;;  %6512 = vmatmul.msk.f32.gmra.mxu1 %vm12445_vm9, %v9031_v41  ;;  %6540 = vmatmul.msk.f32.gmra.mxu3 %vm12445_vm9, %v9031_v41  ;;  %v3446_v41 = vld [vmem:[%s12322_s3 + $0x30] sm:$0xff]  ;;  %v2690_v1 = vrot.slane %v9156_v21, 6  ;;  %v1970_v62 = vsel %vm12445_vm9, %v12841_v12, %v6927_v53 }
 0x284   : > { %v2162_v4 = vadd.f32 %v2161_v15, %v9074_v61  ;;  %4051 = vmatpush.msrb.mxu1 %v3446_v41  ;;  %v6547_v7 = vrot.slane %v2685_v11, 9  ;;  %v6548_v27 = vrot.slane %v2687_v35, 9  ;;  %v9188_v48 = vadd.f32 %v6546_v51, %v2682_v42 }
 0x285   : > { %v6549_v22 = vrot.slane %v2690_v1, 9 }
 0x286   : > { %2208 = vmatmul.f32.gmra.mxu0 %v2026_v60  ;;  %2410 = vmatmul.f32.gmra.mxu2 %v2026_v60  ;;  %v9132_v46 = vpop.f32.mrf.mxu3  ;;  %v2263_v47 = vadd.f32 %v9029_v20, %v2162_v4  ;;  %v7008_v9 = vpop.eup %7007  ;;  %v9182_v57 = vadd.f32 %v6547_v7, %v2685_v11  ;;  %v6937_v60 = vunpack.i.l.bf16 %v9175_v3  ;;  %v9211_v44 = vadd.f32 %v6548_v27, %v2687_v35  ;;  %v1946_v27 = vld.sshfl [vmem:[#allocation1 + $0x10] sm:$0xff pattern:$0x75316420] }
 0x287   : > { %4052 = vmatpush.msrb.mxu1 %v3445_v59  ;;  %v2655_v6 = vrot.slane %v7008_v9, 6  ;;  %v7010_v40 = vpop.eup %7009  ;;  %v3574_v9 = vperm.slane %v9188_v48, 2 }
 0x288   : > { %v9144_v56 = vpop.f32.mrf.mxu1  ;;  %7011 = vtanh.f32 %v2263_v47  ;;  %v3575_v10 = vperm.slane %v9182_v57, 0  ;;  %v3577_v21 = vperm.slane %v9211_v44, 0 }
 0x289   : > { %v2363_v52 = vpop.f32.mrf.mxu2  ;;  %4053 = vmatpush.msrb.mxu1 %v3444_v37  ;;  %v2691_v33 = vsel %vm761_vm3, %v7010_v40, %v2655_v6  ;;  %v9186_v0 = vsel %vm2683_vm12, %v7010_v40, %v2655_v6  ;;  %v9199_v24 = vsel %vm762_vm4, %v7010_v40, %v2655_v6  ;;  %v2696_v43 = vsel %vm2688_vm13, %v2655_v6, %v7010_v40 }
 0x28a   : > { %v2364_v38 = vadd.f32 %v2363_v52, %v9076_v28  ;;  %v2693_v14 = vrot.slane %v9186_v0, 2  ;;  %v6550_v34 = vrot.slane %v2691_v33, 9  ;;  %v2695_v42 = vrot.slane %v9199_v24, 4 }
 0x28b   : > { %v9160_v2 = vpop.f32.mrf.mxu0  ;;  %6513 = vmatmul.msk.f32.gmra.mxu1 %vm12445_vm9, %v9046_v26  ;;  %6541 = vmatmul.msk.f32.gmra.mxu3 %vm12445_vm9, %v9046_v26  ;;  %v9173_v26 = vpop.permute.xlu1 %6930  ;;  %v3573_v52 = vperm.slane %v9188_v48, 0  ;;  %v6928_v37 = vunpack.i.h.bf16 %v9153_v39 }
 0x28c   : > { %v2465_v20 = vadd.f32 %v9040_v49, %v2364_v38  ;;  %4054 = vmatpush.msrb.mxu1 %v3443_v58  ;;  %v6932_v5 = vunpack.i.l.bf16 %v9173_v26  ;;  %v6933_v35 = vunpack.i.h.bf16 %v9173_v26  ;;  %v6551_v7 = vrot.slane %v2693_v14, 9 }
 0x28d   : > { %v9227_v47 = vadd.f32 %v6550_v34, %v2691_v33  ;;  %v9229_v38 = vadd.f32 %v6549_v22, %v2690_v1  ;;  %v3798_v6 = vsel %vm3797_vm14, %v3575_v10, %v3573_v52  ;;  %v6552_v53 = vrot.slane %v2695_v42, 9 }
 0x28e   : > { %2211 = vmatmul.f32.gmra.mxu0 %v2027_v55  ;;  %2413 = vmatmul.f32.gmra.mxu2 %v2027_v55  ;;  %v9180_v49 = vpop.f32.mrf.mxu3  ;;  %7013 = vtanh.f32 %v2465_v20  ;;  %v1999_v63 = vsel %vm12409_vm10, %v1970_v62, %v6932_v5  ;;  %v7012_v32 = vpop.eup %7011  ;;  %v2165_v20 = vadd.f32 %v9160_v2, %v9074_v61  ;;  %v3800_v24 = vsel %vm3799_vm15, %v3577_v21, %v3798_v6  ;;  %v1947_v21 = vld.sshfl [vmem:[#allocation1 + $0x20] sm:$0xff pattern:$0x75316420] }
 0x28f   : > { %4055 = vmatpush.msrb.mxu1 %v3442_v16  ;;  %v2028_v11 = vsel %vm2007_vm11, %v1999_v63, %v6937_v60  ;;  %v3581_v2 = vperm.slane %v9227_v47, 0  ;;  %v3576_v34 = vperm.slane %v9182_v57, 2  ;;  %v9256_v10 = vadd.f32 %v6552_v53, %v2695_v42 }
 0x290   : > { %v9196_v45 = vpop.f32.mrf.mxu1  ;;  %v3580_v52 = vperm.slane %v9229_v38, 2 }
 0x291   : > { %v2366_v15 = vpop.f32.mrf.mxu2  ;;  %4056 = vmatpush.msrb.mxu1 %v3441_v23 }
 0x292   : > { %v2367_v41 = vadd.f32 %v2366_v15, %v9076_v28 }
 0x293   : > { %v2167_v4 = vpop.f32.mrf.mxu0  ;;  %4057 = vmatpush.msrb.mxu1 %v3440_v25  ;;  %6542 = vmatmul.msk.f32.gmra.mxu3 %vm12445_vm9, %v1945_v31  ;;  %v2266_v25 = vadd.f32 %v9044_v54, %v2165_v20 }
 0x294   : > { %6514 = vmatmul.msk.f32.gmra.mxu1 %vm12445_vm9, %v1945_v31  ;;  %v2468_v59 = vadd.f32 %v9061_v30, %v2367_v41  ;;  %v7014_v36 = vpop.eup %7013  ;;  %v2697_v30 = vrot.slane %v2696_v43, 6  ;;  %v2168_v55 = vadd.f32 %v2167_v4, %v9074_v61  ;;  %v9244_v31 = vadd.f32 %v6551_v7, %v2693_v14 }
 0x295   : > { %v2656_v58 = vrot.slane %v7014_v36, 6  ;;  %v3579_v14 = vperm.slane %v9229_v38, 0  ;;  %v6938_v7 = vunpack.i.h.bf16 %v9175_v3  ;;  %v3810_v3 = vsel %vm3797_vm14, %v3576_v34, %v3574_v9  ;;  %v12843_v34 = vld [vmem:[#allocation118_spill] sm:$0xff] }
 0x296   : > { %2214 = vmatmul.f32.gmra.mxu0 %v2028_v11  ;;  %2416 = vmatmul.f32.gmra.mxu2 %v2028_v11  ;;  %v9232_v51 = vpop.f32.mrf.mxu3  ;;  %7015 = vtanh.f32 %v2468_v59  ;;  %v6553_v50 = vrot.slane %v2697_v30, 9  ;;  %v2269_v41 = vadd.f32 %v9064_v8, %v2168_v55  ;;  %v3583_v43 = vperm.slane %v9244_v31, 0 }
 0x297   : > { %v2698_v1 = vsel %vm761_vm3, %v7012_v32, %v2656_v58  ;;  %v2699_v16 = vsel %vm2683_vm12, %v7012_v32, %v2656_v58  ;;  %v2701_v33 = vsel %vm762_vm4, %v7012_v32, %v2656_v58  ;;  %v2703_v0 = vsel %vm2688_vm13, %v2656_v58, %v7012_v32 }
 0x298   : > { %v9238_v40 = vpop.f32.mrf.mxu1  ;;  %v2700_v5 = vrot.slane %v2699_v16, 2  ;;  %v2702_v15 = vrot.slane %v2701_v33, 4  ;;  %v2704_v12 = vrot.slane %v2703_v0, 6  ;;  %v6554_v62 = vrot.slane %v2698_v1, 9  ;;  %v9288_v16 = vpop.permute.xlu1 %6945 }
 0x299   : > { %v2369_v23 = vpop.f32.mrf.mxu2  ;;  %v9258_v63 = vadd.f32 %v6553_v50, %v2697_v30  ;;  %v3802_v59 = vsel %vm3801_vm0, %v3579_v14, %v3800_v24  ;;  %v3578_v8 = vperm.slane %v9211_v44, 2  ;;  %v3585_v30 = vperm.slane %v9256_v10, 0 }
 0x29a   : > { %v2370_v60 = vadd.f32 %v2369_v23, %v9076_v28  ;;  %v6555_v11 = vrot.slane %v2700_v5, 9  ;;  %v6556_v32 = vrot.slane %v2702_v15, 9  ;;  %v3803_v57 = vsel %vm941_vm7, %v3581_v2, %v3802_v59  ;;  %v12842_v2 = vld [vmem:[#allocation104_spill] sm:$0xff] }
 0x29b   : > { %6543 = vmatmul.msk.f32.gmra.mxu3 %vm12445_vm9, %v1946_v27  ;;  %v2170_v19 = vpop.f32.mrf.mxu0  ;;  %v9266_v42 = vadd.f32 %v6554_v62, %v2698_v1  ;;  %v3587_v44 = vperm.slane %v9258_v63, 0  ;;  %v3805_v55 = vsel %vm3804_vm1, %v3583_v43, %v3803_v57  ;;  %v9286_v1 = vpop.permute.xlu0 %6940  ;;  %v3811_v23 = vsel %vm3799_vm15, %v3578_v8, %v3810_v3 }
 0x29c   : > { %6515 = vmatmul.msk.f32.gmra.mxu1 %vm12445_vm9, %v1946_v27  ;;  %v2471_v22 = vadd.f32 %v9078_v13, %v2370_v60  ;;  %v7016_v4 = vpop.eup %7015  ;;  %v6557_v13 = vrot.slane %v2704_v12, 9  ;;  %v2171_v20 = vadd.f32 %v2170_v19, %v9074_v61  ;;  %v9278_v53 = vadd.f32 %v6555_v11, %v2700_v5 }
 0x29d   : > { %v9273_v6 = vrot.slane %v7016_v4, 6  ;;  %v9280_v38 = vadd.f32 %v6556_v32, %v2702_v15  ;;  %v3582_v27 = vperm.slane %v9227_v47, 2  ;;  %v3589_v0 = vperm.slane %v9266_v42, 0  ;;  %v1948_v4 = vld.sshfl [vmem:[#allocation1 + $0x30] sm:$0xff pattern:$0x75316420] }
 0x29e   : > { %v9262_v54 = vpop.f32.mrf.mxu3  ;;  %7017 = vtanh.f32 %v2471_v22  ;;  %v9290_v33 = vadd.f32 %v6557_v13, %v2704_v12  ;;  %v6942_v47 = vunpack.i.l.bf16 %v9286_v1  ;;  %v3590_v48 = vperm.slane %v9266_v42, 2 }
 0x29f   : > { %7019 = vtanh.f32 %v2266_v25  ;;  %v3584_v9 = vperm.slane %v9244_v31, 2  ;;  %v1971_v24 = vsel %vm12445_vm9, %v12842_v2, %v6928_v37  ;;  %v3812_v15 = vsel %vm3801_vm0, %v3580_v52, %v3811_v23 }
 0x2a0   : > { %v9269_v36 = vpop.f32.mrf.mxu1  ;;  %7021 = vtanh.f32 %v2269_v41  ;;  %v2000_v60 = vsel %vm12409_vm10, %v1971_v24, %v6933_v35  ;;  %v6947_v12 = vunpack.i.l.bf16 %v9288_v16  ;;  %v3813_v39 = vsel %vm941_vm7, %v3582_v27, %v3812_v15 }
 0x2a1   : > { %v2372_v58 = vpop.f32.mrf.mxu2  ;;  %v2029_v37 = vsel %vm2007_vm11, %v2000_v60, %v6938_v7  ;;  %v1972_v41 = vsel %vm12445_vm9, %v12843_v34, %v6942_v47  ;;  %v3591_v26 = vperm.slane %v9278_v53, 0  ;;  %v2272_v43 = vadd.f32 %v9083_v18, %v2171_v20  ;;  %v1819_v7 = vpop.permute.xlu2 %1818 }
 0x2a2   : > { %v2373_v62 = vadd.f32 %v2372_v58, %v9076_v28  ;;  %2217 = vmatmul.f32.gmra.mxu0 %v2029_v37  ;;  %v3592_v59 = vperm.slane %v9278_v53, 2  ;;  %v3594_v11 = vperm.slane %v9280_v38, 2  ;;  %v3586_v57 = vperm.slane %v9256_v10, 2  ;;  %2419 = vmatmul.f32.gmra.mxu2 %v2029_v37 }
 0x2a3   : > { %6544 = vmatmul.msk.f32.gmra.mxu3 %vm12445_vm9, %v1947_v21  ;;  %v2173_v25 = vpop.f32.mrf.mxu0  ;;  %v3807_v13 = vsel %vm3806_vm2, %v3585_v30, %v3805_v55  ;;  %v3814_v52 = vsel %vm3804_vm1, %v3584_v9, %v3813_v39  ;;  %v2001_v18 = vsel %vm12409_vm10, %v1972_v41, %v6947_v12  ;;  %7023 = vtanh.f32 %v2272_v43 }
 0x2a4   : > { %6516 = vmatmul.msk.f32.gmra.mxu1 %vm12445_vm9, %v1947_v21  ;;  %v7018_v50 = vpop.eup %7017  ;;  %v2474_v21 = vadd.f32 %v9107_v29, %v2373_v62  ;;  %v3809_v55 = vsel %vm3808_vm5, %v3587_v44, %v3807_v13  ;;  %v3815_v23 = vsel %vm3806_vm2, %v3586_v57, %v3814_v52  ;;  %v2030_v47 = vsel %vm2007_vm11, %v2001_v18, %v1819_v7 }
 0x2a5   : > { %v7020_v5 = vpop.eup %7019  ;;  %v2658_v31 = vrot.slane %v7018_v50, 6  ;;  %v3588_v9 = vperm.slane %v9258_v63, 2  ;;  %v2174_v2 = vadd.f32 %v2173_v25, %v9074_v61  ;;  %v3593_v57 = vperm.slane %v9280_v38, 0 }
 0x2a6   : > { %v7022_v19 = vpop.eup %7021  ;;  %v9309_v14 = vpop.f32.mrf.mxu3  ;;  %v2705_v35 = vsel %vm761_vm3, %v7020_v5, %v9273_v6  ;;  %v2706_v22 = vsel %vm2683_vm12, %v7020_v5, %v9273_v6  ;;  %7025 = vtanh.f32 %v2474_v21  ;;  %v2710_v63 = vsel %vm2688_vm13, %v9273_v6, %v7020_v5 }
 0x2a7   : > { %v2707_v58 = vrot.slane %v2706_v22, 2  ;;  %v6558_v20 = vrot.slane %v2705_v35, 9  ;;  %v2712_v27 = vsel %vm761_vm3, %v7022_v19, %v2658_v31  ;;  %v2713_v3 = vsel %vm2683_vm12, %v7022_v19, %v2658_v31 }
 0x2a8   : > { %v9323_v32 = vpop.f32.mrf.mxu1  ;;  %v2715_v10 = vsel %vm762_vm4, %v7022_v19, %v2658_v31  ;;  %v9336_v30 = vsel %vm2688_vm13, %v2658_v31, %v7022_v19  ;;  %v2714_v50 = vrot.slane %v2713_v3, 2  ;;  %v6562_v62 = vrot.slane %v2712_v27, 9 }
 0x2a9   : > { %v2375_v8 = vpop.f32.mrf.mxu2  ;;  %v2716_v60 = vrot.slane %v2715_v10, 4  ;;  %v2718_v12 = vrot.slane %v9336_v30, 6  ;;  %v3816_v44 = vsel %vm3808_vm5, %v3588_v9, %v3815_v23  ;;  %v2708_v31 = vsel %vm762_vm4, %v7020_v5, %v9273_v6  ;;  %v9359_v22 = vpop.eup %7023 }
 0x2aa   : > { %v2376_v29 = vadd.f32 %v2375_v8, %v9076_v28  ;;  %2220 = vmatmul.f32.gmra.mxu0 %v2030_v47  ;;  %2422 = vmatmul.f32.gmra.mxu2 %v2030_v47  ;;  %v2711_v39 = vrot.slane %v2710_v63, 6  ;;  %v6559_v37 = vrot.slane %v2707_v58, 9  ;;  %v9355_v34 = vadd.f32 %v6558_v20, %v2705_v35 }
 0x2ab   : > { %6545 = vmatmul.msk.f32.gmra.mxu3 %vm12445_vm9, %v1948_v4  ;;  %v2176_v19 = vpop.f32.mrf.mxu0  ;;  %v2275_v43 = vadd.f32 %v9112_v17, %v2174_v2  ;;  %v3817_v6 = vsel %vm3797_vm14, %v3591_v26, %v3589_v0  ;;  %v6564_v8 = vrot.slane %v2716_v60, 9  ;;  %v3595_v7 = vperm.slane %v9290_v33, 0  ;;  %v9393_v2 = vpop.permute.xlu1 %6950 }
 0x2ac   : > { %6517 = vmatmul.msk.f32.gmra.mxu1 %vm12445_vm9, %v1948_v4  ;;  %v2477_v24 = vadd.f32 %v9132_v46, %v2376_v29  ;;  %v2709_v46 = vrot.slane %v2708_v31, 4  ;;  %v6563_v4 = vrot.slane %v2714_v50, 9  ;;  %v7026_v5 = vpop.eup %7025  ;;  %v6561_v52 = vrot.slane %v2711_v39, 9 }
 0x2ad   : > { %v9366_v21 = vadd.f32 %v6559_v37, %v2707_v58  ;;  %v2177_v35 = vadd.f32 %v2176_v19, %v9074_v61  ;;  %v3597_v17 = vperm.slane %v9355_v34, 0  ;;  %v3818_v18 = vsel %vm3799_vm15, %v3593_v57, %v3817_v6 }
 0x2ae   : > { %v9345_v15 = vpop.f32.mrf.mxu3  ;;  %7027 = vtanh.f32 %v2477_v24  ;;  %v6560_v13 = vrot.slane %v2709_v46, 9  ;;  %v6565_v20 = vrot.slane %v2718_v12, 9  ;;  %v9373_v3 = vadd.f32 %v6562_v62, %v2712_v27 }
 0x2af   : > { %v6943_v0 = vunpack.i.h.bf16 %v9286_v1  ;;  %v9378_v10 = vadd.f32 %v6563_v4, %v2714_v50  ;;  %v9380_v30 = vrot.slane %v7026_v5, 6  ;;  %v3599_v29 = vperm.slane %v9366_v21, 0 }
 0x2b0   : > { %v9353_v25 = vpop.f32.mrf.mxu1  ;;  %v9376_v26 = vadd.f32 %v6560_v13, %v2709_v46  ;;  %7029 = vtanh.f32 %v2275_v43  ;;  %v9386_v47 = vadd.f32 %v6561_v52, %v2711_v39  ;;  %v9390_v9 = vadd.f32 %v6564_v8, %v2716_v60  ;;  %v1821_v43 = vpop.permute.xlu0 %1820 }
 0x2b1   : > { %v9357_v41 = vpop.f32.mrf.mxu2  ;;  %v6948_v50 = vunpack.i.h.bf16 %v9288_v16  ;;  %v2278_v24 = vadd.f32 %v9144_v56, %v2177_v35  ;;  %v3605_v19 = vperm.slane %v9373_v3, 0  ;;  %v3606_v31 = vperm.slane %v9373_v3, 2 }
 0x2b2   : > { %v3601_v27 = vperm.slane %v9376_v26, 0  ;;  %v6953_v46 = vunpack.i.h.bf16 %v9393_v2  ;;  %v3607_v60 = vperm.slane %v9378_v10, 0  ;;  %v3608_v16 = vperm.slane %v9378_v10, 2 }
 0x2b3   : > { %6658 = vmatmul.msk.f32.vlgmr.msrb.gmra.mxu3 %vm4013_vm8, %v3816_v44  ;;  %v9397_v44 = vadd.f32 %v6565_v20, %v2718_v12  ;;  %v2719_v56 = vsel %vm761_vm3, %v9359_v22, %v9380_v30  ;;  %v2179_v37 = vpop.f32.mrf.mxu0  ;;  %v2720_v4 = vsel %vm2683_vm12, %v9359_v22, %v9380_v30  ;;  %v3603_v57 = vperm.slane %v9386_v47, 0 }
 0x2b4   : > { %4058 = vmatmul.f32.vlgmr.msrb.gmra.mxu1 %v3809_v55  ;;  %v7028_v58 = vpop.eup %7027  ;;  %v3819_v55 = vsel %vm3801_vm0, %v3595_v7, %v3818_v18  ;;  %v3824_v5 = vsel %vm3797_vm14, %v3592_v59, %v3590_v48  ;;  %v6952_v8 = vunpack.i.l.bf16 %v9393_v2  ;;  %7031 = vtanh.f32 %v2278_v24  ;;  %v12844_v18 = vld [vmem:[#allocation120_spill] sm:$0xff]  ;;  %v12845_v24 = vld [vmem:[#allocation106_spill] sm:$0xff] }
 0x2b5   : > { %v3820_v1 = vsel %vm941_vm7, %v3597_v17, %v3819_v55  ;;  %v2660_v39 = vrot.slane %v7028_v58, 6  ;;  %v3596_v13 = vperm.slane %v9290_v33, 2  ;;  %v3598_v52 = vperm.slane %v9355_v34, 2 }
 0x2b6   : > { %v9384_v23 = vpop.f32.mrf.mxu3  ;;  %v3821_v62 = vsel %vm3804_vm1, %v3599_v29, %v3820_v1  ;;  %v7030_v35 = vpop.eup %7029  ;;  %v3600_v17 = vperm.slane %v9366_v21, 2  ;;  %v3825_v42 = vsel %vm3799_vm15, %v3594_v11, %v3824_v5  ;;  %v1973_v53 = vsel %vm12445_vm9, %v12844_v18, %v6943_v0 }
 0x2b7   : > { %v3822_v6 = vsel %vm3806_vm2, %v3601_v27, %v3821_v62  ;;  %v2721_v48 = vrot.slane %v2720_v4, 2  ;;  %v6566_v59 = vrot.slane %v2719_v56, 9  ;;  %v9430_v20 = vsel %vm2683_vm12, %v7030_v35, %v2660_v39 }
 0x2b8   : > { %v9401_v63 = vpop.f32.mrf.mxu1  ;;  %v3823_v7 = vsel %vm3808_vm5, %v3603_v57, %v3822_v6  ;;  %v3602_v33 = vperm.slane %v9376_v26, 2  ;;  %v9436_v58 = vsel %vm762_vm4, %v7030_v35, %v2660_v39  ;;  %v3826_v38 = vsel %vm3801_vm0, %v3596_v13, %v3825_v42  ;;  %v1648_v6 = vpop.permute.xlu2 %1647 }
 0x2b9   : > { %v2381_v12 = vpop.f32.mrf.mxu2  ;;  %v2002_v11 = vsel %vm12409_vm10, %v1973_v53, %v6948_v50  ;;  %v2379_v21 = vadd.f32 %v9357_v41, %v9076_v28  ;;  %v9443_v0 = vsel %vm761_vm3, %v7030_v35, %v2660_v39  ;;  %v9446_v29 = vsel %vm2688_vm13, %v2660_v39, %v7030_v35 }
 0x2ba   : > { %v3604_v26 = vperm.slane %v9386_v47, 2  ;;  %v3827_v55 = vsel %vm941_vm7, %v3598_v52, %v3826_v38  ;;  %v1974_v50 = vsel %vm12445_vm9, %v12845_v24, %v6952_v8  ;;  %v2031_v62 = vsel %vm2007_vm11, %v2002_v11, %v1821_v43  ;;  %v9457_v4 = vpop.eup %7031  ;;  %v1823_v43 = vpop.permute.xlu0 %1822 }
 0x2bb   : > { %v3828_v1 = vsel %vm3804_vm1, %v3600_v17, %v3827_v55  ;;  %v2480_v41 = vadd.f32 %v9180_v49, %v2379_v21  ;;  %v2728_v39 = vrot.slane %v9430_v20, 2  ;;  %v2730_v57 = vrot.slane %v9436_v58, 4  ;;  %2223 = vmatmul.f32.gmra.mxu0 %v2031_v62  ;;  %2425 = vmatmul.f32.gmra.mxu2 %v2031_v62 }
 0x2bc   : > { %4061 = vmatmul.f32.gmra.mxu1 %v3823_v7  ;;  %v3829_v47 = vsel %vm3806_vm2, %v3602_v33, %v3828_v1  ;;  %v6567_v5 = vrot.slane %v2721_v48, 9  ;;  %v2732_v13 = vrot.slane %v9446_v29, 6  ;;  %v2382_v49 = vadd.f32 %v2381_v12, %v9076_v28  ;;  %v2182_v7 = vpop.f32.mrf.mxu0 }
 0x2bd   : > { %v3830_v8 = vsel %vm3808_vm5, %v3604_v26, %v3829_v47  ;;  %7033 = vtanh.f32 %v2480_v41  ;;  %v2003_v52 = vsel %vm12409_vm10, %v1974_v50, %v1648_v6  ;;  %v2180_v35 = vadd.f32 %v2179_v37, %v9074_v61  ;;  %v1650_v50 = vpop.permute.xlu1 %1649 }
 0x2be   : > { %v9433_v34 = vpop.f32.mrf.mxu3  ;;  %6659 = vmatmul.msk.f32.gmra.mxu3 %vm4013_vm8, %v3830_v8  ;;  %v2722_v17 = vsel %vm762_vm4, %v9359_v22, %v9380_v30  ;;  %v2724_v42 = vsel %vm2688_vm13, %v9380_v30, %v9359_v22  ;;  %v2483_v53 = vadd.f32 %v9232_v51, %v2382_v49  ;;  %v9475_v33 = vadd.f32 %v6566_v59, %v2719_v56 }
 0x2bf   : > { %v2723_v20 = vrot.slane %v2722_v17, 4  ;;  %v2725_v12 = vrot.slane %v2724_v42, 6  ;;  %v6570_v38 = vrot.slane %v9443_v0, 9  ;;  %v6571_v11 = vrot.slane %v2728_v39, 9 }
 0x2c0   : > { %v9450_v27 = vpop.f32.mrf.mxu1  ;;  %v9478_v37 = vadd.f32 %v6567_v5, %v2721_v48  ;;  %v3609_v21 = vperm.slane %v9390_v9, 0  ;;  %v2032_v55 = vsel %vm2007_vm11, %v2003_v52, %v1823_v43  ;;  %7035 = vtanh.f32 %v2483_v53  ;;  %v1825_v17 = vpop.permute.xlu2 %1824 }
 0x2c1   : > { %v2384_v18 = vpop.f32.mrf.mxu2  ;;  %v6568_v22 = vrot.slane %v2723_v20, 9  ;;  %v6569_v30 = vrot.slane %v2725_v12, 9  ;;  %v3611_v51 = vperm.slane %v9397_v44, 0  ;;  %v3613_v1 = vperm.slane %v9475_v33, 0 }
 0x2c2   : > { %v3615_v56 = vperm.slane %v9478_v37, 0  ;;  %v3831_v48 = vsel %vm3797_vm14, %v3607_v60, %v3605_v19  ;;  %v2281_v62 = vadd.f32 %v9196_v45, %v2180_v35  ;;  %v3610_v5 = vperm.slane %v9390_v9, 2  ;;  %v12846_v45 = vld [vmem:[#allocation108_spill] sm:$0xff] }
 0x2c3   : > { %v7034_v59 = vpop.eup %7033  ;;  %v9495_v41 = vadd.f32 %v6568_v22, %v2723_v20  ;;  %v9497_v47 = vadd.f32 %v6569_v30, %v2725_v12  ;;  %v3832_v6 = vsel %vm3799_vm15, %v3609_v21, %v3831_v48  ;;  %v6572_v8 = vrot.slane %v2730_v57, 9  ;;  %2226 = vmatmul.f32.gmra.mxu0 %v2032_v55  ;;  %2428 = vmatmul.f32.gmra.mxu2 %v2032_v55 }
 0x2c4   : > { %v6573_v19 = vrot.slane %v2732_v13, 9  ;;  %v3833_v60 = vsel %vm3801_vm0, %v3611_v51, %v3832_v6  ;;  %v9506_v43 = vrot.slane %v7034_v59, 6  ;;  %v1975_v49 = vsel %vm12445_vm9, %v12846_v45, %v6953_v46 }
 0x2c5   : > { %v3617_v52 = vperm.slane %v9495_v41, 0  ;;  %v3834_v9 = vsel %vm941_vm7, %v3613_v1, %v3833_v60  ;;  %v9515_v35 = vadd.f32 %v6570_v38, %v9443_v0  ;;  %v2183_v42 = vadd.f32 %v2182_v7, %v9074_v61  ;;  %v1477_v0 = vpop.permute.xlu0 %1476 }
 0x2c6   : > { %v9481_v26 = vpop.f32.mrf.mxu3  ;;  %v3619_v53 = vperm.slane %v9497_v47, 0  ;;  %v3835_v20 = vsel %vm3804_vm1, %v3615_v56, %v3834_v9  ;;  %v7036_v12 = vpop.eup %7035  ;;  %v9520_v21 = vadd.f32 %v6571_v11, %v2728_v39  ;;  %7037 = vtanh.f32 %v2281_v62 }
 0x2c7   : > { %v3836_v2 = vsel %vm3806_vm2, %v3617_v52, %v3835_v20  ;;  %v3838_v46 = vsel %vm3797_vm14, %v3608_v16, %v3606_v31  ;;  %v2004_v38 = vsel %vm12409_vm10, %v1975_v49, %v1650_v50  ;;  %v3614_v55 = vperm.slane %v9475_v33, 2  ;;  %v2185_v39 = vpop.f32.mrf.mxu0  ;;  %v1652_v50 = vpop.permute.xlu1 %1651 }
 0x2c8   : > { %v9492_v24 = vpop.f32.mrf.mxu1  ;;  %v3837_v7 = vsel %vm3808_vm5, %v3619_v53, %v3836_v2  ;;  %v3839_v22 = vsel %vm3799_vm15, %v3610_v5, %v3838_v46  ;;  %v9534_v30 = vadd.f32 %v6572_v8, %v2730_v57  ;;  %v9539_v3 = vsel %vm2683_vm12, %v9457_v4, %v9506_v43  ;;  %v1827_v49 = vpop.permute.xlu2 %1826 }
 0x2c9   : > { %v2387_v11 = vpop.f32.mrf.mxu2  ;;  %4064 = vmatmul.f32.gmra.mxu1 %v3837_v7  ;;  %v3612_v31 = vperm.slane %v9397_v44, 2  ;;  %v2385_v16 = vadd.f32 %v2384_v18, %v9076_v28  ;;  %v9547_v33 = vadd.f32 %v6573_v19, %v2732_v13  ;;  %v2662_v51 = vrot.slane %v7036_v12, 6  ;;  %v12847_v44 = vld [vmem:[#allocation123_spill] sm:$0xff] }
 0x2ca   : > { %v2284_v58 = vadd.f32 %v9238_v40, %v2183_v42  ;;  %v3616_v57 = vperm.slane %v9478_v37, 2  ;;  %v3621_v1 = vperm.slane %v9515_v35, 0  ;;  %v2033_v59 = vsel %vm2007_vm11, %v2004_v38, %v1825_v17 }
 0x2cb   : > { %v3840_v48 = vsel %vm3801_vm0, %v3612_v31, %v3839_v22  ;;  %v1976_v18 = vsel %vm12445_vm9, %v12847_v44, %v1477_v0  ;;  %v2733_v29 = vsel %vm761_vm3, %v9457_v4, %v9506_v43  ;;  %v2735_v40 = vrot.slane %v9539_v3, 2  ;;  %2229 = vmatmul.f32.gmra.mxu0 %v2033_v59  ;;  %2431 = vmatmul.f32.gmra.mxu2 %v2033_v59 }
 0x2cc   : > { %v3618_v13 = vperm.slane %v9495_v41, 2  ;;  %v3841_v37 = vsel %vm941_vm7, %v3614_v55, %v3840_v48  ;;  %v7038_v62 = vpop.eup %7037  ;;  %v3622_v6 = vperm.slane %v9515_v35, 2  ;;  %v3623_v5 = vperm.slane %v9520_v21, 0 }
 0x2cd   : > { %v3624_v8 = vperm.slane %v9520_v21, 2  ;;  %v2486_v19 = vadd.f32 %v9262_v54, %v2385_v16  ;;  %v9569_v60 = vsel %vm2683_vm12, %v7038_v62, %v2662_v51  ;;  %7039 = vtanh.f32 %v2284_v58  ;;  %v1479_v16 = vpop.permute.xlu0 %1478 }
 0x2ce   : > { %v9541_v10 = vpop.f32.mrf.mxu3  ;;  %v3842_v45 = vsel %vm3804_vm1, %v3616_v57, %v3841_v37  ;;  %v2005_v41 = vsel %vm12409_vm10, %v1976_v18, %v1652_v50  ;;  %v6574_v52 = vrot.slane %v2733_v29, 9  ;;  %v2743_v9 = vsel %vm762_vm4, %v7038_v62, %v2662_v51 }
 0x2cf   : > { %v3620_v17 = vperm.slane %v9497_v47, 2  ;;  %v2186_v42 = vadd.f32 %v2185_v39, %v9074_v61  ;;  %v9577_v53 = vsel %vm2688_vm13, %v2662_v51, %v7038_v62  ;;  %v3843_v54 = vsel %vm3806_vm2, %v3618_v13, %v3842_v45  ;;  %v9589_v22 = vpop.f32.mrf.mxu0 }
 0x2d0   : > { %v9552_v56 = vpop.f32.mrf.mxu1  ;;  %v2388_v20 = vadd.f32 %v2387_v11, %v9076_v28  ;;  %v6575_v12 = vrot.slane %v2735_v40, 9  ;;  %v2742_v2 = vrot.slane %v9569_v60, 2  ;;  %7041 = vtanh.f32 %v2486_v19  ;;  %v12848_v19 = vld [vmem:[#allocation125_spill] sm:$0xff] }
 0x2d1   : > { %v3844_v46 = vsel %vm3808_vm5, %v3620_v17, %v3843_v54  ;;  %v2034_v38 = vsel %vm2007_vm11, %v2005_v41, %v1827_v49  ;;  %v2740_v47 = vsel %vm761_vm3, %v7038_v62, %v2662_v51  ;;  %v2744_v7 = vrot.slane %v2743_v9, 4  ;;  %v2390_v11 = vpop.f32.mrf.mxu2 }
 0x2d2   : > { %6660 = vmatmul.msk.f32.gmra.mxu3 %vm4013_vm8, %v3844_v46  ;;  %v2489_v55 = vadd.f32 %v9309_v14, %v2388_v20  ;;  %v2736_v39 = vsel %vm762_vm4, %v9457_v4, %v9506_v43  ;;  %v2746_v3 = vrot.slane %v9577_v53, 6  ;;  %v2738_v51 = vsel %vm2688_vm13, %v9506_v43, %v9457_v4  ;;  %v1654_v43 = vpop.permute.xlu1 %1653  ;;  %v1829_v46 = vpop.permute.xlu2 %1828 }
 0x2d3   : > { %v2737_v58 = vrot.slane %v2736_v39, 4  ;;  %v9600_v57 = vadd.f32 %v6574_v52, %v2733_v29  ;;  %v9602_v14 = vpop.eup %7039  ;;  %v2287_v48 = vadd.f32 %v9269_v36, %v2186_v42  ;;  %2232 = vmatmul.f32.gmra.mxu0 %v2034_v38  ;;  %2434 = vmatmul.f32.gmra.mxu2 %v2034_v38  ;;  %v2739_v59 = vrot.slane %v2738_v51, 6 }
 0x2d4   : > { %7043 = vtanh.f32 %v2489_v55  ;;  %v9605_v44 = vadd.f32 %v6575_v12, %v2735_v40  ;;  %v6578_v18 = vrot.slane %v2740_v47, 9  ;;  %v6579_v50 = vrot.slane %v2742_v2, 9 }
 0x2d5   : > { %v6576_v13 = vrot.slane %v2737_v58, 9  ;;  %v3625_v37 = vperm.slane %v9534_v30, 0  ;;  %v6580_v62 = vrot.slane %v2744_v7, 9  ;;  %v1977_v4 = vsel %vm12445_vm9, %v12848_v19, %v1479_v16 }
 0x2d6   : > { %v9583_v0 = vpop.f32.mrf.mxu3  ;;  %v6577_v29 = vrot.slane %v2739_v59, 9  ;;  %v3629_v60 = vperm.slane %v9600_v57, 0  ;;  %v7042_v36 = vpop.eup %7041  ;;  %v3627_v41 = vperm.slane %v9547_v33, 0  ;;  %v3631_v40 = vperm.slane %v9605_v44, 0 }
 0x2d7   : > { %v9611_v45 = vadd.f32 %v6576_v13, %v2737_v58  ;;  %v3845_v49 = vsel %vm3797_vm14, %v3623_v5, %v3621_v1  ;;  %v3626_v52 = vperm.slane %v9534_v30, 2  ;;  %v6581_v9 = vrot.slane %v2746_v3, 9 }
 0x2d8   : > { %v9595_v31 = vpop.f32.mrf.mxu1  ;;  %7045 = vtanh.f32 %v2287_v48  ;;  %v3846_v17 = vsel %vm3799_vm15, %v3625_v37, %v3845_v49  ;;  %v2006_v53 = vsel %vm12409_vm10, %v1977_v4, %v1654_v43  ;;  %v3359_v54 = vadd.f32 %v6577_v29, %v2739_v59 }
 0x2d9   : > { %v3633_v20 = vperm.slane %v9611_v45, 0  ;;  %v3847_v12 = vsel %vm3801_vm0, %v3627_v41, %v3846_v17  ;;  %v9625_v55 = vadd.f32 %v6578_v18, %v2740_v47  ;;  %v9627_v1 = vadd.f32 %v6579_v50, %v2742_v2  ;;  %v2191_v18 = vpop.f32.mrf.mxu0 }
 0x2da   : > { %v7044_v38 = vpop.eup %7043  ;;  %v2663_v30 = vrot.slane %v7042_v36, 6  ;;  %v3848_v5 = vsel %vm941_vm7, %v3629_v60, %v3847_v12  ;;  %v9630_v39 = vadd.f32 %v6580_v62, %v2744_v7  ;;  %v3852_v51 = vsel %vm3797_vm14, %v3624_v8, %v3622_v6  ;;  %v2393_v7 = vpop.f32.mrf.mxu2 }
 0x2db   : > { %v3849_v58 = vsel %vm3804_vm1, %v3631_v40, %v3848_v5  ;;  %v2664_v48 = vrot.slane %v7044_v38, 6  ;;  %v2035_v2 = vsel %vm2007_vm11, %v2006_v53, %v1829_v46  ;;  %v2391_v59 = vadd.f32 %v2390_v11, %v9076_v28  ;;  %vm4216_vm11 = vmor %vm940_vm6, %vm3799_vm15 }
 0x2dc   : > { %v3850_v47 = vsel %vm3806_vm2, %v3633_v20, %v3849_v58  ;;  %v9643_v50 = vadd.f32 %v6581_v9, %v2746_v3  ;;  %v3635_v13 = vperm.slane %v3359_v54, 0  ;;  %v3630_v37 = vperm.slane %v9600_v57, 2  ;;  %2235 = vmatmul.f32.gmra.mxu0 %v2035_v2  ;;  %2437 = vmatmul.f32.gmra.mxu2 %v2035_v2  ;;  %vm4217_vm10 = vmor %vm4216_vm11, %vm941_vm7 }
 0x2dd   : > { %v3853_v35 = vsel %vm3799_vm15, %v3626_v52, %v3852_v51  ;;  %v3637_v6 = vperm.slane %v9625_v55, 0  ;;  %v3639_v8 = vperm.slane %v9627_v1, 0  ;;  %v2747_v62 = vsel %vm761_vm3, %v9602_v14, %v2663_v30  ;;  %vm10437_vm6 = vmor %vm4217_vm10, %vm3806_vm2 }
 0x2de   : > { %v9620_v42 = vpop.f32.mrf.mxu3  ;;  %v7046_v21 = vpop.eup %7045  ;;  %v3628_v11 = vperm.slane %v9547_v33, 2  ;;  %v2748_v3 = vsel %vm2683_vm12, %v9602_v14, %v2663_v30  ;;  %v3851_v19 = vsel %vm3808_vm5, %v3635_v13, %v3850_v47  ;;  %v3632_v57 = vperm.slane %v9605_v44, 2 }
 0x2df   : > { %v2492_v4 = vadd.f32 %v9345_v15, %v2391_v59  ;;  %v2755_v43 = vsel %vm2683_vm12, %v7046_v21, %v2664_v48  ;;  %v2189_v29 = vadd.f32 %v9589_v22, %v9074_v61  ;;  %4067 = vmatmul.f32.gmra.mxu1 %v3851_v19  ;;  %v3634_v60 = vperm.slane %v9611_v45, 2 }
 0x2e0   : > { %v9632_v16 = vpop.f32.mrf.mxu1  ;;  %v3854_v33 = vsel %vm3801_vm0, %v3628_v11, %v3853_v35  ;;  %v2757_v36 = vsel %vm762_vm4, %v7046_v21, %v2664_v48  ;;  %v2759_v41 = vsel %vm2688_vm13, %v2664_v48, %v7046_v21  ;;  %v2394_v15 = vadd.f32 %v2393_v7, %v9076_v28 }
 0x2e1   : > { %v3855_v40 = vsel %vm941_vm7, %v3630_v37, %v3854_v33  ;;  %v2749_v44 = vrot.slane %v2748_v3, 2  ;;  %v6582_v52 = vrot.slane %v2747_v62, 9  ;;  %v2754_v9 = vsel %vm761_vm3, %v7046_v21, %v2664_v48  ;;  %v2194_v47 = vpop.f32.mrf.mxu0 }
 0x2e2   : > { %7047 = vtanh.f32 %v2492_v4  ;;  %v2756_v22 = vrot.slane %v2755_v43, 2  ;;  %v3636_v17 = vperm.slane %v3359_v54, 2  ;;  %v3856_v45 = vsel %vm3804_vm1, %v3632_v57, %v3855_v40 }
 0x2e3   : > { %v2495_v20 = vadd.f32 %v9384_v23, %v2394_v15  ;;  %v2758_v12 = vrot.slane %v2757_v36, 4  ;;  %v2760_v46 = vrot.slane %v2759_v41, 6  ;;  %v2290_v38 = vadd.f32 %v9323_v32, %v2189_v29  ;;  %v2396_v32 = vpop.f32.mrf.mxu2 }
 0x2e4   : > { %v3857_v5 = vsel %vm3806_vm2, %v3634_v60, %v3856_v45  ;;  %v6586_v58 = vrot.slane %v2754_v9, 9  ;;  %v2192_v48 = vadd.f32 %v2191_v18, %v9074_v61  ;;  %v2750_v54 = vsel %vm762_vm4, %v9602_v14, %v2663_v30 }
 0x2e5   : > { %v3858_v51 = vsel %vm3808_vm5, %v3636_v17, %v3857_v5  ;;  %v2751_v2 = vrot.slane %v2750_v54, 4  ;;  %v2752_v23 = vsel %vm2688_vm13, %v2663_v30, %v9602_v14  ;;  %v6583_v59 = vrot.slane %v2749_v44, 9 }
 0x2e6   : > { %v9665_v49 = vpop.f32.mrf.mxu3  ;;  %6661 = vmatmul.msk.f32.gmra.mxu3 %vm4013_vm8, %v3858_v51  ;;  %v9682_v7 = vadd.f32 %v6582_v52, %v2747_v62  ;;  %v6587_v13 = vrot.slane %v2756_v22, 9  ;;  %7049 = vtanh.f32 %v2495_v20  ;;  %v2753_v37 = vrot.slane %v2752_v23, 6 }
 0x2e7   : > { %v3641_v35 = vperm.slane %v9630_v39, 0  ;;  %v6588_v21 = vrot.slane %v2758_v12, 9  ;;  %7051 = vtanh.f32 %v2290_v38  ;;  %v6584_v11 = vrot.slane %v2751_v2, 9 }
 0x2e8   : > { %v9670_v53 = vpop.f32.mrf.mxu1  ;;  %v7048_v18 = vpop.eup %7047  ;;  %v9685_v3 = vadd.f32 %v6583_v59, %v2749_v44  ;;  %v2293_v19 = vadd.f32 %v9353_v25, %v2192_v48  ;;  %v6585_v14 = vrot.slane %v2753_v37, 9  ;;  %v3645_v30 = vperm.slane %v9682_v7, 0 }
 0x2e9   : > { %v3859_v62 = vsel %vm3797_vm14, %v3639_v8, %v3637_v6  ;;  %v6589_v4 = vrot.slane %v2760_v46, 9  ;;  %v9692_v43 = vadd.f32 %v6586_v58, %v2754_v9  ;;  %v3366_v29 = vadd.f32 %v6584_v11, %v2751_v2  ;;  %v2197_v2 = vpop.f32.mrf.mxu0 }
 0x2ea   : > { %v3643_v60 = vperm.slane %v9643_v50, 0  ;;  %v3638_v33 = vperm.slane %v9625_v55, 2  ;;  %v9696_v36 = vadd.f32 %v6587_v13, %v2756_v22  ;;  %v2665_v41 = vrot.slane %v7048_v18, 6 }
 0x2eb   : > { %v3860_v25 = vsel %vm3799_vm15, %v3641_v35, %v3859_v62  ;;  %v3640_v15 = vperm.slane %v9627_v1, 2  ;;  %v3642_v44 = vperm.slane %v9630_v39, 2  ;;  %v3647_v6 = vperm.slane %v9685_v3, 0  ;;  %v2399_v23 = vpop.f32.mrf.mxu2 }
 0x2ec   : > { %v3861_v8 = vsel %vm3801_vm0, %v3643_v60, %v3860_v25  ;;  %v7050_v52 = vpop.eup %7049  ;;  %v9705_v9 = vadd.f32 %v6588_v21, %v2758_v12  ;;  %7053 = vtanh.f32 %v2293_v19  ;;  %v3367_v55 = vadd.f32 %v6585_v14, %v2753_v37 }
 0x2ed   : > { %v3862_v22 = vsel %vm941_vm7, %v3645_v30, %v3861_v8  ;;  %v7052_v17 = vpop.eup %7051  ;;  %v9708_v45 = vadd.f32 %v6589_v4, %v2760_v46  ;;  %v3653_v20 = vperm.slane %v9692_v43, 0  ;;  %v3654_v1 = vperm.slane %v9692_v43, 2 }
 0x2ee   : > { %v9688_v57 = vpop.f32.mrf.mxu3  ;;  %v3649_v38 = vperm.slane %v3366_v29, 0  ;;  %v3655_v39 = vperm.slane %v9696_v36, 0  ;;  %v2761_v5 = vsel %vm761_vm3, %v7052_v17, %v2665_v41  ;;  %v2762_v58 = vsel %vm2683_vm12, %v7052_v17, %v2665_v41 }
 0x2ef   : > { %v2195_v12 = vadd.f32 %v2194_v47, %v9074_v61  ;;  %v2666_v51 = vrot.slane %v7050_v52, 6  ;;  %v3863_v48 = vsel %vm3804_vm1, %v3647_v6, %v3862_v22  ;;  %v3866_v54 = vsel %vm3797_vm14, %v3640_v15, %v3638_v33 }
 0x2f0   : > { %v9698_v40 = vpop.f32.mrf.mxu1  ;;  %v2397_v46 = vadd.f32 %v2396_v32, %v9076_v28  ;;  %v3656_v59 = vperm.slane %v9696_v36, 2  ;;  %v3651_v13 = vperm.slane %v3367_v55, 0  ;;  %v3644_v37 = vperm.slane %v9643_v50, 2 }
 0x2f1   : > { %v3646_v35 = vperm.slane %v9682_v7, 2  ;;  %v3864_v47 = vsel %vm3806_vm2, %v3649_v38, %v3863_v48  ;;  %v3648_v21 = vperm.slane %v9685_v3, 2  ;;  %v3867_v11 = vsel %vm3799_vm15, %v3642_v44, %v3866_v54 }
 0x2f2   : > { %v2498_v19 = vadd.f32 %v9433_v34, %v2397_v46  ;;  %v7054_v32 = vpop.eup %7053  ;;  %v2763_v14 = vrot.slane %v2762_v58, 2  ;;  %v6590_v30 = vrot.slane %v2761_v5, 9  ;;  %v2296_v62 = vadd.f32 %v9401_v63, %v2195_v12 }
 0x2f3   : > { %v3650_v4 = vperm.slane %v3366_v29, 2  ;;  %v2768_v50 = vsel %vm761_vm3, %v7054_v32, %v2666_v51  ;;  %v9731_v7 = vsel %vm2683_vm12, %v7054_v32, %v2666_v51  ;;  %v3865_v60 = vsel %vm3808_vm5, %v3651_v13, %v3864_v47 }
 0x2f4   : > { %v3868_v33 = vsel %vm3801_vm0, %v3644_v37, %v3867_v11  ;;  %v9738_v25 = vsel %vm762_vm4, %v7054_v32, %v2666_v51  ;;  %v9741_v34 = vsel %vm2688_vm13, %v2666_v51, %v7054_v32  ;;  %4070 = vmatmul.f32.gmra.mxu1 %v3865_v60  ;;  %v3652_v63 = vperm.slane %v3367_v55, 2 }
 0x2f5   : > { %v3869_v29 = vsel %vm941_vm7, %v3646_v35, %v3868_v33  ;;  %7055 = vtanh.f32 %v2498_v19  ;;  %v2198_v44 = vadd.f32 %v2197_v2, %v9074_v61  ;;  %v2400_v6 = vadd.f32 %v2399_v23, %v9076_v28  ;;  %v2402_v35 = vpop.f32.mrf.mxu2 }
 0x2f6   : > { %v9722_v18 = vpop.f32.mrf.mxu3  ;;  %v3870_v15 = vsel %vm3804_vm1, %v3648_v21, %v3869_v29  ;;  %v2764_v52 = vsel %vm762_vm4, %v7052_v17, %v2665_v41  ;;  %v2766_v22 = vsel %vm2688_vm13, %v2665_v41, %v7052_v17  ;;  %v6591_v38 = vrot.slane %v2763_v14, 9  ;;  %v2200_v17 = vpop.f32.mrf.mxu0 }
 0x2f7   : > { %v3871_v8 = vsel %vm3806_vm2, %v3650_v4, %v3870_v15  ;;  %v2770_v58 = vrot.slane %v9731_v7, 2  ;;  %v2772_v55 = vrot.slane %v9738_v25, 4  ;;  %v2501_v51 = vadd.f32 %v9481_v26, %v2400_v6 }
 0x2f8   : > { %v9735_v3 = vpop.f32.mrf.mxu1  ;;  %v3872_v12 = vsel %vm3808_vm5, %v3652_v63, %v3871_v8  ;;  %v2765_v54 = vrot.slane %v2764_v52, 4  ;;  %v2767_v46 = vrot.slane %v2766_v22, 6  ;;  %v3372_v2 = vadd.f32 %v6590_v30, %v2761_v5 }
 0x2f9   : > { %6662 = vmatmul.msk.f32.gmra.mxu3 %vm4013_vm8, %v3872_v12  ;;  %v9757_v23 = vadd.f32 %v6591_v38, %v2763_v14  ;;  %v2774_v41 = vrot.slane %v9741_v34, 6  ;;  %7057 = vtanh.f32 %v2501_v51  ;;  %v3657_v13 = vperm.slane %v9705_v9, 0 }
 0x2fa   : > { %v3873_v37 = vsel %vm3797_vm14, %v3655_v39, %v3653_v20  ;;  %v3658_v26 = vperm.slane %v9705_v9, 2  ;;  %v2299_v47 = vadd.f32 %v9450_v27, %v2198_v44  ;;  %v6592_v21 = vrot.slane %v2765_v54, 9 }
 0x2fb   : > { %v6593_v11 = vrot.slane %v2767_v46, 9  ;;  %v7056_v19 = vpop.eup %7055  ;;  %v3659_v5 = vperm.slane %v9708_v45, 0  ;;  %v3661_v32 = vperm.slane %v3372_v2, 0  ;;  %v3663_v14 = vperm.slane %v9757_v23, 0 }
 0x2fc   : > { %v3874_v30 = vsel %vm3799_vm15, %v3657_v13, %v3873_v37  ;;  %v6594_v4 = vrot.slane %v2768_v50, 9  ;;  %7059 = vtanh.f32 %v2296_v62  ;;  %v3374_v7 = vadd.f32 %v6592_v21, %v2765_v54 }
 0x2fd   : > { %v3375_v60 = vadd.f32 %v6593_v11, %v2767_v46  ;;  %v6595_v20 = vrot.slane %v2770_v58, 9  ;;  %v6596_v39 = vrot.slane %v2772_v55, 9  ;;  %v6597_v33 = vrot.slane %v2774_v41, 9 }
 0x2fe   : > { %v9755_v48 = vpop.f32.mrf.mxu3  ;;  %v3875_v27 = vsel %vm3801_vm0, %v3659_v5, %v3874_v30  ;;  %7061 = vtanh.f32 %v2299_v47  ;;  %v2201_v25 = vadd.f32 %v2200_v17, %v9074_v61  ;;  %v3665_v34 = vperm.slane %v3374_v7, 0  ;;  %v2203_v37 = vpop.f32.mrf.mxu0 }
 0x2ff   : > { %v3876_v63 = vsel %vm941_vm7, %v3661_v32, %v3875_v27  ;;  %v7058_v29 = vpop.eup %7057  ;;  %v2667_v15 = vrot.slane %v7056_v19, 6  ;;  %v3667_v44 = vperm.slane %v3375_v60, 0  ;;  %v3880_v6 = vsel %vm3797_vm14, %v3656_v59, %v3654_v1 }
 0x300   : > { %v9767_v9 = vpop.f32.mrf.mxu1  ;;  %v3877_v62 = vsel %vm3804_vm1, %v3663_v14, %v3876_v63  ;;  %v9778_v8 = vadd.f32 %v6594_v4, %v2768_v50  ;;  %v3662_v22 = vperm.slane %v3372_v2, 2  ;;  %v3881_v38 = vsel %vm3799_vm15, %v3658_v26, %v3880_v6  ;;  %v2405_v26 = vpop.f32.mrf.mxu2 }
 0x301   : > { %v3878_v52 = vsel %vm3806_vm2, %v3665_v34, %v3877_v62  ;;  %v9784_v51 = vadd.f32 %v6595_v20, %v2770_v58  ;;  %v3660_v46 = vperm.slane %v9708_v45, 2  ;;  %v2403_v43 = vadd.f32 %v2402_v35, %v9076_v28 }
 0x302   : > { %v3879_v54 = vsel %vm3808_vm5, %v3667_v44, %v3878_v52  ;;  %v7060_v36 = vpop.eup %7059  ;;  %v9789_v17 = vadd.f32 %v6596_v39, %v2772_v55  ;;  %v2668_v1 = vrot.slane %v7058_v29, 6  ;;  %v3664_v59 = vperm.slane %v9757_v23, 2 }
 0x303   : > { %4073 = vmatmul.f32.gmra.mxu1 %v3879_v54  ;;  %v9792_v50 = vadd.f32 %v6597_v33, %v2774_v41  ;;  %v2776_v2 = vsel %vm2683_vm12, %v7060_v36, %v2667_v15  ;;  %v2302_v58 = vadd.f32 %v9492_v24, %v2201_v25  ;;  %v3882_v13 = vsel %vm3801_vm0, %v3660_v46, %v3881_v38 }
 0x304   : > { %v7062_v45 = vpop.eup %7061  ;;  %v3669_v35 = vperm.slane %v9778_v8, 0  ;;  %v2775_v55 = vsel %vm761_vm3, %v7060_v36, %v2667_v15  ;;  %v3666_v47 = vperm.slane %v3374_v7, 2  ;;  %v3883_v21 = vsel %vm941_vm7, %v3662_v22, %v3882_v13 }
 0x305   : > { %v3670_v23 = vperm.slane %v9778_v8, 2  ;;  %v3671_v41 = vperm.slane %v9784_v51, 0  ;;  %v3672_v11 = vperm.slane %v9784_v51, 2  ;;  %v2504_v24 = vadd.f32 %v9541_v10, %v2403_v43 }
 0x306   : > { %v9782_v12 = vpop.f32.mrf.mxu3  ;;  %v2777_v19 = vrot.slane %v2776_v2, 2  ;;  %v2783_v5 = vsel %vm2683_vm12, %v7062_v45, %v2668_v1  ;;  %v3884_v32 = vsel %vm3804_vm1, %v3664_v59, %v3883_v21  ;;  %v2406_v14 = vadd.f32 %v2405_v26, %v9076_v28  ;;  %v2206_v59 = vpop.f32.mrf.mxu0 }
 0x307   : > { %v6598_v30 = vrot.slane %v2775_v55, 9  ;;  %7063 = vtanh.f32 %v2302_v58  ;;  %v3668_v4 = vperm.slane %v3375_v60, 2  ;;  %v2778_v20 = vsel %vm762_vm4, %v7060_v36, %v2667_v15 }
 0x308   : > { %v9807_v7 = vpop.f32.mrf.mxu1  ;;  %v2782_v39 = vsel %vm761_vm3, %v7062_v45, %v2668_v1  ;;  %v9812_v33 = vsel %vm762_vm4, %v7062_v45, %v2668_v1  ;;  %v3885_v10 = vsel %vm3806_vm2, %v3666_v47, %v3884_v32  ;;  %v2204_v27 = vadd.f32 %v2203_v37, %v9074_v61  ;;  %v2408_v26 = vpop.f32.mrf.mxu2 }
 0x309   : > { %v2784_v34 = vrot.slane %v2783_v5, 2  ;;  %v9819_v63 = vsel %vm2688_vm13, %v2668_v1, %v7062_v45  ;;  %v3886_v60 = vsel %vm3808_vm5, %v3668_v4, %v3885_v10  ;;  %7065 = vtanh.f32 %v2504_v24 }
 0x30a   : > { %6663 = vmatmul.msk.f32.gmra.mxu3 %vm4013_vm8, %v3886_v60  ;;  %v2507_v29 = vadd.f32 %v9583_v0, %v2406_v14  ;;  %v2779_v44 = vrot.slane %v2778_v20, 4  ;;  %v2780_v62 = vsel %vm2688_vm13, %v2667_v15, %v7060_v36  ;;  %v6599_v6 = vrot.slane %v2777_v19, 9 }
 0x30b   : > { %v2786_v8 = vrot.slane %v9812_v33, 4  ;;  %v2781_v52 = vrot.slane %v2780_v62, 6  ;;  %v3380_v22 = vadd.f32 %v6598_v30, %v2775_v55  ;;  %v3673_v38 = vperm.slane %v9789_v17, 0 }
 0x30c   : > { %v6600_v51 = vrot.slane %v2779_v44, 9  ;;  %v9827_v54 = vadd.f32 %v6599_v6, %v2777_v19  ;;  %v3675_v46 = vperm.slane %v9792_v50, 0  ;;  %v3887_v43 = vsel %vm3797_vm14, %v3671_v41, %v3669_v35 }
 0x30d   : > { %v9831_v1 = vpop.eup %7063  ;;  %v2788_v0 = vrot.slane %v9819_v63, 6  ;;  %v6601_v15 = vrot.slane %v2781_v52, 9  ;;  %v3677_v36 = vperm.slane %v3380_v22, 0  ;;  %v3888_v2 = vsel %vm3799_vm15, %v3673_v38, %v3887_v43 }
 0x30e   : > { %v9816_v25 = vpop.f32.mrf.mxu3  ;;  %7067 = vtanh.f32 %v2507_v29  ;;  %v3382_v58 = vadd.f32 %v6600_v51, %v2779_v44  ;;  %v3679_v13 = vperm.slane %v9827_v54, 0  ;;  %v3889_v37 = vsel %vm3801_vm0, %v3675_v46, %v3888_v2 }
 0x30f   : > { %v7066_v45 = vpop.eup %7065  ;;  %v6602_v55 = vrot.slane %v2782_v39, 9  ;;  %v2305_v35 = vadd.f32 %v9552_v56, %v2204_v27  ;;  %v3383_v47 = vadd.f32 %v6601_v15, %v2781_v52  ;;  %v3890_v21 = vsel %vm941_vm7, %v3677_v36, %v3889_v37 }
 0x310   : > { %v6603_v41 = vrot.slane %v2784_v34, 9  ;;  %v2207_v24 = vadd.f32 %v2206_v59, %v9074_v61  ;;  %v3681_v19 = vperm.slane %v3382_v58, 0  ;;  %v3891_v5 = vsel %vm3804_vm1, %v3679_v13, %v3890_v21  ;;  %v2411_v15 = vpop.f32.mrf.mxu2 }
 0x311   : > { %v3674_v14 = vperm.slane %v9789_v17, 2  ;;  %v9844_v30 = vpop.f32.mrf.mxu1  ;;  %v2669_v4 = vrot.slane %v7066_v45, 6  ;;  %v3894_v56 = vsel %vm3797_vm14, %v3672_v11, %v3670_v23  ;;  %v6604_v33 = vrot.slane %v2786_v8, 9 }
 0x312   : > { %v3892_v20 = vsel %vm3806_vm2, %v3681_v19, %v3891_v5  ;;  %v6605_v10 = vrot.slane %v2788_v0, 9  ;;  %v3683_v27 = vperm.slane %v3383_v47, 0  ;;  %v9848_v60 = vadd.f32 %v6602_v55, %v2782_v39  ;;  %v2209_v55 = vpop.f32.mrf.mxu0 }
 0x313   : > { %v9850_v29 = vadd.f32 %v6603_v41, %v2784_v34  ;;  %7069 = vtanh.f32 %v2305_v35  ;;  %v2308_v44 = vadd.f32 %v9595_v31, %v2207_v24  ;;  %v3678_v62 = vperm.slane %v3380_v22, 2 }
 0x314   : > { %v7068_v63 = vpop.eup %7067  ;;  %v3893_v17 = vsel %vm3808_vm5, %v3683_v27, %v3892_v20  ;;  %v3895_v6 = vsel %vm3799_vm15, %v3674_v14, %v3894_v56  ;;  %v2409_v52 = vadd.f32 %v2408_v26, %v9076_v28  ;;  %v2789_v23 = vsel %vm761_vm3, %v9831_v1, %v2669_v4 }
 0x315   : > { %v2790_v11 = vsel %vm2683_vm12, %v9831_v1, %v2669_v4  ;;  %4076 = vmatmul.f32.gmra.mxu1 %v3893_v17  ;;  %v3676_v39 = vperm.slane %v9792_v50, 2  ;;  %v3680_v34 = vperm.slane %v9827_v54, 2  ;;  %v2670_v38 = vrot.slane %v7068_v63, 6 }
 0x316   : > { %v9841_v32 = vpop.f32.mrf.mxu3  ;;  %v3682_v31 = vperm.slane %v3382_v58, 2  ;;  %v2510_v51 = vadd.f32 %v9620_v42, %v2409_v52  ;;  %v9863_v22 = vadd.f32 %v6604_v33, %v2786_v8  ;;  %v9865_v46 = vadd.f32 %v6605_v10, %v2788_v0 }
 0x317   : > { %v3685_v43 = vperm.slane %v9848_v60, 0  ;;  %v3896_v59 = vsel %vm3801_vm0, %v3676_v39, %v3895_v6  ;;  %v2791_v36 = vrot.slane %v2790_v11, 2  ;;  %v6606_v2 = vrot.slane %v2789_v23, 9 }
 0x318   : > { %v3897_v13 = vsel %vm941_vm7, %v3678_v62, %v3896_v59  ;;  %7071 = vtanh.f32 %v2510_v51  ;;  %v3687_v58 = vperm.slane %v9850_v29, 0  ;;  %v3684_v42 = vperm.slane %v3383_v47, 2 }
 0x319   : > { %v7070_v54 = vpop.eup %7069  ;;  %7073 = vtanh.f32 %v2308_v44  ;;  %v3898_v8 = vsel %vm3804_vm1, %v3680_v34, %v3897_v13  ;;  %v9877_v45 = vpop.f32.mrf.mxu1  ;;  %v2792_v35 = vsel %vm762_vm4, %v9831_v1, %v2669_v4  ;;  %v2412_v41 = vadd.f32 %v2411_v15, %v9076_v28 }
 0x31a   : > { %v2796_v0 = vsel %vm761_vm3, %v7070_v54, %v2670_v38  ;;  %v2797_v37 = vsel %vm2683_vm12, %v7070_v54, %v2670_v38  ;;  %v3899_v26 = vsel %vm3806_vm2, %v3682_v31, %v3898_v8  ;;  %v2793_v24 = vrot.slane %v2792_v35, 4 }
 0x31b   : > { %v3900_v21 = vsel %vm3808_vm5, %v3684_v42, %v3899_v26  ;;  %v2794_v47 = vsel %vm2688_vm13, %v2669_v4, %v9831_v1  ;;  %v2799_v19 = vsel %vm762_vm4, %v7070_v54, %v2670_v38  ;;  %v6607_v14 = vrot.slane %v2791_v36, 9 }
 0x31c   : > { %6664 = vmatmul.msk.f32.gmra.mxu3 %vm4013_vm8, %v3900_v21  ;;  %v2795_v5 = vrot.slane %v2794_v47, 6  ;;  %v9887_v20 = vadd.f32 %v6606_v2, %v2789_v23  ;;  %v2801_v56 = vsel %vm2688_vm13, %v2670_v38, %v7070_v54  ;;  %v6608_v33 = vrot.slane %v2793_v24, 9 }
 0x31d   : > { %v3689_v10 = vperm.slane %v9863_v22, 0  ;;  %v3901_v27 = vsel %vm3797_vm14, %v3687_v58, %v3685_v43  ;;  %v9892_v17 = vadd.f32 %v6607_v14, %v2791_v36  ;;  %v3691_v1 = vperm.slane %v9865_v46, 0  ;;  %v2414_v36 = vpop.f32.mrf.mxu2 }
 0x31e   : > { %v9870_v50 = vpop.f32.mrf.mxu3  ;;  %v7072_v63 = vpop.eup %7071  ;;  %v6609_v44 = vrot.slane %v2795_v5, 9  ;;  %v3693_v4 = vperm.slane %v9887_v20, 0  ;;  %v2798_v6 = vrot.slane %v2797_v37, 2  ;;  %v2513_v52 = vadd.f32 %v9665_v49, %v2412_v41 }
 0x31f   : > { %v9896_v62 = vpop.eup %7073  ;;  %v3390_v23 = vadd.f32 %v6608_v33, %v2793_v24  ;;  %v3902_v11 = vsel %vm3799_vm15, %v3689_v10, %v3901_v27  ;;  %v2800_v39 = vrot.slane %v2799_v19, 4  ;;  %v2802_v34 = vrot.slane %v2801_v56, 6 }
 0x320   : > { %v3695_v38 = vperm.slane %v9892_v17, 0  ;;  %v3903_v31 = vsel %vm3801_vm0, %v3691_v1, %v3902_v11  ;;  %v6610_v51 = vrot.slane %v2796_v0, 9  ;;  %v2671_v43 = vrot.slane %v7072_v63, 6 }
 0x321   : > { %v2210_v59 = vadd.f32 %v2209_v55, %v9074_v61  ;;  %v3904_v15 = vsel %vm941_vm7, %v3693_v4, %v3903_v31  ;;  %v3688_v2 = vperm.slane %v9850_v29, 2  ;;  %v3391_v13 = vadd.f32 %v6609_v44, %v2795_v5  ;;  %v9910_v35 = vpop.f32.mrf.mxu1  ;;  %v2212_v55 = vpop.f32.mrf.mxu0 }
 0x322   : > { %v3697_v49 = vperm.slane %v3390_v23, 0  ;;  %v6611_v58 = vrot.slane %v2798_v6, 9  ;;  %7075 = vtanh.f32 %v2513_v52  ;;  %v3905_v42 = vsel %vm3804_vm1, %v3695_v38, %v3904_v15 }
 0x323   : > { %v3686_v8 = vperm.slane %v9848_v60, 2  ;;  %v3690_v37 = vperm.slane %v9863_v22, 2  ;;  %v6612_v26 = vrot.slane %v2800_v39, 9  ;;  %v6613_v21 = vrot.slane %v2802_v34, 9 }
 0x324   : > { %v9912_v41 = vadd.f32 %v6610_v51, %v2796_v0  ;;  %v2804_v29 = vsel %vm2683_vm12, %v9896_v62, %v2671_v43  ;;  %v2311_v24 = vadd.f32 %v9632_v16, %v2210_v59  ;;  %v3699_v47 = vperm.slane %v3391_v13, 0 }
 0x325   : > { %v3906_v19 = vsel %vm3806_vm2, %v3697_v49, %v3905_v42  ;;  %v3908_v5 = vsel %vm3797_vm14, %v3688_v2, %v3686_v8  ;;  %v2415_v60 = vadd.f32 %v2414_v36, %v9076_v28  ;;  %v9920_v22 = vadd.f32 %v6611_v58, %v2798_v6  ;;  %v2417_v38 = vpop.f32.mrf.mxu2 }
 0x326   : > { %v9905_v54 = vpop.f32.mrf.mxu3  ;;  %v3692_v14 = vperm.slane %v9865_v46, 2  ;;  %v3694_v56 = vperm.slane %v9887_v20, 2  ;;  %v2803_v0 = vsel %vm761_vm3, %v9896_v62, %v2671_v43  ;;  %v3907_v33 = vsel %vm3808_vm5, %v3699_v47, %v3906_v19 }
 0x327   : > { %v3696_v16 = vperm.slane %v9892_v17, 2  ;;  %v3909_v10 = vsel %vm3799_vm15, %v3690_v37, %v3908_v5  ;;  %v9929_v63 = vadd.f32 %v6612_v26, %v2800_v39  ;;  %v2805_v44 = vrot.slane %v2804_v29, 2  ;;  %4079 = vmatmul.f32.gmra.mxu1 %v3907_v33 }
 0x328   : > { %v7076_v27 = vpop.eup %7075  ;;  %7077 = vtanh.f32 %v2311_v24  ;;  %v3698_v1 = vperm.slane %v3390_v23, 2  ;;  %v9931_v4 = vadd.f32 %v6613_v21, %v2802_v34  ;;  %v3701_v46 = vperm.slane %v9912_v41, 0 }
 0x329   : > { %v3910_v20 = vsel %vm3801_vm0, %v3692_v14, %v3909_v10  ;;  %v2516_v6 = vadd.f32 %v9688_v57, %v2415_v60  ;;  %v3702_v52 = vperm.slane %v9912_v41, 2  ;;  %v3703_v17 = vperm.slane %v9920_v22, 0  ;;  %v9949_v58 = vpop.f32.mrf.mxu1  ;;  %v2215_v42 = vpop.f32.mrf.mxu0 }
 0x32a   : > { %v6614_v11 = vrot.slane %v2803_v0, 9  ;;  %v3911_v39 = vsel %vm941_vm7, %v3694_v56, %v3910_v20  ;;  %v2672_v31 = vrot.slane %v7076_v27, 6  ;;  %v2213_v51 = vadd.f32 %v2212_v55, %v9074_v61 }
 0x32b   : > { %v3700_v23 = vperm.slane %v3391_v13, 2  ;;  %v3912_v34 = vsel %vm3804_vm1, %v3696_v16, %v3911_v39  ;;  %v2806_v57 = vsel %vm762_vm4, %v9896_v62, %v2671_v43  ;;  %v2808_v36 = vsel %vm2688_vm13, %v2671_v43, %v9896_v62 }
 0x32c   : > { %v3913_v15 = vsel %vm3806_vm2, %v3698_v1, %v3912_v34  ;;  %v6615_v2 = vrot.slane %v2805_v44, 9  ;;  %7079 = vtanh.f32 %v2516_v6  ;;  %v2418_v13 = vadd.f32 %v2417_v38, %v9076_v28 }
 0x32d   : > { %v3914_v49 = vsel %vm3808_vm5, %v3700_v23, %v3913_v15  ;;  %v2807_v8 = vrot.slane %v2806_v57, 4  ;;  %v2809_v26 = vrot.slane %v2808_v36, 6  ;;  %v9953_v55 = vadd.f32 %v6614_v11, %v2803_v0  ;;  %v2420_v11 = vpop.f32.mrf.mxu2 }
 0x32e   : > { %v9941_v59 = vpop.f32.mrf.mxu3  ;;  %v7078_v37 = vpop.eup %7077  ;;  %6665 = vmatmul.msk.f32.gmra.mxu3 %vm4013_vm8, %v3914_v49  ;;  %v9955_v21 = vadd.f32 %v6615_v2, %v2805_v44  ;;  %v3705_v62 = vperm.slane %v9929_v63, 0  ;;  %v2314_v41 = vadd.f32 %v9670_v53, %v2213_v51  ;;  %v3915_v24 = vsel %vm3797_vm14, %v3703_v17, %v3701_v46 }
 0x32f   : > { %v2811_v43 = vsel %vm2683_vm12, %v7078_v37, %v2672_v31  ;;  %v6616_v29 = vrot.slane %v2807_v8, 9  ;;  %v6617_v47 = vrot.slane %v2809_v26, 9  ;;  %v3707_v19 = vperm.slane %v9931_v4, 0 }
 0x330   : > { %v3709_v5 = vperm.slane %v9953_v55, 0  ;;  %v3711_v60 = vperm.slane %v9955_v21, 0  ;;  %v3704_v14 = vperm.slane %v9920_v22, 2  ;;  %v2519_v56 = vadd.f32 %v9722_v18, %v2418_v13 }
 0x331   : > { %v3398_v0 = vadd.f32 %v6616_v29, %v2807_v8  ;;  %v3916_v33 = vsel %vm3799_vm15, %v3705_v62, %v3915_v24  ;;  %v2813_v16 = vsel %vm762_vm4, %v7078_v37, %v2672_v31  ;;  %v9969_v53 = vsel %vm2688_vm13, %v2672_v31, %v7078_v37  ;;  %v4059_v2 = vpop.f32.mrf.mxu1  ;;  %v2218_v49 = vpop.f32.mrf.mxu0 }
 0x332   : > { %v9971_v10 = vadd.f32 %v6617_v47, %v2809_v26  ;;  %v3917_v27 = vsel %vm3801_vm0, %v3707_v19, %v3916_v33  ;;  %v7080_v44 = vpop.eup %7079  ;;  %v2812_v1 = vrot.slane %v2811_v43, 2  ;;  %v2216_v46 = vadd.f32 %v2215_v42, %v9074_v61 }
 0x333   : > { %v3713_v20 = vperm.slane %v3398_v0, 0  ;;  %v3918_v22 = vsel %vm941_vm7, %v3709_v5, %v3917_v27  ;;  %v3706_v18 = vperm.slane %v9929_v63, 2  ;;  %v2810_v6 = vsel %vm761_vm3, %v7078_v37, %v2672_v31 }
 0x334   : > { %7081 = vtanh.f32 %v2314_v41  ;;  %v3919_v17 = vsel %vm3804_vm1, %v3711_v60, %v3918_v22  ;;  %v2814_v39 = vrot.slane %v2813_v16, 4  ;;  %v3922_v51 = vsel %vm3797_vm14, %v3704_v14, %v3702_v52 }
 0x335   : > { %7083 = vtanh.f32 %v2519_v56  ;;  %v3920_v38 = vsel %vm3806_vm2, %v3713_v20, %v3919_v17  ;;  %v2816_v34 = vrot.slane %v9969_v53, 6  ;;  %v3715_v15 = vperm.slane %v9971_v10, 0 }
 0x336   : > { %v4118_v23 = vpop.f32.mrf.mxu3  ;;  %v6618_v57 = vrot.slane %v2810_v6, 9  ;;  %v6619_v36 = vrot.slane %v2812_v1, 9  ;;  %v2673_v63 = vrot.slane %v7080_v44, 6  ;;  %v2317_v31 = vadd.f32 %v9698_v40, %v2216_v46 }
 0x337   : > { %v3921_v42 = vsel %vm3808_vm5, %v3715_v15, %v3920_v38  ;;  %v3710_v13 = vperm.slane %v9953_v55, 2  ;;  %v3923_v8 = vsel %vm3799_vm15, %v3706_v18, %v3922_v51  ;;  %v9987_v37 = vadd.f32 %v4118_v23, %v4059_v2 }
 0x338   : > { %v6620_v52 = vrot.slane %v2814_v39, 9  ;;  %4082 = vmatmul.f32.gmra.mxu1 %v3921_v42  ;;  %v3708_v26 = vperm.slane %v9931_v4, 2  ;;  %v3712_v62 = vperm.slane %v9955_v21, 2  ;;  %v3714_v41 = vperm.slane %v3398_v0, 2 }
 0x339   : > { %v9992_v40 = vrot.slane %v9987_v37, 2  ;;  %v9995_v29 = vrot.slane %v9987_v37, 4  ;;  %v9998_v55 = vrot.slane %v9987_v37, 6  ;;  %4371 = vst [vmem:[#allocation1] ss:$4 sm:$0xff] %v9987_v37  ;;  %v6621_v47 = vrot.slane %v2816_v34, 9  ;;  %v2221_v51 = vpop.f32.mrf.mxu0 }
 0x33a   : > { %v7082_v43 = vpop.eup %7081  ;;  %v10001_v19 = vadd.f32 %v6618_v57, %v2810_v6  ;;  %7085 = vtanh.f32 %v2317_v31  ;;  %v3924_v4 = vsel %vm3801_vm0, %v3708_v26, %v3923_v8  ;;  %v10004_v21 = vadd.f32 %v6619_v36, %v2812_v1  ;;  %v2423_v1 = vpop.f32.mrf.mxu2 }
 0x33b   : > { %v7084_v24 = vpop.eup %7083  ;;  %v2817_v5 = vsel %vm761_vm3, %v7082_v43, %v2673_v63  ;;  %v2818_v60 = vsel %vm2683_vm12, %v7082_v43, %v2673_v63  ;;  %v3925_v14 = vsel %vm941_vm7, %v3710_v13, %v3924_v4  ;;  %4373 = vst [vmem:[#allocation1 + $0x1] ss:$4 sm:$0xff] %v9992_v40  ;;  %v3716_v56 = vperm.slane %v9971_v10, 2 }
 0x33c   : > { %v3926_v0 = vsel %vm3804_vm1, %v3712_v62, %v3925_v14  ;;  %4375 = vst [vmem:[#allocation1 + $0x2] ss:$4 sm:$0xff] %v9995_v29  ;;  %v2421_v33 = vadd.f32 %v2420_v11, %v9076_v28  ;;  %v10014_v16 = vadd.f32 %v6620_v52, %v2814_v39  ;;  %v2674_v53 = vrot.slane %v7084_v24, 6  ;;  %v4062_v14 = vpop.f32.mrf.mxu1 }
 0x33d   : > { %v2219_v27 = vadd.f32 %v2218_v49, %v9074_v61  ;;  %v3927_v44 = vsel %vm3806_vm2, %v3714_v41, %v3926_v0  ;;  %4377 = vst [vmem:[#allocation1 + $0x3] ss:$4 sm:$0xff] %v9998_v55  ;;  %v2819_v46 = vrot.slane %v2818_v60, 2  ;;  %v6622_v20 = vrot.slane %v2817_v5, 9 }
 0x33e   : > { %v3928_v10 = vsel %vm3808_vm5, %v3716_v56, %v3927_v44  ;;  %v10020_v22 = vadd.f32 %v6621_v47, %v2816_v34  ;;  %v3717_v18 = vperm.slane %v10001_v19, 0  ;;  %v3718_v6 = vperm.slane %v10001_v19, 2 }
 0x33f   : > { %v3719_v17 = vperm.slane %v10004_v21, 0  ;;  %6666 = vmatmul.msk.f32.gmra.mxu3 %vm4013_vm8, %v3928_v10  ;;  %v3720_v39 = vperm.slane %v10004_v21, 2  ;;  %v2522_v38 = vadd.f32 %v9755_v48, %v2421_v33  ;;  %v2424_v23 = vadd.f32 %v2423_v1, %v9076_v28 }
 0x340   : > { %v7086_v11 = vpop.eup %7085  ;;  %v2820_v15 = vsel %vm762_vm4, %v7082_v43, %v2673_v63  ;;  %v3722_v34 = vperm.slane %v10014_v16, 2  ;;  %v2320_v36 = vadd.f32 %v9735_v3, %v2219_v27  ;;  %v2822_v49 = vsel %vm2688_vm13, %v2673_v63, %v7082_v43 }
 0x341   : > { %v2825_v57 = vsel %vm2683_vm12, %v7086_v11, %v2674_v53  ;;  %v2821_v31 = vrot.slane %v2820_v15, 4  ;;  %v2827_v2 = vsel %vm762_vm4, %v7086_v11, %v2674_v53  ;;  %v6623_v42 = vrot.slane %v2819_v46, 9  ;;  %v4121_v43 = vpop.f32.mrf.mxu3 }
 0x342   : > { %v3404_v13 = vadd.f32 %v6622_v20, %v2817_v5  ;;  %v2829_v48 = vsel %vm2688_vm13, %v2674_v53, %v7086_v11  ;;  %v2823_v8 = vrot.slane %v2822_v49, 6  ;;  %v3721_v26 = vperm.slane %v10014_v16, 0 }
 0x343   : > { %v6624_v52 = vrot.slane %v2821_v31, 9  ;;  %7087 = vtanh.f32 %v2522_v38  ;;  %v2525_v62 = vadd.f32 %v9782_v12, %v2424_v23  ;;  %v10038_v41 = vadd.f32 %v6623_v42, %v2819_v46 }
 0x344   : > { %v3725_v24 = vperm.slane %v3404_v13, 0  ;;  %v6625_v3 = vrot.slane %v2823_v8, 9  ;;  %v3723_v19 = vperm.slane %v10020_v22, 0  ;;  %v3929_v63 = vsel %vm3797_vm14, %v3719_v17, %v3717_v18 }
 0x345   : > { %v10040_v47 = vadd.f32 %v6624_v52, %v2821_v31  ;;  %v2824_v4 = vsel %vm761_vm3, %v7086_v11, %v2674_v53  ;;  %v2826_v21 = vrot.slane %v2825_v57, 2  ;;  %v3727_v5 = vperm.slane %v10038_v41, 0  ;;  %v2426_v53 = vpop.f32.mrf.mxu2  ;;  %v2224_v11 = vpop.f32.mrf.mxu0 }
 0x346   : > { %v3930_v60 = vsel %vm3799_vm15, %v3721_v26, %v3929_v63  ;;  %v2222_v12 = vadd.f32 %v2221_v51, %v9074_v61  ;;  %v3407_v56 = vadd.f32 %v6625_v3, %v2823_v8  ;;  %v2828_v16 = vrot.slane %v2827_v2, 4 }
 0x347   : > { %v3729_v0 = vperm.slane %v10040_v47, 0  ;;  %v3931_v33 = vsel %vm3801_vm0, %v3723_v19, %v3930_v60  ;;  %v2830_v27 = vrot.slane %v2829_v48, 6  ;;  %v10051_v1 = vadd.f32 %v4121_v43, %v4062_v14 }
 0x348   : > { %v3932_v44 = vsel %vm941_vm7, %v3725_v24, %v3931_v33  ;;  %7089 = vtanh.f32 %v2525_v62  ;;  %v3731_v46 = vperm.slane %v3407_v56, 0  ;;  %v3936_v10 = vsel %vm3797_vm14, %v3720_v39, %v3718_v6 }
 0x349   : > { %v3933_v20 = vsel %vm3804_vm1, %v3727_v5, %v3932_v44  ;;  %v7088_v18 = vpop.eup %7087  ;;  %v6626_v17 = vrot.slane %v2824_v4, 9  ;;  %7091 = vtanh.f32 %v2320_v36  ;;  %4379 = vst [vmem:[#allocation1 + $0x20] ss:$4 sm:$0xff] %v10051_v1  ;;  %v6627_v51 = vrot.slane %v2826_v21, 9 }
 0x34a   : > { %v3934_v38 = vsel %vm3806_vm2, %v3729_v0, %v3933_v20  ;;  %v2323_v23 = vadd.f32 %v9767_v9, %v2222_v12  ;;  %v6628_v57 = vrot.slane %v2828_v16, 9  ;;  %v3726_v31 = vperm.slane %v3404_v13, 2 }
 0x34b   : > { %v3935_v15 = vsel %vm3808_vm5, %v3731_v46, %v3934_v38  ;;  %v3937_v2 = vsel %vm3799_vm15, %v3722_v34, %v3936_v10  ;;  %v6629_v49 = vrot.slane %v2830_v27, 9  ;;  %v2675_v6 = vrot.slane %v7088_v18, 6 }
 0x34c   : > { %4085 = vmatmul.f32.gmra.mxu1 %v3935_v15  ;;  %v2225_v39 = vadd.f32 %v2224_v11, %v9074_v61  ;;  %v3724_v36 = vperm.slane %v10020_v22, 2  ;;  %v10062_v42 = vadd.f32 %v6626_v17, %v2824_v4  ;;  %v3728_v48 = vperm.slane %v10038_v41, 2 }
 0x34d   : > { %v12414_v8 = vrot.slane %v10051_v1, 6  ;;  %v10066_v52 = vadd.f32 %v6627_v51, %v2826_v21  ;;  %7093 = vtanh.f32 %v2323_v23  ;;  %v3730_v13 = vperm.slane %v10040_v47, 2  ;;  %v2429_v21 = vpop.f32.mrf.mxu2 }
 0x34e   : > { %v7090_v9 = vpop.eup %7089  ;;  %v3938_v34 = vsel %vm3801_vm0, %v3724_v36, %v3937_v2  ;;  %v10070_v62 = vadd.f32 %v6628_v57, %v2828_v16  ;;  %v10075_v22 = vadd.f32 %v6629_v49, %v2830_v27  ;;  %v2326_v19 = vadd.f32 %v9807_v7, %v2225_v39  ;;  %v2227_v27 = vpop.f32.mrf.mxu0 }
 0x34f   : > { %v7092_v26 = vpop.eup %7091  ;;  %v3939_v24 = vsel %vm941_vm7, %v3726_v31, %v3938_v34  ;;  %4381 = vst [vmem:[#allocation1 + $0x21] ss:$4 sm:$0xff] %v12414_v8  ;;  %v3733_v47 = vperm.slane %v10062_v42, 0  ;;  %v2676_v63 = vrot.slane %v7090_v9, 6  ;;  %v3732_v43 = vperm.slane %v3407_v56, 2 }
 0x350   : > { %v2831_v41 = vsel %vm761_vm3, %v7092_v26, %v2675_v6  ;;  %v2832_v3 = vsel %vm2683_vm12, %v7092_v26, %v2675_v6  ;;  %v3940_v4 = vsel %vm3804_vm1, %v3728_v48, %v3939_v24  ;;  %v3734_v5 = vperm.slane %v10062_v42, 2 }
 0x351   : > { %v3735_v60 = vperm.slane %v10066_v52, 0  ;;  %v3736_v12 = vperm.slane %v10066_v52, 2  ;;  %v3941_v14 = vsel %vm3806_vm2, %v3730_v13, %v3940_v4  ;;  %v2833_v0 = vrot.slane %v2832_v3, 2 }
 0x352   : > { %v6630_v33 = vrot.slane %v2831_v41, 9  ;;  %v3942_v16 = vsel %vm3808_vm5, %v3732_v43, %v3941_v14  ;;  %v2427_v7 = vadd.f32 %v2426_v53, %v9076_v28  ;;  %v3738_v56 = vperm.slane %v10070_v62, 2  ;;  %v4065_v43 = vpop.f32.mrf.mxu1 }
 0x353   : > { %v7094_v44 = vpop.eup %7093  ;;  %7095 = vtanh.f32 %v2326_v19  ;;  %6667 = vmatmul.msk.f32.gmra.mxu3 %vm4013_vm8, %v3942_v16  ;;  %v2430_v46 = vadd.f32 %v2429_v21, %v9076_v28  ;;  %v2834_v20 = vsel %vm762_vm4, %v7092_v26, %v2675_v6  ;;  %v2836_v11 = vsel %vm2688_vm13, %v2675_v6, %v7092_v26 }
 0x354   : > { %v10093_v10 = vsel %vm761_vm3, %v7094_v44, %v2676_v63  ;;  %v2528_v18 = vadd.f32 %v9816_v25, %v2427_v7  ;;  %v2835_v17 = vrot.slane %v2834_v20, 4  ;;  %v10098_v53 = vsel %vm2683_vm12, %v7094_v44, %v2676_v63 }
 0x355   : > { %v10101_v38 = vsel %vm762_vm4, %v7094_v44, %v2676_v63  ;;  %v10104_v51 = vsel %vm2688_vm13, %v2676_v63, %v7094_v44  ;;  %v2837_v23 = vrot.slane %v2836_v11, 6  ;;  %v6631_v15 = vrot.slane %v2833_v0, 9  ;;  %v4124_v24 = vpop.f32.mrf.mxu3  ;;  %v2432_v16 = vpop.f32.mrf.mxu2 }
 0x356   : > { %7097 = vtanh.f32 %v2528_v18  ;;  %v6632_v57 = vrot.slane %v2835_v17, 9  ;;  %v3412_v31 = vadd.f32 %v6630_v33, %v2831_v41  ;;  %v2228_v2 = vadd.f32 %v2227_v27, %v9074_v61  ;;  %v2230_v14 = vpop.f32.mrf.mxu0 }
 0x357   : > { %v2531_v25 = vadd.f32 %v9841_v32, %v2430_v46  ;;  %v6633_v49 = vrot.slane %v2837_v23, 9  ;;  %v3737_v6 = vperm.slane %v10070_v62, 0  ;;  %v2840_v39 = vrot.slane %v10098_v53, 2 }
 0x358   : > { %v3413_v36 = vadd.f32 %v6631_v15, %v2833_v0  ;;  %v3414_v42 = vadd.f32 %v6632_v57, %v2835_v17  ;;  %v3741_v48 = vperm.slane %v3412_v31, 0  ;;  %v2842_v52 = vrot.slane %v10101_v38, 4 }
 0x359   : > { %v10110_v9 = vpop.eup %7095  ;;  %v10113_v13 = vadd.f32 %v6633_v49, %v2837_v23  ;;  %v3739_v34 = vperm.slane %v10075_v22, 0  ;;  %v3943_v26 = vsel %vm3797_vm14, %v3735_v60, %v3733_v47  ;;  %v2844_v32 = vrot.slane %v10104_v51, 6 }
 0x35a   : > { %v3743_v41 = vperm.slane %v3413_v36, 0  ;;  %v3745_v62 = vperm.slane %v3414_v42, 0  ;;  %v3944_v3 = vsel %vm3799_vm15, %v3737_v6, %v3943_v26  ;;  %v6634_v19 = vrot.slane %v10093_v10, 9 }
 0x35b   : > { %v2329_v63 = vadd.f32 %v9844_v30, %v2228_v2  ;;  %7099 = vtanh.f32 %v2531_v25  ;;  %v3945_v4 = vsel %vm3801_vm0, %v3739_v34, %v3944_v3  ;;  %v3742_v47 = vperm.slane %v3412_v31, 2 }
 0x35c   : > { %v7098_v21 = vpop.eup %7097  ;;  %v3946_v0 = vsel %vm941_vm7, %v3741_v48, %v3945_v4  ;;  %v3950_v60 = vsel %vm3797_vm14, %v3736_v12, %v3734_v5  ;;  %v10124_v33 = vadd.f32 %v4124_v24, %v4065_v43  ;;  %v3747_v7 = vperm.slane %v10113_v13, 0  ;;  %v10138_v5 = vld.sshfl [vmem:[#allocation1] sm:$0xff pattern:$0x73625140] }
 0x35d   : > { %v3947_v27 = vsel %vm3804_vm1, %v3743_v41, %v3946_v0  ;;  %v3740_v30 = vperm.slane %v10075_v22, 2  ;;  %v3951_v44 = vsel %vm3799_vm15, %v3738_v56, %v3950_v60  ;;  %v6635_v46 = vrot.slane %v2840_v39, 9  ;;  %12849 = vst [vmem:[#allocation29_spill] sm:$0xff] %v10138_v5 }
 0x35e   : > { %v3948_v20 = vsel %vm3806_vm2, %v3745_v62, %v3947_v27  ;;  %v10132_v18 = vrot.slane %v10124_v33, 2  ;;  %v10135_v17 = vrot.slane %v10124_v33, 4  ;;  %4383 = vst [vmem:[#allocation1 + $0x22] ss:$4 sm:$0xff] %v10124_v33  ;;  %v2677_v12 = vrot.slane %v7098_v21, 6  ;;  %v2233_v3 = vpop.f32.mrf.mxu0 }
 0x35f   : > { %v3949_v11 = vsel %vm3808_vm5, %v3747_v7, %v3948_v20  ;;  %v3744_v53 = vperm.slane %v3413_v36, 2  ;;  %v3952_v22 = vsel %vm3801_vm0, %v3740_v30, %v3951_v44  ;;  %v6636_v56 = vrot.slane %v2842_v52, 9 }
 0x360   : > { %v2231_v38 = vadd.f32 %v2230_v14, %v9074_v61  ;;  %4088 = vmatmul.f32.gmra.mxu1 %v3949_v11  ;;  %v3953_v51 = vsel %vm941_vm7, %v3742_v47, %v3952_v22  ;;  %v10145_v23 = vrot.slane %v10124_v33, 6  ;;  %4385 = vst [vmem:[#allocation1 + $0x23] ss:$4 sm:$0xff] %v10132_v18  ;;  %7101 = vtanh.f32 %v2329_v63 }
 0x361   : > { %v7100_v15 = vpop.eup %7099  ;;  %v3746_v57 = vperm.slane %v3414_v42, 2  ;;  %4388 = vst [vmem:[#allocation1] ss:$4 sm:$0xff] %v10135_v17  ;;  %v6637_v31 = vrot.slane %v2844_v32, 9  ;;  %v10150_v2 = vadd.f32 %v6634_v19, %v10093_v10  ;;  %v10153_v25 = vadd.f32 %v6635_v46, %v2840_v39 }
 0x362   : > { %4389 = vst [vmem:[#allocation1 + $0x1] ss:$4 sm:$0xff] %v10145_v23  ;;  %v2846_v49 = vsel %vm2683_vm12, %v10110_v9, %v2677_v12  ;;  %v3954_v6 = vsel %vm3804_vm1, %v3744_v53, %v3953_v51  ;;  %v10158_v36 = vadd.f32 %v6636_v56, %v2842_v52  ;;  %v2678_v48 = vrot.slane %v7100_v15, 6  ;;  %v2435_v52 = vpop.f32.mrf.mxu2 }
 0x363   : > { %v2332_v42 = vadd.f32 %v9877_v45, %v2231_v38  ;;  %v2845_v34 = vsel %vm761_vm3, %v10110_v9, %v2677_v12  ;;  %v3748_v10 = vperm.slane %v10113_v13, 2  ;;  %v3955_v26 = vsel %vm3806_vm2, %v3746_v57, %v3954_v6 }
 0x364   : > { %v2433_v39 = vadd.f32 %v2432_v16, %v9076_v28  ;;  %v10166_v24 = vadd.f32 %v6637_v31, %v2844_v32  ;;  %v3749_v41 = vperm.slane %v10150_v2, 0  ;;  %v2847_v62 = vrot.slane %v2846_v49, 2 }
 0x365   : > { %v3750_v63 = vperm.slane %v10150_v2, 2  ;;  %v3751_v45 = vperm.slane %v10153_v25, 0  ;;  %v3752_v43 = vperm.slane %v10153_v25, 2  ;;  %v3956_v13 = vsel %vm3808_vm5, %v3748_v10, %v3955_v26  ;;  %v4068_v26 = vpop.f32.mrf.mxu1 }
 0x366   : > { %v7102_v19 = vpop.eup %7101  ;;  %v3754_v4 = vperm.slane %v10158_v36, 2  ;;  %v6638_v21 = vrot.slane %v2845_v34, 9  ;;  %7103 = vtanh.f32 %v2332_v42  ;;  %6668 = vmatmul.msk.f32.gmra.mxu3 %vm4013_vm8, %v3956_v13  ;;  %v2534_v0 = vadd.f32 %v9870_v50, %v2433_v39  ;;  %v2236_v39 = vpop.f32.mrf.mxu0 }
 0x367   : > { %v10175_v32 = vsel %vm2683_vm12, %v7102_v19, %v2678_v48  ;;  %v10179_v14 = vsel %vm762_vm4, %v7102_v19, %v2678_v48  ;;  %v2234_v47 = vadd.f32 %v2233_v3, %v9074_v61  ;;  %v2436_v60 = vadd.f32 %v2435_v52, %v9076_v28 }
 0x368   : > { %v10185_v16 = vsel %vm2688_vm13, %v2678_v48, %v7102_v19  ;;  %v2848_v7 = vsel %vm762_vm4, %v10110_v9, %v2677_v12  ;;  %v2850_v27 = vsel %vm2688_vm13, %v2677_v12, %v10110_v9  ;;  %v6639_v30 = vrot.slane %v2847_v62, 9 }
 0x369   : > { %v2852_v44 = vsel %vm761_vm3, %v7102_v19, %v2678_v48  ;;  %v2854_v46 = vrot.slane %v10175_v32, 2  ;;  %7105 = vtanh.f32 %v2534_v0  ;;  %v2537_v50 = vadd.f32 %v9905_v54, %v2436_v60  ;;  %v4127_v49 = vpop.f32.mrf.mxu3 }
 0x36a   : > { %v2335_v20 = vadd.f32 %v9910_v35, %v2234_v47  ;;  %v2849_v11 = vrot.slane %v2848_v7, 4  ;;  %v2851_v53 = vrot.slane %v2850_v27, 6  ;;  %v3420_v22 = vadd.f32 %v6638_v21, %v2845_v34 }
 0x36b   : > { %v2856_v56 = vrot.slane %v10179_v14, 4  ;;  %v2858_v38 = vrot.slane %v10185_v16, 6  ;;  %v3421_v51 = vadd.f32 %v6639_v30, %v2847_v62  ;;  %v3753_v9 = vperm.slane %v10158_v36, 0 }
 0x36c   : > { %v10198_v12 = vpop.eup %7103  ;;  %7107 = vtanh.f32 %v2537_v50  ;;  %v6640_v15 = vrot.slane %v2849_v11, 9  ;;  %v6641_v57 = vrot.slane %v2851_v53, 9  ;;  %v3757_v31 = vperm.slane %v3420_v22, 0 }
 0x36d   : > { %v6642_v2 = vrot.slane %v2852_v44, 9  ;;  %v3755_v54 = vperm.slane %v10166_v24, 0  ;;  %v3759_v35 = vperm.slane %v3421_v51, 0  ;;  %v3957_v25 = vsel %vm3797_vm14, %v3751_v45, %v3749_v41 }
 0x36e   : > { %7109 = vtanh.f32 %v2335_v20  ;;  %v3422_v6 = vadd.f32 %v6640_v15, %v2849_v11  ;;  %v10202_v48 = vadd.f32 %v6641_v57, %v2851_v53  ;;  %v3958_v42 = vsel %vm3799_vm15, %v3753_v9, %v3957_v25 }
 0x36f   : > { %v7106_v36 = vpop.eup %7105  ;;  %v6643_v34 = vrot.slane %v2854_v46, 9  ;;  %v6644_v10 = vrot.slane %v2856_v56, 9  ;;  %v3959_v62 = vsel %vm3801_vm0, %v3755_v54, %v3958_v42  ;;  %v3964_v3 = vsel %vm3797_vm14, %v3752_v43, %v3750_v63 }
 0x370   : > { %v3761_v52 = vperm.slane %v3422_v6, 0  ;;  %v3960_v41 = vsel %vm941_vm7, %v3757_v31, %v3959_v62  ;;  %v3758_v19 = vperm.slane %v3420_v22, 2  ;;  %v10210_v45 = vadd.f32 %v4127_v49, %v4068_v26 }
 0x371   : > { %v3763_v13 = vperm.slane %v10202_v48, 0  ;;  %v3961_v21 = vsel %vm3804_vm1, %v3759_v35, %v3960_v41  ;;  %v3756_v14 = vperm.slane %v10166_v24, 2  ;;  %v3965_v0 = vsel %vm3799_vm15, %v3754_v4, %v3964_v3  ;;  %v2438_v3 = vpop.f32.mrf.mxu2 }
 0x372   : > { %v7108_v47 = vpop.eup %7107  ;;  %v6645_v60 = vrot.slane %v2858_v38, 9  ;;  %v2679_v7 = vrot.slane %v7106_v36, 6  ;;  %v2237_v63 = vadd.f32 %v2236_v39, %v9074_v61  ;;  %v3962_v43 = vsel %vm3806_vm2, %v3761_v52, %v3961_v21 }
 0x373   : > { %v2680_v27 = vrot.slane %v7108_v47, 6  ;;  %v3963_v30 = vsel %vm3808_vm5, %v3763_v13, %v3962_v43  ;;  %v3760_v50 = vperm.slane %v3421_v51, 2  ;;  %v3966_v20 = vsel %vm3801_vm0, %v3756_v14, %v3965_v0 }
 0x374   : > { %v7110_v11 = vpop.eup %7109  ;;  %4091 = vmatmul.f32.gmra.mxu1 %v3963_v30  ;;  %v3762_v24 = vperm.slane %v3422_v6, 2  ;;  %v3967_v4 = vsel %vm941_vm7, %v3758_v19, %v3966_v20  ;;  %v4184_v53 = vrot.slane %v10210_v45, 4  ;;  %v10225_v22 = vrot.slane %v10210_v45, 6 }
 0x375   : > { %v2866_v61 = vsel %vm761_vm3, %v7110_v11, %v2680_v27  ;;  %v2867_v9 = vsel %vm2683_vm12, %v7110_v11, %v2680_v27  ;;  %v2869_v15 = vsel %vm762_vm4, %v7110_v11, %v2680_v27  ;;  %v10231_v51 = vsel %vm2688_vm13, %v2680_v27, %v7110_v11 }
 0x376   : > { %v3424_v57 = vadd.f32 %v6642_v2, %v2852_v44  ;;  %v2860_v31 = vsel %vm2683_vm12, %v10198_v12, %v2679_v7  ;;  %v2868_v54 = vrot.slane %v2867_v9, 2  ;;  %4390 = vst [vmem:[#allocation1 + $0x2] ss:$4 sm:$0xff] %v4184_v53  ;;  %v3425_v35 = vadd.f32 %v6643_v34, %v2854_v46 }
 0x377   : > { %v10239_v25 = vadd.f32 %v6644_v10, %v2856_v56  ;;  %v2859_v49 = vsel %vm761_vm3, %v10198_v12, %v2679_v7  ;;  %v3968_v6 = vsel %vm3804_vm1, %v3760_v50, %v3967_v4  ;;  %4391 = vst [vmem:[#allocation1 + $0x3] ss:$4 sm:$0xff] %v10225_v22  ;;  %v2870_v44 = vrot.slane %v2869_v15, 4 }
 0x378   : > { %v2872_v2 = vrot.slane %v10231_v51, 6  ;;  %v6650_v42 = vrot.slane %v2866_v61, 9  ;;  %v2338_v36 = vadd.f32 %v9949_v58, %v2237_v63  ;;  %v3427_v26 = vadd.f32 %v6645_v60, %v2858_v38 }
 0x379   : > { %v2861_v32 = vrot.slane %v2860_v31, 2  ;;  %v3764_v46 = vperm.slane %v10202_v48, 2  ;;  %v3969_v56 = vsel %vm3806_vm2, %v3762_v24, %v3968_v6  ;;  %v3765_v34 = vperm.slane %v3424_v57, 0 }
 0x37a   : > { %v3766_v10 = vperm.slane %v3424_v57, 2  ;;  %v6646_v39 = vrot.slane %v2859_v49, 9  ;;  %v6651_v62 = vrot.slane %v2868_v54, 9  ;;  %v3767_v52 = vperm.slane %v3425_v35, 0  ;;  %v4071_v57 = vpop.f32.mrf.mxu1 }
 0x37b   : > { %v3768_v41 = vperm.slane %v3425_v35, 2  ;;  %v3770_v19 = vperm.slane %v10239_v25, 2  ;;  %v3970_v13 = vsel %vm3808_vm5, %v3764_v46, %v3969_v56  ;;  %v6652_v58 = vrot.slane %v2870_v44, 9 }
 0x37c   : > { %v6653_v16 = vrot.slane %v2872_v2, 9  ;;  %v10255_v38 = vadd.f32 %v6650_v42, %v2866_v61  ;;  %7111 = vtanh.f32 %v2338_v36  ;;  %6669 = vmatmul.msk.f32.gmra.mxu3 %vm4013_vm8, %v3970_v13  ;;  %v2439_v48 = vadd.f32 %v2438_v3, %v9076_v28  ;;  %v4130_v61 = vpop.f32.mrf.mxu3 }
 0x37d   : > { %v2862_v21 = vsel %vm762_vm4, %v10198_v12, %v2679_v7  ;;  %v2864_v14 = vsel %vm2688_vm13, %v2679_v7, %v10198_v12  ;;  %v6647_v0 = vrot.slane %v2861_v32, 9  ;;  %v10263_v47 = vadd.f32 %v6651_v62, %v2868_v54 }
 0x37e   : > { %v2863_v60 = vrot.slane %v2862_v21, 4  ;;  %v2865_v63 = vrot.slane %v2864_v14, 6  ;;  %v3428_v43 = vadd.f32 %v6646_v39, %v2859_v49  ;;  %v2540_v27 = vadd.f32 %v9941_v59, %v2439_v48 }
 0x37f   : > { %v3429_v30 = vadd.f32 %v6647_v0, %v2861_v32  ;;  %v3769_v50 = vperm.slane %v10239_v25, 0  ;;  %v3771_v20 = vperm.slane %v3427_v26, 0  ;;  %v3971_v4 = vsel %vm3797_vm14, %v3767_v52, %v3765_v34 }
 0x380   : > { %v6648_v11 = vrot.slane %v2863_v60, 9  ;;  %v6649_v28 = vrot.slane %v2865_v63, 9  ;;  %v3773_v24 = vperm.slane %v3428_v43, 0  ;;  %v10268_v9 = vadd.f32 %v6652_v58, %v2870_v44  ;;  %v10276_v44 = vld.sshfl [vmem:[#allocation1 + $0x20] sm:$0xff pattern:$0x73625140] }
 0x381   : > { %7113 = vtanh.f32 %v2540_v27  ;;  %v3775_v12 = vperm.slane %v3429_v30, 0  ;;  %v3972_v7 = vsel %vm3799_vm15, %v3769_v50, %v3971_v4  ;;  %v3772_v35 = vperm.slane %v3427_v26, 2  ;;  %12850 = vst [vmem:[#allocation128_spill] sm:$0xff] %v10276_v44 }
 0x382   : > { %v7112_v15 = vpop.eup %7111  ;;  %v3430_v31 = vadd.f32 %v6648_v11, %v2863_v60  ;;  %v3431_v59 = vadd.f32 %v6649_v28, %v2865_v63  ;;  %v3973_v54 = vsel %vm3801_vm0, %v3771_v20, %v3972_v7  ;;  %v3774_v49 = vperm.slane %v3428_v43, 2 }
 0x383   : > { %v3974_v25 = vsel %vm941_vm7, %v3773_v24, %v3973_v54  ;;  %v3978_v6 = vsel %vm3797_vm14, %v3768_v41, %v3766_v10  ;;  %v10274_v42 = vadd.f32 %v4130_v61, %v4071_v57  ;;  %v3776_v56 = vperm.slane %v3429_v30, 2 }
 0x384   : > { %v3777_v36 = vperm.slane %v3430_v31, 0  ;;  %v3779_v32 = vperm.slane %v3431_v59, 0  ;;  %v3975_v46 = vsel %vm3804_vm1, %v3775_v12, %v3974_v25  ;;  %v3778_v34 = vperm.slane %v3430_v31, 2 }
 0x385   : > { %v3979_v39 = vsel %vm3799_vm15, %v3770_v19, %v3978_v6  ;;  %v10281_v62 = vrot.slane %v10274_v42, 2  ;;  %v10284_v26 = vrot.slane %v10274_v42, 4  ;;  %4392 = vst [vmem:[#allocation1 + $0x20] ss:$4 sm:$0xff] %v10274_v42  ;;  %v3435_v41 = vadd.f32 %v6653_v16, %v2872_v2 }
 0x386   : > { %v3976_v10 = vsel %vm3806_vm2, %v3777_v36, %v3975_v46  ;;  %v3980_v3 = vsel %vm3801_vm0, %v3772_v35, %v3979_v39  ;;  %v3781_v13 = vperm.slane %v10255_v38, 0  ;;  %v3783_v48 = vperm.slane %v10263_v47, 0  ;;  %v10320_v39 = vld.sshfl [vmem:[#allocation1] sm:$0xff pattern:$0x73625140] }
 0x387   : > { %v7114_v52 = vpop.eup %7113  ;;  %v3977_v19 = vsel %vm3808_vm5, %v3779_v32, %v3976_v10  ;;  %v3981_v58 = vsel %vm941_vm7, %v3774_v49, %v3980_v3  ;;  %4393 = vst [vmem:[#allocation1 + $0x21] ss:$4 sm:$0xff] %v10281_v62  ;;  %v3780_v14 = vperm.slane %v3431_v59, 2  ;;  %v3782_v51 = vperm.slane %v10255_v38, 2 }
 0x388   : > { %v2681_v21 = vrot.slane %v7114_v52, 6  ;;  %4094 = vmatmul.f32.gmra.mxu1 %v3977_v19  ;;  %v3982_v0 = vsel %vm3804_vm1, %v3776_v56, %v3981_v58  ;;  %4394 = vst [vmem:[#allocation1 + $0x22] ss:$4 sm:$0xff] %v10284_v26  ;;  %v3784_v2 = vperm.slane %v10263_v47, 2  ;;  %v3785_v60 = vperm.slane %v10268_v9, 0 }
 0x389   : > { %v3983_v16 = vsel %vm3806_vm2, %v3778_v34, %v3982_v0  ;;  %v3786_v63 = vperm.slane %v10268_v9, 2  ;;  %v3787_v11 = vperm.slane %v3435_v41, 0  ;;  %v3985_v4 = vsel %vm3797_vm14, %v3783_v48, %v3781_v13  ;;  %v4074_v9 = vpop.f32.mrf.mxu1  ;;  %12852 = vst [vmem:[#allocation133_spill] sm:$0xff] %v10320_v39 }
 0x38a   : > { %v2873_v43 = vsel %vm761_vm3, %v7112_v15, %v2681_v21  ;;  %v2874_v27 = vsel %vm2683_vm12, %v7112_v15, %v2681_v21  ;;  %v3984_v30 = vsel %vm3808_vm5, %v3780_v14, %v3983_v16  ;;  %v2876_v38 = vsel %vm762_vm4, %v7112_v15, %v2681_v21 }
 0x38b   : > { %v2875_v50 = vrot.slane %v2874_v27, 2  ;;  %v6654_v20 = vrot.slane %v2873_v43, 9  ;;  %6670 = vmatmul.msk.f32.gmra.mxu3 %vm4013_vm8, %v3984_v30  ;;  %v2877_v28 = vrot.slane %v2876_v38, 4  ;;  %v2878_v24 = vsel %vm2688_vm13, %v2681_v21, %v7112_v15 }
 0x38c   : > { %v3788_v61 = vperm.slane %v3435_v41, 2  ;;  %v2879_v12 = vrot.slane %v2878_v24, 6  ;;  %v3986_v31 = vsel %vm3799_vm15, %v3785_v60, %v3985_v4  ;;  %v3992_v35 = vsel %vm3797_vm14, %v3784_v2, %v3782_v51 }
 0x38d   : > { %v4133_v47 = vpop.f32.mrf.mxu3  ;;  %v6655_v7 = vrot.slane %v2875_v50, 9  ;;  %v3436_v57 = vadd.f32 %v6654_v20, %v2873_v43  ;;  %v6656_v59 = vrot.slane %v2877_v28, 9  ;;  %v3987_v54 = vsel %vm3801_vm0, %v3787_v11, %v3986_v31 }
 0x38e   : > { %v10313_v25 = vadd.f32 %v4133_v47, %v4074_v9  ;;  %v6657_v49 = vrot.slane %v2879_v12, 9  ;;  %v3993_v46 = vsel %vm3799_vm15, %v3786_v63, %v3992_v35  ;;  %vm4786_vm10 = vcmask 687104  }
 0x38f   : > { %v3437_v6 = vadd.f32 %v6655_v7, %v2875_v50  ;;  %v3789_v36 = vperm.slane %v3436_v57, 0  ;;  %v3790_v15 = vperm.slane %v3436_v57, 2  ;;  %v3438_v32 = vadd.f32 %v6656_v59, %v2877_v28 }
 0x390   : > { %12851 = vst [vmem:[#allocation131_spill] sm:$0xff] %v10313_v25  ;;  %v12413_v56 = vrot.slane %v10313_v25, 2  ;;  %v10318_v34 = vrot.slane %v10313_v25, 4  ;;  %v3439_v10 = vadd.f32 %v6657_v49, %v2879_v12  ;;  %v3994_v58 = vsel %vm3801_vm0, %v3788_v61, %v3993_v46  ;;  %v4859_v46 = vld [vmem:[%s12323_s4 + $0xf0] sm:$0xff] }
 0x391   : > { %v3791_v3 = vperm.slane %v3437_v6, 0  ;;  %v3988_v52 = vsel %vm941_vm7, %v3789_v36, %v3987_v54  ;;  %v3792_v41 = vperm.slane %v3437_v6, 2  ;;  %v3793_v13 = vperm.slane %v3438_v32, 0  ;;  %4969 = vmatpush.msrb.mxu0 %v4859_v46 }
 0x392   : > { %v3794_v19 = vperm.slane %v3438_v32, 2  ;;  %v10325_v48 = vrot.slane %v10313_v25, 6  ;;  %4395 = vst [vmem:[#allocation1 + $0x23] ss:$4 sm:$0xff] %v12413_v56  ;;  %v3795_v21 = vperm.slane %v3439_v10, 0  ;;  %v3995_v0 = vsel %vm941_vm7, %v3790_v15, %v3994_v58  ;;  %v4077_v27 = vpop.f32.mrf.mxu1  ;;  %v4891_v32 = vld [vmem:[%s12323_s4 + $0x1f0] sm:$0xff] }
 0x393   : > { %v3989_v14 = vsel %vm3804_vm1, %v3791_v3, %v3988_v52  ;;  %4398 = vst [vmem:[#allocation1] ss:$4 sm:$0xff] %v10318_v34  ;;  %v3796_v2 = vperm.slane %v3439_v10, 2  ;;  %v3996_v16 = vsel %vm3804_vm1, %v3792_v41, %v3995_v0  ;;  %5016 = vmatpush.msrb.mxu2 %v4891_v32  ;;  %v4230_v46 = vrot.slane %v10051_v1, 7 }
 0x394   : > { %v3990_v51 = vsel %vm3806_vm2, %v3793_v13, %v3989_v14  ;;  %4399 = vst [vmem:[#allocation1 + $0x1] ss:$4 sm:$0xff] %v10325_v48  ;;  %v3997_v63 = vsel %vm3806_vm2, %v3794_v19, %v3996_v16  ;;  %v4256_v56 = vrot.slane %v10274_v42, 7  ;;  %vm4962_vm11 = vcmask 1043456  }
 0x395   : > { %v3991_v60 = vsel %vm3808_vm5, %v3795_v21, %v3990_v51  ;;  %v3998_v43 = vsel %vm3808_vm5, %v3796_v2, %v3997_v63  ;;  %v4232_v8 = vrot.slane %v4230_v46, 2  ;;  %vm4818_vm9 = vcmask 654336  }
 0x396   : > { %4097 = vmatmul.f32.gmra.mxu1 %v3991_v60  ;;  %6671 = vmatmul.msk.f32.gmra.mxu3 %vm4013_vm8, %v3998_v43 }
 0x399   : > { %v10348_v28 = vld.sshfl [vmem:[#allocation1 + $0x20] sm:$0xff pattern:$0x73625140] }
 0x39a   : > { %12853 = vst [vmem:[#allocation136_spill] sm:$0xff] %v10348_v28 }
 0x39f   : > { %v4136_v30 = vpop.f32.mrf.mxu3 }
 0x3a0   : > { %v10339_v50 = vadd.f32 %v4136_v30, %v4077_v27  ;;  %v4221_v30 = vrot.slane %v9992_v40, 7 }
 0x3a2   : > { %v10342_v20 = vrot.slane %v10339_v50, 2  ;;  %4400 = vst [vmem:[#allocation1 + $0x2] ss:$4 sm:$0xff] %v10339_v50 }
 0x3a4   : > { %4401 = vst [vmem:[#allocation1 + $0x3] ss:$4 sm:$0xff] %v10342_v20  ;;  %v4080_v38 = vpop.f32.mrf.mxu1 }
 0x3ab   : > { %v10365_v57 = vld.sshfl [vmem:[#allocation1] sm:$0xff pattern:$0x73625140] }
 0x3ac   : > { %12854 = vst [vmem:[#allocation86_spill] sm:$0xff] %v10365_v57 }
 0x3b1   : > { %v4139_v11 = vpop.f32.mrf.mxu3 }
 0x3b2   : > { %v10346_v47 = vadd.f32 %v4139_v11, %v4080_v38  ;;  %v4224_v11 = vrot.slane %v9995_v29, 7 }
 0x3b4   : > { %v10351_v24 = vrot.slane %v10346_v47, 2  ;;  %v10354_v4 = vrot.slane %v10346_v47, 4  ;;  %v10357_v61 = vrot.slane %v10346_v47, 6  ;;  %4402 = vst [vmem:[#allocation1 + $0x20] ss:$4 sm:$0xff] %v10346_v47  ;;  %v4226_v32 = vrot.slane %v4224_v11, 2 }
 0x3b5   : > { %v4083_v9 = vpop.f32.mrf.mxu1 }
 0x3b6   : > { %4403 = vst [vmem:[#allocation1 + $0x21] ss:$4 sm:$0xff] %v10351_v24 }
 0x3b7   : > { %4404 = vst [vmem:[#allocation1 + $0x22] ss:$4 sm:$0xff] %v10354_v4 }
 0x3b8   : > { %4405 = vst [vmem:[#allocation1 + $0x23] ss:$4 sm:$0xff] %v10357_v61 }
 0x3bf   : > { %v10383_v15 = vld.sshfl [vmem:[#allocation1 + $0x20] sm:$0xff pattern:$0x73625140] }
 0x3c0   : > { %12855 = vst [vmem:[#allocation142_spill] sm:$0xff] %v10383_v15 }
 0x3c2   : > { %v4142_v12 = vpop.f32.mrf.mxu3 }
 0x3c3   : > { %v10363_v7 = vadd.f32 %v4142_v12, %v4083_v9  ;;  %v4223_v12 = vrot.slane %v4221_v30, 2  ;;  %v12926_v9 = vrot.slane %v10210_v45, 2 }
 0x3c5   : > { %v12412_v31 = vrot.slane %v10363_v7, 6  ;;  %4408 = vst [vmem:[#allocation1] ss:$4 sm:$0xff] %v10363_v7 }
 0x3c7   : > { %4409 = vst [vmem:[#allocation1 + $0x1] ss:$4 sm:$0xff] %v12412_v31 }
 0x3c9   : > { %v4086_v59 = vpop.f32.mrf.mxu1 }
 0x3d6   : > { %v4145_v54 = vpop.f32.mrf.mxu3 }
 0x3d7   : > { %v10371_v35 = vadd.f32 %v4145_v54, %v4086_v59  ;;  %v4227_v59 = vrot.slane %v9998_v55, 7  ;;  %v6672_v54 = vrot.slane %v9987_v37, 9 }
 0x3d9   : > { %v10374_v49 = vrot.slane %v10371_v35, 2  ;;  %v10377_v6 = vrot.slane %v10371_v35, 4  ;;  %v10380_v36 = vrot.slane %v10371_v35, 6  ;;  %4410 = vst [vmem:[#allocation1 + $0x2] ss:$4 sm:$0xff] %v10371_v35  ;;  %v10456_v37 = vsel %vm10437_vm6, %v4226_v32, %v4227_v59 }
 0x3db   : > { %4411 = vst [vmem:[#allocation1 + $0x3] ss:$4 sm:$0xff] %v10374_v49 }
 0x3dc   : > { %4412 = vst [vmem:[#allocation1 + $0x20] ss:$4 sm:$0xff] %v10377_v6 }
 0x3dd   : > { %4413 = vst [vmem:[#allocation1 + $0x21] ss:$4 sm:$0xff] %v10380_v36  ;;  %v4089_v10 = vpop.f32.mrf.mxu1 }
 0x3e2   : > { %v10405_v14 = vld.sshfl [vmem:[#allocation1] sm:$0xff pattern:$0x73625140] }
 0x3e3   : > { %12856 = vst [vmem:[#allocation143_spill] sm:$0xff] %v10405_v14  ;;  %v12863_v14 = vrot.slane %v10210_v45, 7 }
 0x3e9   : > { %v4148_v3 = vpop.f32.mrf.mxu3 }
 0x3ea   : > { %v10394_v52 = vadd.f32 %v4148_v3, %v4089_v10  ;;  %v4222_v10 = vsel %vm10437_vm6, %v6672_v54, %v4221_v30  ;;  %v4243_v54 = vrot.slane %v10135_v17, 7 }
 0x3ec   : > { %v12410_v41 = vrot.slane %v10394_v52, 4  ;;  %v10398_v13 = vrot.slane %v10394_v52, 6  ;;  %v4245_v32 = vrot.slane %v4243_v54, 2 }
 0x3ee   : > { %4414 = vst [vmem:[#allocation1 + $0x22] ss:$4 sm:$0xff] %v12410_v41 }
 0x3ef   : > { %4415 = vst [vmem:[#allocation1 + $0x23] ss:$4 sm:$0xff] %v10398_v13 }
 0x3f1   : > { %v4092_v19 = vpop.f32.mrf.mxu1 }
 0x3f6   : > { %v10428_v38 = vld.sshfl [vmem:[#allocation1 + $0x20] sm:$0xff pattern:$0x73625140] }
 0x3f7   : > { %12858 = vst [vmem:[#allocation115_spill] sm:$0xff] %v10428_v38 }
 0x3ff   : > { %v4151_v58 = vpop.f32.mrf.mxu3 }
 0x400   : > { %v10403_v21 = vadd.f32 %v4151_v58, %v4092_v19 }
 0x402   : > { %v10408_v0 = vrot.slane %v10403_v21, 2  ;;  %v10411_v51 = vrot.slane %v10403_v21, 4  ;;  %4418 = vst [vmem:[#allocation1] ss:$4 sm:$0xff] %v10403_v21 }
 0x404   : > { %4419 = vst [vmem:[#allocation1 + $0x1] ss:$4 sm:$0xff] %v10408_v0 }
 0x405   : > { %4420 = vst [vmem:[#allocation1 + $0x2] ss:$4 sm:$0xff] %v10411_v51  ;;  %v4095_v2 = vpop.f32.mrf.mxu1 }
 0x40e   : > { %v4154_v16 = vpop.f32.mrf.mxu3 }
 0x40f   : > { %v10416_v60 = vadd.f32 %v4154_v16, %v4095_v2  ;;  %v10450_v2 = vsel %vm10437_vm6, %v4223_v12, %v4224_v11  ;;  %v4229_v16 = vrot.slane %v4227_v59, 2  ;;  %v4246_v12 = vrot.slane %v10145_v23, 7 }
 0x410   : > { %v10473_v59 = vrot.slane %v10051_v1, 2 }
 0x411   : > { %12857 = vst [vmem:[#allocation36_spill] sm:$0xff] %v10416_v60  ;;  %v12411_v63 = vrot.slane %v10416_v60, 2  ;;  %v10422_v43 = vrot.slane %v10416_v60, 4  ;;  %v10425_v27 = vrot.slane %v10416_v60, 6  ;;  %v10461_v30 = vsel %vm10437_vm6, %v4229_v16, %v4230_v46 }
 0x412   : > { %v6674_v16 = vrot.slane %v4184_v53, 9  ;;  %v4248_v31 = vrot.slane %v4246_v12, 2  ;;  %v10485_v38 = vsel %vm10437_vm6, %v4245_v32, %v4246_v12  ;;  %v12866_v12 = vrot.slane %v10051_v1, 6 }
 0x413   : > { %4421 = vst [vmem:[#allocation1 + $0x3] ss:$4 sm:$0xff] %v12411_v63  ;;  %v4098_v19 = vpop.f32.mrf.mxu1  ;;  %v4240_v63 = vrot.slane %v10132_v18, 7 }
 0x414   : > { %4422 = vst [vmem:[#allocation1 + $0x20] ss:$4 sm:$0xff] %v10422_v43  ;;  %v10493_v15 = vsel %vm10437_vm6, %v4248_v31, %v12863_v14  ;;  %v6673_v32 = vrot.slane %v12866_v12, 9  ;;  %v4269_v31 = vrot.slane %v10318_v34, 7  ;;  %v12868_v14 = vrot.slane %v10473_v59, 7 }
 0x415   : > { %4423 = vst [vmem:[#allocation1 + $0x21] ss:$4 sm:$0xff] %v10425_v27  ;;  %v4242_v28 = vrot.slane %v4240_v63, 2  ;;  %v4275_v12 = vrot.slane %v10339_v50, 7 }
 0x416   : > { %12862 = vst [vmem:[#allocation122_spill] sm:$0xff] %v10485_v38 }
 0x417   : > { %12864 = vst [vmem:[#allocation91_spill] sm:$0xff] %v10493_v15 }
 0x419   : > { %v4157_v58 = vpop.f32.mrf.mxu3 }
 0x41a   : > { %v10446_v3 = vld.sshfl [vmem:[#allocation1] sm:$0xff pattern:$0x73625140]  ;;  %v10452_v41 = vadd.f32 %v4157_v58, %v4098_v19  ;;  %v4253_v19 = vrot.slane %v10225_v22, 7  ;;  %v4237_v58 = vrot.slane %v10124_v33, 7 }
 0x41b   : > { %12861 = vst [vmem:[#allocation121_spill] sm:$0xff] %v10446_v3 }
 0x41c   : > { %4438 = vst [vmem:[#allocation1] ss:$4 sm:$0xff] %v4222_v10  ;;  %v10466_v11 = vrot.slane %v10452_v41, 2  ;;  %v4255_v53 = vrot.slane %v4253_v19, 2  ;;  %v4239_v57 = vrot.slane %v4237_v58, 2  ;;  %v4254_v46 = vsel %vm10437_vm6, %v6674_v16, %v4253_v19 }
 0x41d   : > { %4440 = vst [vmem:[#allocation1 + $0x1] ss:$4 sm:$0xff] %v10450_v2  ;;  %v10512_v19 = vsel %vm10437_vm6, %v4232_v8, %v12868_v14  ;;  %v4238_v16 = vsel %vm10437_vm6, %v6673_v32, %v4237_v58  ;;  %v10527_v8 = vsel %vm10437_vm6, %v4242_v28, %v4243_v54  ;;  %v4271_v14 = vrot.slane %v4269_v31, 2 }
 0x41e   : > { %4442 = vst [vmem:[#allocation1 + $0x2] ss:$4 sm:$0xff] %v10456_v37  ;;  %v10505_v39 = vsel %vm10437_vm6, %v4255_v53, %v4256_v56  ;;  %v10521_v53 = vsel %vm10437_vm6, %v4239_v57, %v4240_v63  ;;  %v4259_v58 = vrot.slane %v10281_v62, 7  ;;  %v10532_v32 = vrot.slane %v10339_v50, 4 }
 0x41f   : > { %4444 = vst [vmem:[#allocation1 + $0x3] ss:$4 sm:$0xff] %v10461_v30  ;;  %v10536_v57 = vrot.slane %v10274_v42, 6  ;;  %v4262_v63 = vrot.slane %v10284_v26, 7  ;;  %v4258_v28 = vrot.slane %v4256_v56, 2 }
 0x420   : > { %4424 = vst [vmem:[#allocation1 + $0x22] ss:$4 sm:$0xff] %v10452_v41 }
 0x421   : > { %4425 = vst [vmem:[#allocation1 + $0x23] ss:$4 sm:$0xff] %v10466_v11 }
 0x422   : > { %12867 = vst [vmem:[#allocation97_spill] sm:$0xff] %v10505_v39 }
 0x423   : > { %12869 = vst [vmem:[#allocation52_spill] sm:$0xff] %v10512_v19 }
 0x424   : > { %12870 = vst [vmem:[#allocation102_spill] sm:$0xff] %v10521_v53 }
 0x425   : > { %12871 = vst [vmem:[#allocation129_spill] sm:$0xff] %v10527_v8 }
 0x426   : > { %v10487_v10 = vld.sshfl [vmem:[#allocation1] sm:$0xff pattern:$0x73625140] }
 0x427   : > { %4455 = vst [vmem:[#allocation1] ss:$4 sm:$0xff] %v10485_v38 }
 0x428   : > { %4456 = vst [vmem:[#allocation1 + $0x1] ss:$4 sm:$0xff] %v10493_v15  ;;  %v10499_v3 = vld.sshfl [vmem:[#allocation1 + $0x20] sm:$0xff pattern:$0x73625140]  ;;  %v4264_v15 = vrot.slane %v4262_v63, 2 }
 0x429   : > { %12865 = vst [vmem:[#allocation33_spill] sm:$0xff] %v10499_v3  ;;  %v4278_v3 = vrot.slane %v10342_v20, 7 }
 0x42a   : > { %4457 = vst [vmem:[#allocation1 + $0x2] ss:$4 sm:$0xff] %v4254_v46  ;;  %v4272_v46 = vrot.slane %v10325_v48, 7 }
 0x42b   : > { %4458 = vst [vmem:[#allocation1 + $0x3] ss:$4 sm:$0xff] %v10505_v39  ;;  %v4280_v5 = vrot.slane %v4278_v3, 2 }
 0x42c   : > { %4446 = vst [vmem:[#allocation1 + $0x20] ss:$4 sm:$0xff] %v10512_v19  ;;  %v4274_v44 = vrot.slane %v4272_v46, 2  ;;  %v10541_v54 = vsel %vm10437_vm6, %v4271_v14, %v4272_v46  ;;  %v12875_v46 = vrot.slane %v10313_v25, 2  ;;  %v4294_v19 = vrot.slane %v10363_v7, 7 }
 0x42d   : > { %4448 = vst [vmem:[#allocation1 + $0x21] ss:$4 sm:$0xff] %v4238_v16  ;;  %v4277_v16 = vrot.slane %v4275_v12, 2 }
 0x42e   : > { %4450 = vst [vmem:[#allocation1 + $0x22] ss:$4 sm:$0xff] %v10521_v53  ;;  %v4261_v53 = vrot.slane %v4259_v58, 2  ;;  %v10547_v39 = vsel %vm10437_vm6, %v4274_v44, %v4275_v12  ;;  %v6675_v14 = vrot.slane %v12875_v46, 9  ;;  %v10566_v12 = vrot.slane %v10363_v7, 2 }
 0x42f   : > { %4452 = vst [vmem:[#allocation1 + $0x23] ss:$4 sm:$0xff] %v10527_v8  ;;  %v12421_v8 = vrot.slane %v10532_v32, 7  ;;  %v10554_v56 = vsel %vm10437_vm6, %v4277_v16, %v4278_v3  ;;  %v10572_v3 = vsel %vm10437_vm6, %v4258_v28, %v4259_v58  ;;  %v12879_v28 = vrot.slane %v10536_v57, 7 }
 0x430   : > { %12872 = vst [vmem:[#allocation94_spill] sm:$0xff] %v10541_v54  ;;  %v10577_v46 = vsel %vm10437_vm6, %v4261_v53, %v4262_v63  ;;  %v4304_v63 = vrot.slane %v10374_v49, 7  ;;  %v12431_v25 = vrot.slane %v10566_v12, 7 }
 0x431   : > { %12873 = vst [vmem:[#allocation43_spill] sm:$0xff] %v10547_v39  ;;  %v10563_v44 = vsel %vm10437_vm6, %v4280_v5, %v12421_v8  ;;  %v4301_v5 = vrot.slane %v10371_v35, 7  ;;  %v4889_v8 = vld [vmem:[%s12323_s4 + $0x1e0] sm:$0xff]  ;;  %v10592_v53 = vsel %vm10437_vm6, %v4264_v15, %v12879_v28  ;;  %v4285_v15 = vrot.slane %v10351_v24, 7 }
 0x432   : > { %v10543_v38 = vld.sshfl [vmem:[#allocation1] sm:$0xff pattern:$0x73625140]  ;;  %12874 = vst [vmem:[#allocation14_spill] sm:$0xff] %v10554_v56  ;;  %5017 = vmatpush.msrb.mxu2 %v4889_v8  ;;  %v4306_v28 = vrot.slane %v4304_v63, 2 }
 0x433   : > { %4465 = vst [vmem:[#allocation1] ss:$4 sm:$0xff] %v10541_v54  ;;  %v4857_v54 = vld [vmem:[%s12323_s4 + $0xe0] sm:$0xff]  ;;  %v4303_v8 = vrot.slane %v4301_v5, 2 }
 0x434   : > { %4466 = vst [vmem:[#allocation1 + $0x1] ss:$4 sm:$0xff] %v10547_v39  ;;  %4970 = vmatpush.msrb.mxu0 %v4857_v54  ;;  %v12881_v54 = vrot.slane %v10363_v7, 6 }
 0x435   : > { %12876 = vst [vmem:[#allocation53_spill] sm:$0xff] %v10563_v44 }
 0x436   : > { %4467 = vst [vmem:[#allocation1 + $0x2] ss:$4 sm:$0xff] %v10554_v56  ;;  %v4454_v16 = vld.sshfl [vmem:[#allocation1 + $0x20] sm:$0xff pattern:$0x73625140]  ;;  %v4296_v56 = vrot.slane %v4294_v19, 2 }
 0x437   : > { %12877 = vst [vmem:[#allocation3_spill] sm:$0xff] %v10572_v3  ;;  %v6954_v58 = vpack.i.bf16 %v4454_v16, %v10487_v10  ;;  %v4288_v10 = vrot.slane %v10354_v4, 7  ;;  %v6677_v16 = vrot.slane %v12881_v54, 9  ;;  %v6676_v54 = vrot.slane %v10346_v47, 9 }
 0x438   : > { %4468 = vst [vmem:[#allocation1 + $0x3] ss:$4 sm:$0xff] %v10563_v44  ;;  %v4270_v44 = vsel %vm10437_vm6, %v6675_v14, %v4269_v31  ;;  %v10609_v31 = vsel %vm10437_vm6, %v4296_v56, %v12431_v25 }
 0x439   : > { %12878 = vst [vmem:[#allocation4_spill] sm:$0xff] %v10577_v46  ;;  %6955 = vrot.lane.b32.xlu0 %v6954_v58, %s7176_s16  ;;  %v4291_v58 = vrot.slane %v10357_v61, 7  ;;  %v4290_v39 = vrot.slane %v4288_v10, 2 }
 0x43a   : > { %4459 = vst [vmem:[#allocation1 + $0x20] ss:$4 sm:$0xff] %v10572_v3  ;;  %v10621_v3 = vsel %vm10437_vm6, %v4303_v8, %v4304_v63 }
 0x43b   : > { %12880 = vst [vmem:[#allocation34_spill] sm:$0xff] %v10592_v53  ;;  %v4293_v8 = vrot.slane %v4291_v58, 2  ;;  %v10641_v25 = vsel %vm10437_vm6, %v4290_v39, %v4291_v58  ;;  %v4887_v58 = vld [vmem:[%s12323_s4 + $0x1d0] sm:$0xff] }
 0x43c   : > { %4460 = vst [vmem:[#allocation1 + $0x21] ss:$4 sm:$0xff] %v10577_v46  ;;  %v4307_v46 = vrot.slane %v10377_v6, 7  ;;  %5018 = vmatpush.msrb.mxu2 %v4887_v58  ;;  %v4851_v58 = vld [vmem:[%s12323_s4 + $0xb0] sm:$0xff] }
 0x43d   : > { %4461 = vst [vmem:[#allocation1 + $0x22] ss:$4 sm:$0xff] %v10592_v53  ;;  %v4287_v53 = vrot.slane %v4285_v15, 2 }
 0x43e   : > { %4462 = vst [vmem:[#allocation1 + $0x23] ss:$4 sm:$0xff] %v4270_v44  ;;  %v4302_v44 = vsel %vm10437_vm6, %v6677_v16, %v4301_v5  ;;  %v10625_v56 = vsel %vm10437_vm6, %v4306_v28, %v4307_v46  ;;  %v4286_v5 = vsel %vm10437_vm6, %v6676_v54, %v4285_v15  ;;  %v4323_v16 = vrot.slane %v10408_v0, 7 }
 0x43f   : > { %12882 = vst [vmem:[#allocation109_spill] sm:$0xff] %v10609_v31  ;;  %v10611_v14 = vld.sshfl [vmem:[#allocation1] sm:$0xff pattern:$0x73625140]  ;;  %v10635_v63 = vsel %vm10437_vm6, %v4287_v53, %v4288_v10  ;;  %v4326_v28 = vrot.slane %v10411_v51, 7  ;;  %v10646_v15 = vsel %vm10437_vm6, %v4293_v8, %v4294_v19  ;;  %v10649_v54 = vrot.slane %v10403_v21, 6 }
 0x440   : > { %4475 = vst [vmem:[#allocation1] ss:$4 sm:$0xff] %v10609_v31  ;;  %v12888_v53 = vrot.slane %v10403_v21, 7  ;;  %v4855_v19 = vld [vmem:[%s12323_s4 + $0xd0] sm:$0xff]  ;;  %v4310_v8 = vrot.slane %v10380_v36, 7  ;;  %v4333_v31 = vrot.slane %v10422_v43, 7 }
 0x441   : > { %12883 = vst [vmem:[#allocation8_spill] sm:$0xff] %v10621_v3  ;;  %v4328_v39 = vrot.slane %v4326_v28, 2  ;;  %4971 = vmatpush.msrb.mxu0 %v4855_v19  ;;  %v4313_v19 = vrot.slane %v10394_v52, 7 }
 0x442   : > { %4476 = vst [vmem:[#allocation1 + $0x1] ss:$4 sm:$0xff] %v4302_v44  ;;  %v4322_v10 = vrot.slane %v12888_v53, 2 }
 0x443   : > { %12884 = vst [vmem:[#allocation48_spill] sm:$0xff] %v10625_v56 }
 0x444   : > { %4477 = vst [vmem:[#allocation1 + $0x2] ss:$4 sm:$0xff] %v10621_v3 }
 0x445   : > { %4478 = vst [vmem:[#allocation1 + $0x3] ss:$4 sm:$0xff] %v10625_v56  ;;  %v4464_v47 = vld.sshfl [vmem:[#allocation1 + $0x20] sm:$0xff pattern:$0x73625140]  ;;  %v12892_v56 = vrot.slane %v10649_v54, 7 }
 0x446   : > { %12885 = vst [vmem:[#allocation9_spill] sm:$0xff] %v10635_v63  ;;  %v6969_v44 = vpack.i.bf16 %v4464_v47, %v10543_v38  ;;  %v4325_v38 = vrot.slane %v4323_v16, 2  ;;  %v4309_v47 = vrot.slane %v4307_v46, 2 }
 0x447   : > { %4469 = vst [vmem:[#allocation1 + $0x20] ss:$4 sm:$0xff] %v4286_v5  ;;  %v4885_v5 = vld [vmem:[%s12323_s4 + $0x1c0] sm:$0xff]  ;;  %v10698_v3 = vsel %vm10437_vm6, %v4328_v39, %v12892_v56 }
 0x448   : > { %12886 = vst [vmem:[#allocation111_spill] sm:$0xff] %v10641_v25  ;;  %6970 = vrot.lane.b32.xlu0 %v6969_v44, %s7176_s16  ;;  %v12889_v44 = vrot.slane %v10416_v60, 2  ;;  %v4317_v60 = vrot.slane %v10398_v13, 7  ;;  %5019 = vmatpush.msrb.mxu2 %v4885_v5  ;;  %v10712_v56 = vsel %vm10437_vm6, %v4309_v47, %v4310_v8 }
 0x449   : > { %4470 = vst [vmem:[#allocation1 + $0x21] ss:$4 sm:$0xff] %v10635_v63 }
 0x44a   : > { %12887 = vst [vmem:[#allocation5_spill] sm:$0xff] %v10646_v15  ;;  %v6679_v53 = vrot.slane %v12889_v44, 9  ;;  %v4883_v44 = vld [vmem:[%s12323_s4 + $0x1b0] sm:$0xff] }
 0x44b   : > { %4471 = vst [vmem:[#allocation1 + $0x22] ss:$4 sm:$0xff] %v10641_v25  ;;  %v10674_v25 = vsel %vm10437_vm6, %v4322_v10, %v4323_v16  ;;  %v10689_v16 = vsel %vm10437_vm6, %v4325_v38, %v4326_v28  ;;  %v12891_v10 = vrot.slane %v10394_v52, 4  ;;  %v4881_v28 = vld [vmem:[%s12323_s4 + $0x1a0] sm:$0xff]  ;;  %5020 = vmatpush.msrb.mxu2 %v4883_v44 }
 0x44c   : > { %4472 = vst [vmem:[#allocation1 + $0x23] ss:$4 sm:$0xff] %v10646_v15  ;;  %v4853_v15 = vld [vmem:[%s12323_s4 + $0xc0] sm:$0xff]  ;;  %v4334_v5 = vsel %vm10437_vm6, %v6679_v53, %v4333_v31  ;;  %v4319_v53 = vrot.slane %v4317_v60, 2 }
 0x44d   : > { %12890 = vst [vmem:[#allocation58_spill] sm:$0xff] %v10674_v25  ;;  %v10677_v46 = vld.sshfl [vmem:[#allocation1] sm:$0xff pattern:$0x73625140]  ;;  %4972 = vmatpush.msrb.mxu0 %v4853_v15  ;;  %v6678_v63 = vrot.slane %v12891_v10, 9  ;;  %v4312_v15 = vrot.slane %v4310_v8, 2  ;;  %5021 = vmatpush.msrb.mxu2 %v4881_v28 }
 0x44e   : > { %4485 = vst [vmem:[#allocation1] ss:$4 sm:$0xff] %v10674_v25  ;;  %v4849_v38 = vld [vmem:[%s12323_s4 + $0xa0] sm:$0xff]  ;;  %v4879_v10 = vld [vmem:[%s12323_s4 + $0x190] sm:$0xff]  ;;  %v12893_v8 = vrot.slane %v10403_v21, 7  ;;  %v4342_v28 = vrot.slane %v10466_v11, 7 }
 0x44f   : > { %4486 = vst [vmem:[#allocation1 + $0x1] ss:$4 sm:$0xff] %v10689_v16  ;;  %4973 = vmatpush.msrb.mxu0 %v4851_v58  ;;  %v10721_v25 = vsel %vm10437_vm6, %v4312_v15, %v4313_v19  ;;  %v4318_v47 = vsel %vm10437_vm6, %v6678_v63, %v4317_v60  ;;  %5022 = vmatpush.msrb.mxu2 %v4879_v10  ;;  %v4847_v60 = vld [vmem:[%s12323_s4 + $0x90] sm:$0xff]  ;;  %v4336_v63 = vrot.slane %v10425_v27, 7 }
 0x450   : > { %4487 = vst [vmem:[#allocation1 + $0x2] ss:$4 sm:$0xff] %v10698_v3  ;;  %v10732_v58 = vsel %vm10437_vm6, %v4319_v53, %v12893_v8  ;;  %v4344_v53 = vrot.slane %v4342_v28, 2 }
 0x451   : > { %4488 = vst [vmem:[#allocation1 + $0x3] ss:$4 sm:$0xff] %v4334_v5  ;;  %4974 = vmatpush.msrb.mxu0 %v4849_v38  ;;  %v4335_v38 = vrot.slane %v4333_v31, 2  ;;  %v10746_v5 = vrot.slane %v10452_v41, 4  ;;  %v4338_v10 = vrot.slane %v4336_v63, 2 }
 0x453   : > { %v4474_v39 = vld.sshfl [vmem:[#allocation1 + $0x20] sm:$0xff pattern:$0x73625140]  ;;  %4975 = vmatpush.msrb.mxu0 %v4847_v60 }
 0x454   : > { %4479 = vst [vmem:[#allocation1 + $0x20] ss:$4 sm:$0xff] %v10712_v56  ;;  %v6984_v44 = vpack.i.bf16 %v4474_v39, %v10611_v14  ;;  %v4339_v14 = vrot.slane %v10452_v41, 7 }
 0x455   : > { %4480 = vst [vmem:[#allocation1 + $0x21] ss:$4 sm:$0xff] %v10721_v25 }
 0x456   : > { %4481 = vst [vmem:[#allocation1 + $0x22] ss:$4 sm:$0xff] %v4318_v47  ;;  %6985 = vrot.lane.b32.xlu0 %v6984_v44, %s7176_s16  ;;  %v4341_v39 = vrot.slane %v4339_v14, 2  ;;  %v10752_v44 = vsel %vm10437_vm6, %v4335_v38, %v4336_v63  ;;  %v12444_v47 = vrot.slane %v10746_v5, 7  ;;  %v4845_v38 = vld [vmem:[%s12323_s4 + $0x80] sm:$0xff] }
 0x457   : > { %4482 = vst [vmem:[#allocation1 + $0x23] ss:$4 sm:$0xff] %v10732_v58  ;;  %4976 = vmatpush.msrb.mxu0 %v4845_v38 }
 0x458   : > { %v10742_v15 = vld.sshfl [vmem:[#allocation1] sm:$0xff pattern:$0x73625140]  ;;  %v10765_v8 = vsel %vm10437_vm6, %v4341_v39, %v4342_v28  ;;  %v10772_v60 = vsel %vm10437_vm6, %v4344_v53, %v12444_v47  ;;  %v4843_v53 = vld [vmem:[%s12323_s4 + $0x70] sm:$0xff] }
 0x459   : > { %4525 = vst [vmem:[#allocation1] ss:$4 sm:$0xff] %v9992_v40  ;;  %v10759_v40 = vsel %vm10437_vm6, %v4338_v10, %v4339_v14  ;;  %v4877_v14 = vld [vmem:[%s12323_s4 + $0x180] sm:$0xff]  ;;  %v4875_v10 = vld [vmem:[%s12323_s4 + $0x170] sm:$0xff]  ;;  %4977 = vmatpush.msrb.mxu0 %v4843_v53 }
 0x45a   : > { %4527 = vst [vmem:[#allocation1 + $0x1] ss:$4 sm:$0xff] %v9995_v29  ;;  %5023 = vmatpush.msrb.mxu2 %v4877_v14 }
 0x45b   : > { %4529 = vst [vmem:[#allocation1 + $0x2] ss:$4 sm:$0xff] %v9998_v55 }
 0x45c   : > { %4531 = vst [vmem:[#allocation1 + $0x3] ss:$4 sm:$0xff] %v10051_v1  ;;  %5024 = vmatpush.msrb.mxu2 %v4875_v10  ;;  %v12442_v10 = vrot.slane %v10210_v45, 2 }
 0x45e   : > { %v10755_v31 = vld.sshfl [vmem:[#allocation1 + $0x20] sm:$0xff pattern:$0x73625140] }
 0x45f   : > { %4489 = vst [vmem:[#allocation1 + $0x20] ss:$4 sm:$0xff] %v10752_v44 }
 0x460   : > { %4490 = vst [vmem:[#allocation1 + $0x21] ss:$4 sm:$0xff] %v10759_v40 }
 0x461   : > { %4491 = vst [vmem:[#allocation1 + $0x22] ss:$4 sm:$0xff] %v10765_v8 }
 0x462   : > { %4492 = vst [vmem:[#allocation1 + $0x23] ss:$4 sm:$0xff] %v10772_v60 }
 0x463   : > { %v4540_v63 = vld.sshfl [vmem:[#allocation1] sm:$0xff pattern:$0x73625140] }
 0x464   : > { %4542 = vst [vmem:[#allocation1] ss:$4 sm:$0xff] %v10145_v23 }
 0x465   : > { %4543 = vst [vmem:[#allocation1 + $0x1] ss:$4 sm:$0xff] %v10210_v45 }
 0x466   : > { %4544 = vst [vmem:[#allocation1 + $0x2] ss:$4 sm:$0xff] %v10225_v22 }
 0x467   : > { %4545 = vst [vmem:[#allocation1 + $0x3] ss:$4 sm:$0xff] %v10274_v42 }
 0x469   : > { %v10782_v28 = vld.sshfl [vmem:[#allocation1 + $0x20] sm:$0xff pattern:$0x73625140] }
 0x46a   : > { %4533 = vst [vmem:[#allocation1 + $0x20] ss:$4 sm:$0xff] %v10473_v59 }
 0x46b   : > { %4535 = vst [vmem:[#allocation1 + $0x21] ss:$4 sm:$0xff] %v10124_v33 }
 0x46c   : > { %4537 = vst [vmem:[#allocation1 + $0x22] ss:$4 sm:$0xff] %v10132_v18 }
 0x46d   : > { %4539 = vst [vmem:[#allocation1 + $0x23] ss:$4 sm:$0xff] %v10135_v17 }
 0x46e   : > { %v4550_v39 = vld.sshfl [vmem:[#allocation1] sm:$0xff pattern:$0x73625140] }
 0x46f   : > { %4552 = vst [vmem:[#allocation1] ss:$4 sm:$0xff] %v10325_v48 }
 0x470   : > { %4553 = vst [vmem:[#allocation1 + $0x1] ss:$4 sm:$0xff] %v10339_v50 }
 0x471   : > { %4554 = vst [vmem:[#allocation1 + $0x2] ss:$4 sm:$0xff] %v10342_v20 }
 0x472   : > { %4555 = vst [vmem:[#allocation1 + $0x3] ss:$4 sm:$0xff] %v10532_v32 }
 0x474   : > { %v4541_v22 = vld.sshfl [vmem:[#allocation1 + $0x20] sm:$0xff pattern:$0x73625140] }
 0x475   : > { %v6959_v33 = vpack.i.bf16 %v4541_v22, %v4540_v63  ;;  %4546 = vst [vmem:[#allocation1 + $0x20] ss:$4 sm:$0xff] %v10281_v62  ;;  %v4841_v22 = vld [vmem:[%s12323_s4 + $0x60] sm:$0xff] }
 0x476   : > { %4547 = vst [vmem:[#allocation1 + $0x21] ss:$4 sm:$0xff] %v10284_v26  ;;  %4978 = vmatpush.msrb.mxu0 %v4841_v22 }
 0x477   : > { %6960 = vrot.lane.b32.xlu1 %v6959_v33, %s7177_s26  ;;  %4548 = vst [vmem:[#allocation1 + $0x22] ss:$4 sm:$0xff] %v10536_v57 }
 0x478   : > { %4549 = vst [vmem:[#allocation1 + $0x23] ss:$4 sm:$0xff] %v10318_v34 }
 0x479   : > { %v4560_v14 = vld.sshfl [vmem:[#allocation1] sm:$0xff pattern:$0x73625140] }
 0x47a   : > { %4562 = vst [vmem:[#allocation1] ss:$4 sm:$0xff] %v10566_v12 }
 0x47b   : > { %4563 = vst [vmem:[#allocation1 + $0x1] ss:$4 sm:$0xff] %v10371_v35 }
 0x47c   : > { %4564 = vst [vmem:[#allocation1 + $0x2] ss:$4 sm:$0xff] %v10374_v49 }
 0x47d   : > { %4565 = vst [vmem:[#allocation1 + $0x3] ss:$4 sm:$0xff] %v10377_v6 }
 0x47f   : > { %v4551_v63 = vld.sshfl [vmem:[#allocation1 + $0x20] sm:$0xff pattern:$0x73625140] }
 0x480   : > { %v6974_v38 = vpack.i.bf16 %v4551_v63, %v4550_v39  ;;  %4556 = vst [vmem:[#allocation1 + $0x20] ss:$4 sm:$0xff] %v10351_v24  ;;  %v4873_v39 = vld [vmem:[%s12323_s4 + $0x160] sm:$0xff]  ;;  %v4856_v63 = vld [vmem:[%s12323_s4 + $0xd8] sm:$0xff] }
 0x481   : > { %4557 = vst [vmem:[#allocation1 + $0x21] ss:$4 sm:$0xff] %v10354_v4  ;;  %5025 = vmatpush.msrb.mxu2 %v4873_v39  ;;  %v4854_v39 = vld [vmem:[%s12323_s4 + $0xc8] sm:$0xff] }
 0x482   : > { %6975 = vrot.lane.b32.xlu1 %v6974_v38, %s7177_s26  ;;  %4558 = vst [vmem:[#allocation1 + $0x22] ss:$4 sm:$0xff] %v10357_v61  ;;  %v12896_v38 = vrot.slane %v10473_v59, 7 }
 0x483   : > { %4559 = vst [vmem:[#allocation1 + $0x23] ss:$4 sm:$0xff] %v10363_v7 }
 0x484   : > { %v10816_v34 = vld.sshfl [vmem:[#allocation1] sm:$0xff pattern:$0x73625140] }
 0x485   : > { %4572 = vst [vmem:[#allocation1] ss:$4 sm:$0xff] %v10408_v0 }
 0x486   : > { %4573 = vst [vmem:[#allocation1 + $0x1] ss:$4 sm:$0xff] %v10411_v51 }
 0x487   : > { %4574 = vst [vmem:[#allocation1 + $0x2] ss:$4 sm:$0xff] %v10649_v54 }
 0x488   : > { %4575 = vst [vmem:[#allocation1 + $0x3] ss:$4 sm:$0xff] %v10422_v43  ;;  %v4860_v43 = vld [vmem:[%s12323_s4 + $0xf8] sm:$0xff] }
 0x489   : > { %5157 = vmatpush.msra.mxu1 %v4860_v43  ;;  %v12897_v43 = vld [vmem:[#allocation91_spill] sm:$0xff] }
 0x48a   : > { %v4561_v35 = vld.sshfl [vmem:[#allocation1 + $0x20] sm:$0xff pattern:$0x73625140] }
 0x48b   : > { %v6989_v24 = vpack.i.bf16 %v4561_v35, %v4560_v14  ;;  %4566 = vst [vmem:[#allocation1 + $0x20] ss:$4 sm:$0xff] %v10380_v36  ;;  %v12894_v14 = vld [vmem:[#allocation52_spill] sm:$0xff]  ;;  %v4347_v35 = vrot.slane %v12896_v38, 2  ;;  %v12899_v38 = vld [vmem:[#allocation3_spill] sm:$0xff] }
 0x48c   : > { %4567 = vst [vmem:[#allocation1 + $0x21] ss:$4 sm:$0xff] %v10394_v52 }
 0x48d   : > { %6990 = vrot.lane.b32.xlu1 %v6989_v24, %s7177_s26  ;;  %4568 = vst [vmem:[#allocation1 + $0x22] ss:$4 sm:$0xff] %v10398_v13  ;;  %v6994_v13 = vpack.i.bf16 %v10755_v31, %v10677_v46  ;;  %v4858_v31 = vld [vmem:[%s12323_s4 + $0xe8] sm:$0xff] }
 0x48e   : > { %4569 = vst [vmem:[#allocation1 + $0x23] ss:$4 sm:$0xff] %v10403_v21  ;;  %5158 = vmatpush.msra.mxu1 %v4858_v31 }
 0x48f   : > { %v4580_v33 = vld.sshfl [vmem:[#allocation1] sm:$0xff pattern:$0x73625140] }
 0x490   : > { %4612 = vst [vmem:[#allocation1] ss:$4 sm:$0xff] %v10450_v2  ;;  %v12895_v2 = vrot.slane %v10210_v45, 7  ;;  %5159 = vmatpush.msra.mxu1 %v4856_v63  ;;  %v12902_v63 = vld [vmem:[#allocation122_spill] sm:$0xff] }
 0x491   : > { %4614 = vst [vmem:[#allocation1 + $0x1] ss:$4 sm:$0xff] %v10456_v37  ;;  %v4351_v37 = vrot.slane %v12442_v10, 7  ;;  %v12908_v10 = vld [vmem:[#allocation53_spill] sm:$0xff] }
 0x492   : > { %4616 = vst [vmem:[#allocation1 + $0x2] ss:$4 sm:$0xff] %v10461_v30  ;;  %v4350_v46 = vrot.slane %v12895_v2, 2  ;;  %v12441_v30 = vrot.slane %v10051_v1, 4  ;;  %5160 = vmatpush.msra.mxu1 %v4854_v39  ;;  %v4871_v39 = vld [vmem:[%s12323_s4 + $0x150] sm:$0xff] }
 0x493   : > { %4618 = vst [vmem:[#allocation1 + $0x3] ss:$4 sm:$0xff] %v12894_v14  ;;  %v12898_v14 = vld [vmem:[#allocation97_spill] sm:$0xff]  ;;  %5026 = vmatpush.msrb.mxu2 %v4871_v39  ;;  %v12906_v39 = vld [vmem:[#allocation14_spill] sm:$0xff] }
 0x494   : > { %v4352_v22 = vsel %vm10437_vm6, %v4350_v46, %v4351_v37  ;;  %v12900_v46 = vld [vmem:[#allocation102_spill] sm:$0xff]  ;;  %v12443_v37 = vrot.slane %v10339_v50, 6 }
 0x495   : > { %6995 = vrot.lane.b32.xlu1 %v6994_v13, %s7176_s16  ;;  %v4571_v53 = vld.sshfl [vmem:[#allocation1 + $0x20] sm:$0xff pattern:$0x73625140]  ;;  %v4348_v13 = vrot.slane %v12441_v30, 7 }
 0x496   : > { %4576 = vst [vmem:[#allocation1 + $0x20] ss:$4 sm:$0xff] %v10425_v27 }
 0x497   : > { %4577 = vst [vmem:[#allocation1 + $0x21] ss:$4 sm:$0xff] %v10452_v41  ;;  %v4349_v2 = vsel %vm10437_vm6, %v4347_v35, %v4348_v13  ;;  %v4852_v35 = vld [vmem:[%s12323_s4 + $0xb8] sm:$0xff] }
 0x498   : > { %4578 = vst [vmem:[#allocation1 + $0x22] ss:$4 sm:$0xff] %v10466_v11  ;;  %5161 = vmatpush.msra.mxu1 %v4852_v35  ;;  %v4846_v35 = vld [vmem:[%s12323_s4 + $0x88] sm:$0xff] }
 0x499   : > { %4579 = vst [vmem:[#allocation1 + $0x23] ss:$4 sm:$0xff] %v10746_v5 }
 0x49a   : > { %v4627_v24 = vld.sshfl [vmem:[#allocation1] sm:$0xff pattern:$0x73625140] }
 0x49b   : > { %4629 = vst [vmem:[#allocation1] ss:$4 sm:$0xff] %v12897_v43  ;;  %v12903_v43 = vrot.slane %v10532_v32, 7 }
 0x49c   : > { %4630 = vst [vmem:[#allocation1 + $0x1] ss:$4 sm:$0xff] %v4352_v22  ;;  %v4850_v22 = vld [vmem:[%s12323_s4 + $0xa8] sm:$0xff] }
 0x49d   : > { %4596 = vrot.lane.b32.xlu1 %v4571_v53, %s7177_s26  ;;  %4631 = vst [vmem:[#allocation1 + $0x2] ss:$4 sm:$0xff] %v12898_v14  ;;  %v12901_v53 = vld [vmem:[#allocation129_spill] sm:$0xff]  ;;  %v4356_v13 = vrot.slane %v12903_v43, 2  ;;  %5162 = vmatpush.msra.mxu1 %v4850_v22  ;;  %v12907_v43 = vrot.slane %v10536_v57, 7  ;;  %v4844_v22 = vld [vmem:[%s12323_s4 + $0x78] sm:$0xff] }
 0x49e   : > { %4632 = vst [vmem:[#allocation1 + $0x3] ss:$4 sm:$0xff] %v12899_v38  ;;  %v4357_v38 = vrot.slane %v12443_v37, 7  ;;  %v4199_v37 = vrot.slane %v10363_v7, 4 }
 0x4a0   : > { %v4581_v31 = vld.sshfl [vmem:[#allocation1 + $0x20] sm:$0xff pattern:$0x73625140]  ;;  %v4358_v30 = vsel %vm10437_vm6, %v4356_v13, %v4357_v38 }
 0x4a1   : > { %4620 = vst [vmem:[#allocation1 + $0x20] ss:$4 sm:$0xff] %v4349_v2  ;;  %v4848_v2 = vld [vmem:[%s12323_s4 + $0x98] sm:$0xff] }
 0x4a2   : > { %4622 = vst [vmem:[#allocation1 + $0x21] ss:$4 sm:$0xff] %v12900_v46  ;;  %v12904_v46 = vld [vmem:[#allocation43_spill] sm:$0xff]  ;;  %5163 = vmatpush.msra.mxu1 %v4848_v2  ;;  %v12910_v2 = vld [vmem:[#allocation34_spill] sm:$0xff] }
 0x4a3   : > { %4624 = vst [vmem:[#allocation1 + $0x22] ss:$4 sm:$0xff] %v12901_v53  ;;  %v12905_v53 = vld [vmem:[#allocation131_spill] sm:$0xff] }
 0x4a4   : > { %4626 = vst [vmem:[#allocation1 + $0x23] ss:$4 sm:$0xff] %v12902_v63  ;;  %v4354_v63 = vrot.slane %v12905_v53, 7  ;;  %5164 = vmatpush.msra.mxu1 %v4846_v35  ;;  %v12912_v35 = vld [vmem:[#allocation94_spill] sm:$0xff] }
 0x4a5   : > { %4598 = vrot.lane.b32.xlu1 %v4580_v33, %s7177_s26  ;;  %v4839_v33 = vld [vmem:[%s12323_s4 + $0x50] sm:$0xff]  ;;  %v10893_v14 = vld.sshfl [vmem:[#allocation1] sm:$0xff pattern:$0x73625140] }
 0x4a6   : > { %4979 = vmatpush.msrb.mxu0 %v4839_v33  ;;  %4639 = vst [vmem:[#allocation1] ss:$4 sm:$0xff] %v12904_v46  ;;  %v4353_v33 = vrot.slane %v12907_v43, 2  ;;  %v12909_v43 = vld [vmem:[#allocation4_spill] sm:$0xff]  ;;  %5165 = vmatpush.msra.mxu1 %v4844_v22  ;;  %v4835_v22 = vld [vmem:[%s12323_s4 + $0x30] sm:$0xff] }
 0x4a7   : > { %4640 = vst [vmem:[#allocation1 + $0x1] ss:$4 sm:$0xff] %v12906_v39  ;;  %v4837_v39 = vld [vmem:[%s12323_s4 + $0x40] sm:$0xff] }
 0x4a8   : > { %4641 = vst [vmem:[#allocation1 + $0x2] ss:$4 sm:$0xff] %v12908_v10  ;;  %4980 = vmatpush.msrb.mxu0 %v4837_v39  ;;  %v4869_v10 = vld [vmem:[%s12323_s4 + $0x140] sm:$0xff]  ;;  %v4355_v13 = vsel %vm10437_vm6, %v4353_v33, %v4354_v63  ;;  %v4840_v63 = vld [vmem:[%s12323_s4 + $0x58] sm:$0xff]  ;;  %v4838_v33 = vld [vmem:[%s12323_s4 + $0x48] sm:$0xff] }
 0x4a9   : > { %4642 = vst [vmem:[#allocation1 + $0x3] ss:$4 sm:$0xff] %v4358_v30  ;;  %v4842_v30 = vld [vmem:[%s12323_s4 + $0x68] sm:$0xff]  ;;  %5027 = vmatpush.msrb.mxu2 %v4869_v10  ;;  %v4833_v10 = vld [vmem:[%s12323_s4 + $0x20] sm:$0xff] }
 0x4aa   : > { %5166 = vmatpush.msra.mxu1 %v4842_v30  ;;  %4981 = vmatpush.msrb.mxu0 %v4835_v22  ;;  %v4831_v30 = vld [vmem:[%s12323_s4 + $0x10] sm:$0xff]  ;;  %v12916_v22 = vld [vmem:[#allocation29_spill] sm:$0xff] }
 0x4ab   : > { %v4628_v46 = vld.sshfl [vmem:[#allocation1 + $0x20] sm:$0xff pattern:$0x73625140]  ;;  %v10946_v39 = vpop.permute.xlu0 %6955 }
 0x4ac   : > { %v6964_v47 = vpack.i.bf16 %v4628_v46, %v4627_v24  ;;  %4633 = vst [vmem:[#allocation1 + $0x20] ss:$4 sm:$0xff] %v12909_v43  ;;  %v12911_v24 = vrot.slane %v10566_v12, 7  ;;  %5167 = vmatpush.msra.mxu1 %v4840_v63  ;;  %v4836_v43 = vld [vmem:[%s12323_s4 + $0x38] sm:$0xff]  ;;  %4982 = vmatpush.msrb.mxu0 %v4833_v10  ;;  %v4829_v63 = vld [vmem:[%s12323_s4] sm:$0xff] }
 0x4ad   : > { %4634 = vst [vmem:[#allocation1 + $0x21] ss:$4 sm:$0xff] %v12910_v2  ;;  %4600 = vrot.lane.b32.xlu1 %v4581_v31, %s7177_s26  ;;  %v4360_v31 = vrot.slane %v4199_v37, 7  ;;  %v12913_v2 = vld [vmem:[#allocation8_spill] sm:$0xff] }
 0x4ae   : > { %v4359_v38 = vrot.slane %v12911_v24, 2  ;;  %6965 = vrot.lane.b32.xlu2 %v6964_v47, %s7178_s28  ;;  %4635 = vst [vmem:[#allocation1 + $0x22] ss:$4 sm:$0xff] %v4355_v13  ;;  %v6957_v13 = vunpack.i.l.bf16 %v10946_v39  ;;  %5168 = vmatpush.msra.mxu1 %v4838_v33  ;;  %v12914_v24 = vld [vmem:[#allocation48_spill] sm:$0xff]  ;;  %v12915_v33 = vld [vmem:[#allocation9_spill] sm:$0xff] }
 0x4af   : > { %4636 = vst [vmem:[#allocation1 + $0x23] ss:$4 sm:$0xff] %v12912_v35  ;;  %4983 = vmatpush.msrb.mxu0 %v4831_v30  ;;  %v12919_v30 = vld [vmem:[#allocation109_spill] sm:$0xff] }
 0x4b0   : > { %v4361_v46 = vsel %vm10437_vm6, %v4359_v38, %v4360_v31  ;;  %v4647_v47 = vld.sshfl [vmem:[#allocation1] sm:$0xff pattern:$0x73625140]  ;;  %v4834_v38 = vld [vmem:[%s12323_s4 + $0x28] sm:$0xff]  ;;  %5169 = vmatpush.msra.mxu1 %v4836_v43  ;;  %v4787_v10 = vsel %vm4786_vm10, %v12916_v22, %v6957_v13 }
 0x4b1   : > { %4649 = vst [vmem:[#allocation1] ss:$4 sm:$0xff] %v4361_v46  ;;  %v4832_v46 = vld [vmem:[%s12323_s4 + $0x18] sm:$0xff]  ;;  %v12918_v43 = vld [vmem:[#allocation5_spill] sm:$0xff]  ;;  %4984 = vmatpush.msrb.mxu0 %v4829_v63  ;;  %v4362_v63 = vrot.slane %v4313_v19, 2 }
 0x4b2   : > { %4650 = vst [vmem:[#allocation1 + $0x1] ss:$4 sm:$0xff] %v12913_v2  ;;  %5170 = vmatpush.msra.mxu1 %v4834_v38  ;;  %v4204_v2 = vrot.slane %v10394_v52, 2  ;;  %4985 = vmatmul.f32.vlgmr.msrb.gmra.mxu0 %v4787_v10  ;;  %v12921_v38 = vrot.slane %v10649_v54, 7 }
 0x4b3   : > { %4651 = vst [vmem:[#allocation1 + $0x2] ss:$4 sm:$0xff] %v12914_v24  ;;  %v12920_v24 = vld [vmem:[#allocation36_spill] sm:$0xff] }
 0x4b4   : > { %4652 = vst [vmem:[#allocation1 + $0x3] ss:$4 sm:$0xff] %v10712_v56  ;;  %v12917_v56 = vld [vmem:[#allocation111_spill] sm:$0xff]  ;;  %5171 = vmatpush.msra.mxu1 %v4832_v46  ;;  %v4363_v22 = vrot.slane %v4204_v2, 7 }
 0x4b6   : > { %v4638_v35 = vld.sshfl [vmem:[#allocation1 + $0x20] sm:$0xff pattern:$0x73625140]  ;;  %v4364_v19 = vsel %vm10437_vm6, %v4362_v63, %v4363_v22 }
 0x4b7   : > { %v6979_v31 = vpack.i.bf16 %v4638_v35, %v10893_v14  ;;  %4643 = vst [vmem:[#allocation1 + $0x20] ss:$4 sm:$0xff] %v12915_v33  ;;  %v4830_v14 = vld [vmem:[%s12323_s4 + $0x8] sm:$0xff]  ;;  %v4366_v35 = vrot.slane %v12920_v24, 7  ;;  %v4365_v33 = vrot.slane %v12921_v38, 2 }
 0x4b8   : > { %4644 = vst [vmem:[#allocation1 + $0x21] ss:$4 sm:$0xff] %v12917_v56  ;;  %5172 = vmatpush.msra.mxu1 %v4830_v14  ;;  %v4215_v14 = vrot.slane %v10452_v41, 6 }
 0x4b9   : > { %6980 = vrot.lane.b32.xlu2 %v6979_v31, %s7178_s28  ;;  %4645 = vst [vmem:[#allocation1 + $0x22] ss:$4 sm:$0xff] %v12918_v43  ;;  %5173 = vmatmul.f32.vlgmr.msra.gmra.mxu1 %v4787_v10  ;;  %v4367_v46 = vsel %vm10437_vm6, %v4365_v33, %v4366_v35  ;;  %v6958_v10 = vunpack.i.h.bf16 %v10946_v39  ;;  %v4867_v43 = vld [vmem:[%s12323_s4 + $0x130] sm:$0xff]  ;;  %v4929_v39 = vld [vmem:[%s12323_s4 + $0x320] sm:$0xff] }
 0x4ba   : > { %4646 = vst [vmem:[#allocation1 + $0x23] ss:$4 sm:$0xff] %v12919_v30  ;;  %5028 = vmatpush.msrb.mxu2 %v4867_v43  ;;  %v12924_v30 = vrot.slane %v10746_v5, 7  ;;  %v4369_v33 = vrot.slane %v4215_v14, 7 }
 0x4bb   : > { %v4657_v31 = vld.sshfl [vmem:[#allocation1] sm:$0xff pattern:$0x73625140] }
 0x4bc   : > { %4659 = vst [vmem:[#allocation1] ss:$4 sm:$0xff] %v10689_v16  ;;  %v12922_v16 = vld [vmem:[#allocation58_spill] sm:$0xff]  ;;  %v4368_v35 = vrot.slane %v12924_v30, 2 }
 0x4bd   : > { %4660 = vst [vmem:[#allocation1 + $0x1] ss:$4 sm:$0xff] %v10698_v3  ;;  %v12923_v3 = vld [vmem:[#allocation128_spill] sm:$0xff]  ;;  %v4862_v30 = vld [vmem:[%s12323_s4 + $0x108] sm:$0xff] }
 0x4be   : > { %4661 = vst [vmem:[#allocation1 + $0x2] ss:$4 sm:$0xff] %v4367_v46  ;;  %v4878_v46 = vld [vmem:[%s12323_s4 + $0x188] sm:$0xff] }
 0x4bf   : > { %4662 = vst [vmem:[#allocation1 + $0x3] ss:$4 sm:$0xff] %v10752_v44  ;;  %v11008_v44 = vpop.permute.xlu0 %6970 }
 0x4c1   : > { %v4648_v56 = vld.sshfl [vmem:[#allocation1 + $0x20] sm:$0xff pattern:$0x73625140]  ;;  %4677 = vrot.lane.b32.xlu2 %v4647_v47, %s7178_s28  ;;  %v4788_v47 = vsel %vm4786_vm10, %v12923_v3, %v6958_v10 }
 0x4c2   : > { %4679 = vrot.lane.b32.xlu0 %v4648_v56, %s7178_s28  ;;  %4653 = vst [vmem:[#allocation1 + $0x20] ss:$4 sm:$0xff] %v10721_v25  ;;  %4988 = vmatmul.f32.gmra.mxu0 %v4788_v47 }
 0x4c3   : > { %4654 = vst [vmem:[#allocation1 + $0x21] ss:$4 sm:$0xff] %v4364_v19  ;;  %5176 = vmatmul.f32.gmra.mxu1 %v4788_v47  ;;  %v4923_v19 = vld [vmem:[%s12323_s4 + $0x2f0] sm:$0xff] }
 0x4c4   : > { %4655 = vst [vmem:[#allocation1 + $0x22] ss:$4 sm:$0xff] %v10732_v58  ;;  %v6972_v58 = vunpack.i.l.bf16 %v11008_v44  ;;  %5063 = vmatpush.msra.mxu0 %v4923_v19 }
 0x4c5   : > { %4656 = vst [vmem:[#allocation1 + $0x23] ss:$4 sm:$0xff] %v12922_v16 }
 0x4c6   : > { %v4667_v25 = vld.sshfl [vmem:[#allocation1] sm:$0xff pattern:$0x73625140] }
 0x4c7   : > { %4699 = vst [vmem:[#allocation1] ss:$4 sm:$0xff] %v9995_v29  ;;  %v12925_v29 = vld [vmem:[#allocation133_spill] sm:$0xff] }
 0x4c8   : > { %4701 = vst [vmem:[#allocation1 + $0x1] ss:$4 sm:$0xff] %v9998_v55  ;;  %v4370_v55 = vsel %vm10437_vm6, %v4368_v35, %v4369_v33  ;;  %v11053_v22 = vpop.permute.xlu0 %6985  ;;  %v4931_v35 = vld [vmem:[%s12323_s4 + $0x330] sm:$0xff]  ;;  %vm4807_vm6 = vcmask 1014784  }
 0x4c9   : > { %4594 = vrot.lane.b32.xlu2 %v10816_v34, %s7177_s26  ;;  %4703 = vst [vmem:[#allocation1 + $0x2] ss:$4 sm:$0xff] %v10051_v1  ;;  %v4789_v34 = vsel %vm4786_vm10, %v12925_v29, %v6972_v58 }
 0x4ca   : > { %4681 = vrot.lane.b32.xlu0 %v4657_v31, %s7178_s28  ;;  %4705 = vst [vmem:[#allocation1 + $0x3] ss:$4 sm:$0xff] %v10473_v59  ;;  %4991 = vmatmul.f32.gmra.mxu0 %v4789_v34  ;;  %v6973_v59 = vunpack.i.h.bf16 %v11008_v44  ;;  %v4903_v44 = vld [vmem:[%s12323_s4 + $0x250] sm:$0xff] }
 0x4cb   : > { %5179 = vmatmul.f32.gmra.mxu1 %v4789_v34 }
 0x4cc   : > { %v4658_v38 = vld.sshfl [vmem:[#allocation1 + $0x20] sm:$0xff pattern:$0x73625140] }
 0x4cd   : > { %4663 = vst [vmem:[#allocation1 + $0x20] ss:$4 sm:$0xff] %v10759_v40  ;;  %v4865_v40 = vld [vmem:[%s12323_s4 + $0x120] sm:$0xff] }
 0x4ce   : > { %4664 = vst [vmem:[#allocation1 + $0x21] ss:$4 sm:$0xff] %v10765_v8  ;;  %5029 = vmatpush.msrb.mxu2 %v4865_v40 }
 0x4cf   : > { %4665 = vst [vmem:[#allocation1 + $0x22] ss:$4 sm:$0xff] %v10772_v60  ;;  %v12927_v60 = vld [vmem:[#allocation136_spill] sm:$0xff] }
 0x4d0   : > { %4666 = vst [vmem:[#allocation1 + $0x23] ss:$4 sm:$0xff] %v4370_v55  ;;  %v4790_v31 = vsel %vm4786_vm10, %v12927_v60, %v6973_v59 }
 0x4d1   : > { %4683 = vrot.lane.b32.xlu2 %v4658_v38, %s7178_s28  ;;  %v4714_v8 = vld.sshfl [vmem:[#allocation1] sm:$0xff pattern:$0x73625140] }
 0x4d2   : > { %4511 = vrot.lane.b32.xlu0 %v10742_v15, %s7176_s16  ;;  %4716 = vst [vmem:[#allocation1] ss:$4 sm:$0xff] %v10210_v45  ;;  %4994 = vmatmul.f32.gmra.mxu0 %v4790_v31  ;;  %v12928_v15 = vrot.slane %v10051_v1, 4  ;;  %v6987_v45 = vunpack.i.l.bf16 %v11053_v22  ;;  %v12929_v1 = vld [vmem:[#allocation86_spill] sm:$0xff]  ;;  %v4917_v38 = vld [vmem:[%s12323_s4 + $0x2c0] sm:$0xff] }
 0x4d3   : > { %4717 = vst [vmem:[#allocation1 + $0x1] ss:$4 sm:$0xff] %v12926_v9  ;;  %5182 = vmatmul.f32.gmra.mxu1 %v4790_v31 }
 0x4d4   : > { %4718 = vst [vmem:[#allocation1 + $0x2] ss:$4 sm:$0xff] %v10274_v42 }
 0x4d5   : > { %4719 = vst [vmem:[#allocation1 + $0x3] ss:$4 sm:$0xff] %v10281_v62  ;;  %v4791_v62 = vsel %vm4786_vm10, %v12929_v1, %v6987_v45 }
 0x4d7   : > { %v4668_v63 = vld.sshfl [vmem:[#allocation1 + $0x20] sm:$0xff pattern:$0x73625140] }
 0x4d8   : > { %4707 = vst [vmem:[#allocation1 + $0x20] ss:$4 sm:$0xff] %v12928_v15 }
 0x4d9   : > { %4709 = vst [vmem:[#allocation1 + $0x21] ss:$4 sm:$0xff] %v10132_v18  ;;  %4685 = vrot.lane.b32.xlu2 %v4667_v25, %s7178_s28 }
 0x4da   : > { %4513 = vrot.lane.b32.xlu0 %v10782_v28, %s7176_s16  ;;  %4711 = vst [vmem:[#allocation1 + $0x22] ss:$4 sm:$0xff] %v10135_v17  ;;  %4997 = vmatmul.f32.gmra.mxu0 %v4791_v62  ;;  %s7179_s16 = smov 80   ;;  %v12930_v17 = vrot.slane %v10339_v50, 6  ;;  %v4886_v28 = vld [vmem:[%s12323_s4 + $0x1c8] sm:$0xff] }
 0x4db   : > { %4713 = vst [vmem:[#allocation1 + $0x23] ss:$4 sm:$0xff] %v10145_v23  ;;  %5185 = vmatmul.f32.gmra.mxu1 %v4791_v62  ;;  %v6988_v23 = vunpack.i.h.bf16 %v11053_v22  ;;  %v4897_v22 = vld [vmem:[%s12323_s4 + $0x220] sm:$0xff] }
 0x4dc   : > { %v4724_v42 = vld.sshfl [vmem:[#allocation1] sm:$0xff pattern:$0x73625140] }
 0x4dd   : > { %4726 = vst [vmem:[#allocation1] ss:$4 sm:$0xff] %v10339_v50  ;;  %v4890_v50 = vld [vmem:[%s12323_s4 + $0x1e8] sm:$0xff] }
 0x4de   : > { %4727 = vst [vmem:[#allocation1 + $0x1] ss:$4 sm:$0xff] %v10342_v20  ;;  %v4892_v20 = vld [vmem:[%s12323_s4 + $0x1f8] sm:$0xff] }
 0x4df   : > { %4728 = vst [vmem:[#allocation1 + $0x2] ss:$4 sm:$0xff] %v10532_v32  ;;  %v12931_v32 = vld [vmem:[#allocation142_spill] sm:$0xff]  ;;  %5204 = vmatpush.msra.mxu3 %v4892_v20 }
 0x4e0   : > { %4729 = vst [vmem:[#allocation1 + $0x3] ss:$4 sm:$0xff] %v12930_v17 }
 0x4e1   : > { %4687 = vrot.lane.b32.xlu2 %v4668_v63, %s7178_s28  ;;  %5205 = vmatpush.msra.mxu3 %v4890_v50  ;;  %s7180_s28 = smov 112  }
 0x4e2   : > { %v4715_v18 = vld.sshfl [vmem:[#allocation1 + $0x20] sm:$0xff pattern:$0x73625140]  ;;  %4756 = vrot.lane.b32.xlu0 %v4714_v8, %s7179_s16 }
 0x4e3   : > { %4758 = vrot.lane.b32.xlu1 %v4715_v18, %s7179_s16  ;;  %4720 = vst [vmem:[#allocation1 + $0x20] ss:$4 sm:$0xff] %v10284_v26  ;;  %v4792_v26 = vsel %vm4786_vm10, %v12931_v32, %v6988_v23 }
 0x4e4   : > { %4721 = vst [vmem:[#allocation1 + $0x21] ss:$4 sm:$0xff] %v10536_v57  ;;  %5000 = vmatmul.f32.gmra.mxu0 %v4792_v26  ;;  %5188 = vmatmul.f32.gmra.mxu1 %v4792_v26  ;;  %v4909_v26 = vld [vmem:[%s12323_s4 + $0x280] sm:$0xff] }
 0x4e5   : > { %4722 = vst [vmem:[#allocation1 + $0x22] ss:$4 sm:$0xff] %v12905_v53 }
 0x4e6   : > { %4723 = vst [vmem:[#allocation1 + $0x23] ss:$4 sm:$0xff] %v10325_v48  ;;  %v4888_v48 = vld [vmem:[%s12323_s4 + $0x1d8] sm:$0xff] }
 0x4e7   : > { %v4734_v57 = vld.sshfl [vmem:[#allocation1] sm:$0xff pattern:$0x73625140]  ;;  %5206 = vmatpush.msra.mxu3 %v4888_v48  ;;  %v4907_v48 = vld [vmem:[%s12323_s4 + $0x270] sm:$0xff] }
 0x4e8   : > { %4736 = vst [vmem:[#allocation1] ss:$4 sm:$0xff] %v4199_v37  ;;  %v4884_v37 = vld [vmem:[%s12323_s4 + $0x1b8] sm:$0xff] }
 0x4e9   : > { %4760 = vrot.lane.b32.xlu2 %v4724_v42, %s7179_s16  ;;  %4737 = vst [vmem:[#allocation1 + $0x1] ss:$4 sm:$0xff] %v10374_v49  ;;  %5207 = vmatpush.msra.mxu3 %v4886_v28  ;;  %v4863_v49 = vld [vmem:[%s12323_s4 + $0x110] sm:$0xff] }
 0x4ea   : > { %4738 = vst [vmem:[#allocation1 + $0x2] ss:$4 sm:$0xff] %v10377_v6  ;;  %v4882_v6 = vld [vmem:[%s12323_s4 + $0x1a8] sm:$0xff]  ;;  %5030 = vmatpush.msrb.mxu2 %v4863_v49  ;;  %v12933_v42 = vld [vmem:[#allocation115_spill] sm:$0xff] }
 0x4eb   : > { %4764 = vrot.lane.b32.xlu1 %v4734_v57, %s7179_s16  ;;  %4739 = vst [vmem:[#allocation1 + $0x3] ss:$4 sm:$0xff] %v10380_v36  ;;  %v11114_v36 = vpop.permute.xlu1 %6960  ;;  %5208 = vmatpush.msra.mxu3 %v4884_v37  ;;  %v4927_v37 = vld [vmem:[%s12323_s4 + $0x310] sm:$0xff] }
 0x4ec   : > { %v6962_v33 = vunpack.i.l.bf16 %v11114_v36  ;;  %v6963_v60 = vunpack.i.h.bf16 %v11114_v36 }
 0x4ed   : > { %v4725_v53 = vld.sshfl [vmem:[#allocation1 + $0x20] sm:$0xff pattern:$0x73625140]  ;;  %5209 = vmatpush.msra.mxu3 %v4882_v6 }
 0x4ee   : > { %4762 = vrot.lane.b32.xlu0 %v4725_v53, %s7179_s16  ;;  %4730 = vst [vmem:[#allocation1 + $0x20] ss:$4 sm:$0xff] %v10354_v4  ;;  %v4880_v4 = vld [vmem:[%s12323_s4 + $0x198] sm:$0xff]  ;;  %v4798_v15 = vsel %vm4013_vm8, %v6958_v10, %v6963_v60  ;;  %v4911_v10 = vld [vmem:[%s12323_s4 + $0x290] sm:$0xff]  ;;  %v4905_v6 = vld [vmem:[%s12323_s4 + $0x260] sm:$0xff] }
 0x4ef   : > { %4731 = vst [vmem:[#allocation1 + $0x21] ss:$4 sm:$0xff] %v10357_v61  ;;  %v4861_v61 = vld [vmem:[%s12323_s4 + $0x100] sm:$0xff]  ;;  %5210 = vmatpush.msra.mxu3 %v4880_v4  ;;  %v4924_v60 = vld [vmem:[%s12323_s4 + $0x2f8] sm:$0xff] }
 0x4f0   : > { %4732 = vst [vmem:[#allocation1 + $0x22] ss:$4 sm:$0xff] %v10363_v7  ;;  %5031 = vmatpush.msrb.mxu2 %v4861_v61  ;;  %v4933_v7 = vld [vmem:[%s12323_s4 + $0x340] sm:$0xf] }
 0x4f1   : > { %4733 = vst [vmem:[#allocation1 + $0x23] ss:$4 sm:$0xff] %v10566_v12  ;;  %v4876_v12 = vld [vmem:[%s12323_s4 + $0x178] sm:$0xff]  ;;  %5211 = vmatpush.msra.mxu3 %v4878_v46 }
 0x4f2   : > { %v4744_v56 = vld.sshfl [vmem:[#allocation1] sm:$0xff pattern:$0x73625140]  ;;  %6680 = vmatpush.msk.msra.mxu2 %vm4962_vm11, %v4933_v7 }
 0x4f3   : > { %4746 = vst [vmem:[#allocation1] ss:$4 sm:$0xff] %v10411_v51  ;;  %v4874_v51 = vld [vmem:[%s12323_s4 + $0x168] sm:$0xff]  ;;  %5212 = vmatpush.msra.mxu3 %v4876_v12  ;;  %v4899_v12 = vld [vmem:[%s12323_s4 + $0x230] sm:$0xff] }
 0x4f4   : > { %4747 = vst [vmem:[#allocation1 + $0x1] ss:$4 sm:$0xff] %v10649_v54  ;;  %v11144_v16 = vpop.permute.xlu1 %6975  ;;  %v4872_v54 = vld [vmem:[%s12323_s4 + $0x158] sm:$0xff]  ;;  %5122 = vmatpush.msra.mxu2 %v4931_v35 }
 0x4f5   : > { %4748 = vst [vmem:[#allocation1 + $0x2] ss:$4 sm:$0xff] %v12920_v24  ;;  %5213 = vmatpush.msra.mxu3 %v4874_v51  ;;  %v4921_v24 = vld [vmem:[%s12323_s4 + $0x2e0] sm:$0xff]  ;;  %v6977_v17 = vunpack.i.l.bf16 %v11144_v16  ;;  %v6978_v57 = vunpack.i.h.bf16 %v11144_v16 }
 0x4f6   : > { %4768 = vrot.lane.b32.xlu0 %v4744_v56, %s7179_s16  ;;  %4749 = vst [vmem:[#allocation1 + $0x3] ss:$4 sm:$0xff] %v10425_v27  ;;  %v4870_v27 = vld [vmem:[%s12323_s4 + $0x148] sm:$0xff]  ;;  %5064 = vmatpush.msra.mxu0 %v4921_v24 }
 0x4f7   : > { %5214 = vmatpush.msra.mxu3 %v4872_v54  ;;  %5123 = vmatpush.msra.mxu2 %v4929_v39  ;;  %v4799_v50 = vsel %vm4013_vm8, %v6972_v58, %v6977_v17  ;;  %v4800_v58 = vsel %vm4013_vm8, %v6973_v59, %v6978_v57  ;;  %v4893_v54 = vld [vmem:[%s12323_s4 + $0x200] sm:$0xff]  ;;  %v4916_v39 = vld [vmem:[%s12323_s4 + $0x2b8] sm:$0xff]  ;;  %v4914_v17 = vld [vmem:[%s12323_s4 + $0x2a8] sm:$0xff] }
 0x4f8   : > { %v4735_v3 = vld.sshfl [vmem:[#allocation1 + $0x20] sm:$0xff pattern:$0x73625140]  ;;  %v4908_v57 = vld [vmem:[%s12323_s4 + $0x278] sm:$0xff] }
 0x4f9   : > { %4740 = vst [vmem:[#allocation1 + $0x20] ss:$4 sm:$0xff] %v10394_v52  ;;  %4766 = vrot.lane.b32.xlu2 %v4735_v3, %s7179_s16  ;;  %v4919_v52 = vld [vmem:[%s12323_s4 + $0x2d0] sm:$0xff]  ;;  %5215 = vmatpush.msra.mxu3 %v4870_v27  ;;  %v4925_v27 = vld [vmem:[%s12323_s4 + $0x300] sm:$0xff] }
 0x4fa   : > { %4741 = vst [vmem:[#allocation1 + $0x21] ss:$4 sm:$0xff] %v4204_v2  ;;  %5065 = vmatpush.msra.mxu0 %v4919_v52  ;;  %v4866_v2 = vld [vmem:[%s12323_s4 + $0x128] sm:$0xff]  ;;  %5124 = vmatpush.msra.mxu2 %v4927_v37 }
 0x4fb   : > { %4742 = vst [vmem:[#allocation1 + $0x22] ss:$4 sm:$0xff] %v10403_v21  ;;  %v4868_v21 = vld [vmem:[%s12323_s4 + $0x138] sm:$0xff]  ;;  %v4902_v37 = vld [vmem:[%s12323_s4 + $0x248] sm:$0xff] }
 0x4fc   : > { %4743 = vst [vmem:[#allocation1 + $0x23] ss:$4 sm:$0xff] %v10408_v0  ;;  %5216 = vmatpush.msra.mxu3 %v4868_v21  ;;  %v4864_v0 = vld [vmem:[%s12323_s4 + $0x118] sm:$0xff]  ;;  %5066 = vmatpush.msra.mxu0 %v4917_v38 }
 0x4fd   : > { %v4754_v43 = vld.sshfl [vmem:[#allocation1] sm:$0xff pattern:$0x73625140]  ;;  %5125 = vmatpush.msra.mxu2 %v4925_v27 }
 0x4fe   : > { %5217 = vmatpush.msra.mxu3 %v4866_v2 }
 0x4ff   : > { %v11171_v47 = vpop.permute.xlu1 %6990 }
 0x500   : > { %5218 = vmatpush.msra.mxu3 %v4864_v0  ;;  %v6992_v49 = vunpack.i.l.bf16 %v11171_v47  ;;  %v6993_v61 = vunpack.i.h.bf16 %v11171_v47  ;;  %v12934_v47 = vld [vmem:[#allocation121_spill] sm:$0xff] }
 0x501   : > { %4772 = vrot.lane.b32.xlu2 %v4754_v43, %s7179_s16 }
 0x502   : > { %5219 = vmatpush.msra.mxu3 %v4862_v30  ;;  %v4801_v36 = vsel %vm4013_vm8, %v6987_v45, %v6992_v49  ;;  %v4802_v56 = vsel %vm4013_vm8, %v6988_v23, %v6993_v61  ;;  %v4901_v45 = vld [vmem:[%s12323_s4 + $0x240] sm:$0xff]  ;;  %v4895_v23 = vld [vmem:[%s12323_s4 + $0x210] sm:$0xff]  ;;  %v4904_v49 = vld [vmem:[%s12323_s4 + $0x258] sm:$0xff] }
 0x503   : > { %v4745_v25 = vld.sshfl [vmem:[#allocation1 + $0x20] sm:$0xff pattern:$0x73625140] }
 0x504   : > { %4770 = vrot.lane.b32.xlu1 %v4745_v25, %s7179_s16  ;;  %4750 = vst [vmem:[#allocation1 + $0x20] ss:$4 sm:$0xff] %v10452_v41 }
 0x505   : > { %4751 = vst [vmem:[#allocation1 + $0x21] ss:$4 sm:$0xff] %v10466_v11  ;;  %v4797_v11 = vsel %vm4013_vm8, %v6957_v13, %v6962_v33  ;;  %v4913_v13 = vld [vmem:[%s12323_s4 + $0x2a0] sm:$0xff] }
 0x506   : > { %4752 = vst [vmem:[#allocation1 + $0x22] ss:$4 sm:$0xff] %v10746_v5  ;;  %v12932_v5 = vld [vmem:[#allocation143_spill] sm:$0xff]  ;;  %v12935_v33 = vld [vmem:[#allocation33_spill] sm:$0xff] }
 0x507   : > { %4753 = vst [vmem:[#allocation1 + $0x23] ss:$4 sm:$0xff] %v4215_v14  ;;  %v11193_v29 = vpop.permute.xlu1 %6995  ;;  %v4915_v14 = vld [vmem:[%s12323_s4 + $0x2b0] sm:$0xff] }
 0x508   : > { %v11195_v34 = vpop.permute.xlu2 %6965  ;;  %v6997_v55 = vunpack.i.l.bf16 %v11193_v29  ;;  %5067 = vmatpush.msra.mxu0 %v4915_v14  ;;  %v6998_v31 = vunpack.i.h.bf16 %v11193_v29 }
 0x509   : > { %v6967_v40 = vunpack.i.l.bf16 %v11195_v34  ;;  %v6968_v63 = vunpack.i.h.bf16 %v11195_v34  ;;  %v4932_v34 = vld [vmem:[%s12323_s4 + $0x338] sm:$0xff] }
 0x50a   : > { %v4793_v8 = vsel %vm4786_vm10, %v12932_v5, %v6997_v55  ;;  %5068 = vmatpush.msra.mxu0 %v4913_v13  ;;  %v4794_v1 = vsel %vm4786_vm10, %v12933_v42, %v6998_v31  ;;  %v4920_v42 = vld [vmem:[%s12323_s4 + $0x2d8] sm:$0xff] }
 0x50b   : > { %v4808_v41 = vsel %vm4807_vm6, %v4797_v11, %v6967_v40  ;;  %5003 = vmatmul.f32.gmra.mxu0 %v4793_v8  ;;  %5191 = vmatmul.f32.gmra.mxu1 %v4793_v8  ;;  %v4809_v62 = vsel %vm4807_vm6, %v4798_v15, %v6968_v63  ;;  %v4922_v15 = vld [vmem:[%s12323_s4 + $0x2e8] sm:$0xff] }
 0x50c   : > { %5032 = vmatmul.f32.vlgmr.msrb.gmra.mxu2 %v4808_v41  ;;  %5220 = vmatmul.f32.vlgmr.msra.gmra.mxu3 %v4808_v41 }
 0x50d   : > { %5069 = vmatpush.msra.mxu0 %v4911_v10  ;;  %v4930_v10 = vld [vmem:[%s12323_s4 + $0x328] sm:$0xff] }
 0x50e   : > { %v4755_v9 = vld.sshfl [vmem:[#allocation1 + $0x20] sm:$0xff pattern:$0x73625140] }
 0x50f   : > { %4774 = vrot.lane.b32.xlu0 %v4755_v9, %s7179_s16  ;;  %5070 = vmatpush.msra.mxu0 %v4909_v26  ;;  %v4597_v24 = vpop.permute.xlu1 %4596  ;;  %v4934_v9 = vld [vmem:[%s12323_s4 + $0x348] sm:$0xf] }
 0x510   : > { %v4804_v2 = vsel %vm4013_vm8, %v6998_v31, %v4597_v24  ;;  %6691 = vmatpush.msk.msrb.mxu2 %vm4962_vm11, %v4934_v9  ;;  %v4910_v26 = vld [vmem:[%s12323_s4 + $0x288] sm:$0xff]  ;;  %vm12936_vm11 = vcmask 261120  }
 0x511   : > { %5071 = vmatpush.msra.mxu0 %v4907_v48 }
 0x512   : > { %5310 = vmatpush.msrb.mxu2 %v4932_v34 }
 0x513   : > { %5006 = vmatmul.f32.gmra.mxu0 %v4794_v1  ;;  %5194 = vmatmul.f32.gmra.mxu1 %v4794_v1  ;;  %v11229_v18 = vpop.permute.xlu2 %6980 }
 0x514   : > { %5035 = vmatmul.f32.gmra.mxu2 %v4809_v62  ;;  %5223 = vmatmul.f32.gmra.mxu3 %v4809_v62  ;;  %v6982_v20 = vunpack.i.l.bf16 %v11229_v18  ;;  %v6983_v28 = vunpack.i.h.bf16 %v11229_v18 }
 0x515   : > { %5072 = vmatpush.msra.mxu0 %v4905_v6  ;;  %5311 = vmatpush.msrb.mxu2 %v4930_v10 }
 0x516   : > { %v4810_v32 = vsel %vm4807_vm6, %v4799_v50, %v6982_v20  ;;  %v4811_v53 = vsel %vm4807_vm6, %v4800_v58, %v6983_v28  ;;  %v4912_v50 = vld [vmem:[%s12323_s4 + $0x298] sm:$0xff]  ;;  %v4906_v58 = vld [vmem:[%s12323_s4 + $0x268] sm:$0xff] }
 0x517   : > { %5073 = vmatpush.msra.mxu0 %v4903_v44  ;;  %v4599_v25 = vpop.permute.xlu1 %4598 }
 0x519   : > { %5074 = vmatpush.msra.mxu0 %v4901_v45  ;;  %v4926_v45 = vld [vmem:[%s12323_s4 + $0x308] sm:$0xff] }
 0x51b   : > { %v11269_v59 = vpop.permute.xlu2 %4677  ;;  %5075 = vmatpush.msra.mxu0 %v4899_v12 }
 0x51c   : > { %5038 = vmatmul.f32.gmra.mxu2 %v4810_v32  ;;  %5226 = vmatmul.f32.gmra.mxu3 %v4810_v32  ;;  %v4812_v4 = vsel %vm4807_vm6, %v4801_v36, %v11269_v59  ;;  %v4898_v36 = vld [vmem:[%s12323_s4 + $0x228] sm:$0xff] }
 0x51d   : > { %5076 = vmatpush.msra.mxu0 %v4897_v22 }
 0x51f   : > { %5077 = vmatpush.msra.mxu0 %v4895_v23  ;;  %v4601_v11 = vpop.permute.xlu1 %4600 }
 0x521   : > { %5078 = vmatpush.msra.mxu0 %v4893_v54 }
 0x523   : > { %v4595_v19 = vpop.permute.xlu2 %4594  ;;  %5251 = vmatpush.msrb.mxu0 %v4924_v60 }
 0x524   : > { %5041 = vmatmul.f32.gmra.mxu2 %v4811_v53  ;;  %5229 = vmatmul.f32.gmra.mxu3 %v4811_v53  ;;  %v4803_v51 = vsel %vm4013_vm8, %v6997_v55, %v4595_v19 }
 0x525   : > { %5252 = vmatpush.msrb.mxu0 %v4922_v15 }
 0x527   : > { %5253 = vmatpush.msrb.mxu0 %v4920_v42 }
 0x52b   : > { %v11309_v52 = vpop.permute.xlu2 %4683 }
 0x52c   : > { %5044 = vmatmul.f32.gmra.mxu2 %v4812_v4  ;;  %5232 = vmatmul.f32.gmra.mxu3 %v4812_v4  ;;  %v4815_v0 = vsel %vm4807_vm6, %v4804_v2, %v11309_v52  ;;  %v4896_v4 = vld [vmem:[%s12323_s4 + $0x218] sm:$0xff] }
 0x52f   : > { %v11423_v53 = vpop.f32.mrf.mxu0 }
 0x533   : > { %v11318_v30 = vpop.permute.xlu2 %4685 }
 0x534   : > { %v11277_v46 = vpop.permute.xlu0 %4679 }
 0x535   : > { %v4813_v7 = vsel %vm4807_vm6, %v4802_v56, %v11277_v46  ;;  %v4894_v56 = vld [vmem:[%s12323_s4 + $0x208] sm:$0xff] }
 0x536   : > { %5047 = vmatmul.f32.gmra.mxu2 %v4813_v7  ;;  %5235 = vmatmul.f32.gmra.mxu3 %v4813_v7 }
 0x53b   : > { %v11328_v41 = vpop.permute.xlu2 %4687 }
 0x53c   : > { %v11299_v16 = vpop.permute.xlu0 %4681 }
 0x53d   : > { %v4814_v3 = vsel %vm4807_vm6, %v4803_v51, %v11299_v16 }
 0x53e   : > { %5050 = vmatmul.f32.gmra.mxu2 %v4814_v3  ;;  %5238 = vmatmul.f32.gmra.mxu3 %v4814_v3 }
 0x53f   : > { %v11449_v61 = vpop.f32.mrf.mxu0 }
 0x543   : > { %v11366_v1 = vpop.permute.xlu2 %4760 }
 0x544   : > { %v4512_v21 = vpop.permute.xlu0 %4511  ;;  %v11375_v62 = vsel %vm4818_vm9, %v6982_v20, %v11366_v1 }
 0x545   : > { %v4795_v43 = vsel %vm4786_vm10, %v12934_v47, %v4512_v21  ;;  %v4805_v35 = vsel %vm4013_vm8, %v4512_v21, %v4599_v25 }
 0x546   : > { %5009 = vmatmul.f32.gmra.mxu0 %v4795_v43  ;;  %5197 = vmatmul.f32.gmra.mxu1 %v4795_v43  ;;  %v4816_v55 = vsel %vm4807_vm6, %v4805_v35, %v11318_v30 }
 0x547   : > { %5053 = vmatmul.f32.gmra.mxu2 %v4815_v0  ;;  %5241 = vmatmul.f32.gmra.mxu3 %v4815_v0  ;;  %v4992_v19 = vpop.f32.mrf.mxu0 }
 0x54c   : > { %v4514_v38 = vpop.permute.xlu0 %4513 }
 0x54d   : > { %v4796_v29 = vsel %vm4786_vm10, %v12935_v33, %v4514_v38  ;;  %v4806_v5 = vsel %vm4013_vm8, %v4514_v38, %v4601_v11  ;;  %vm4941_vm8 = vcmask 293888   ;;  %v11515_v33 = vld [vmem:[%s12324_s5] sm:$0x3] }
 0x54e   : > { %5012 = vmatmul.f32.gmra.mxu0 %v4796_v29  ;;  %5200 = vmatmul.f32.gmra.mxu1 %v4796_v29  ;;  %v4817_v13 = vsel %vm4807_vm6, %v4806_v5, %v11328_v41  ;;  %v4937_v29 = vperm.slane %v11515_v33, 0  ;;  %vm12937_vm6 = vmmov %vm12936_vm11 }
 0x54f   : > { %5056 = vmatmul.f32.gmra.mxu2 %v4816_v55  ;;  %5244 = vmatmul.f32.gmra.mxu3 %v4816_v55 }
 0x550   : > { %v4990_v15 = vadd.f32 %v11449_v61, %v4937_v29  ;;  %v4993_v10 = vadd.f32 %v4992_v19, %v4937_v29 }
 0x553   : > { %v11433_v6 = vpop.permute.xlu2 %4766 }
 0x554   : > { %v11326_v8 = vpop.permute.xlu0 %4756  ;;  %v4824_v44 = vsel %vm4818_vm9, %v11277_v46, %v11433_v6 }
 0x555   : > { %v11334_v14 = vsel %vm4818_vm9, %v6967_v40, %v11326_v8  ;;  %v11346_v40 = vpop.permute.xlu1 %4758 }
 0x556   : > { %5079 = vmatmul.f32.vlgmr.msra.gmra.mxu0 %v11334_v14  ;;  %v11352_v31 = vsel %vm4818_vm9, %v6968_v63, %v11346_v40  ;;  %v4918_v63 = vld [vmem:[%s12323_s4 + $0x2c8] sm:$0xff] }
 0x557   : > { %5059 = vmatmul.f32.gmra.mxu2 %v4817_v13  ;;  %5247 = vmatmul.f32.gmra.mxu3 %v4817_v13 }
 0x558   : > { %5254 = vmatpush.msrb.mxu0 %v4918_v63 }
 0x55a   : > { %5255 = vmatpush.msrb.mxu0 %v4916_v39 }
 0x55b   : > { %v11471_v51 = vpop.permute.xlu2 %4772 }
 0x55c   : > { %5256 = vmatpush.msrb.mxu0 %v4914_v17  ;;  %v4827_v3 = vsel %vm4818_vm9, %v11318_v30, %v11471_v51 }
 0x55d   : > { %v11409_v18 = vpop.permute.xlu1 %4764 }
 0x55e   : > { %5082 = vmatmul.f32.gmra.mxu0 %v11352_v31  ;;  %v11414_v48 = vsel %vm4818_vm9, %v11269_v59, %v11409_v18  ;;  %v4900_v59 = vld [vmem:[%s12323_s4 + $0x238] sm:$0xff] }
 0x55f   : > { %6681 = vmatmul.msk.f32.vlgmr.msra.gmra.mxu2 %vm4941_vm8, %v11326_v8  ;;  %5257 = vmatpush.msrb.mxu0 %v4912_v50 }
 0x560   : > { %v11389_v20 = vpop.permute.xlu0 %4762 }
 0x561   : > { %v11398_v32 = vsel %vm4818_vm9, %v6983_v28, %v11389_v20  ;;  %5258 = vmatpush.msrb.mxu0 %v4910_v26  ;;  %v4928_v28 = vld [vmem:[%s12323_s4 + $0x318] sm:$0xff] }
 0x562   : > { %5312 = vmatpush.msrb.mxu2 %v4928_v28 }
 0x563   : > { %5259 = vmatpush.msrb.mxu0 %v4908_v57 }
 0x564   : > { %5313 = vmatpush.msrb.mxu2 %v4926_v45 }
 0x565   : > { %5260 = vmatpush.msrb.mxu0 %v4906_v58 }
 0x566   : > { %5085 = vmatmul.f32.gmra.mxu0 %v11375_v62 }
 0x567   : > { %6682 = vmatmul.msk.f32.gmra.mxu2 %vm4941_vm8, %v11346_v40  ;;  %5261 = vmatpush.msrb.mxu0 %v4904_v49 }
 0x568   : > { %v11451_v46 = vpop.permute.xlu0 %4768 }
 0x569   : > { %5262 = vmatpush.msrb.mxu0 %v4902_v37  ;;  %v4825_v7 = vsel %vm4818_vm9, %v11299_v16, %v11451_v46  ;;  %v11473_v16 = vpop.f32.mrf.mxu0 }
 0x56b   : > { %5263 = vmatpush.msrb.mxu0 %v4900_v59 }
 0x56d   : > { %5264 = vmatpush.msrb.mxu0 %v4898_v36 }
 0x56e   : > { %5088 = vmatmul.f32.gmra.mxu0 %v11398_v32 }
 0x56f   : > { %6683 = vmatmul.msk.f32.gmra.mxu2 %vm4941_vm8, %v11366_v1  ;;  %5265 = vmatpush.msrb.mxu0 %v4896_v4 }
 0x571   : > { %5266 = vmatpush.msrb.mxu0 %v4894_v56 }
 0x576   : > { %5091 = vmatmul.f32.gmra.mxu0 %v11414_v48  ;;  %v11464_v12 = vpop.permute.xlu1 %4770 }
 0x577   : > { %6684 = vmatmul.msk.f32.gmra.mxu2 %vm4941_vm8, %v11389_v20  ;;  %v4826_v22 = vsel %vm4818_vm9, %v11309_v52, %v11464_v12  ;;  %v11488_v52 = vpop.f32.mrf.mxu0 }
 0x578   : > { %v4999_v59 = vadd.f32 %v11488_v52, %v4937_v29 }
 0x57e   : > { %5094 = vmatmul.f32.gmra.mxu0 %v4824_v44 }
 0x57f   : > { %6685 = vmatmul.msk.f32.gmra.mxu2 %vm4941_vm8, %v11409_v18  ;;  %v11495_v47 = vpop.f32.mrf.mxu0 }
 0x581   : > { %v11480_v27 = vpop.permute.xlu0 %4774 }
 0x582   : > { %v11485_v24 = vsel %vm4818_vm9, %v11328_v41, %v11480_v27  ;;  %v4987_v41 = vadd.f32 %v11423_v53, %v4937_v29 }
 0x586   : > { %5097 = vmatmul.f32.gmra.mxu0 %v4825_v7 }
 0x587   : > { %6686 = vmatmul.msk.f32.gmra.mxu2 %vm4941_vm8, %v11433_v6 }
 0x588   : > { %v11500_v0 = vpop.f32.mrf.mxu0 }
 0x58e   : > { %5100 = vmatmul.f32.gmra.mxu0 %v4826_v22 }
 0x58f   : > { %6687 = vmatmul.msk.f32.gmra.mxu2 %vm4941_vm8, %v11451_v46  ;;  %v5033_v23 = vpop.f32.mrf.mxu2  ;;  %v11537_v57 = vpop.f32.mrf.mxu3 }
 0x590   : > { %v5007_v30 = vpop.f32.mrf.mxu0  ;;  %v5034_v13 = vadd.f32 %v5033_v23, %v4987_v41 }
 0x591   : > { %v5008_v55 = vadd.f32 %v5007_v30, %v4937_v29 }
 0x596   : > { %5103 = vmatmul.f32.gmra.mxu0 %v4827_v3 }
 0x597   : > { %6688 = vmatmul.msk.f32.gmra.mxu2 %vm4941_vm8, %v11464_v12  ;;  %v5036_v54 = vpop.f32.mrf.mxu2 }
 0x598   : > { %v5037_v34 = vadd.f32 %v5036_v54, %v4990_v15 }
 0x59e   : > { %5106 = vmatmul.f32.gmra.mxu0 %v11485_v24 }
 0x59f   : > { %6689 = vmatmul.msk.f32.gmra.mxu2 %vm4941_vm8, %v11471_v51  ;;  %v5039_v21 = vpop.f32.mrf.mxu2 }
 0x5a0   : > { %v5040_v17 = vadd.f32 %v5039_v21, %v4993_v10  ;;  %v5679_v10 = vld [vmem:[%s12325_s6 + $0x70] sm:$0xff] }
 0x5a6   : > { %5267 = vmatmul.f32.vlgmr.msrb.gmra.mxu0 %v11334_v14 }
 0x5a7   : > { %6690 = vmatmul.msk.f32.gmra.mxu2 %vm4941_vm8, %v11480_v27  ;;  %v5042_v2 = vpop.f32.mrf.mxu2 }
 0x5ae   : > { %5270 = vmatmul.f32.gmra.mxu0 %v11352_v31 }
 0x5af   : > { %6692 = vmatmul.msk.f32.vlgmr.msrb.gmra.mxu2 %vm4941_vm8, %v11326_v8  ;;  %v5045_v43 = vpop.f32.mrf.mxu2 }
 0x5b0   : > { %v5046_v36 = vadd.f32 %v5045_v43, %v4999_v59  ;;  %v5684_v43 = vld [vmem:[%s12325_s6 + $0x98] sm:$0xff] }
 0x5b1   : > { %5934 = vmatpush.msrb.mxu3 %v5684_v43 }
 0x5b6   : > { %5273 = vmatmul.f32.gmra.mxu0 %v11375_v62 }
 0x5b7   : > { %6693 = vmatmul.msk.f32.gmra.mxu2 %vm4941_vm8, %v11346_v40 }
 0x5b9   : > { %v11505_v25 = vpop.f32.mrf.mxu2 }
 0x5be   : > { %5276 = vmatmul.f32.gmra.mxu0 %v11398_v32 }
 0x5bf   : > { %6694 = vmatmul.msk.f32.gmra.mxu2 %vm4941_vm8, %v11366_v1 }
 0x5c1   : > { %v11510_v35 = vpop.f32.mrf.mxu2 }
 0x5c3   : > { %v5010_v38 = vpop.f32.mrf.mxu0 }
 0x5c4   : > { %v5011_v14 = vadd.f32 %v5010_v38, %v4937_v29 }
 0x5c6   : > { %5279 = vmatmul.f32.gmra.mxu0 %v11414_v48  ;;  %v4996_v48 = vadd.f32 %v11473_v16, %v4937_v29 }
 0x5c7   : > { %6695 = vmatmul.msk.f32.gmra.mxu2 %vm4941_vm8, %v11389_v20 }
 0x5c8   : > { %v5043_v28 = vadd.f32 %v5042_v2, %v4996_v48 }
 0x5ca   : > { %v5054_v11 = vpop.f32.mrf.mxu2 }
 0x5cb   : > { %v5013_v5 = vpop.f32.mrf.mxu0  ;;  %v11521_v8 = vadd.f32 %v5054_v11, %v5008_v55 }
 0x5cc   : > { %v5014_v42 = vadd.f32 %v5013_v5, %v4937_v29 }
 0x5ce   : > { %5282 = vmatmul.f32.gmra.mxu0 %v4824_v44 }
 0x5cf   : > { %6696 = vmatmul.msk.f32.gmra.mxu2 %vm4941_vm8, %v11409_v18  ;;  %v11539_v18 = vpop.f32.mrf.mxu1 }
 0x5d2   : > { %v5057_v9 = vpop.f32.mrf.mxu2 }
 0x5d3   : > { %v5080_v60 = vpop.f32.mrf.mxu0  ;;  %v11526_v40 = vadd.f32 %v5057_v9, %v5011_v14 }
 0x5d4   : > { %v5081_v31 = vadd.f32 %v5080_v60, %v5034_v13 }
 0x5d6   : > { %5285 = vmatmul.f32.gmra.mxu0 %v4825_v7  ;;  %v5002_v7 = vadd.f32 %v11495_v47, %v4937_v29 }
 0x5d7   : > { %6697 = vmatmul.msk.f32.gmra.mxu2 %vm4941_vm8, %v11433_v6  ;;  %v11547_v6 = vpop.f32.mrf.mxu3  ;;  %v11551_v44 = vpop.f32.mrf.mxu1 }
 0x5d8   : > { %v5049_v19 = vadd.f32 %v11505_v25, %v5002_v7 }
 0x5da   : > { %v5060_v1 = vpop.f32.mrf.mxu2 }
 0x5db   : > { %v5083_v63 = vpop.f32.mrf.mxu0  ;;  %v11531_v62 = vadd.f32 %v5060_v1, %v5014_v42 }
 0x5dc   : > { %v5084_v39 = vadd.f32 %v5083_v63, %v5037_v34 }
 0x5de   : > { %5288 = vmatmul.f32.gmra.mxu0 %v4826_v22 }
 0x5df   : > { %6698 = vmatmul.msk.f32.gmra.mxu2 %vm4941_vm8, %v11451_v46  ;;  %v11559_v45 = vpop.f32.mrf.mxu3 }
 0x5e2   : > { %v5127_v20 = vpop.f32.mrf.mxu2 }
 0x5e3   : > { %v5086_v50 = vpop.f32.mrf.mxu0  ;;  %v11535_v32 = vadd.f32 %v5127_v20, %v5081_v31 }
 0x5e4   : > { %v5087_v26 = vadd.f32 %v5086_v50, %v5040_v17  ;;  %v11602_v17 = vperm.slane %v11515_v33, 1  ;;  %v5677_v50 = vld [vmem:[%s12325_s6 + $0x60] sm:$0xff]  ;;  %v5676_v33 = vld [vmem:[%s12325_s6 + $0x58] sm:$0xff] }
 0x5e6   : > { %5291 = vmatmul.f32.gmra.mxu0 %v4827_v3  ;;  %v5005_v3 = vadd.f32 %v11500_v0, %v4937_v29  ;;  %v5680_v29 = vld [vmem:[%s12325_s6 + $0x78] sm:$0xff] }
 0x5e7   : > { %6699 = vmatmul.msk.f32.gmra.mxu2 %vm4941_vm8, %v11464_v12  ;;  %v11561_v12 = vpop.f32.mrf.mxu1  ;;  %v11568_v52 = vpop.f32.mrf.mxu3  ;;  %5890 = vmatpush.msrb.mxu1 %v5680_v29 }
 0x5e8   : > { %v5052_v54 = vadd.f32 %v11510_v35, %v5005_v3  ;;  %v5181_v3 = vadd.f32 %v11561_v12, %v11602_v17 }
 0x5e9   : > { %5891 = vmatpush.msrb.mxu1 %v5679_v10 }
 0x5ea   : > { %v5130_v58 = vpop.f32.mrf.mxu2 }
 0x5eb   : > { %v5089_v53 = vpop.f32.mrf.mxu0  ;;  %v11544_v49 = vadd.f32 %v5130_v58, %v5084_v39  ;;  %v5175_v58 = vadd.f32 %v11539_v18, %v11602_v17  ;;  %v5674_v18 = vld [vmem:[%s12325_s6 + $0x48] sm:$0xff] }
 0x5ec   : > { %v5090_v37 = vadd.f32 %v5089_v53, %v5043_v28  ;;  %v5683_v53 = vld [vmem:[%s12325_s6 + $0x90] sm:$0xff] }
 0x5ed   : > { %v5222_v59 = vadd.f32 %v11537_v57, %v5175_v58  ;;  %5935 = vmatpush.msrb.mxu3 %v5683_v53  ;;  %v5178_v57 = vadd.f32 %v11551_v44, %v11602_v17  ;;  %v5672_v44 = vld [vmem:[%s12325_s6 + $0x38] sm:$0xff] }
 0x5ee   : > { %5294 = vmatmul.f32.gmra.mxu0 %v11485_v24 }
 0x5ef   : > { %6700 = vmatmul.msk.f32.gmra.mxu2 %vm4941_vm8, %v11471_v51  ;;  %v11572_v2 = vpop.f32.mrf.mxu1  ;;  %v11580_v35 = vpop.f32.mrf.mxu3 }
 0x5f2   : > { %v5133_v4 = vpop.f32.mrf.mxu2 }
 0x5f3   : > { %v5092_v61 = vpop.f32.mrf.mxu0  ;;  %v11554_v46 = vadd.f32 %v5133_v4, %v5087_v26 }
 0x5f4   : > { %v5093_v56 = vadd.f32 %v5092_v61, %v5046_v36  ;;  %v5673_v61 = vld [vmem:[%s12325_s6 + $0x40] sm:$0xff] }
 0x5f7   : > { %6701 = vmatmul.msk.f32.gmra.mxu2 %vm4941_vm8, %v11480_v27  ;;  %v5186_v55 = vpop.f32.mrf.mxu1  ;;  %v11588_v13 = vpop.f32.mrf.mxu3  ;;  %vm12938_vm8 = vmmov %vm12937_vm6 }
 0x5fa   : > { %v5136_v22 = vpop.f32.mrf.mxu2 }
 0x5fb   : > { %v5095_v23 = vpop.f32.mrf.mxu0  ;;  %v11564_v51 = vadd.f32 %v5136_v22, %v5090_v37  ;;  %v5675_v37 = vld [vmem:[%s12325_s6 + $0x50] sm:$0xff] }
 0x5fc   : > { %v5096_v16 = vadd.f32 %v5095_v23, %v5049_v19  ;;  %v5225_v23 = vadd.f32 %v11547_v6, %v5178_v57 }
 0x5ff   : > { %v5189_v9 = vpop.f32.mrf.mxu1  ;;  %v5239_v34 = vpop.f32.mrf.mxu3 }
 0x602   : > { %v5139_v24 = vpop.f32.mrf.mxu2 }
 0x603   : > { %v5098_v27 = vpop.f32.mrf.mxu0  ;;  %v11570_v21 = vadd.f32 %v5139_v24, %v5093_v56  ;;  %v5187_v24 = vadd.f32 %v5186_v55, %v11602_v17  ;;  %v5670_v55 = vld [vmem:[%s12325_s6 + $0x28] sm:$0xff] }
 0x604   : > { %v5099_v47 = vadd.f32 %v5098_v27, %v5052_v54  ;;  %v5184_v54 = vadd.f32 %v11572_v2, %v11602_v17  ;;  %v5190_v27 = vadd.f32 %v5189_v9, %v11602_v17 }
 0x607   : > { %v5192_v42 = vpop.f32.mrf.mxu1  ;;  %v11607_v26 = vpop.f32.mrf.mxu3 }
 0x608   : > { %v5193_v43 = vadd.f32 %v5192_v42, %v11602_v17 }
 0x60a   : > { %v5142_v25 = vpop.f32.mrf.mxu2 }
 0x60b   : > { %v5101_v30 = vpop.f32.mrf.mxu0  ;;  %v11577_v38 = vadd.f32 %v5142_v25, %v5096_v16 }
 0x60c   : > { %v5102_v0 = vadd.f32 %v5101_v30, %v11521_v8  ;;  %v5228_v30 = vadd.f32 %v11559_v45, %v5181_v3 }
 0x60f   : > { %v5195_v20 = vpop.f32.mrf.mxu1  ;;  %v5245_v22 = vpop.f32.mrf.mxu3 }
 0x610   : > { %v5196_v12 = vadd.f32 %v5195_v20, %v11602_v17 }
 0x612   : > { %v5145_v11 = vpop.f32.mrf.mxu2  ;;  %v11684_v20 = vadd.f32 %v11607_v26, %v5196_v12 }
 0x613   : > { %v5104_v5 = vpop.f32.mrf.mxu0  ;;  %v11585_v41 = vadd.f32 %v5145_v11, %v5099_v47 }
 0x614   : > { %v5105_v14 = vadd.f32 %v5104_v5, %v11526_v40  ;;  %v5678_v40 = vld [vmem:[%s12325_s6 + $0x68] sm:$0xff]  ;;  %v11661_v5 = vadd.f32 %v11580_v35, %v5187_v24 }
 0x615   : > { %5892 = vmatpush.msrb.mxu1 %v5678_v40 }
 0x617   : > { %5893 = vmatpush.msrb.mxu1 %v5677_v50  ;;  %v5198_v56 = vpop.f32.mrf.mxu1 }
 0x618   : > { %v5199_v10 = vadd.f32 %v5198_v56, %v11602_v17 }
 0x619   : > { %5894 = vmatpush.msrb.mxu1 %v5676_v33 }
 0x61a   : > { %v5148_v60 = vpop.f32.mrf.mxu2 }
 0x61b   : > { %v5107_v31 = vpop.f32.mrf.mxu0  ;;  %v11590_v8 = vadd.f32 %v5148_v60, %v5102_v0  ;;  %5895 = vmatpush.msrb.mxu1 %v5675_v37  ;;  %v11654_v0 = vadd.f32 %v11568_v52, %v5184_v54  ;;  %v5681_v52 = vld [vmem:[%s12325_s6 + $0x80] sm:$0xff] }
 0x61c   : > { %v5108_v15 = vadd.f32 %v5107_v31, %v11531_v62  ;;  %v5669_v31 = vld [vmem:[%s12325_s6 + $0x20] sm:$0xff] }
 0x61d   : > { %5896 = vmatpush.msrb.mxu1 %v5674_v18  ;;  %v5667_v18 = vld [vmem:[%s12325_s6 + $0x10] sm:$0xff] }
 0x61f   : > { %5897 = vmatpush.msrb.mxu1 %v5673_v61  ;;  %v5201_v45 = vpop.f32.mrf.mxu1 }
 0x620   : > { %v5202_v40 = vadd.f32 %v5201_v45, %v11602_v17 }
 0x621   : > { %5898 = vmatpush.msrb.mxu1 %v5672_v44 }
 0x622   : > { %v5151_v1 = vpop.f32.mrf.mxu2 }
 0x623   : > { %v5268_v63 = vpop.f32.mrf.mxu0  ;;  %v11593_v39 = vadd.f32 %v5151_v1, %v5105_v14  ;;  %v11666_v14 = vadd.f32 %v5239_v34, %v5193_v43 }
 0x624   : > { %v5269_v36 = vadd.f32 %v5268_v63, %v5222_v59  ;;  %v11692_v59 = vadd.f32 %v5245_v22, %v5199_v10 }
 0x62a   : > { %v5154_v62 = vpop.f32.mrf.mxu2 }
 0x62b   : > { %v5271_v48 = vpop.f32.mrf.mxu0  ;;  %v11609_v28 = vadd.f32 %v5154_v62, %v5108_v15  ;;  %v5248_v15 = vpop.f32.mrf.mxu3  ;;  %v5668_v62 = vld [vmem:[%s12325_s6 + $0x18] sm:$0xff] }
 0x62c   : > { %v5272_v16 = vadd.f32 %v5271_v48, %v5225_v23  ;;  %v11694_v17 = vadd.f32 %v5248_v15, %v5202_v40 }
 0x632   : > { %v5315_v4 = vpop.f32.mrf.mxu2 }
 0x633   : > { %v11629_v7 = vpop.f32.mrf.mxu0  ;;  %v5316_v19 = vadd.f32 %v5315_v4, %v5269_v36 }
 0x635   : > { %7115 = vtanh.f32 %v5316_v19 }
 0x636   : > { %7117 = vtanh.f32 %v11535_v32  ;;  %v5671_v32 = vld [vmem:[%s12325_s6 + $0x30] sm:$0xff] }
 0x637   : > { %7119 = vtanh.f32 %v11544_v49  ;;  %v11664_v49 = vadd.f32 %v11588_v13, %v5190_v27  ;;  %5899 = vmatpush.msrb.mxu1 %v5671_v32 }
 0x638   : > { %7121 = vtanh.f32 %v11554_v46  ;;  %v5682_v46 = vld [vmem:[%s12325_s6 + $0x88] sm:$0xff] }
 0x639   : > { %5936 = vmatpush.msrb.mxu3 %v5682_v46  ;;  %5900 = vmatpush.msrb.mxu1 %v5670_v55 }
 0x63a   : > { %v5318_v47 = vpop.f32.mrf.mxu2 }
 0x63b   : > { %v7116_v6 = vpop.eup %7115  ;;  %v11650_v2 = vpop.f32.mrf.mxu0  ;;  %v5319_v25 = vadd.f32 %v5318_v47, %v5272_v16  ;;  %5937 = vmatpush.msrb.mxu3 %v5681_v52  ;;  %5901 = vmatpush.msrb.mxu1 %v5669_v31 }
 0x63c   : > { %v5385_v29 = vrot.slane %v7116_v6, 6  ;;  %v7118_v11 = vpop.eup %7117  ;;  %v5278_v47 = vadd.f32 %v11650_v2, %v11654_v0  ;;  %v5665_v6 = vld [vmem:[%s12325_s6] sm:$0xff] }
 0x63d   : > { %7123 = vtanh.f32 %v5319_v25  ;;  %v7120_v50 = vpop.eup %7119  ;;  %5902 = vmatpush.msrb.mxu1 %v5668_v62 }
 0x63e   : > { %v5395_v9 = vsel %vm761_vm3, %v7118_v11, %v5385_v29  ;;  %v5396_v35 = vsel %vm2683_vm12, %v7118_v11, %v5385_v29  ;;  %v5398_v13 = vsel %vm762_vm4, %v7118_v11, %v5385_v29  ;;  %v5400_v60 = vsel %vm2688_vm13, %v5385_v29, %v7118_v11  ;;  %v11690_v37 = vpop.eup %7121 }
 0x63f   : > { %v5397_v42 = vrot.slane %v5396_v35, 2  ;;  %v5399_v34 = vrot.slane %v5398_v13, 4  ;;  %v5401_v1 = vrot.slane %v5400_v60, 6  ;;  %v6702_v63 = vrot.slane %v5395_v9, 9  ;;  %5903 = vmatpush.msrb.mxu1 %v5667_v18 }
 0x640   : > { %7125 = vtanh.f32 %v11564_v51  ;;  %v5275_v51 = vadd.f32 %v11629_v7, %v5228_v30  ;;  %v5666_v7 = vld [vmem:[%s12325_s6 + $0x8] sm:$0xff] }
 0x641   : > { %v6703_v48 = vrot.slane %v5397_v42, 9  ;;  %v6704_v58 = vrot.slane %v5399_v34, 9  ;;  %v6705_v33 = vrot.slane %v5401_v1, 9  ;;  %v5625_v53 = vadd.f32 %v6702_v63, %v5395_v9  ;;  %5904 = vmatpush.msrb.mxu1 %v5666_v7 }
 0x642   : > { %7127 = vtanh.f32 %v11570_v21  ;;  %v5321_v26 = vpop.f32.mrf.mxu2 }
 0x643   : > { %v7124_v36 = vpop.eup %7123  ;;  %7129 = vtanh.f32 %v11577_v38  ;;  %v5626_v4 = vadd.f32 %v6703_v48, %v5397_v42  ;;  %v5627_v61 = vadd.f32 %v6704_v58, %v5399_v34  ;;  %v5628_v56 = vadd.f32 %v6705_v33, %v5401_v1  ;;  %v11702_v19 = vpop.f32.mrf.mxu0  ;;  %5905 = vmatpush.msrb.mxu1 %v5665_v6 }
 0x644   : > { %v5725_v57 = vperm.slane %v5625_v53, 0  ;;  %v5726_v22 = vperm.slane %v5625_v53, 2  ;;  %v5386_v23 = vrot.slane %v7124_v36, 6  ;;  %v5322_v21 = vadd.f32 %v5321_v26, %v5275_v51 }
 0x645   : > { %v5727_v16 = vperm.slane %v5626_v4, 0  ;;  %v5728_v3 = vperm.slane %v5626_v4, 2  ;;  %v5729_v54 = vperm.slane %v5627_v61, 0  ;;  %v5730_v24 = vperm.slane %v5627_v61, 2 }
 0x646   : > { %v11707_v38 = vpop.eup %7125  ;;  %v5731_v27 = vperm.slane %v5628_v56, 0  ;;  %v5402_v44 = vsel %vm761_vm3, %v7120_v50, %v5386_v23  ;;  %v5403_v32 = vsel %vm2683_vm12, %v7120_v50, %v5386_v23  ;;  %v5405_v30 = vsel %vm762_vm4, %v7120_v50, %v5386_v23 }
 0x647   : > { %v5805_v43 = vsel %vm3797_vm14, %v5727_v16, %v5725_v57  ;;  %v5812_v12 = vsel %vm3797_vm14, %v5728_v3, %v5726_v22  ;;  %v5404_v25 = vrot.slane %v5403_v32, 2  ;;  %v5406_v0 = vrot.slane %v5405_v30, 4 }
 0x648   : > { %v11719_v29 = vpop.eup %7127  ;;  %v5813_v2 = vsel %vm3799_vm15, %v5730_v24, %v5812_v12  ;;  %v5407_v55 = vsel %vm2688_vm13, %v5386_v23, %v7120_v50  ;;  %v6706_v11 = vrot.slane %v5402_v44, 9  ;;  %7131 = vtanh.f32 %v5322_v21 }
 0x649   : > { %v11723_v45 = vpop.eup %7129  ;;  %v5408_v46 = vrot.slane %v5407_v55, 6  ;;  %v6707_v52 = vrot.slane %v5404_v25, 9  ;;  %v5806_v9 = vsel %vm3799_vm15, %v5729_v54, %v5805_v43  ;;  %7133 = vtanh.f32 %v11585_v41 }
 0x64a   : > { %v5732_v35 = vperm.slane %v5628_v56, 2  ;;  %v6708_v13 = vrot.slane %v5406_v0, 9  ;;  %v5629_v60 = vadd.f32 %v6706_v11, %v5402_v44  ;;  %v5324_v31 = vpop.f32.mrf.mxu2  ;;  %v5807_v63 = vsel %vm3801_vm0, %v5731_v27, %v5806_v9 }
 0x64b   : > { %v6709_v15 = vrot.slane %v5408_v46, 9  ;;  %v5630_v42 = vadd.f32 %v6707_v52, %v5404_v25  ;;  %v5283_v34 = vpop.f32.mrf.mxu0  ;;  %v5325_v1 = vadd.f32 %v5324_v31, %v5278_v47  ;;  %v5281_v7 = vadd.f32 %v11702_v19, %v11661_v5 }
 0x64c   : > { %v5631_v10 = vadd.f32 %v6708_v13, %v5406_v0  ;;  %v5733_v40 = vperm.slane %v5629_v60, 0  ;;  %v5734_v62 = vperm.slane %v5629_v60, 2  ;;  %v5814_v50 = vsel %vm3801_vm0, %v5732_v35, %v5813_v2 }
 0x64d   : > { %v5736_v48 = vperm.slane %v5630_v42, 2  ;;  %7135 = vtanh.f32 %v5325_v1  ;;  %v5632_v58 = vadd.f32 %v6709_v15, %v5408_v46  ;;  %v5735_v33 = vperm.slane %v5630_v42, 0 }
 0x64e   : > { %v5738_v41 = vperm.slane %v5631_v10, 2  ;;  %v5737_v53 = vperm.slane %v5631_v10, 0  ;;  %v5808_v51 = vsel %vm941_vm7, %v5733_v40, %v5807_v63  ;;  %v5815_v26 = vsel %vm941_vm7, %v5734_v62, %v5814_v50  ;;  %v7132_v18 = vpop.eup %7131 }
 0x64f   : > { %v5739_v36 = vperm.slane %v5632_v58, 0  ;;  %v5809_v4 = vsel %vm3804_vm1, %v5735_v33, %v5808_v51  ;;  %v5740_v61 = vperm.slane %v5632_v58, 2  ;;  %v5816_v56 = vsel %vm3804_vm1, %v5736_v48, %v5815_v26  ;;  %v11733_v57 = vpop.eup %7133 }
 0x650   : > { %7137 = vtanh.f32 %v11590_v8  ;;  %v5387_v22 = vrot.slane %v7132_v18, 6  ;;  %v5810_v23 = vsel %vm3806_vm2, %v5737_v53, %v5809_v4  ;;  %v5817_v21 = vsel %vm3806_vm2, %v5738_v41, %v5816_v56 }
 0x651   : > { %7139 = vtanh.f32 %v11593_v39  ;;  %v5811_v16 = vsel %vm3808_vm5, %v5739_v36, %v5810_v23  ;;  %v5818_v3 = vsel %vm3808_vm5, %v5740_v61, %v5817_v21  ;;  %v5284_v43 = vadd.f32 %v5283_v34, %v11664_v49 }
 0x652   : > { %v5409_v54 = vsel %vm761_vm3, %v11690_v37, %v5387_v22  ;;  %v5410_v8 = vsel %vm2683_vm12, %v11690_v37, %v5387_v22  ;;  %v5412_v24 = vsel %vm762_vm4, %v11690_v37, %v5387_v22  ;;  %v5414_v27 = vsel %vm2688_vm13, %v5387_v22, %v11690_v37  ;;  %v5327_v39 = vpop.f32.mrf.mxu2  ;;  %5906 = vmatmul.f32.vlgmr.msrb.gmra.mxu1 %v5811_v16 }
 0x653   : > { %v7136_v47 = vpop.eup %7135  ;;  %v5411_v5 = vrot.slane %v5410_v8, 2  ;;  %v5413_v19 = vrot.slane %v5412_v24, 4  ;;  %v5415_v44 = vrot.slane %v5414_v27, 6  ;;  %v6710_v32 = vrot.slane %v5409_v54, 9  ;;  %v5286_v6 = vpop.f32.mrf.mxu0  ;;  %6742 = vmatmul.msk.f32.vlgmr.msrb.gmra.mxu3 %vm12936_vm11, %v5818_v3 }
 0x654   : > { %7141 = vtanh.f32 %v11609_v28  ;;  %v5388_v12 = vrot.slane %v7136_v47, 6  ;;  %v5328_v25 = vadd.f32 %v5327_v39, %v5281_v7  ;;  %v5287_v13 = vadd.f32 %v5286_v6, %v11666_v14 }
 0x655   : > { %v6711_v30 = vrot.slane %v5411_v5, 9  ;;  %v6712_v2 = vrot.slane %v5413_v19, 9  ;;  %v6713_v0 = vrot.slane %v5415_v44, 9  ;;  %v11754_v37 = vadd.f32 %v6710_v32, %v5409_v54 }
 0x656   : > { %v11756_v55 = vpop.eup %7137  ;;  %v5416_v11 = vsel %vm761_vm3, %v11707_v38, %v5388_v12  ;;  %v5417_v46 = vsel %vm2683_vm12, %v11707_v38, %v5388_v12  ;;  %v5419_v28 = vsel %vm762_vm4, %v11707_v38, %v5388_v12  ;;  %7143 = vtanh.f32 %v5328_v25 }
 0x657   : > { %v11764_v49 = vpop.eup %7139  ;;  %v11766_v52 = vadd.f32 %v6711_v30, %v5411_v5  ;;  %v11768_v9 = vadd.f32 %v6712_v2, %v5413_v19  ;;  %v11770_v35 = vadd.f32 %v6713_v0, %v5415_v44  ;;  %v5741_v60 = vperm.slane %v11754_v37, 0 }
 0x658   : > { %v5418_v31 = vrot.slane %v5417_v46, 2  ;;  %v5420_v15 = vrot.slane %v5419_v28, 4  ;;  %v6714_v42 = vrot.slane %v5416_v11, 9  ;;  %v5742_v34 = vperm.slane %v11754_v37, 2 }
 0x659   : > { %v5743_v1 = vperm.slane %v11766_v52, 0  ;;  %v5744_v63 = vperm.slane %v11766_v52, 2  ;;  %v5745_v10 = vperm.slane %v11768_v9, 0  ;;  %v5746_v62 = vperm.slane %v11768_v9, 2 }
 0x65a   : > { %v11778_v40 = vpop.eup %7141  ;;  %v5747_v50 = vperm.slane %v11770_v35, 0  ;;  %v6715_v14 = vrot.slane %v5418_v31, 9  ;;  %v11782_v48 = vadd.f32 %v6714_v42, %v5416_v11  ;;  %v5330_v58 = vpop.f32.mrf.mxu2  ;;  %v5421_v53 = vsel %vm2688_vm13, %v5388_v12, %v11707_v38 }
 0x65b   : > { %v5289_v33 = vpop.f32.mrf.mxu0  ;;  %v5331_v41 = vadd.f32 %v5330_v58, %v5284_v43  ;;  %v6716_v51 = vrot.slane %v5420_v15, 9  ;;  %v5819_v26 = vsel %vm3797_vm14, %v5743_v1, %v5741_v60  ;;  %v5748_v36 = vperm.slane %v11770_v35, 2 }
 0x65c   : > { %v7144_v18 = vpop.eup %7143  ;;  %v5750_v4 = vperm.slane %v11782_v48, 2  ;;  %v5422_v61 = vrot.slane %v5421_v53, 6  ;;  %v11789_v56 = vadd.f32 %v6715_v14, %v5418_v31  ;;  %v11792_v23 = vadd.f32 %v5289_v33, %v11684_v20 }
 0x65d   : > { %v5389_v22 = vrot.slane %v7144_v18, 6  ;;  %7145 = vtanh.f32 %v5331_v41  ;;  %v11794_v21 = vadd.f32 %v6716_v51, %v5420_v15  ;;  %v5749_v38 = vperm.slane %v11782_v48, 0 }
 0x65e   : > { %v6717_v7 = vrot.slane %v5422_v61, 9  ;;  %v5751_v16 = vperm.slane %v11789_v56, 0  ;;  %v5820_v3 = vsel %vm3799_vm15, %v5745_v10, %v5819_v26  ;;  %v5752_v6 = vperm.slane %v11789_v56, 2 }
 0x65f   : > { %v5423_v54 = vsel %vm761_vm3, %v11719_v29, %v5389_v22  ;;  %v5424_v8 = vsel %vm2683_vm12, %v11719_v29, %v5389_v22  ;;  %v5426_v20 = vsel %vm762_vm4, %v11719_v29, %v5389_v22  ;;  %v5428_v24 = vsel %vm2688_vm13, %v5389_v22, %v11719_v29 }
 0x660   : > { %v5425_v27 = vrot.slane %v5424_v8, 2  ;;  %v5427_v39 = vrot.slane %v5426_v20, 4  ;;  %v5429_v47 = vrot.slane %v5428_v24, 6  ;;  %v6718_v5 = vrot.slane %v5423_v54, 9 }
 0x661   : > { %v11807_v19 = vadd.f32 %v6717_v7, %v5422_v61  ;;  %v5753_v44 = vperm.slane %v11794_v21, 0  ;;  %v5821_v32 = vsel %vm3801_vm0, %v5747_v50, %v5820_v3  ;;  %v5754_v60 = vperm.slane %v11794_v21, 2 }
 0x662   : > { %v6719_v43 = vrot.slane %v5425_v27, 9  ;;  %v6720_v12 = vrot.slane %v5427_v39, 9  ;;  %v6721_v25 = vrot.slane %v5429_v47, 9  ;;  %v11812_v30 = vadd.f32 %v6718_v5, %v5423_v54  ;;  %v5333_v2 = vpop.f32.mrf.mxu2 }
 0x663   : > { %v7146_v0 = vpop.eup %7145  ;;  %v5292_v29 = vpop.f32.mrf.mxu0  ;;  %v5334_v11 = vadd.f32 %v5333_v2, %v5287_v13  ;;  %v5755_v46 = vperm.slane %v11807_v19, 0  ;;  %v5822_v28 = vsel %vm941_vm7, %v5749_v38, %v5821_v32  ;;  %v5756_v1 = vperm.slane %v11807_v19, 2 }
 0x664   : > { %v11817_v31 = vadd.f32 %v6719_v43, %v5425_v27  ;;  %v11819_v15 = vadd.f32 %v6720_v12, %v5427_v39  ;;  %v11821_v42 = vadd.f32 %v6721_v25, %v5429_v47  ;;  %v5757_v10 = vperm.slane %v11812_v30, 0 }
 0x665   : > { %v5758_v50 = vperm.slane %v11812_v30, 2  ;;  %v5390_v14 = vrot.slane %v7146_v0, 6  ;;  %7147 = vtanh.f32 %v5334_v11  ;;  %v11830_v41 = vadd.f32 %v5292_v29, %v11692_v59 }
 0x666   : > { %v5759_v13 = vperm.slane %v11817_v31, 0  ;;  %v5760_v58 = vperm.slane %v11817_v31, 2  ;;  %v5761_v33 = vperm.slane %v11819_v15, 0  ;;  %v5762_v53 = vperm.slane %v11819_v15, 2 }
 0x667   : > { %v5763_v51 = vperm.slane %v11821_v42, 0  ;;  %v5430_v26 = vsel %vm761_vm3, %v11723_v45, %v5390_v14  ;;  %v5431_v18 = vsel %vm2683_vm12, %v11723_v45, %v5390_v14  ;;  %v5433_v56 = vsel %vm762_vm4, %v11723_v45, %v5390_v14 }
 0x668   : > { %v5432_v61 = vrot.slane %v5431_v18, 2  ;;  %v6722_v22 = vrot.slane %v5430_v26, 9  ;;  %v5823_v21 = vsel %vm3804_vm1, %v5751_v16, %v5822_v28  ;;  %v5434_v7 = vrot.slane %v5433_v56, 4 }
 0x669   : > { %v5824_v59 = vsel %vm3806_vm2, %v5753_v44, %v5823_v21  ;;  %v5826_v38 = vsel %vm3797_vm14, %v5744_v63, %v5742_v34  ;;  %v5435_v3 = vsel %vm2688_vm13, %v5390_v14, %v11723_v45  ;;  %v5764_v37 = vperm.slane %v11821_v42, 2 }
 0x66a   : > { %v6723_v54 = vrot.slane %v5432_v61, 9  ;;  %v11849_v8 = vadd.f32 %v6722_v22, %v5430_v26  ;;  %v5825_v20 = vsel %vm3808_vm5, %v5755_v46, %v5824_v59  ;;  %v5827_v16 = vsel %vm3799_vm15, %v5746_v62, %v5826_v38  ;;  %v5336_v24 = vpop.f32.mrf.mxu2 }
 0x66b   : > { %v7148_v27 = vpop.eup %7147  ;;  %5909 = vmatmul.f32.gmra.mxu1 %v5825_v20  ;;  %v5828_v52 = vsel %vm3801_vm0, %v5748_v36, %v5827_v16  ;;  %v5337_v45 = vadd.f32 %v5336_v24, %v11792_v23  ;;  %v5436_v34 = vrot.slane %v5435_v3, 6  ;;  %v6724_v62 = vrot.slane %v5434_v7, 9  ;;  %v5295_v5 = vpop.f32.mrf.mxu0 }
 0x66c   : > { %v5766_v63 = vperm.slane %v11849_v8, 2  ;;  %v5391_v39 = vrot.slane %v7148_v27, 6  ;;  %v5829_v9 = vsel %vm941_vm7, %v5750_v4, %v5828_v52  ;;  %v11865_v44 = vadd.f32 %v6723_v54, %v5432_v61 }
 0x66d   : > { %v5830_v47 = vsel %vm3804_vm1, %v5752_v6, %v5829_v9  ;;  %7149 = vtanh.f32 %v5337_v45  ;;  %v6725_v19 = vrot.slane %v5436_v34, 9  ;;  %v5296_v25 = vadd.f32 %v5295_v5, %v11694_v17 }
 0x66e   : > { %v5437_v35 = vsel %vm761_vm3, %v11733_v57, %v5391_v39  ;;  %v5438_v36 = vsel %vm2683_vm12, %v11733_v57, %v5391_v39  ;;  %v5440_v23 = vsel %vm762_vm4, %v11733_v57, %v5391_v39  ;;  %v5442_v48 = vsel %vm2688_vm13, %v5391_v39, %v11733_v57 }
 0x66f   : > { %v5439_v4 = vrot.slane %v5438_v36, 2  ;;  %v5441_v32 = vrot.slane %v5440_v23, 4  ;;  %v5443_v6 = vrot.slane %v5442_v48, 6  ;;  %v6726_v43 = vrot.slane %v5437_v35, 9 }
 0x670   : > { %v5831_v12 = vsel %vm3806_vm2, %v5754_v60, %v5830_v47  ;;  %v11877_v2 = vadd.f32 %v6724_v62, %v5434_v7  ;;  %v11879_v0 = vadd.f32 %v6725_v19, %v5436_v34  ;;  %v5765_v26 = vperm.slane %v11849_v8, 0 }
 0x671   : > { %v6727_v29 = vrot.slane %v5439_v4, 9  ;;  %v6728_v11 = vrot.slane %v5441_v32, 9  ;;  %v6729_v46 = vrot.slane %v5443_v6, 9  ;;  %v11881_v28 = vadd.f32 %v6726_v43, %v5437_v35 }
 0x672   : > { %v5832_v14 = vsel %vm3808_vm5, %v5756_v1, %v5831_v12  ;;  %v5339_v57 = vpop.f32.mrf.mxu2  ;;  %v5767_v18 = vperm.slane %v11865_v44, 0  ;;  %v5769_v60 = vperm.slane %v11877_v2, 0  ;;  %v5771_v21 = vperm.slane %v11879_v0, 0 }
 0x673   : > { %v7150_v61 = vpop.eup %7149  ;;  %v11887_v17 = vadd.f32 %v6727_v29, %v5439_v4  ;;  %v11889_v56 = vadd.f32 %v6728_v11, %v5441_v32  ;;  %v11891_v22 = vadd.f32 %v6729_v46, %v5443_v6  ;;  %6743 = vmatmul.msk.f32.gmra.mxu3 %vm12937_vm6, %v5832_v14  ;;  %v5773_v1 = vperm.slane %v11881_v28, 0 }
 0x674   : > { %v5774_v7 = vperm.slane %v11881_v28, 2  ;;  %v5392_v59 = vrot.slane %v7150_v61, 6  ;;  %v5340_v38 = vadd.f32 %v5339_v57, %v11830_v41  ;;  %v5833_v16 = vsel %vm3797_vm14, %v5759_v13, %v5757_v10 }
 0x675   : > { %v5775_v3 = vperm.slane %v11887_v17, 0  ;;  %v5776_v54 = vperm.slane %v11887_v17, 2  ;;  %v5777_v20 = vperm.slane %v11889_v56, 0  ;;  %v5778_v24 = vperm.slane %v11889_v56, 2 }
 0x676   : > { %v5779_v27 = vperm.slane %v11891_v22, 0  ;;  %v5444_v52 = vsel %vm761_vm3, %v11756_v55, %v5392_v59  ;;  %v5445_v41 = vsel %vm2683_vm12, %v11756_v55, %v5392_v59  ;;  %v5447_v34 = vsel %vm762_vm4, %v11756_v55, %v5392_v59 }
 0x677   : > { %v5446_v45 = vrot.slane %v5445_v41, 2  ;;  %v6730_v39 = vrot.slane %v5444_v52, 9  ;;  %7151 = vtanh.f32 %v5340_v38  ;;  %v5780_v9 = vperm.slane %v11891_v22, 2 }
 0x678   : > { %v5448_v62 = vrot.slane %v5447_v34, 4  ;;  %v5834_v10 = vsel %vm3799_vm15, %v5761_v33, %v5833_v16  ;;  %v5768_v13 = vperm.slane %v11865_v44, 2  ;;  %v5770_v35 = vperm.slane %v11877_v2, 2 }
 0x679   : > { %v6731_v47 = vrot.slane %v5446_v45, 9  ;;  %v11919_v5 = vadd.f32 %v6730_v39, %v5444_v52  ;;  %v5835_v19 = vsel %vm3801_vm0, %v5763_v51, %v5834_v10  ;;  %v5840_v23 = vsel %vm3797_vm14, %v5760_v58, %v5758_v50 }
 0x67a   : > { %v5836_v36 = vsel %vm941_vm7, %v5765_v26, %v5835_v19  ;;  %v5342_v33 = vpop.f32.mrf.mxu2  ;;  %v5449_v44 = vsel %vm2688_vm13, %v5392_v59, %v11756_v55  ;;  %v6732_v48 = vrot.slane %v5448_v62, 9  ;;  %v5772_v32 = vperm.slane %v11879_v0, 2 }
 0x67b   : > { %v5837_v4 = vsel %vm3804_vm1, %v5767_v18, %v5836_v36  ;;  %v5841_v51 = vsel %vm3799_vm15, %v5762_v53, %v5840_v23  ;;  %v5343_v6 = vadd.f32 %v5342_v33, %v5296_v25  ;;  %v5450_v50 = vrot.slane %v5449_v44, 6 }
 0x67c   : > { %v5838_v30 = vsel %vm3806_vm2, %v5769_v60, %v5837_v4  ;;  %v5842_v31 = vsel %vm3801_vm0, %v5764_v37, %v5841_v51  ;;  %v11942_v58 = vadd.f32 %v6731_v47, %v5446_v45  ;;  %v5782_v43 = vperm.slane %v11919_v5, 2 }
 0x67d   : > { %v7152_v55 = vpop.eup %7151  ;;  %v5839_v12 = vsel %vm3808_vm5, %v5771_v21, %v5838_v30  ;;  %v5843_v15 = vsel %vm941_vm7, %v5766_v63, %v5842_v31  ;;  %7153 = vtanh.f32 %v5343_v6  ;;  %v6733_v42 = vrot.slane %v5450_v50, 9 }
 0x67e   : > { %v5393_v53 = vrot.slane %v7152_v55, 6  ;;  %5912 = vmatmul.f32.gmra.mxu1 %v5839_v12  ;;  %v5844_v25 = vsel %vm3804_vm1, %v5768_v13, %v5843_v15  ;;  %v11950_v2 = vadd.f32 %v6732_v48, %v5448_v62  ;;  %v5781_v0 = vperm.slane %v11919_v5, 0 }
 0x67f   : > { %v5845_v37 = vsel %vm3806_vm2, %v5770_v35, %v5844_v25  ;;  %v5783_v29 = vperm.slane %v11942_v58, 0  ;;  %v5847_v11 = vsel %vm3797_vm14, %v5775_v3, %v5773_v1  ;;  %v5656_v21 = vadd.f32 %v6733_v42, %v5450_v50 }
 0x680   : > { %v5451_v8 = vsel %vm761_vm3, %v11764_v49, %v5393_v53  ;;  %v5452_v63 = vsel %vm2683_vm12, %v11764_v49, %v5393_v53  ;;  %v5454_v46 = vsel %vm762_vm4, %v11764_v49, %v5393_v53  ;;  %v5456_v14 = vsel %vm2688_vm13, %v5393_v53, %v11764_v49 }
 0x681   : > { %v5453_v57 = vrot.slane %v5452_v63, 2  ;;  %v5455_v26 = vrot.slane %v5454_v46, 4  ;;  %v5457_v18 = vrot.slane %v5456_v14, 6  ;;  %v6734_v60 = vrot.slane %v5451_v8, 9 }
 0x682   : > { %v5846_v61 = vsel %vm3808_vm5, %v5772_v32, %v5845_v37  ;;  %v5785_v1 = vperm.slane %v11950_v2, 0  ;;  %v5848_v59 = vsel %vm3799_vm15, %v5777_v20, %v5847_v11  ;;  %v5787_v49 = vperm.slane %v5656_v21, 0 }
 0x683   : > { %v7154_v38 = vpop.eup %7153  ;;  %v6735_v3 = vrot.slane %v5453_v57, 9  ;;  %v6736_v16 = vrot.slane %v5455_v26, 9  ;;  %v6737_v52 = vrot.slane %v5457_v18, 9  ;;  %v5657_v41 = vadd.f32 %v6734_v60, %v5451_v8  ;;  %6744 = vmatmul.msk.f32.gmra.mxu3 %vm12938_vm8, %v5846_v61 }
 0x684   : > { %v5394_v45 = vrot.slane %v7154_v38, 6  ;;  %v5849_v34 = vsel %vm3801_vm0, %v5779_v27, %v5848_v59  ;;  %v5784_v39 = vperm.slane %v11942_v58, 2  ;;  %v5786_v20 = vperm.slane %v11950_v2, 2 }
 0x685   : > { %v5658_v62 = vadd.f32 %v6735_v3, %v5453_v57  ;;  %v5659_v10 = vadd.f32 %v6736_v16, %v5455_v26  ;;  %v5660_v13 = vadd.f32 %v6737_v52, %v5457_v18  ;;  %v5789_v47 = vperm.slane %v5657_v41, 0 }
 0x686   : > { %v5458_v19 = vsel %vm761_vm3, %v11778_v40, %v5394_v45  ;;  %v5459_v35 = vsel %vm2683_vm12, %v11778_v40, %v5394_v45  ;;  %v5461_v36 = vsel %vm762_vm4, %v11778_v40, %v5394_v45  ;;  %v5790_v23 = vperm.slane %v5657_v41, 2  ;;  %vm12939_vm3 = vmmov %vm12937_vm6 }
 0x687   : > { %v5791_v33 = vperm.slane %v5658_v62, 0  ;;  %v5792_v27 = vperm.slane %v5658_v62, 2  ;;  %v5793_v44 = vperm.slane %v5659_v10, 0  ;;  %v5794_v48 = vperm.slane %v5659_v10, 2  ;;  %vm12940_vm4 = vmmov %vm12939_vm3 }
 0x688   : > { %v5795_v4 = vperm.slane %v5660_v13, 0  ;;  %v5460_v32 = vrot.slane %v5459_v35, 2  ;;  %v5462_v51 = vrot.slane %v5461_v36, 4  ;;  %v5796_v6 = vperm.slane %v5660_v13, 2  ;;  %vm12941_vm12 = vmmov %vm12939_vm3 }
 0x689   : > { %v6738_v30 = vrot.slane %v5458_v19, 9  ;;  %v5850_v31 = vsel %vm941_vm7, %v5781_v0, %v5849_v34  ;;  %v5854_v50 = vsel %vm3797_vm14, %v5776_v54, %v5774_v7  ;;  %v5463_v15 = vsel %vm2688_vm13, %v5394_v45, %v11778_v40 }
 0x68a   : > { %v6739_v58 = vrot.slane %v5460_v32, 9  ;;  %v5851_v55 = vsel %vm3804_vm1, %v5783_v29, %v5850_v31  ;;  %v5855_v12 = vsel %vm3799_vm15, %v5778_v24, %v5854_v50  ;;  %v5464_v17 = vrot.slane %v5463_v15, 6 }
 0x68b   : > { %v5661_v53 = vadd.f32 %v6738_v30, %v5458_v19  ;;  %v5852_v25 = vsel %vm3806_vm2, %v5785_v1, %v5851_v55  ;;  %v5856_v28 = vsel %vm3801_vm0, %v5780_v9, %v5855_v12  ;;  %v6740_v56 = vrot.slane %v5462_v51, 9 }
 0x68c   : > { %v5853_v7 = vsel %vm3808_vm5, %v5787_v49, %v5852_v25  ;;  %v5857_v54 = vsel %vm941_vm7, %v5782_v43, %v5856_v28  ;;  %v5662_v42 = vadd.f32 %v6739_v58, %v5460_v32  ;;  %v5788_v24 = vperm.slane %v5656_v21, 2 }
 0x68d   : > { %5915 = vmatmul.f32.gmra.mxu1 %v5853_v7  ;;  %v5858_v40 = vsel %vm3804_vm1, %v5784_v39, %v5857_v54  ;;  %v6741_v2 = vrot.slane %v5464_v17, 9  ;;  %v5797_v37 = vperm.slane %v5661_v53, 0  ;;  %v5663_v22 = vadd.f32 %v6740_v56, %v5462_v51 }
 0x68e   : > { %v5859_v0 = vsel %vm3806_vm2, %v5786_v20, %v5858_v40  ;;  %v5799_v29 = vperm.slane %v5662_v42, 0  ;;  %v5861_v9 = vsel %vm3797_vm14, %v5791_v33, %v5789_v47  ;;  %v5798_v11 = vperm.slane %v5661_v53, 2 }
 0x68f   : > { %v5860_v8 = vsel %vm3808_vm5, %v5788_v24, %v5859_v0  ;;  %v5664_v5 = vadd.f32 %v6741_v2, %v5464_v17  ;;  %v5862_v43 = vsel %vm3799_vm15, %v5793_v44, %v5861_v9  ;;  %v5801_v63 = vperm.slane %v5663_v22, 0  ;;  %v6139_v0 = vld [vmem:[%s12326_s7 + $0x178] sm:$0xff] }
 0x690   : > { %6745 = vmatmul.msk.f32.gmra.mxu3 %vm12939_vm3, %v5860_v8  ;;  %v5863_v46 = vsel %vm3801_vm0, %v5795_v4, %v5862_v43  ;;  %v5800_v14 = vperm.slane %v5662_v42, 2  ;;  %v5868_v57 = vsel %vm3797_vm14, %v5792_v27, %v5790_v23  ;;  %v5802_v18 = vperm.slane %v5663_v22, 2  ;;  %v6138_v22 = vld [vmem:[%s12326_s7 + $0x170] sm:$0xff]  ;;  %6189 = vmatpush.msra.mxu0 %v6139_v0  ;;  %v6107_v9 = vld [vmem:[%s12326_s7 + $0x78] sm:$0xff]  ;;  %v6137_v8 = vld [vmem:[%s12326_s7 + $0x168] sm:$0xff] }
 0x691   : > { %v5864_v26 = vsel %vm941_vm7, %v5797_v37, %v5863_v46  ;;  %v5869_v60 = vsel %vm3799_vm15, %v5794_v48, %v5868_v57  ;;  %v5803_v61 = vperm.slane %v5664_v5, 0  ;;  %v5804_v16 = vperm.slane %v5664_v5, 2  ;;  %6149 = vmatpush.msra.mxu1 %v6107_v9  ;;  %v6106_v5 = vld [vmem:[%s12326_s7 + $0x70] sm:$0xff]  ;;  %v6125_v0 = vld [vmem:[%s12326_s7 + $0x108] sm:$0xff] }
 0x692   : > { %v5865_v21 = vsel %vm3804_vm1, %v5799_v29, %v5864_v26  ;;  %v5870_v1 = vsel %vm3801_vm0, %v5796_v6, %v5869_v60  ;;  %6190 = vmatpush.msra.mxu0 %v6138_v22  ;;  %v6104_v26 = vld [vmem:[%s12326_s7 + $0x60] sm:$0xff]  ;;  %v6141_v22 = vld [vmem:[%s12326_s7 + $0x188] sm:$0xff]  ;;  %vm6146_vm13 = vcmask 130048   ;;  %vm12942_vm14 = vcmask 523264  }
 0x693   : > { %v5866_v59 = vsel %vm3806_vm2, %v5801_v63, %v5865_v21  ;;  %v5871_v38 = vsel %vm941_vm7, %v5798_v11, %v5870_v1  ;;  %v6105_v63 = vld [vmem:[%s12326_s7 + $0x68] sm:$0xff]  ;;  %6150 = vmatpush.msra.mxu1 %v6106_v5  ;;  %v6103_v1 = vld [vmem:[%s12326_s7 + $0x58] sm:$0xff]  ;;  %vm6089_vm7 = vcmask 916480   ;;  %vm6320_vm15 = vcmask 64512  }
 0x694   : > { %v5867_v3 = vsel %vm3808_vm5, %v5803_v61, %v5866_v59  ;;  %v5872_v52 = vsel %vm3804_vm1, %v5800_v14, %v5871_v38  ;;  %v6136_v14 = vld [vmem:[%s12326_s7 + $0x160] sm:$0xff]  ;;  %6191 = vmatpush.msra.mxu0 %v6137_v8  ;;  %v6135_v61 = vld [vmem:[%s12326_s7 + $0x158] sm:$0xff]  ;;  %v6134_v59 = vld [vmem:[%s12326_s7 + $0x150] sm:$0xff]  ;;  %vm6322_vm0 = vcmask 58368  }
 0x695   : > { %5918 = vmatmul.f32.gmra.mxu1 %v5867_v3  ;;  %v5873_v41 = vsel %vm3806_vm2, %v5802_v18, %v5872_v52  ;;  %v6123_v18 = vld [vmem:[%s12326_s7 + $0xf8] sm:$0xff]  ;;  %v6102_v38 = vld [vmem:[%s12326_s7 + $0x50] sm:$0xff]  ;;  %v6133_v3 = vld [vmem:[%s12326_s7 + $0x148] sm:$0xff] }
 0x696   : > { %v5874_v45 = vsel %vm3808_vm5, %v5804_v16, %v5873_v41  ;;  %6151 = vmatpush.msra.mxu1 %v6105_v63  ;;  %6169 = vmatpush.msra.mxu3 %v6123_v18  ;;  %v6101_v16 = vld [vmem:[%s12326_s7 + $0x48] sm:$0xff]  ;;  %v6241_v18 = vld [vmem:[%s12328_s9 + $0x58] sm:$0xff] }
 0x697   : > { %6192 = vmatpush.msra.mxu0 %v6136_v14  ;;  %v6244_v14 = vld [vmem:[%s12328_s9 + $0x70] sm:$0xff] }
 0x698   : > { %6746 = vmatmul.msk.f32.gmra.mxu3 %vm12940_vm4, %v5874_v45  ;;  %6152 = vmatpush.msra.mxu1 %v6104_v26  ;;  %v6242_v26 = vld [vmem:[%s12328_s9 + $0x60] sm:$0xff] }
 0x699   : > { %6193 = vmatpush.msra.mxu0 %v6135_v61  ;;  %v6239_v61 = vld [vmem:[%s12328_s9 + $0x48] sm:$0xff] }
 0x69a   : > { %6153 = vmatpush.msra.mxu1 %v6103_v1  ;;  %v6237_v1 = vld [vmem:[%s12328_s9 + $0x38] sm:$0xff] }
 0x69b   : > { %6194 = vmatpush.msra.mxu0 %v6134_v59  ;;  %v6236_v59 = vld [vmem:[%s12328_s9 + $0x30] sm:$0xff] }
 0x69c   : > { %6154 = vmatpush.msra.mxu1 %v6102_v38  ;;  %v6235_v38 = vld [vmem:[%s12328_s9 + $0x28] sm:$0xff] }
 0x69d   : > { %6195 = vmatpush.msra.mxu0 %v6133_v3  ;;  %v6234_v3 = vld [vmem:[%s12328_s9 + $0x20] sm:$0xff] }
 0x69e   : > { %6155 = vmatpush.msra.mxu1 %v6101_v16  ;;  %v6233_v16 = vld [vmem:[%s12328_s9 + $0x18] sm:$0xff] }
 0x6cf   : > { %v5907_v49 = vpop.f32.mrf.mxu1 }
 0x6d6   : > { %v5939_v34 = vpop.f32.mrf.mxu3 }
 0x6d7   : > { %v12018_v39 = vadd.f32 %v5939_v34, %v5907_v49 }
 0x6d9   : > { %5994 = vst [vmem:[#allocation1] ss:$9 sm:$0xff] %v12018_v39  ;;  %v5963_v62 = vrot.slane %v12018_v39, 5  ;;  %v5959_v50 = vrot.slane %v12018_v39, 1  ;;  %v5964_v58 = vrot.slane %v12018_v39, 6  ;;  %v5960_v17 = vrot.slane %v12018_v39, 2 }
 0x6da   : > { %v5965_v7 = vrot.slane %v12018_v39, 7  ;;  %v5961_v37 = vrot.slane %v12018_v39, 3  ;;  %v5962_v52 = vrot.slane %v12018_v39, 4 }
 0x6db   : > { %5996 = vst [vmem:[#allocation1 + $0x1] ss:$9 sm:$0xff] %v5963_v62 }
 0x6e8   : > { %v5910_v10 = vpop.f32.mrf.mxu1 }
 0x6f6   : > { %v5942_v13 = vpop.f32.mrf.mxu3 }
 0x6f7   : > { %v12022_v20 = vadd.f32 %v5942_v13, %v5910_v10 }
 0x6f9   : > { %v5967_v47 = vrot.slane %v12022_v20, 2  ;;  %v5972_v19 = vrot.slane %v12022_v20, 7  ;;  %v5968_v12 = vrot.slane %v12022_v20, 3  ;;  %v5969_v56 = vrot.slane %v12022_v20, 4 }
 0x6fa   : > { %v5970_v11 = vrot.slane %v12022_v20, 5  ;;  %v5966_v41 = vrot.slane %v12022_v20, 1  ;;  %v5971_v49 = vrot.slane %v12022_v20, 6 }
 0x6fb   : > { %5998 = vst [vmem:[#allocation1 + $0x2] ss:$9 sm:$0xff] %v5967_v47  ;;  %v5913_v35 = vpop.f32.mrf.mxu1  ;;  %v6122_v47 = vld [vmem:[%s12326_s7 + $0xf0] sm:$0xff] }
 0x6fc   : > { %6000 = vst [vmem:[#allocation1 + $0x3] ss:$9 sm:$0xff] %v5972_v19  ;;  %v6132_v19 = vld [vmem:[%s12326_s7 + $0x140] sm:$0xff]  ;;  %6170 = vmatpush.msra.mxu3 %v6122_v47 }
 0x6fd   : > { %6196 = vmatpush.msra.mxu0 %v6132_v19 }
 0x706   : > { %v5945_v36 = vpop.f32.mrf.mxu3 }
 0x707   : > { %v12026_v23 = vadd.f32 %v5945_v36, %v5913_v35  ;;  %v6099_v35 = vld [vmem:[%s12326_s7 + $0x38] sm:$0xff]  ;;  %v6121_v36 = vld [vmem:[%s12326_s7 + $0xe8] sm:$0xff] }
 0x708   : > { %6171 = vmatpush.msra.mxu3 %v6121_v36  ;;  %v6277_v36 = vld [vmem:[%s12331_s12 + $0x8] sm:$0x3] }
 0x709   : > { %v5976_v33 = vrot.slane %v12026_v23, 4  ;;  %v5977_v15 = vrot.slane %v12026_v23, 5  ;;  %v5973_v42 = vrot.slane %v12026_v23, 1  ;;  %v5978_v24 = vrot.slane %v12026_v23, 6 }
 0x70a   : > { %v5916_v27 = vpop.f32.mrf.mxu1  ;;  %v5974_v43 = vrot.slane %v12026_v23, 2  ;;  %v5979_v46 = vrot.slane %v12026_v23, 7  ;;  %v5975_v34 = vrot.slane %v12026_v23, 3 }
 0x70b   : > { %6002 = vst [vmem:[#allocation1 + $0x4] ss:$9 sm:$0xff] %v5976_v33  ;;  %v6120_v33 = vld [vmem:[%s12326_s7 + $0xe0] sm:$0xff] }
 0x70c   : > { %6172 = vmatpush.msra.mxu3 %v6120_v33  ;;  %v7181_v33 = vmov 0  }
 0x70d   : > { %7000 = vset.pattern.permute.xlu0 %v7181_v33  ;;  %6999 = vset.pattern.permute.xlu2 %v7181_v33 }
 0x712   : > { %v5919_v51 = vpop.f32.mrf.mxu1 }
 0x713   : > { %v5948_v44 = vpop.f32.mrf.mxu3 }
 0x714   : > { %v12029_v48 = vadd.f32 %v5948_v44, %v5916_v27  ;;  %v6131_v27 = vld [vmem:[%s12326_s7 + $0x138] sm:$0xff]  ;;  %v6097_v44 = vld [vmem:[%s12326_s7 + $0x28] sm:$0xff] }
 0x715   : > { %6197 = vmatpush.msra.mxu0 %v6131_v27  ;;  %v7002_v27 = vld [vmem:[%s12329_s10] ss:$0 sm:$0xff] }
 0x716   : > { %v5980_v4 = vrot.slane %v12029_v48, 1  ;;  %v5985_v32 = vrot.slane %v12029_v48, 6  ;;  %v5981_v53 = vrot.slane %v12029_v48, 2  ;;  %v5986_v25 = vrot.slane %v12029_v48, 7 }
 0x717   : > { %v5982_v40 = vrot.slane %v12029_v48, 3  ;;  %v5983_v57 = vrot.slane %v12029_v48, 4  ;;  %v5984_v62 = vrot.slane %v12029_v48, 5 }
 0x718   : > { %6004 = vst [vmem:[#allocation1 + $0x5] ss:$9 sm:$0xff] %v5980_v4  ;;  %v6130_v4 = vld [vmem:[%s12326_s7 + $0x130] sm:$0xff] }
 0x719   : > { %6006 = vst [vmem:[#allocation1 + $0x6] ss:$9 sm:$0xff] %v5985_v32  ;;  %v6096_v32 = vld [vmem:[%s12326_s7 + $0x20] sm:$0xff]  ;;  %6198 = vmatpush.msra.mxu0 %v6130_v4 }
 0x71b   : > { %v5951_v6 = vpop.f32.mrf.mxu3 }
 0x71c   : > { %v12033_v30 = vadd.f32 %v5951_v6, %v5919_v51  ;;  %v6118_v51 = vld [vmem:[%s12326_s7 + $0xd0] sm:$0xff]  ;;  %v6095_v6 = vld [vmem:[%s12326_s7 + $0x18] sm:$0xff] }
 0x71e   : > { %v5989_v31 = vrot.slane %v12033_v30, 3  ;;  %v5990_v28 = vrot.slane %v12033_v30, 4  ;;  %v5991_v2 = vrot.slane %v12033_v30, 5  ;;  %v5987_v60 = vrot.slane %v12033_v30, 1 }
 0x71f   : > { %v5992_v21 = vrot.slane %v12033_v30, 6  ;;  %v5988_v10 = vrot.slane %v12033_v30, 2  ;;  %v5993_v39 = vrot.slane %v12033_v30, 7 }
 0x720   : > { %6008 = vst [vmem:[#allocation1 + $0x7] ss:$9 sm:$0xff] %v5989_v31  ;;  %v6094_v31 = vld [vmem:[%s12326_s7 + $0x10] sm:$0xff] }
 0x727   : > { %v12038_v55 = vld [vmem:[#allocation1] sm:$0xff] }
 0x728   : > { %6011 = vst [vmem:[#allocation1] ss:$9 sm:$0xff] %v5959_v50  ;;  %v6116_v50 = vld [vmem:[%s12326_s7 + $0xc0] sm:$0xff] }
 0x729   : > { %6013 = vst [vmem:[#allocation1 + $0x1] ss:$9 sm:$0xff] %v5964_v58  ;;  %v6129_v58 = vld [vmem:[%s12326_s7 + $0x128] sm:$0xff] }
 0x72a   : > { %6015 = vst [vmem:[#allocation1 + $0x2] ss:$9 sm:$0xff] %v5968_v12  ;;  %v6128_v12 = vld [vmem:[%s12326_s7 + $0x120] sm:$0xff]  ;;  %6199 = vmatpush.msra.mxu0 %v6129_v58 }
 0x72b   : > { %6017 = vst [vmem:[#allocation1 + $0x3] ss:$9 sm:$0xff] %v12026_v23  ;;  %v6098_v23 = vld [vmem:[%s12326_s7 + $0x30] sm:$0xff] }
 0x72c   : > { %6019 = vst [vmem:[#allocation1 + $0x4] ss:$9 sm:$0xff] %v5977_v15  ;;  %v6093_v15 = vld [vmem:[%s12326_s7 + $0x8] sm:$0xff]  ;;  %6200 = vmatpush.msra.mxu0 %v6128_v12 }
 0x72d   : > { %6021 = vst [vmem:[#allocation1 + $0x5] ss:$9 sm:$0xff] %v5981_v53  ;;  %v6115_v53 = vld [vmem:[%s12326_s7 + $0xb8] sm:$0xff] }
 0x72e   : > { %6023 = vst [vmem:[#allocation1 + $0x6] ss:$9 sm:$0xff] %v5986_v25  ;;  %v6127_v25 = vld [vmem:[%s12326_s7 + $0x118] sm:$0xff] }
 0x72f   : > { %6025 = vst [vmem:[#allocation1 + $0x7] ss:$9 sm:$0xff] %v5990_v28  ;;  %v6092_v28 = vld [vmem:[%s12326_s7] sm:$0xff]  ;;  %6201 = vmatpush.msra.mxu0 %v6127_v25 }
 0x736   : > { %v6026_v54 = vld [vmem:[#allocation1] sm:$0xff] }
 0x737   : > { %6027 = vrot.lane.b32.xlu1 %v6026_v54, %s7179_s16  ;;  %6030 = vst [vmem:[#allocation1] ss:$9 sm:$0xff] %v5960_v17  ;;  %v6114_v17 = vld [vmem:[%s12326_s7 + $0xb0] sm:$0xff]  ;;  %v6113_v54 = vld [vmem:[%s12326_s7 + $0xa8] sm:$0xff] }
 0x738   : > { %6032 = vst [vmem:[#allocation1 + $0x1] ss:$9 sm:$0xff] %v5965_v7  ;;  %v6126_v7 = vld [vmem:[%s12326_s7 + $0x110] sm:$0xff] }
 0x739   : > { %6034 = vst [vmem:[#allocation1 + $0x2] ss:$9 sm:$0xff] %v5969_v56  ;;  %v6112_v56 = vld [vmem:[%s12326_s7 + $0xa0] sm:$0xff]  ;;  %6202 = vmatpush.msra.mxu0 %v6126_v7 }
 0x73a   : > { %6036 = vst [vmem:[#allocation1 + $0x3] ss:$9 sm:$0xff] %v5973_v42  ;;  %v6111_v42 = vld [vmem:[%s12326_s7 + $0x98] sm:$0xff] }
 0x73b   : > { %6038 = vst [vmem:[#allocation1 + $0x4] ss:$9 sm:$0xff] %v5978_v24  ;;  %v6110_v24 = vld [vmem:[%s12326_s7 + $0x90] sm:$0xff]  ;;  %6203 = vmatpush.msra.mxu0 %v6125_v0 }
 0x73c   : > { %6040 = vst [vmem:[#allocation1 + $0x5] ss:$9 sm:$0xff] %v5982_v40  ;;  %v6109_v40 = vld [vmem:[%s12326_s7 + $0x88] sm:$0xff] }
 0x73d   : > { %6042 = vst [vmem:[#allocation1 + $0x6] ss:$9 sm:$0xff] %v12033_v30  ;;  %v6117_v30 = vld [vmem:[%s12326_s7 + $0xc8] sm:$0xff] }
 0x73e   : > { %6044 = vst [vmem:[#allocation1 + $0x7] ss:$9 sm:$0xff] %v5991_v2  ;;  %v6108_v2 = vld [vmem:[%s12326_s7 + $0x80] sm:$0xff] }
 0x745   : > { %v6045_v29 = vld [vmem:[#allocation1] sm:$0xff] }
 0x746   : > { %6046 = vrot.lane.b32.xlu2 %v6045_v29, %s7173_s20  ;;  %6049 = vst [vmem:[#allocation1] ss:$9 sm:$0xff] %v5961_v37  ;;  %v6140_v29 = vld [vmem:[%s12326_s7 + $0x180] sm:$0xff] }
 0x747   : > { %6051 = vst [vmem:[#allocation1 + $0x1] ss:$9 sm:$0xff] %v12022_v20  ;;  %v6100_v20 = vld [vmem:[%s12326_s7 + $0x40] sm:$0xff] }
 0x748   : > { %6053 = vst [vmem:[#allocation1 + $0x2] ss:$9 sm:$0xff] %v5970_v11  ;;  %6156 = vmatpush.msra.mxu1 %v6100_v20  ;;  %v6124_v11 = vld [vmem:[%s12326_s7 + $0x100] sm:$0xff] }
 0x749   : > { %6055 = vst [vmem:[#allocation1 + $0x3] ss:$9 sm:$0xff] %v5974_v43  ;;  %6204 = vmatpush.msra.mxu0 %v6124_v11 }
 0x74a   : > { %6057 = vst [vmem:[#allocation1 + $0x4] ss:$9 sm:$0xff] %v5979_v46  ;;  %6157 = vmatpush.msra.mxu1 %v6099_v35 }
 0x74b   : > { %6059 = vst [vmem:[#allocation1 + $0x5] ss:$9 sm:$0xff] %v5983_v57  ;;  %v6243_v57 = vld [vmem:[%s12328_s9 + $0x68] sm:$0xff] }
 0x74c   : > { %6061 = vst [vmem:[#allocation1 + $0x6] ss:$9 sm:$0xff] %v5987_v60  ;;  %6158 = vmatpush.msra.mxu1 %v6098_v23  ;;  %v6240_v60 = vld [vmem:[%s12328_s9 + $0x50] sm:$0xff]  ;;  %v6276_v23 = vld [vmem:[%s12331_s12] sm:$0xff] }
 0x74d   : > { %6063 = vst [vmem:[#allocation1 + $0x7] ss:$9 sm:$0xff] %v5992_v21  ;;  %v6238_v21 = vld [vmem:[%s12328_s9 + $0x40] sm:$0xff] }
 0x74e   : > { %6159 = vmatpush.msra.mxu1 %v6097_v44  ;;  %6280 = vperm.xlu2 %6999, %v6276_v23  }
 0x750   : > { %6160 = vmatpush.msra.mxu1 %v6096_v32  ;;  %v6274_v32 = vld [vmem:[%s12330_s11] sm:$0xff] }
 0x752   : > { %6161 = vmatpush.msra.mxu1 %v6095_v6 }
 0x754   : > { %v6064_v45 = vld [vmem:[#allocation1] sm:$0xff]  ;;  %6162 = vmatpush.msra.mxu1 %v6094_v31 }
 0x755   : > { %6065 = vrot.lane.b32.xlu0 %v6064_v45, %s7180_s28  ;;  %6068 = vst [vmem:[#allocation1] ss:$9 sm:$0xff] %v5962_v52  ;;  %v6232_v52 = vld [vmem:[%s12328_s9 + $0x10] sm:$0xff]  ;;  %v6230_v45 = vld [vmem:[%s12328_s9] sm:$0xff] }
 0x756   : > { %6070 = vst [vmem:[#allocation1 + $0x1] ss:$9 sm:$0xff] %v5966_v41  ;;  %6163 = vmatpush.msra.mxu1 %v6093_v15  ;;  %v6231_v41 = vld [vmem:[%s12328_s9 + $0x8] sm:$0xff] }
 0x757   : > { %6072 = vst [vmem:[#allocation1 + $0x2] ss:$9 sm:$0xff] %v5971_v49  ;;  %v7001_v49 = vld [vmem:[%s12327_s8] ss:$0 sm:$0xff] }
 0x758   : > { %6074 = vst [vmem:[#allocation1 + $0x3] ss:$9 sm:$0xff] %v5975_v34  ;;  %6164 = vmatpush.msra.mxu1 %v6092_v28 }
 0x759   : > { %6076 = vst [vmem:[#allocation1 + $0x4] ss:$9 sm:$0xff] %v12029_v48  ;;  %v6119_v48 = vld [vmem:[%s12326_s7 + $0xd8] sm:$0xff] }
 0x75a   : > { %6078 = vst [vmem:[#allocation1 + $0x5] ss:$9 sm:$0xff] %v5984_v62  ;;  %6173 = vmatpush.msra.mxu3 %v6119_v48  ;;  %6223 = vmatpush.msrb.mxu1 %v6141_v22 }
 0x75b   : > { %6080 = vst [vmem:[#allocation1 + $0x6] ss:$9 sm:$0xff] %v5988_v10 }
 0x75c   : > { %6082 = vst [vmem:[#allocation1 + $0x7] ss:$9 sm:$0xff] %v5993_v39  ;;  %6174 = vmatpush.msra.mxu3 %v6118_v51  ;;  %6224 = vmatpush.msrb.mxu1 %v6140_v29  ;;  %v6275_v51 = vld [vmem:[%s12330_s11 + $0x8] sm:$0x3] }
 0x75d   : > { %6285 = vperm.xlu0 %7000, %v6277_v36  }
 0x75e   : > { %6175 = vmatpush.msra.mxu3 %v6117_v30 }
 0x760   : > { %6176 = vmatpush.msra.mxu3 %v6116_v50 }
 0x762   : > { %6177 = vmatpush.msra.mxu3 %v6115_v53 }
 0x763   : > { %v6083_v13 = vld [vmem:[#allocation1] sm:$0xff] }
 0x764   : > { %6084 = vrot.lane.b32.xlu1 %v6083_v13, %s7174_s21  ;;  %6178 = vmatpush.msra.mxu3 %v6114_v17 }
 0x766   : > { %6179 = vmatpush.msra.mxu3 %v6113_v54 }
 0x768   : > { %6180 = vmatpush.msra.mxu3 %v6112_v56 }
 0x76a   : > { %6181 = vmatpush.msra.mxu3 %v6111_v42 }
 0x76c   : > { %6182 = vmatpush.msra.mxu3 %v6110_v24 }
 0x76e   : > { %6183 = vmatpush.msra.mxu3 %v6109_v40 }
 0x770   : > { %6184 = vmatpush.msra.mxu3 %v6108_v2 }
 0x772   : > { %6254 = vmatpush.msrb.mxu3 %v6244_v14 }
 0x774   : > { %6255 = vmatpush.msrb.mxu3 %v6243_v57 }
 0x776   : > { %6256 = vmatpush.msrb.mxu3 %v6242_v26 }
 0x778   : > { %6257 = vmatpush.msrb.mxu3 %v6241_v18 }
 0x77a   : > { %6258 = vmatpush.msrb.mxu3 %v6240_v60 }
 0x77c   : > { %6259 = vmatpush.msrb.mxu3 %v6239_v61 }
 0x77e   : > { %6260 = vmatpush.msrb.mxu3 %v6238_v21 }
 0x780   : > { %6261 = vmatpush.msrb.mxu3 %v6237_v1 }
 0x782   : > { %6262 = vmatpush.msrb.mxu3 %v6236_v59 }
 0x784   : > { %6263 = vmatpush.msrb.mxu3 %v6235_v38 }
 0x786   : > { %6264 = vmatpush.msrb.mxu3 %v6234_v3 }
 0x788   : > { %6265 = vmatpush.msrb.mxu3 %v6233_v16 }
 0x78a   : > { %6266 = vmatpush.msrb.mxu3 %v6232_v52 }
 0x78c   : > { %6267 = vmatpush.msrb.mxu3 %v6231_v41 }
 0x78e   : > { %6268 = vmatpush.msrb.mxu3 %v6230_v45 }
 0x7a0   : > { %v6047_v8 = vpop.permute.xlu2 %6046 }
 0x7a8   : > { %v6281_v6 = vpop.permute.xlu2 %6280 }
 0x7a9   : > { %v6028_v37 = vpop.permute.xlu1 %6027 }
 0x7aa   : > { %v6087_v9 = vsel %vm4818_vm9, %v12038_v55, %v6028_v37  ;;  %v6088_v5 = vsel %vm12941_vm12, %v6028_v37, %v6047_v8  ;;  %vm6249_vm9 = vcmask 982016  }
 0x7ab   : > { %6165 = vmatmul.f32.vlgmr.msra.gmra.mxu1 %v6087_v9 }
 0x7c7   : > { %v6066_v43 = vpop.permute.xlu0 %6065 }
 0x7c8   : > { %v6090_v63 = vsel %vm6089_vm7, %v6088_v5, %v6066_v43 }
 0x7c9   : > { %6185 = vmatmul.f32.vlgmr.msra.gmra.mxu3 %v6090_v63 }
 0x7cf   : > { %v6286_v50 = vpop.permute.xlu0 %6285 }
 0x7d6   : > { %v6085_v46 = vpop.permute.xlu1 %6084 }
 0x7d7   : > { %v6091_v55 = vsel %vm12942_vm14, %v6066_v43, %v6085_v46  ;;  %6747 = vmatmul.msk.f32.vlgmr.msrb.gmra.mxu1 %vm6146_vm13, %v6085_v46 }
 0x7d8   : > { %6205 = vmatmul.f32.vlgmr.msra.gmra.mxu0 %v6091_v55 }
 0x828   : > { %v6166_v34 = vpop.f32.mrf.mxu1 }
 0x829   : > { %v6167_v10 = vadd.f32 %v7001_v49, %v6166_v34 }
 0x84c   : > { %v6186_v62 = vpop.f32.mrf.mxu3 }
 0x84d   : > { %v6187_v39 = vadd.f32 %v6186_v62, %v6167_v10 }
 0x854   : > { %v6226_v47 = vpop.f32.mrf.mxu1 }
 0x855   : > { %v6206_v13 = vpop.f32.mrf.mxu0 }
 0x856   : > { %v6207_v20 = vadd.f32 %v6206_v13, %v6187_v39 }
 0x858   : > { %v6227_v19 = vadd.f32 %v6226_v47, %v6207_v20 }
 0x85a   : > { %7155 = vtanh.f32 %v6227_v19 }
 0x860   : > { %v7156_v35 = vpop.eup %7155 }
 0x861   : > { %6748 = vmatmul.msk.f32.vlgmr.msrb.gmra.mxu3 %vm6249_vm9, %v7156_v35 }
 0x8e4   : > { %v6270_v44 = vpop.f32.mrf.mxu3 }
 0x8e5   : > { %v6271_v48 = vadd.f32 %v7002_v27, %v6270_v44 }
 0x8e7   : > { %7157 = vtanh.f32 %v6271_v48 }
 0x8ed   : > { %v7158_v4 = vpop.eup %7157 }
 0x8ee   : > { %6749 = vmatpush.xpose.msk.msra.mxu1 %vm4786_vm10, %v7158_v4 }
 0x8f1   : > { %6750 = vmatmul.msk.f32.vlgmr.msra.gmra.mxu1 %vm4786_vm10, %v6274_v32 }
 0x8f9   : > { %6751 = vmatmul.msk.f32.gmra.mxu1 %vm4786_vm10, %v6275_v51 }
 0x96e   : > { %v6314_v30 = vpop.f32.mrf.mxu1 }
 0x96f   : > { %v6315_v31 = vadd.f32 %v6314_v30, %v6281_v6 }
 0x971   : > { %6321 = vst.msk [vmem:[%s480_s27] sm:$0xff] %vm6320_vm15, %v6315_v31  ;;  %v6324_v15 = vsel %vm6320_vm15, %v6315_v31, -inf }
 0x976   : > { %v6317_v58 = vpop.f32.mrf.mxu1 }
 0x977   : > { %v6318_v12 = vadd.f32 %v6317_v58, %v6286_v50 }
 0x979   : > { %6323 = vst.msk [vmem:[%s480_s27 + $0x8] sm:$0x3] %vm6322_vm0, %v6318_v12  ;;  %v6325_v53 = vsel %vm6322_vm0, %v6318_v12, -inf }
 0x97a   : > { %v6326_v25 = vmax.f32 %v6324_v15, %v6325_v53 }
 0x97c   : > { %v6327_v28 = vrot.slane %v6326_v25, 4 }
 0x97e   : > { %v6328_v17 = vmax.f32 %v6326_v25, %v6327_v28 }
 0x980   : > { %v6329_v7 = vrot.slane %v6328_v17, 2 }
 0x982   : > { %v6330_v54 = vmax.f32 %v6328_v17, %v6329_v7 }
 0x984   : > { %v6331_v56 = vrot.slane %v6330_v54, 1 }
 0x986   : > { %v6332_v42 = vmax.f32 %v6330_v54, %v6331_v56 }
 0x988   : > { %v6333_v24 = vsub.f32 %v6315_v31, %v6332_v42  ;;  %v6334_v40 = vsub.f32 %v6318_v12, %v6332_v42 }
 0x98a   : > { %v6335_v2 = vmul.f32 1.442695, %v6333_v24  ;;  %v6337_v37 = vmul.f32 1.442695, %v6334_v40 }
 0x98c   : > { %7159 = vpow2.f32 %v6335_v2 }
 0x98d   : > { %7161 = vpow2.f32 %v6337_v37 }
 0x992   : > { %v7160_v0 = vpop.eup %7159 }
 0x993   : > { %v7162_v22 = vpop.eup %7161  ;;  %v6339_v29 = vsel %vm6320_vm15, %v7160_v0, 0.0 }
 0x994   : > { %v6340_v9 = vsel %vm6322_vm0, %v7162_v22, 0.0 }
 0x995   : > { %v6341_v11 = vadd.f32 %v6340_v9, %v6339_v29 }
 0x997   : > { %v6342_v8 = vrot.slane %v6341_v11, 4 }
 0x999   : > { %v6343_v5 = vadd.f32 %v6342_v8, %v6341_v11 }
 0x99b   : > { %v6344_v43 = vrot.slane %v6343_v5, 2 }
 0x99d   : > { %v6345_v63 = vadd.f32 %v6344_v43, %v6343_v5 }
 0x99f   : > { %v6346_v46 = vrot.slane %v6345_v63, 1 }
 0x9a1   : > { %v6347_v55 = vadd.f32 %v6346_v46, %v6345_v63 }
 0x9a3   : > { %7163 = vrcp.f32 %v6347_v55  ;;  %v6359_v18 = vand.u32 2147483648, %v6347_v55  ;;  %v6357_v61 = vand.u32 2147483647, %v6347_v55  ;;  %vm6353_vm2 = vweird.f32 %v6347_v55 }
 0x9a5   : > { %v6360_v1 = vor.u32 1.1754944e-38, %v6359_v18  ;;  %vm6358_vm10 = vcmp.eq.f32.partialorder %v6357_v61, 8.507059e+37 }
 0x9a9   : > { %v7164_v14 = vpop.eup %7163 }
 0x9aa   : > { %v6349_v57 = vmul.f32 %v7164_v14, %v6347_v55  ;;  %vm6354_vm1 = vweird.f32 %v7164_v14 }
 0x9ab   : > { %vm6355_vm5 = vmor %vm6353_vm2, %vm6354_vm1 }
 0x9ac   : > { %v6350_v26 = vsub.f32 1.0, %v6349_v57 }
 0x9ae   : > { %v6351_v60 = vmul.f32 %v7164_v14, %v6350_v26 }
 0x9b0   : > { %v6352_v21 = vadd.f32 %v7164_v14, %v6351_v60 }
 0x9b2   : > { %v6356_v59 = vsel %vm6355_vm5, %v7164_v14, %v6352_v21 }
 0x9b3   : > { %v6361_v38 = vsel %vm6358_vm10, %v6360_v1, %v6356_v59 }
 0x9b4   : > { %v6362_v3 = vmul.f32 %v7160_v0, %v6361_v38  ;;  %v6363_v16 = vmul.f32 %v7162_v22, %v6361_v38 }
 0x9b6   : > { %6364 = vst.msk [vmem:[%s485_s18] sm:$0xff] %vm6320_vm15, %v6362_v3 }
 0x9b7   : > { %6365 = vst.msk [vmem:[%s485_s18 + $0x8] sm:$0x3] %vm6322_vm0, %v6363_v16 }
 0x9b8 PF: > { %s25_s29 = sadd.s32 1, %s7171_s29  }
 0x9b9   : > { %p22_p5 = scmp.ge.s32.totalorder %s25_s29, 5  }
 0x9bb   :  { %24 = sbr.rel (!%p22_p5) target bundleno = 1 (0x1), region = 226 }

</bundles_post_ra>
